<compile_context>
chip_gen: v6e
topology: v6e:2x2x1
jax: 0.10.0
libtpu: 0.0.40
codegen_flags: <defaults>
</compile_context>

<pallas_src>
import functools

import jax
import jax.numpy as jnp
from jax import lax
from jax.experimental import pallas as pl
from jax.experimental.pallas import tpu as pltpu

BN_EPS = 1e-5  # PyTorch BatchNorm1d default


# ----------------------------------------------------------------------------
# In-kernel helpers
# ----------------------------------------------------------------------------
def _mm(a, w):
    """MXU matmul; activation cast to the stored weight dtype, f32 accumulation."""
    return jnp.dot(a.astype(w.dtype), w, preferred_element_type=jnp.float32)


def _bn_train(h, gamma, beta):
    """Training-mode BatchNorm1d (biased batch stats), folded to one FMA per element."""
    inv_n = 1.0 / h.shape[0]
    mean = jnp.sum(h, axis=0, keepdims=True) * inv_n
    ex2 = jnp.sum(h * h, axis=0, keepdims=True) * inv_n
    var = jnp.maximum(ex2 - mean * mean, 0.0)     # clamp guards tiny negative cancellation
    scale = gamma * lax.rsqrt(var + BN_EPS)       # [1, H]
    shift = beta - mean * scale                   # [1, H]
    return h * scale + shift


def _sigmoid(z):
    """sigmoid(z) = 0.5*tanh(0.5*z) + 0.5 : single EUP transcendental + one VALU FMA."""
    return 0.5 * jnp.tanh(0.5 * z) + 0.5


# ----------------------------------------------------------------------------
# Fused kernel: Extractor -> {Classifier softmax, Discriminator -> BCE}
# ----------------------------------------------------------------------------
def adda_fused_kernel(
    x_ref,
    we1_ref, ge1_ref, bee1_ref, we2_ref, be2_ref,                 # extractor (VMEM)
    wc1_hbm, gc1_ref, bec1_ref,                                   # classifier (big W in HBM)
    wc2_hbm, gc2_ref, bec2_ref,
    wc3_hbm, bc3_ref,
    wd1_hbm, gd1_ref, bed1_ref, wd2r_ref, bd2_ref,                # discriminator
    probs_ref, loss_ref,                                          # outputs
    wc1_buf, wc2_buf, wc3_buf, wd1_buf, sems,                     # scratch
    *, source):
    # Kick off classifier/discriminator weight DMAs (HBM -> VMEM scratch) so they overlap the
    # extractor matmuls; wait on each one right before its first use.
    pltpu.make_async_copy(wc1_hbm, wc1_buf, sems.at[0]).start()
    pltpu.make_async_copy(wc2_hbm, wc2_buf, sems.at[1]).start()
    pltpu.make_async_copy(wc3_hbm, wc3_buf, sems.at[2]).start()
    pltpu.make_async_copy(wd1_hbm, wd1_buf, sems.at[3]).start()

    # ---- Extractor: e_fc1 (bias folded into BN) -> e_bn1 -> e_sigmoid1 -> e_fc3 ----
    x = x_ref[...]
    h = _mm(x, we1_ref[...])
    s = _sigmoid(_bn_train(h, ge1_ref[...], bee1_ref[...]))
    feat = _mm(s, we2_ref[...]) + be2_ref[...]        # stays VMEM-resident; padded cols exact 0

    # ---- Classifier: c_fc1 -> c_bn1 -> c_sigmoid1 -> c_fc2 -> c_bn2 -> c_fc3 -> softmax ----
    pltpu.make_async_copy(wc1_hbm, wc1_buf, sems.at[0]).wait()
    s1 = _sigmoid(_bn_train(_mm(feat, wc1_buf[...]), gc1_ref[...], bec1_ref[...]))
    pltpu.make_async_copy(wc2_hbm, wc2_buf, sems.at[1]).wait()
    h2 = _bn_train(_mm(s1, wc2_buf[...]), gc2_ref[...], bec2_ref[...])
    pltpu.make_async_copy(wc3_hbm, wc3_buf, sems.at[2]).wait()
    logits = _mm(h2, wc3_buf[...]) + bc3_ref[...]     # padded class cols carry bias = -1e30
    m = jnp.max(logits, axis=1, keepdims=True)
    e = jnp.exp(logits - m)
    probs_ref[...] = e / jnp.sum(e, axis=1, keepdims=True)   # exact per-row divide (128 rows)

    # ---- Discriminator + BCE: d_fc1 -> d_bn1 -> d_sigmoid1 -> d_fc3 -> d_sigmoid2 -> BCE ----
    # (ZeroLayerF / ReverseLayerF are identity in the forward pass.)
    pltpu.make_async_copy(wd1_hbm, wd1_buf, sems.at[3]).wait()
    sd = _sigmoid(_bn_train(_mm(feat, wd1_buf[...]), gd1_ref[...], bed1_ref[...]))
    # d_fc3 has output width 1: elementwise mul + lane reduce (VPU/XLU), not a 1-col MXU matmul.
    z = jnp.sum(sd * wd2r_ref[...], axis=1, keepdims=True) + bd2_ref[...]   # [B, 1] logit
    # BCE(sigmoid(z), y), y=1 (source) / y=0 (target), mean reduction, via stable softplus:
    #   -log(sigmoid(z)) = softplus(-z);  -log(1 - sigmoid(z)) = softplus(z)
    t = -z if source else z
    per_sample = jnp.maximum(t, 0.0) + jnp.log(1.0 + jnp.exp(-jnp.abs(t)))
    loss_ref[...] = jnp.sum(per_sample, axis=0, keepdims=True) * (1.0 / per_sample.shape[0])


# ----------------------------------------------------------------------------
# pallas_call wrapper
# ----------------------------------------------------------------------------
def _vmem():
    return pl.BlockSpec(memory_space=pltpu.MemorySpace.VMEM)


def _hbm():
    return pl.BlockSpec(memory_space=pl.ANY)


def adda_forward(x, kernel_params, *, n_classes=4, source=True, alpha=1.0):
    """ADDA.forward: returns (class_output [B, n_classes], domain BCE loss scalar).

    ZeroLayerF / ReverseLayerF are identity in the forward pass (alpha only scales gradients),
    so `alpha` does not affect the returned values.
    """
    del alpha
    ek, ck, dk = kernel_params
    B = x.shape[0]
    in_dim_p = ek["w1"].shape[0]
    n_cls_p = ck["w3"].shape[1]
    wdt = ek["w1"].dtype

    # Pad the contraction dim of the first matmul to a multiple of 128 (lane-dense x load,
    # clean MXU K-tiling). Padded x cols multiply zero w1 rows -> exact.
    x_pad = jnp.pad(x.astype(jnp.float32), ((0, 0), (0, in_dim_p - x.shape[1])))

    kernel = functools.partial(adda_fused_kernel, source=bool(source))
    in_specs = [
        _vmem(),                                            # x
        _vmem(), _vmem(), _vmem(), _vmem(), _vmem(),        # extractor: w1 g1 be1 w2 b2
        _hbm(), _vmem(), _vmem(),                           # classifier: w1 g1 be1
        _hbm(), _vmem(), _vmem(),                           # classifier: w2 g2 be2
        _hbm(), _vmem(),                                    # classifier: w3 b3
        _hbm(), _vmem(), _vmem(), _vmem(), _vmem(),         # discrim.:  w1 g1 be1 w2r b2
    ]
    probs_pad, loss = pl.pallas_call(
        kernel,
        out_shape=(jax.ShapeDtypeStruct((B, n_cls_p), jnp.float32),
                   jax.ShapeDtypeStruct((1, 1), jnp.float32)),
        in_specs=in_specs,
        out_specs=(_vmem(), _vmem()),
        scratch_shapes=[
            pltpu.VMEM(ck["w1"].shape, wdt),
            pltpu.VMEM(ck["w2"].shape, wdt),
            pltpu.VMEM(ck["w3"].shape, wdt),
            pltpu.VMEM(dk["w1"].shape, wdt),
            pltpu.SemaphoreType.DMA((4,)),
        ],
    )(x_pad,
      ek["w1"], ek["g1"], ek["be1"], ek["w2"], ek["b2"],
      ck["w1"], ck["g1"], ck["be1"], ck["w2"], ck["g2"], ck["be2"], ck["w3"], ck["b3"],
      dk["w1"], dk["g1"], dk["be1"], dk["w2r"], dk["b2"])
    return probs_pad[:, :n_classes], loss[0, 0]


# ----------------------------------------------------------------------------
# Parameter construction (PyTorch-like init) and lane-dense padding for the kernel
# ----------------------------------------------------------------------------
def init_raw_params(key, input_dim=310, e_hid=500, feat_dim=300,
                    c_hid=500, n_classes=4, d_hid=300):
    """PyTorch-style init. BN affine is perturbed away from (1, 0) so the fold is exercised."""
    keys = iter(jax.random.split(key, 22))

    def linear(fan_in, fan_out):
        lim = 1.0 / (fan_in ** 0.5)
        w = jax.random.uniform(next(keys), (fan_in, fan_out), jnp.float32, -lim, lim)
        b = jax.random.uniform(next(keys), (fan_out,), jnp.float32, -lim, lim)
        return w, b

    def bn(dim):
        g = 1.0 + 0.1 * jax.random.uniform(next(keys), (dim,), jnp.float32, -1.0, 1.0)
        be = 0.1 * jax.random.uniform(next(keys), (dim,), jnp.float32, -1.0, 1.0)
        return g, be

    ew1, eb1 = linear(input_dim, e_hid); eg, ebe = bn(e_hid); ew2, eb2 = linear(e_hid, feat_dim)
    ep = dict(w1=ew1, b1=eb1, gamma=eg, beta=ebe, w2=ew2, b2=eb2)

    cw1, cb1 = linear(feat_dim, c_hid); cg1, cbe1 = bn(c_hid)
    cw2, cb2 = linear(c_hid, c_hid);    cg2, cbe2 = bn(c_hid)
    cw3, cb3 = linear(c_hid, n_classes)
    cp = dict(w1=cw1, b1=cb1, g1=cg1, be1=cbe1, w2=cw2, b2=cb2, g2=cg2, be2=cbe2,
              w3=cw3, b3=cb3)

    dw1, db1 = linear(feat_dim, d_hid); dg, dbe = bn(d_hid); dw2, db2 = linear(d_hid, 1)
    dp = dict(w1=dw1, b1=db1, g=dg, be=dbe, w2=dw2, b2=db2)
    return ep, cp, dp


def _round_up128(n):
    return ((n + 127) // 128) * 128


def _pad_mat(w, rows, cols, dtype):
    return jnp.pad(w, ((0, rows - w.shape[0]), (0, cols - w.shape[1]))).astype(dtype)


def _pad_row(v, cols, fill=0.0):
    pad = jnp.full((cols - v.shape[0],), fill, jnp.float32)
    return jnp.concatenate([v.astype(jnp.float32), pad]).reshape(1, -1)


def prepare_kernel_params(raw, weight_dtype=jnp.bfloat16):
    """One-time wrapper-level padding of all dims (incl. the first contraction dim) to
    multiples of 128.

    NOTE: these folded params are only valid for a TRAINING-mode BN forward — biases feeding a
    BatchNorm (e_fc1, c_fc1, c_fc2, d_fc1) are dropped because batch-mean subtraction cancels
    them exactly; an eval-mode forward with running stats must not reuse them.
    weight_dtype=jnp.bfloat16 (default) is the MXU fast path (bf16 operands, f32 accumulation);
    BN/bias/affine rows stay f32. The padded class columns of the c_fc3 bias are set to -1e30
    so the in-kernel softmax needs no padding mask (padded w3 columns are zero -> exact).
    """
    ep, cp, dp = raw
    in_p = _round_up128(ep["w1"].shape[0])       # 310 -> 384
    e_hid_p = _round_up128(ep["w1"].shape[1])    # 500 -> 512
    feat_p = _round_up128(ep["w2"].shape[1])     # 300 -> 384
    c_hid_p = _round_up128(cp["w1"].shape[1])    # 500 -> 512
    n_cls_p = _round_up128(cp["w3"].shape[1])    # 4   -> 128
    d_hid_p = _round_up128(dp["w1"].shape[1])    # 300 -> 384

    ek = dict(
        w1=_pad_mat(ep["w1"], in_p, e_hid_p, weight_dtype),
        g1=_pad_row(ep["gamma"], e_hid_p), be1=_pad_row(ep["beta"], e_hid_p),
        w2=_pad_mat(ep["w2"], e_hid_p, feat_p, weight_dtype),
        b2=_pad_row(ep["b2"], feat_p),
    )
    ck = dict(
        w1=_pad_mat(cp["w1"], feat_p, c_hid_p, weight_dtype),
        g1=_pad_row(cp["g1"], c_hid_p), be1=_pad_row(cp["be1"], c_hid_p),
        w2=_pad_mat(cp["w2"], c_hid_p, c_hid_p, weight_dtype),
        g2=_pad_row(cp["g2"], c_hid_p), be2=_pad_row(cp["be2"], c_hid_p),
        w3=_pad_mat(cp["w3"], c_hid_p, n_cls_p, weight_dtype),
        b3=_pad_row(cp["b3"], n_cls_p, fill=-1e30),   # kills padded softmax columns exactly
    )
    dk = dict(
        w1=_pad_mat(dp["w1"], feat_p, d_hid_p, weight_dtype),
        g1=_pad_row(dp["g"], d_hid_p), be1=_pad_row(dp["be"], d_hid_p),
        w2r=_pad_row(dp["w2"][:, 0], d_hid_p),        # width-1 projection stored as a lane row
        b2=dp["b2"].reshape(1, 1).astype(jnp.float32),
    )
    return ek, ck, dk


# ----------------------------------------------------------------------------
# Pure-JAX reference (literal PyTorch semantics: all biases, two-pass BN, exact sigmoid/softmax)
# ----------------------------------------------------------------------------
def _bn_ref(h, gamma, beta):
    mean = jnp.mean(h, axis=0, keepdims=True)
    var = jnp.mean((h - mean) ** 2, axis=0, keepdims=True)
    return (h - mean) / jnp.sqrt(var + BN_EPS) * gamma + beta


def reference_adda_forward(x, raw, source=True):
    ep, cp, dp = raw

    def dot(a, b):
        return jnp.dot(a, b, precision=lax.Precision.HIGHEST)

    # Extractor
    h = dot(x, ep["w1"]) + ep["b1"]
    s = jax.nn.sigmoid(_bn_ref(h, ep["gamma"], ep["beta"]))
    feat = dot(s, ep["w2"]) + ep["b2"]
    # Classifier
    h1 = dot(feat, cp["w1"]) + cp["b1"]
    s1 = jax.nn.sigmoid(_bn_ref(h1, cp["g1"], cp["be1"]))
    h2 = _bn_ref(dot(s1, cp["w2"]) + cp["b2"], cp["g2"], cp["be2"])
    logits = dot(h2, cp["w3"]) + cp["b3"]
    probs = jax.nn.softmax(logits, axis=1)
    # Discriminator + BCE (Zero/ReverseLayerF are identity in forward)
    hd = dot(feat, dp["w1"]) + dp["b1"]
    sd = jax.nn.sigmoid(_bn_ref(hd, dp["g"], dp["be"]))
    p = jax.nn.sigmoid(dot(sd, dp["w2"]) + dp["b2"])[:, 0]
    if source:
        loss = -jnp.mean(jnp.log(p))
    else:
        loss = -jnp.mean(jnp.log(1.0 - p))
    return probs, loss


# ----------------------------------------------------------------------------
if __name__ == "__main__":
    # Module default dims; B=128 amortizes per-call overhead and is a multiple of 8 so no
    # sublane padding corrupts the BatchNorm batch statistics.
    B = 128
    INPUT_DIM, E_HID, FEAT_DIM = 310, 500, 300   # Extractor defaults
    C_HID, N_CLASSES = 500, 4                    # Classifier defaults
    D_HID = 300                                  # Discriminator defaults

    key = jax.random.PRNGKey(0)
    k_x, k_p = jax.random.split(key)
    x = jax.random.normal(k_x, (B, INPUT_DIM), jnp.float32)

    raw = init_raw_params(k_p, INPUT_DIM, E_HID, FEAT_DIM, C_HID, N_CLASSES, D_HID)
    # bf16 matmul operands (f32 accumulation) = MXU fast path on v5e/v6e/v7x.
    kparams = prepare_kernel_params(raw, weight_dtype=jnp.bfloat16)

    for source in (True, False):
        cls_out, dom_loss = adda_forward(x, kparams, n_classes=N_CLASSES, source=source)
        cls_out = jax.block_until_ready(cls_out)
        dom_loss_f = float(dom_loss)

        ref_cls, ref_loss = reference_adda_forward(x, raw, source=source)
        assert cls_out.shape == (B, N_CLASSES)
        assert bool(jnp.all(jnp.isfinite(cls_out)))
        # exact softmax divide -> rows sum to 1 up to f32 rounding
        assert jnp.allclose(jnp.sum(cls_out, axis=1), 1.0, atol=1e-3)
        # tolerances cover the bf16 matmul-operand path (f32 accumulation)
        assert jnp.allclose(cls_out, ref_cls, atol=2e-2, rtol=0.0), "class_output mismatch"
        assert abs(dom_loss_f - float(ref_loss)) < 2e-2, "domain loss mismatch"

    print("KERNEL_OK")
</pallas_src>

<mosaic_0001>
module attributes {stable_mosaic.version = 11 : i64} {
  func.func @adda_fused_kernel(%arg0: memref<128x384xf32, #tpu.memory_space<vmem>>, %arg1: memref<384x512xbf16, #tpu.memory_space<vmem>>, %arg2: memref<1x512xf32, #tpu.memory_space<vmem>>, %arg3: memref<1x512xf32, #tpu.memory_space<vmem>>, %arg4: memref<512x384xbf16, #tpu.memory_space<vmem>>, %arg5: memref<1x384xf32, #tpu.memory_space<vmem>>, %arg6: memref<384x512xbf16, #tpu.memory_space<any>>, %arg7: memref<1x512xf32, #tpu.memory_space<vmem>>, %arg8: memref<1x512xf32, #tpu.memory_space<vmem>>, %arg9: memref<512x512xbf16, #tpu.memory_space<any>>, %arg10: memref<1x512xf32, #tpu.memory_space<vmem>>, %arg11: memref<1x512xf32, #tpu.memory_space<vmem>>, %arg12: memref<512x128xbf16, #tpu.memory_space<any>>, %arg13: memref<1x128xf32, #tpu.memory_space<vmem>>, %arg14: memref<384x384xbf16, #tpu.memory_space<any>>, %arg15: memref<1x384xf32, #tpu.memory_space<vmem>>, %arg16: memref<1x384xf32, #tpu.memory_space<vmem>>, %arg17: memref<1x384xf32, #tpu.memory_space<vmem>>, %arg18: memref<1x1xf32, #tpu.memory_space<vmem>>, %arg19: memref<128x128xf32, #tpu.memory_space<vmem>>, %arg20: memref<1x1xf32, #tpu.memory_space<vmem>>, %arg21: memref<384x512xbf16, #tpu.memory_space<vmem>>, %arg22: memref<512x512xbf16, #tpu.memory_space<vmem>>, %arg23: memref<512x128xbf16, #tpu.memory_space<vmem>>, %arg24: memref<384x384xbf16, #tpu.memory_space<vmem>>, %arg25: memref<4x!tpu.dma_semaphore, #tpu.memory_space<semaphore_mem>>) attributes {dimension_semantics = [], scalar_prefetch = 0 : i64, scratch_operands = 5 : i64, tpu.core_type = #tpu.core_type<tc>} {
    %c0_i32 = arith.constant 0 : i32
    %0 = tpu.memref_slice %arg25[%c0_i32] : memref<4x!tpu.dma_semaphore, #tpu.memory_space<semaphore_mem>> -> memref<1x!tpu.dma_semaphore, #tpu.memory_space<semaphore_mem>>
    %1 = tpu.memref_squeeze %0 : memref<1x!tpu.dma_semaphore, #tpu.memory_space<semaphore_mem>> -> memref<!tpu.dma_semaphore, #tpu.memory_space<semaphore_mem>>
    tpu.enqueue_dma source(%arg6 : memref<384x512xbf16, #tpu.memory_space<any>>) target(%arg21 : memref<384x512xbf16, #tpu.memory_space<vmem>>) target_semaphore(%1 : memref<!tpu.dma_semaphore, #tpu.memory_space<semaphore_mem>>)
    %c1_i32 = arith.constant 1 : i32
    %2 = tpu.memref_slice %arg25[%c1_i32] : memref<4x!tpu.dma_semaphore, #tpu.memory_space<semaphore_mem>> -> memref<1x!tpu.dma_semaphore, #tpu.memory_space<semaphore_mem>>
    %3 = tpu.memref_squeeze %2 : memref<1x!tpu.dma_semaphore, #tpu.memory_space<semaphore_mem>> -> memref<!tpu.dma_semaphore, #tpu.memory_space<semaphore_mem>>
    tpu.enqueue_dma source(%arg9 : memref<512x512xbf16, #tpu.memory_space<any>>) target(%arg22 : memref<512x512xbf16, #tpu.memory_space<vmem>>) target_semaphore(%3 : memref<!tpu.dma_semaphore, #tpu.memory_space<semaphore_mem>>)
    %c2_i32 = arith.constant 2 : i32
    %4 = tpu.memref_slice %arg25[%c2_i32] : memref<4x!tpu.dma_semaphore, #tpu.memory_space<semaphore_mem>> -> memref<1x!tpu.dma_semaphore, #tpu.memory_space<semaphore_mem>>
    %5 = tpu.memref_squeeze %4 : memref<1x!tpu.dma_semaphore, #tpu.memory_space<semaphore_mem>> -> memref<!tpu.dma_semaphore, #tpu.memory_space<semaphore_mem>>
    tpu.enqueue_dma source(%arg12 : memref<512x128xbf16, #tpu.memory_space<any>>) target(%arg23 : memref<512x128xbf16, #tpu.memory_space<vmem>>) target_semaphore(%5 : memref<!tpu.dma_semaphore, #tpu.memory_space<semaphore_mem>>)
    %c3_i32 = arith.constant 3 : i32
    %6 = tpu.memref_slice %arg25[%c3_i32] : memref<4x!tpu.dma_semaphore, #tpu.memory_space<semaphore_mem>> -> memref<1x!tpu.dma_semaphore, #tpu.memory_space<semaphore_mem>>
    %7 = tpu.memref_squeeze %6 : memref<1x!tpu.dma_semaphore, #tpu.memory_space<semaphore_mem>> -> memref<!tpu.dma_semaphore, #tpu.memory_space<semaphore_mem>>
    tpu.enqueue_dma source(%arg14 : memref<384x384xbf16, #tpu.memory_space<any>>) target(%arg24 : memref<384x384xbf16, #tpu.memory_space<vmem>>) target_semaphore(%7 : memref<!tpu.dma_semaphore, #tpu.memory_space<semaphore_mem>>)
    %c0 = arith.constant 0 : index
    %c0_0 = arith.constant 0 : index
    %8 = vector.load %arg0[%c0, %c0_0] : memref<128x384xf32, #tpu.memory_space<vmem>>, vector<128x384xf32>
    %c0_1 = arith.constant 0 : index
    %c0_2 = arith.constant 0 : index
    %9 = vector.load %arg1[%c0_1, %c0_2] : memref<384x512xbf16, #tpu.memory_space<vmem>>, vector<384x512xbf16>
    %10 = arith.truncf %8 : vector<128x384xf32> to vector<128x384xbf16>
    %cst = arith.constant dense<0.000000e+00> : vector<128x512xf32>
    %11 = tpu.matmul %10, %9, %cst {dimension_numbers = #tpu.dot_dimension_numbers<[1], [0], [0], [1], [0, 0, 1, 1], [], []>} : vector<128x384xbf16>, vector<384x512xbf16>, vector<128x512xf32> -> vector<128x512xf32>
    %c0_3 = arith.constant 0 : index
    %c0_4 = arith.constant 0 : index
    %12 = vector.load %arg2[%c0_3, %c0_4] : memref<1x512xf32, #tpu.memory_space<vmem>>, vector<1x512xf32>
    %c0_5 = arith.constant 0 : index
    %c0_6 = arith.constant 0 : index
    %13 = vector.load %arg3[%c0_5, %c0_6] : memref<1x512xf32, #tpu.memory_space<vmem>>, vector<1x512xf32>
    %cst_7 = arith.constant dense<0.000000e+00> : vector<512xf32>
    %14 = vector.multi_reduction <add>, %11, %cst_7 [0] : vector<128x512xf32> to vector<512xf32>
    %15 = vector.shape_cast %14 : vector<512xf32> to vector<1x512xf32>
    %cst_8 = arith.constant 7.812500e-03 : f32
    %16 = vector.broadcast %cst_8 : f32 to vector<1x512xf32>
    %17 = arith.mulf %15, %16 : vector<1x512xf32>
    %18 = arith.mulf %11, %11 : vector<128x512xf32>
    %cst_9 = arith.constant dense<0.000000e+00> : vector<512xf32>
    %19 = vector.multi_reduction <add>, %18, %cst_9 [0] : vector<128x512xf32> to vector<512xf32>
    %20 = vector.shape_cast %19 : vector<512xf32> to vector<1x512xf32>
    %cst_10 = arith.constant 7.812500e-03 : f32
    %21 = vector.broadcast %cst_10 : f32 to vector<1x512xf32>
    %22 = arith.mulf %20, %21 : vector<1x512xf32>
    %23 = arith.mulf %17, %17 : vector<1x512xf32>
    %24 = arith.subf %22, %23 : vector<1x512xf32>
    %cst_11 = arith.constant 0.000000e+00 : f32
    %25 = vector.broadcast %cst_11 : f32 to vector<1x512xf32>
    %26 = arith.maximumf %24, %25 : vector<1x512xf32>
    %cst_12 = arith.constant 9.99999974E-6 : f32
    %27 = vector.broadcast %cst_12 : f32 to vector<1x512xf32>
    %28 = arith.addf %26, %27 : vector<1x512xf32>
    %29 = math.rsqrt %28 : vector<1x512xf32>
    %30 = arith.mulf %12, %29 : vector<1x512xf32>
    %31 = arith.mulf %17, %30 : vector<1x512xf32>
    %32 = arith.subf %13, %31 : vector<1x512xf32>
    %33 = vector.broadcast %30 : vector<1x512xf32> to vector<128x512xf32>
    %34 = arith.mulf %11, %33 : vector<128x512xf32>
    %35 = vector.broadcast %32 : vector<1x512xf32> to vector<128x512xf32>
    %36 = arith.addf %34, %35 : vector<128x512xf32>
    %cst_13 = arith.constant 5.000000e-01 : f32
    %37 = vector.broadcast %cst_13 : f32 to vector<128x512xf32>
    %38 = arith.mulf %37, %36 : vector<128x512xf32>
    %39 = math.tanh %38 : vector<128x512xf32>
    %cst_14 = arith.constant 5.000000e-01 : f32
    %40 = vector.broadcast %cst_14 : f32 to vector<128x512xf32>
    %41 = arith.mulf %40, %39 : vector<128x512xf32>
    %cst_15 = arith.constant 5.000000e-01 : f32
    %42 = vector.broadcast %cst_15 : f32 to vector<128x512xf32>
    %43 = arith.addf %41, %42 : vector<128x512xf32>
    %c0_16 = arith.constant 0 : index
    %c0_17 = arith.constant 0 : index
    %44 = vector.load %arg4[%c0_16, %c0_17] : memref<512x384xbf16, #tpu.memory_space<vmem>>, vector<512x384xbf16>
    %45 = arith.truncf %43 : vector<128x512xf32> to vector<128x512xbf16>
    %cst_18 = arith.constant dense<0.000000e+00> : vector<128x384xf32>
    %46 = tpu.matmul %45, %44, %cst_18 {dimension_numbers = #tpu.dot_dimension_numbers<[1], [0], [0], [1], [0, 0, 1, 1], [], []>} : vector<128x512xbf16>, vector<512x384xbf16>, vector<128x384xf32> -> vector<128x384xf32>
    %c0_19 = arith.constant 0 : index
    %c0_20 = arith.constant 0 : index
    %47 = vector.load %arg5[%c0_19, %c0_20] : memref<1x384xf32, #tpu.memory_space<vmem>>, vector<1x384xf32>
    %48 = vector.broadcast %47 : vector<1x384xf32> to vector<128x384xf32>
    %49 = arith.addf %46, %48 : vector<128x384xf32>
    %c0_i32_21 = arith.constant 0 : i32
    %50 = tpu.memref_slice %arg25[%c0_i32_21] : memref<4x!tpu.dma_semaphore, #tpu.memory_space<semaphore_mem>> -> memref<1x!tpu.dma_semaphore, #tpu.memory_space<semaphore_mem>>
    %51 = tpu.memref_squeeze %50 : memref<1x!tpu.dma_semaphore, #tpu.memory_space<semaphore_mem>> -> memref<!tpu.dma_semaphore, #tpu.memory_space<semaphore_mem>>
    tpu.wait_dma2 semaphore(%51 : memref<!tpu.dma_semaphore, #tpu.memory_space<semaphore_mem>>) src(%arg6 : memref<384x512xbf16, #tpu.memory_space<any>>) dst(%arg21 : memref<384x512xbf16, #tpu.memory_space<vmem>>)
    %c0_22 = arith.constant 0 : index
    %c0_23 = arith.constant 0 : index
    %52 = vector.load %arg21[%c0_22, %c0_23] : memref<384x512xbf16, #tpu.memory_space<vmem>>, vector<384x512xbf16>
    %53 = arith.truncf %49 : vector<128x384xf32> to vector<128x384xbf16>
    %cst_24 = arith.constant dense<0.000000e+00> : vector<128x512xf32>
    %54 = tpu.matmul %53, %52, %cst_24 {dimension_numbers = #tpu.dot_dimension_numbers<[1], [0], [0], [1], [0, 0, 1, 1], [], []>} : vector<128x384xbf16>, vector<384x512xbf16>, vector<128x512xf32> -> vector<128x512xf32>
    %c0_25 = arith.constant 0 : index
    %c0_26 = arith.constant 0 : index
    %55 = vector.load %arg7[%c0_25, %c0_26] : memref<1x512xf32, #tpu.memory_space<vmem>>, vector<1x512xf32>
    %c0_27 = arith.constant 0 : index
    %c0_28 = arith.constant 0 : index
    %56 = vector.load %arg8[%c0_27, %c0_28] : memref<1x512xf32, #tpu.memory_space<vmem>>, vector<1x512xf32>
    %cst_29 = arith.constant dense<0.000000e+00> : vector<512xf32>
    %57 = vector.multi_reduction <add>, %54, %cst_29 [0] : vector<128x512xf32> to vector<512xf32>
    %58 = vector.shape_cast %57 : vector<512xf32> to vector<1x512xf32>
    %cst_30 = arith.constant 7.812500e-03 : f32
    %59 = vector.broadcast %cst_30 : f32 to vector<1x512xf32>
    %60 = arith.mulf %58, %59 : vector<1x512xf32>
    %61 = arith.mulf %54, %54 : vector<128x512xf32>
    %cst_31 = arith.constant dense<0.000000e+00> : vector<512xf32>
    %62 = vector.multi_reduction <add>, %61, %cst_31 [0] : vector<128x512xf32> to vector<512xf32>
    %63 = vector.shape_cast %62 : vector<512xf32> to vector<1x512xf32>
    %cst_32 = arith.constant 7.812500e-03 : f32
    %64 = vector.broadcast %cst_32 : f32 to vector<1x512xf32>
    %65 = arith.mulf %63, %64 : vector<1x512xf32>
    %66 = arith.mulf %60, %60 : vector<1x512xf32>
    %67 = arith.subf %65, %66 : vector<1x512xf32>
    %cst_33 = arith.constant 0.000000e+00 : f32
    %68 = vector.broadcast %cst_33 : f32 to vector<1x512xf32>
    %69 = arith.maximumf %67, %68 : vector<1x512xf32>
    %cst_34 = arith.constant 9.99999974E-6 : f32
    %70 = vector.broadcast %cst_34 : f32 to vector<1x512xf32>
    %71 = arith.addf %69, %70 : vector<1x512xf32>
    %72 = math.rsqrt %71 : vector<1x512xf32>
    %73 = arith.mulf %55, %72 : vector<1x512xf32>
    %74 = arith.mulf %60, %73 : vector<1x512xf32>
    %75 = arith.subf %56, %74 : vector<1x512xf32>
    %76 = vector.broadcast %73 : vector<1x512xf32> to vector<128x512xf32>
    %77 = arith.mulf %54, %76 : vector<128x512xf32>
    %78 = vector.broadcast %75 : vector<1x512xf32> to vector<128x512xf32>
    %79 = arith.addf %77, %78 : vector<128x512xf32>
    %cst_35 = arith.constant 5.000000e-01 : f32
    %80 = vector.broadcast %cst_35 : f32 to vector<128x512xf32>
    %81 = arith.mulf %80, %79 : vector<128x512xf32>
    %82 = math.tanh %81 : vector<128x512xf32>
    %cst_36 = arith.constant 5.000000e-01 : f32
    %83 = vector.broadcast %cst_36 : f32 to vector<128x512xf32>
    %84 = arith.mulf %83, %82 : vector<128x512xf32>
    %cst_37 = arith.constant 5.000000e-01 : f32
    %85 = vector.broadcast %cst_37 : f32 to vector<128x512xf32>
    %86 = arith.addf %84, %85 : vector<128x512xf32>
    %c1_i32_38 = arith.constant 1 : i32
    %87 = tpu.memref_slice %arg25[%c1_i32_38] : memref<4x!tpu.dma_semaphore, #tpu.memory_space<semaphore_mem>> -> memref<1x!tpu.dma_semaphore, #tpu.memory_space<semaphore_mem>>
    %88 = tpu.memref_squeeze %87 : memref<1x!tpu.dma_semaphore, #tpu.memory_space<semaphore_mem>> -> memref<!tpu.dma_semaphore, #tpu.memory_space<semaphore_mem>>
    tpu.wait_dma2 semaphore(%88 : memref<!tpu.dma_semaphore, #tpu.memory_space<semaphore_mem>>) src(%arg9 : memref<512x512xbf16, #tpu.memory_space<any>>) dst(%arg22 : memref<512x512xbf16, #tpu.memory_space<vmem>>)
    %c0_39 = arith.constant 0 : index
    %c0_40 = arith.constant 0 : index
    %89 = vector.load %arg22[%c0_39, %c0_40] : memref<512x512xbf16, #tpu.memory_space<vmem>>, vector<512x512xbf16>
    %90 = arith.truncf %86 : vector<128x512xf32> to vector<128x512xbf16>
    %cst_41 = arith.constant dense<0.000000e+00> : vector<128x512xf32>
    %91 = tpu.matmul %90, %89, %cst_41 {dimension_numbers = #tpu.dot_dimension_numbers<[1], [0], [0], [1], [0, 0, 1, 1], [], []>} : vector<128x512xbf16>, vector<512x512xbf16>, vector<128x512xf32> -> vector<128x512xf32>
    %c0_42 = arith.constant 0 : index
    %c0_43 = arith.constant 0 : index
    %92 = vector.load %arg10[%c0_42, %c0_43] : memref<1x512xf32, #tpu.memory_space<vmem>>, vector<1x512xf32>
    %c0_44 = arith.constant 0 : index
    %c0_45 = arith.constant 0 : index
    %93 = vector.load %arg11[%c0_44, %c0_45] : memref<1x512xf32, #tpu.memory_space<vmem>>, vector<1x512xf32>
    %cst_46 = arith.constant dense<0.000000e+00> : vector<512xf32>
    %94 = vector.multi_reduction <add>, %91, %cst_46 [0] : vector<128x512xf32> to vector<512xf32>
    %95 = vector.shape_cast %94 : vector<512xf32> to vector<1x512xf32>
    %cst_47 = arith.constant 7.812500e-03 : f32
    %96 = vector.broadcast %cst_47 : f32 to vector<1x512xf32>
    %97 = arith.mulf %95, %96 : vector<1x512xf32>
    %98 = arith.mulf %91, %91 : vector<128x512xf32>
    %cst_48 = arith.constant dense<0.000000e+00> : vector<512xf32>
    %99 = vector.multi_reduction <add>, %98, %cst_48 [0] : vector<128x512xf32> to vector<512xf32>
    %100 = vector.shape_cast %99 : vector<512xf32> to vector<1x512xf32>
    %cst_49 = arith.constant 7.812500e-03 : f32
    %101 = vector.broadcast %cst_49 : f32 to vector<1x512xf32>
    %102 = arith.mulf %100, %101 : vector<1x512xf32>
    %103 = arith.mulf %97, %97 : vector<1x512xf32>
    %104 = arith.subf %102, %103 : vector<1x512xf32>
    %cst_50 = arith.constant 0.000000e+00 : f32
    %105 = vector.broadcast %cst_50 : f32 to vector<1x512xf32>
    %106 = arith.maximumf %104, %105 : vector<1x512xf32>
    %cst_51 = arith.constant 9.99999974E-6 : f32
    %107 = vector.broadcast %cst_51 : f32 to vector<1x512xf32>
    %108 = arith.addf %106, %107 : vector<1x512xf32>
    %109 = math.rsqrt %108 : vector<1x512xf32>
    %110 = arith.mulf %92, %109 : vector<1x512xf32>
    %111 = arith.mulf %97, %110 : vector<1x512xf32>
    %112 = arith.subf %93, %111 : vector<1x512xf32>
    %113 = vector.broadcast %110 : vector<1x512xf32> to vector<128x512xf32>
    %114 = arith.mulf %91, %113 : vector<128x512xf32>
    %115 = vector.broadcast %112 : vector<1x512xf32> to vector<128x512xf32>
    %116 = arith.addf %114, %115 : vector<128x512xf32>
    %c2_i32_52 = arith.constant 2 : i32
    %117 = tpu.memref_slice %arg25[%c2_i32_52] : memref<4x!tpu.dma_semaphore, #tpu.memory_space<semaphore_mem>> -> memref<1x!tpu.dma_semaphore, #tpu.memory_space<semaphore_mem>>
    %118 = tpu.memref_squeeze %117 : memref<1x!tpu.dma_semaphore, #tpu.memory_space<semaphore_mem>> -> memref<!tpu.dma_semaphore, #tpu.memory_space<semaphore_mem>>
    tpu.wait_dma2 semaphore(%118 : memref<!tpu.dma_semaphore, #tpu.memory_space<semaphore_mem>>) src(%arg12 : memref<512x128xbf16, #tpu.memory_space<any>>) dst(%arg23 : memref<512x128xbf16, #tpu.memory_space<vmem>>)
    %c0_53 = arith.constant 0 : index
    %c0_54 = arith.constant 0 : index
    %119 = vector.load %arg23[%c0_53, %c0_54] : memref<512x128xbf16, #tpu.memory_space<vmem>>, vector<512x128xbf16>
    %120 = arith.truncf %116 : vector<128x512xf32> to vector<128x512xbf16>
    %cst_55 = arith.constant dense<0.000000e+00> : vector<128x128xf32>
    %121 = tpu.matmul %120, %119, %cst_55 {dimension_numbers = #tpu.dot_dimension_numbers<[1], [0], [0], [1], [0, 0, 1, 1], [], []>} : vector<128x512xbf16>, vector<512x128xbf16>, vector<128x128xf32> -> vector<128x128xf32>
    %c0_56 = arith.constant 0 : index
    %c0_57 = arith.constant 0 : index
    %122 = vector.load %arg13[%c0_56, %c0_57] : memref<1x128xf32, #tpu.memory_space<vmem>>, vector<1x128xf32>
    %123 = vector.broadcast %122 : vector<1x128xf32> to vector<128x128xf32>
    %124 = arith.addf %121, %123 : vector<128x128xf32>
    %cst_58 = arith.constant dense<0xFF800000> : vector<128xf32>
    %125 = vector.multi_reduction <maximumf>, %124, %cst_58 [1] : vector<128x128xf32> to vector<128xf32>
    %126 = vector.shape_cast %125 : vector<128xf32> to vector<128x1xf32>
    %127 = vector.broadcast %126 : vector<128x1xf32> to vector<128x128xf32>
    %128 = arith.subf %124, %127 : vector<128x128xf32>
    %129 = math.exp %128 : vector<128x128xf32>
    %cst_59 = arith.constant dense<0.000000e+00> : vector<128xf32>
    %130 = vector.multi_reduction <add>, %129, %cst_59 [1] : vector<128x128xf32> to vector<128xf32>
    %131 = vector.shape_cast %130 : vector<128xf32> to vector<128x1xf32>
    %132 = vector.broadcast %131 : vector<128x1xf32> to vector<128x128xf32>
    %133 = arith.divf %129, %132 : vector<128x128xf32>
    %c0_60 = arith.constant 0 : index
    %c0_61 = arith.constant 0 : index
    %134 = vector.load %arg19[%c0_60, %c0_61] : memref<128x128xf32, #tpu.memory_space<vmem>>, vector<128x128xf32>
    tpu.vector_store %arg19[%c0_60, %c0_61], %133 {strides = array<i32>} : memref<128x128xf32, #tpu.memory_space<vmem>>, vector<128x128xf32>,
    %c3_i32_62 = arith.constant 3 : i32
    %135 = tpu.memref_slice %arg25[%c3_i32_62] : memref<4x!tpu.dma_semaphore, #tpu.memory_space<semaphore_mem>> -> memref<1x!tpu.dma_semaphore, #tpu.memory_space<semaphore_mem>>
    %136 = tpu.memref_squeeze %135 : memref<1x!tpu.dma_semaphore, #tpu.memory_space<semaphore_mem>> -> memref<!tpu.dma_semaphore, #tpu.memory_space<semaphore_mem>>
    tpu.wait_dma2 semaphore(%136 : memref<!tpu.dma_semaphore, #tpu.memory_space<semaphore_mem>>) src(%arg14 : memref<384x384xbf16, #tpu.memory_space<any>>) dst(%arg24 : memref<384x384xbf16, #tpu.memory_space<vmem>>)
    %c0_63 = arith.constant 0 : index
    %c0_64 = arith.constant 0 : index
    %137 = vector.load %arg24[%c0_63, %c0_64] : memref<384x384xbf16, #tpu.memory_space<vmem>>, vector<384x384xbf16>
    %138 = arith.truncf %49 : vector<128x384xf32> to vector<128x384xbf16>
    %cst_65 = arith.constant dense<0.000000e+00> : vector<128x384xf32>
    %139 = tpu.matmul %138, %137, %cst_65 {dimension_numbers = #tpu.dot_dimension_numbers<[1], [0], [0], [1], [0, 0, 1, 1], [], []>} : vector<128x384xbf16>, vector<384x384xbf16>, vector<128x384xf32> -> vector<128x384xf32>
    %c0_66 = arith.constant 0 : index
    %c0_67 = arith.constant 0 : index
    %140 = vector.load %arg15[%c0_66, %c0_67] : memref<1x384xf32, #tpu.memory_space<vmem>>, vector<1x384xf32>
    %c0_68 = arith.constant 0 : index
    %c0_69 = arith.constant 0 : index
    %141 = vector.load %arg16[%c0_68, %c0_69] : memref<1x384xf32, #tpu.memory_space<vmem>>, vector<1x384xf32>
    %cst_70 = arith.constant dense<0.000000e+00> : vector<384xf32>
    %142 = vector.multi_reduction <add>, %139, %cst_70 [0] : vector<128x384xf32> to vector<384xf32>
    %143 = vector.shape_cast %142 : vector<384xf32> to vector<1x384xf32>
    %cst_71 = arith.constant 7.812500e-03 : f32
    %144 = vector.broadcast %cst_71 : f32 to vector<1x384xf32>
    %145 = arith.mulf %143, %144 : vector<1x384xf32>
    %146 = arith.mulf %139, %139 : vector<128x384xf32>
    %cst_72 = arith.constant dense<0.000000e+00> : vector<384xf32>
    %147 = vector.multi_reduction <add>, %146, %cst_72 [0] : vector<128x384xf32> to vector<384xf32>
    %148 = vector.shape_cast %147 : vector<384xf32> to vector<1x384xf32>
    %cst_73 = arith.constant 7.812500e-03 : f32
    %149 = vector.broadcast %cst_73 : f32 to vector<1x384xf32>
    %150 = arith.mulf %148, %149 : vector<1x384xf32>
    %151 = arith.mulf %145, %145 : vector<1x384xf32>
    %152 = arith.subf %150, %151 : vector<1x384xf32>
    %cst_74 = arith.constant 0.000000e+00 : f32
    %153 = vector.broadcast %cst_74 : f32 to vector<1x384xf32>
    %154 = arith.maximumf %152, %153 : vector<1x384xf32>
    %cst_75 = arith.constant 9.99999974E-6 : f32
    %155 = vector.broadcast %cst_75 : f32 to vector<1x384xf32>
    %156 = arith.addf %154, %155 : vector<1x384xf32>
    %157 = math.rsqrt %156 : vector<1x384xf32>
    %158 = arith.mulf %140, %157 : vector<1x384xf32>
    %159 = arith.mulf %145, %158 : vector<1x384xf32>
    %160 = arith.subf %141, %159 : vector<1x384xf32>
    %161 = vector.broadcast %158 : vector<1x384xf32> to vector<128x384xf32>
    %162 = arith.mulf %139, %161 : vector<128x384xf32>
    %163 = vector.broadcast %160 : vector<1x384xf32> to vector<128x384xf32>
    %164 = arith.addf %162, %163 : vector<128x384xf32>
    %cst_76 = arith.constant 5.000000e-01 : f32
    %165 = vector.broadcast %cst_76 : f32 to vector<128x384xf32>
    %166 = arith.mulf %165, %164 : vector<128x384xf32>
    %167 = math.tanh %166 : vector<128x384xf32>
    %cst_77 = arith.constant 5.000000e-01 : f32
    %168 = vector.broadcast %cst_77 : f32 to vector<128x384xf32>
    %169 = arith.mulf %168, %167 : vector<128x384xf32>
    %cst_78 = arith.constant 5.000000e-01 : f32
    %170 = vector.broadcast %cst_78 : f32 to vector<128x384xf32>
    %171 = arith.addf %169, %170 : vector<128x384xf32>
    %c0_79 = arith.constant 0 : index
    %c0_80 = arith.constant 0 : index
    %172 = vector.load %arg17[%c0_79, %c0_80] : memref<1x384xf32, #tpu.memory_space<vmem>>, vector<1x384xf32>
    %173 = vector.broadcast %172 : vector<1x384xf32> to vector<128x384xf32>
    %174 = arith.mulf %171, %173 : vector<128x384xf32>
    %cst_81 = arith.constant dense<0.000000e+00> : vector<128xf32>
    %175 = vector.multi_reduction <add>, %174, %cst_81 [1] : vector<128x384xf32> to vector<128xf32>
    %176 = vector.shape_cast %175 : vector<128xf32> to vector<128x1xf32>
    %c0_82 = arith.constant 0 : index
    %c0_83 = arith.constant 0 : index
    %177 = vector.load %arg18[%c0_82, %c0_83] : memref<1x1xf32, #tpu.memory_space<vmem>>, vector<1x1xf32>
    %178 = vector.broadcast %177 : vector<1x1xf32> to vector<128x1xf32>
    %179 = arith.addf %176, %178 : vector<128x1xf32>
    %cst_84 = arith.constant 0.000000e+00 : f32
    %180 = vector.broadcast %cst_84 : f32 to vector<128x1xf32>
    %181 = arith.subf %180, %179 : vector<128x1xf32>
    %cst_85 = arith.constant 0.000000e+00 : f32
    %182 = vector.broadcast %cst_85 : f32 to vector<128x1xf32>
    %183 = arith.maximumf %181, %182 : vector<128x1xf32>
    %184 = math.absf %181 : vector<128x1xf32>
    %cst_86 = arith.constant 0.000000e+00 : f32
    %185 = vector.broadcast %cst_86 : f32 to vector<128x1xf32>
    %186 = arith.subf %185, %184 : vector<128x1xf32>
    %187 = math.exp %186 : vector<128x1xf32>
    %cst_87 = arith.constant 1.000000e+00 : f32
    %188 = vector.broadcast %cst_87 : f32 to vector<128x1xf32>
    %189 = arith.addf %188, %187 : vector<128x1xf32>
    %190 = math.log %189 : vector<128x1xf32>
    %191 = arith.addf %183, %190 : vector<128x1xf32>
    %cst_88 = arith.constant dense<0.000000e+00> : vector<1xf32>
    %192 = vector.multi_reduction <add>, %191, %cst_88 [0] : vector<128x1xf32> to vector<1xf32>
    %193 = vector.shape_cast %192 : vector<1xf32> to vector<1x1xf32>
    %cst_89 = arith.constant 7.812500e-03 : f32
    %194 = vector.broadcast %cst_89 : f32 to vector<1x1xf32>
    %195 = arith.mulf %193, %194 : vector<1x1xf32>
    %c0_90 = arith.constant 0 : index
    %c0_91 = arith.constant 0 : index
    %196 = vector.load %arg20[%c0_90, %c0_91] : memref<1x1xf32, #tpu.memory_space<vmem>>, vector<1x1xf32>
    tpu.vector_store %arg20[%c0_90, %c0_91], %195 {strides = array<i32>} : memref<1x1xf32, #tpu.memory_space<vmem>>, vector<1x1xf32>,
    return
  }
}

</mosaic_0001>

<bundles_post_ra>
// kernel: tpu_custom_call.1
= control target key start
LH: loop header
LB: loop body
LE: loop exit
PB: predicated region body
PF: predicated region fallthrough
CT: control target
= control target key end

     0   :  { %s16695_s0 = inlined_call_operand.hbm [shape: f32[128,384], index: 0, kind: input, shape index: {}]   ;;  %s16696_s1 = inlined_call_operand.hbm [shape: bf16[384,512], index: 1, kind: input, shape index: {}]   ;;  %s16697_s2 = inlined_call_operand.vmem [shape: f32[1,512], index: 2, kind: input, shape index: {}]   ;;  %s16698_s3 = inlined_call_operand.hbm [shape: f32[1,512], index: 3, kind: input, shape index: {}]   ;;  %s16699_s4 = inlined_call_operand.hbm [shape: bf16[512,384], index: 4, kind: input, shape index: {}]   ;;  %s16700_s5 = inlined_call_operand.hbm [shape: f32[1,384], index: 5, kind: input, shape index: {}]   ;;  %s16701_s6 = inlined_call_operand.hbm [shape: bf16[384,512], index: 6, kind: input, shape index: {}]   ;;  %s16702_s7 = inlined_call_operand.vmem [shape: f32[1,512], index: 7, kind: input, shape index: {}]   ;;  %s16703_s8 = inlined_call_operand.vmem [shape: f32[1,512], index: 8, kind: input, shape index: {}]   ;;  %s16704_s9 = inlined_call_operand.hbm [shape: bf16[512,512], index: 9, kind: input, shape index: {}]   ;;  %s16705_s10 = inlined_call_operand.vmem [shape: f32[1,512], index: 10, kind: input, shape index: {}]   ;;  %s16706_s11 = inlined_call_operand.vmem [shape: f32[1,512], index: 11, kind: input, shape index: {}]   ;;  %s16707_s12 = inlined_call_operand.hbm [shape: bf16[512,128], index: 12, kind: input, shape index: {}]   ;;  %s16708_s13 = inlined_call_operand.hbm [shape: f32[1,128], index: 13, kind: input, shape index: {}]   ;;  %s16709_s14 = inlined_call_operand.hbm [shape: bf16[384,384], index: 14, kind: input, shape index: {}]   ;;  %s16710_s15 = inlined_call_operand.vmem [shape: f32[1,384], index: 15, kind: input, shape index: {}]   ;;  %s16711_s16 = inlined_call_operand.vmem [shape: f32[1,384], index: 16, kind: input, shape index: {}]   ;;  %s16712_s17 = inlined_call_operand.vmem [shape: f32[1,384], index: 17, kind: input, shape index: {}]   ;;  %s16713_s18 = inlined_call_operand.<no memory space> [shape: f32[1,1], index: 18, kind: input, shape index: {}]   ;;  %s16714_s19 = inlined_call_operand.hbm [shape: f32[128,128], index: 19, kind: output, shape index: {0}]   ;;  %s16715_s20 = inlined_call_operand.hbm [shape: f32[1,1], index: 20, kind: output, shape index: {1}]  }
   0x1   :  { %16909 = sst [smem:[#allocation102_spill]] %s16695_s0  ;;  %v26_v0 = vstv %s16713_s18 }
   0x2   :  { %16910 = sst [smem:[#allocation103_spill]] %s16696_s1  ;;  %27 = vst [vmem:[#allocation7] sm:$0x1] %v26_v0 }
   0x3   :  { %16911 = sst [smem:[#allocation104_spill]] %s16697_s2 }
   0x4   :  { %16912 = sst [smem:[#allocation105_spill]] %s16698_s3 }
   0x5   :  { %16913 = sst [smem:[#allocation106_spill]] %s16699_s4 }
   0x6   :  { %28 = vsyncpa [#allocation9], 0 }
   0x7   :  { %29 = vsyncpa [#allocation12], 0 }
   0x8   :  { %30 = vsyncpa [#allocation15], 0 }
   0x9   :  { %31 = vsyncpa [#allocation18], 0 }
   0xa   :  { %32 = vsyncpa [#allocation10], 0 }
   0xb   :  { %33 = vsyncpa [#allocation21], 0  ;;  %s11672_s23 = smov [#allocation11]  }
   0xc   :  { %s51_s24 = sshll.u32 %s11672_s23, 4  ;;  %s52_s24 = int_to_ptr.vmem [resolvable:$true] %s51_s24 }
   0xd   :  { %s11420_s2 = scalar_lea.vmem %s52_s24, 12288  ;;  %p11425_p1 = scmp.lt.s32.totalorder %s52_s24, %s52_s24 }
   0xe   :  { %p11421_p0 = scmp.ne.s32.totalorder %s52_s24, %s11420_s2  ;;  %p11426_p2 = scmp.lt.s32.totalorder %s11420_s2, %s11420_s2 }
  0x10   :  { %p11427_p3 = por %p11426_p2, %p11425_p1 }
  0x12   :  { %p11428_p4 = pnand %p11427_p3, %p11421_p0 }
  0x14   :  { %11431 = shalt.err (!%p11428_p4)
}
  0x15   :  { %s11673_s25 = smov 256   ;;  %s11674_s3 = smov 16  }
  0x16   :  { %s16914_s27 = sld [smem:[#allocation103_spill]]  ;;  %s11675_s28 = smov [#allocation14]  }
  0x17   :  { %s75_s4 = sshll.u32 %s11675_s28, 4  ;;  %s76_s4 = int_to_ptr.vmem [resolvable:$true] %s75_s4 }
  0x18   :  { %s11440_s29 = scalar_lea.vmem %s76_s4, 12288  ;;  %p11445_p6 = scmp.lt.s32.totalorder %s76_s4, %s76_s4 }
  0x19   :  { %p11441_p5 = scmp.ne.s32.totalorder %s76_s4, %s11440_s29  ;;  %p11446_p7 = scmp.lt.s32.totalorder %s11440_s29, %s11440_s29 }
  0x1b   :  { %p11447_p8 = por %p11446_p7, %p11445_p6 }
  0x1c   :  { %57 = dma.hbm_to_vmem [thread:$0]  %s16914_s27, 12288, %s52_s24, [#allocation12], %s11673_s25, %s11673_s25, %s11674_s3  }
  0x1d   :  { %p11448_p9 = pnand %p11447_p8, %p11441_p5 }
  0x1f   :  { %11451 = shalt.err (!%p11448_p9)
}
  0x20   :  { %s11676_s30 = smov 192   ;;  %s11677_s0 = smov 12  }
  0x21   :  { %s16915_s22 = sld [smem:[#allocation106_spill]]  ;;  %s11678_s23 = smov [#allocation8]  }
  0x22   :  { %s39_s2 = sshll.u32 %s11678_s23, 4  ;;  %s40_s2 = int_to_ptr.vmem [resolvable:$true] %s39_s2 }
  0x23   :  { %s11460_s24 = scalar_lea.vmem %s40_s2, 6144  ;;  %p11465_p11 = scmp.lt.s32.totalorder %s40_s2, %s40_s2 }
  0x24   :  { %p11461_p10 = scmp.ne.s32.totalorder %s40_s2, %s11460_s24  ;;  %p11466_p12 = scmp.lt.s32.totalorder %s11460_s24, %s11460_s24 }
  0x26   :  { %p11467_p13 = por %p11466_p12, %p11465_p11 }
  0x27   :  { %81 = dma.hbm_to_vmem [thread:$0]  %s16915_s22, 12288, %s76_s4, [#allocation15], %s11676_s30, %s11676_s30, %s11677_s0  }
  0x28   :  { %p11468_p0 = pnand %p11467_p13, %p11461_p10 }
  0x2a   :  { %11471 = shalt.err (!%p11468_p0)
}
  0x2b   :  { %s11679_s25 = smov 384   ;;  %s11680_s3 = smov 24  }
  0x2c   :  { %s16916_s27 = sld [smem:[#allocation102_spill]]  ;;  %s11681_s28 = smov [#allocation13]  }
  0x2d   :  { %s66_s29 = sshll.u32 %s11681_s28, 4  ;;  %s11682_s4 = smov [#allocation16]   ;;  %s67_s29 = int_to_ptr.vmem [resolvable:$true] %s66_s29 }
  0x2e   :  { %s88_s30 = sshll.u32 %s11682_s4, 4  ;;  %s11480_s0 = scalar_lea.vmem %s67_s29, 64  ;;  %s89_s30 = int_to_ptr.vmem [resolvable:$true] %s88_s30 }
  0x2f   :  { %p11481_p1 = scmp.ne.s32.totalorder %s67_s29, %s11480_s0  ;;  %p11485_p2 = scmp.lt.s32.totalorder %s67_s29, %s67_s29 }
  0x30   :  { %p11486_p3 = scmp.lt.s32.totalorder %s11480_s0, %s11480_s0 }
  0x32   :  { %45 = dma.hbm_to_vmem [thread:$0]  %s16916_s27, 6144, %s40_s2, [#allocation9], %s11679_s25, %s11679_s25, %s11680_s3  }
  0x33   :  { %p11487_p4 = por %p11486_p3, %p11485_p2 }
  0x35   :  { %p11488_p5 = pnand %p11487_p4, %p11481_p1 }
  0x37   :  { %11491 = shalt.err (!%p11488_p5)
}
  0x38   :  { %s16917_s22 = sld [smem:[#allocation105_spill]]  ;;  %s11500_s23 = scalar_lea.vmem %s89_s30, 48 }
  0x39   :  { %p11501_p6 = scmp.ne.s32.totalorder %s89_s30, %s11500_s23  ;;  %s11504_s2 = scalar_lea.vmem %s89_s30, 64 }
  0x3a   :  { %p11505_p7 = scmp.lt.s32.totalorder %s89_s30, %s89_s30  ;;  %p11506_p8 = scmp.lt.s32.totalorder %s11504_s2, %s11500_s23 }
  0x3c   :  { %p11507_p9 = por %p11506_p8, %p11505_p7 }
  0x3e   :  { %69 = dma.hbm_to_vmem [thread:$0]  %s16917_s22, 64, %s67_s29, [#allocation12]  }
  0x3f   :  { %p11508_p10 = pnand %p11507_p9, %p11501_p6 }
  0x41   :  { %11511 = shalt.err (!%p11508_p10)
}
  0x42   :  { %91 = dma.hbm_to_vmem [thread:$0]  %s16700_s5, 48, %s89_s30, [#allocation15]  }
  0x43   :  { %s11683_s3 = smov [#allocation17]  }
  0x44   :  { %s106_s18 = sshll.u32 %s11683_s3, 4  ;;  %s107_s18 = int_to_ptr.vmem [resolvable:$true] %s106_s18 }
  0x45   :  { %s11520_s26 = scalar_lea.vmem %s107_s18, 16  ;;  %s11524_s27 = scalar_lea.vmem %s107_s18, 32 }
  0x46   :  { %p11521_p11 = scmp.ne.s32.totalorder %s107_s18, %s11520_s26  ;;  %p11525_p12 = scmp.lt.s32.totalorder %s107_s18, %s107_s18 }
  0x47   :  { %p11526_p13 = scmp.lt.s32.totalorder %s11524_s27, %s11520_s26 }
  0x49   :  { %p11527_p0 = por %p11526_p13, %p11525_p12 }
  0x4b   :  { %p11528_p1 = pnand %p11527_p0, %p11521_p11 }
  0x4d   :  { %11531 = shalt.err (!%p11528_p1)
}
  0x4e   :  { %109 = dma.hbm_to_vmem [thread:$0]  %s16708_s13, 16, %s107_s18, [#allocation18]  }
  0x4f   :  { %11652 = dma.done.wait [#allocation9], 6144  }
  0x50   :  { %11653 = vsyncadd [#allocation9], 4294961152 }
  0x51   :  { %11654 = dma.done.wait [#allocation12], 12352  }
  0x52   :  { %11655 = vsyncadd [#allocation12], 4294954944 }
  0x53   :  { %11656 = dma.done.wait [#allocation15], 12336  }
  0x54   :  { %11657 = vsyncadd [#allocation15], 4294954960 }
  0x55   :  { %11658 = dma.done.wait [#allocation18], 16  }
  0x56   :  { %11659 = vsyncadd [#allocation18], 4294967280  ;;  %v16716_v1 = vmov 0   ;;  %v10166_v2 = vld [vmem:[#allocation11 + $0xe4] ss:$16 sps:$4 sm:$0xff]   ;;  %v185_v36 = vld [vmem:[#allocation8 + $0x8] sm:$0xff] }
  0x57   :  { %977 = vmatprep.mubr.bf16.mxu1 %v16716_v1  ;;  %v10168_v3 = vld [vmem:[#allocation11 + $0xe0] ss:$16 sps:$4 sm:$0xff]   ;;  %832 = vmatprep.subr.bf16.mxu0 %v10166_v2  ;;  %v10169_v4 = vld [vmem:[#allocation11 + $0xc4] ss:$16 sps:$4 sm:$0xff]   ;;  %v189_v43 = vld [vmem:[#allocation8 + $0x28] sm:$0xff]  ;;  %s16956_s4 = sld [smem:[#allocation104_spill]] }
  0x58   :  { %833 = vmatpush1.bf16.msra.mxu0 %v10168_v3  ;;  %v10171_v5 = vld [vmem:[#allocation11 + $0xc0] ss:$16 sps:$4 sm:$0xff]   ;;  %v10172_v6 = vld [vmem:[#allocation11 + $0xa4] ss:$16 sps:$4 sm:$0xff]   ;;  %v10237_v44 = vld [vmem:[#allocation11 + $0xec] ss:$16 sps:$4 sm:$0xff]  }
  0x59   :  { %834 = vmatprep.subr.bf16.mxu0 %v10169_v4  ;;  %v10174_v7 = vld [vmem:[#allocation11 + $0xa0] ss:$16 sps:$4 sm:$0xff]   ;;  %v10175_v8 = vld [vmem:[#allocation11 + $0x84] ss:$16 sps:$4 sm:$0xff]   ;;  %v10235_v48 = vld [vmem:[#allocation11 + $0xe8] ss:$16 sps:$4 sm:$0xff]  }
  0x5a   :  { %v10187_v9 = vld [vmem:[#allocation11 + $0x2e4] ss:$16 sps:$4 sm:$0xff]   ;;  %v10177_v10 = vld [vmem:[#allocation11 + $0x80] ss:$16 sps:$4 sm:$0xff]   ;;  %v10243_v49 = vld [vmem:[#allocation11 + $0xcc] ss:$16 sps:$4 sm:$0xff]  }
  0x5b   :  { %v10178_v11 = vld [vmem:[#allocation11 + $0x64] ss:$16 sps:$4 sm:$0xff]   ;;  %v10191_v12 = vld [vmem:[#allocation11 + $0x2e0] ss:$16 sps:$4 sm:$0xff]   ;;  %945 = vmatprep.subr.bf16.mxu1 %v10187_v9  ;;  %v10241_v52 = vld [vmem:[#allocation11 + $0xc8] ss:$16 sps:$4 sm:$0xff]  }
  0x5c   :  { %835 = vmatpush1.bf16.msra.mxu0 %v10171_v5  ;;  %v10193_v13 = vld [vmem:[#allocation11 + $0x2c4] ss:$16 sps:$4 sm:$0xff]   ;;  %946 = vmatpush1.bf16.msra.mxu1 %v10191_v12  ;;  %v10180_v14 = vld [vmem:[#allocation11 + $0x60] ss:$16 sps:$4 sm:$0xff]   ;;  %v195_v54 = vld [vmem:[#allocation8 + $0x58] sm:$0xff]  ;;  %s11686_s30 = smov [#allocation2]  }
  0x5d   :  { %836 = vmatprep.subr.bf16.mxu0 %v10172_v6  ;;  %947 = vmatprep.subr.bf16.mxu1 %v10193_v13  ;;  %v10197_v15 = vld [vmem:[#allocation11 + $0x2c0] ss:$16 sps:$4 sm:$0xff]   ;;  %v10199_v16 = vld [vmem:[#allocation11 + $0x2a4] ss:$16 sps:$4 sm:$0xff]   ;;  %v10249_v55 = vld [vmem:[#allocation11 + $0xac] ss:$16 sps:$4 sm:$0xff]  }
  0x5e   :  { %v10181_v17 = vld [vmem:[#allocation11 + $0x44] ss:$16 sps:$4 sm:$0xff]   ;;  %v10203_v18 = vld [vmem:[#allocation11 + $0x2a0] ss:$16 sps:$4 sm:$0xff]   ;;  %v10247_v59 = vld [vmem:[#allocation11 + $0xa8] ss:$16 sps:$4 sm:$0xff]  }
  0x5f   :  { %v10205_v19 = vld [vmem:[#allocation11 + $0x284] ss:$16 sps:$4 sm:$0xff]   ;;  %v10183_v20 = vld [vmem:[#allocation11 + $0x40] ss:$16 sps:$4 sm:$0xff]   ;;  %v10252_v60 = vld [vmem:[#allocation11 + $0x8c] ss:$16 sps:$4 sm:$0xff]  }
  0x60   :  { %837 = vmatpush1.bf16.msra.mxu0 %v10174_v7  ;;  %948 = vmatpush1.bf16.msra.mxu1 %v10197_v15  ;;  %v10184_v21 = vld [vmem:[#allocation11 + $0x24] ss:$16 sps:$4 sm:$0xff]   ;;  %v10209_v22 = vld [vmem:[#allocation11 + $0x280] ss:$16 sps:$4 sm:$0xff]   ;;  %v10250_v63 = vld [vmem:[#allocation11 + $0x88] ss:$16 sps:$4 sm:$0xff]  }
  0x61   :  { %838 = vmatprep.subr.bf16.mxu0 %v10175_v8  ;;  %949 = vmatprep.subr.bf16.mxu1 %v10199_v16  ;;  %v10211_v23 = vld [vmem:[#allocation11 + $0x264] ss:$16 sps:$4 sm:$0xff]   ;;  %v10186_v24 = vld [vmem:[#allocation11 + $0x20] ss:$16 sps:$4 sm:$0xff]   ;;  %v201_v2 = vld [vmem:[#allocation8 + $0x88] sm:$0xff]  ;;  %s144_s0 = sshll.u32 %s11686_s30, 4  ;;  %s145_s0 = int_to_ptr.vmem [resolvable:$true] %s144_s0 }
  0x62   :  { %v10189_v25 = vld [vmem:[#allocation11 + $0x4] ss:$16 sps:$4 sm:$0xff]   ;;  %v10215_v26 = vld [vmem:[#allocation11 + $0x260] ss:$16 sps:$4 sm:$0xff]   ;;  %v10258_v3 = vld [vmem:[#allocation11 + $0x6c] ss:$16 sps:$4 sm:$0xff]   ;;  %p11545_p3 = scmp.lt.s32.totalorder %s145_s0, %s145_s0 }
  0x63   :  { %v10217_v27 = vld [vmem:[#allocation11 + $0x244] ss:$16 sps:$4 sm:$0xff]   ;;  %v10192_v28 = vld [vmem:[#allocation11] ss:$16 sps:$4 sm:$0xff]   ;;  %v10256_v9 = vld [vmem:[#allocation11 + $0x68] ss:$16 sps:$4 sm:$0xff]  }
  0x64   :  { %839 = vmatpush1.bf16.msra.mxu0 %v10177_v10  ;;  %950 = vmatpush1.bf16.msra.mxu1 %v10203_v18  ;;  %v10195_v29 = vld [vmem:[#allocation11 + $0x1e4] ss:$16 sps:$4 sm:$0xff]   ;;  %v10221_v30 = vld [vmem:[#allocation11 + $0x240] ss:$16 sps:$4 sm:$0xff]   ;;  %v187_v10 = vld [vmem:[#allocation8 + $0x18] sm:$0xff]  ;;  %s11687_s21 = smov [#allocation3]  }
  0x65   :  { %840 = vmatprep.subr.bf16.mxu0 %v10178_v11  ;;  %951 = vmatprep.subr.bf16.mxu1 %v10205_v19  ;;  %v10223_v31 = vld [vmem:[#allocation11 + $0x224] ss:$16 sps:$4 sm:$0xff]   ;;  %v10198_v32 = vld [vmem:[#allocation11 + $0x1e0] ss:$16 sps:$4 sm:$0xff]   ;;  %v10261_v11 = vld [vmem:[#allocation11 + $0x4c] ss:$16 sps:$4 sm:$0xff]  }
  0x66   :  { %v10201_v33 = vld [vmem:[#allocation11 + $0x1c4] ss:$16 sps:$4 sm:$0xff]   ;;  %v10227_v34 = vld [vmem:[#allocation11 + $0x220] ss:$16 sps:$4 sm:$0xff]   ;;  %v10246_v12 = vld [vmem:[#allocation11 + $0x2ec] ss:$16 sps:$4 sm:$0xff]  }
  0x67   :  { %v10229_v35 = vld [vmem:[#allocation11 + $0x204] ss:$16 sps:$4 sm:$0xff]   ;;  %v10204_v38 = vld [vmem:[#allocation11 + $0x1c0] ss:$16 sps:$4 sm:$0xff]   ;;  %v191_v13 = vld [vmem:[#allocation8 + $0x38] sm:$0xff]  ;;  %s156_s1 = sshll.u32 %s11687_s21, 4  ;;  %s157_s1 = int_to_ptr.vmem [resolvable:$true] %s156_s1 }
  0x68   :  { %841 = vmatpush1.bf16.msra.mxu0 %v10180_v14  ;;  %952 = vmatpush1.bf16.msra.mxu1 %v10209_v22  ;;  %v188_v37 = vld [vmem:[#allocation8 + $0x20] sm:$0xff]  ;;  %v186_v42 = vld [vmem:[#allocation8 + $0x10] sm:$0xff]  ;;  %v10259_v15 = vld [vmem:[#allocation11 + $0x48] ss:$16 sps:$4 sm:$0xff]   ;;  %s11540_s22 = scalar_lea.vmem %s145_s0, 12288 }
  0x69   :  { %842 = vmatprep.subr.bf16.mxu0 %v10181_v17  ;;  %953 = vmatprep.subr.bf16.mxu1 %v10211_v23  ;;  %v11821_v39 = vpack.c.bf16 %v188_v37, %v185_v36  ;;  %v10207_v40 = vld [vmem:[#allocation11 + $0x1a4] ss:$16 sps:$4 sm:$0xff]   ;;  %v10233_v41 = vld [vmem:[#allocation11 + $0x200] ss:$16 sps:$4 sm:$0xff]   ;;  %v11824_v47 = vpack.c.bf16 %v189_v43, %v186_v42  ;;  %v207_v17 = vld [vmem:[#allocation8 + $0xb8] sm:$0xff]  ;;  %p11541_p2 = scmp.ne.s32.totalorder %s145_s0, %s11540_s22  ;;  %p11546_p4 = scmp.lt.s32.totalorder %s11540_s22, %s11540_s22 }
  0x6a   :  { %v10210_v45 = vld [vmem:[#allocation11 + $0x1a0] ss:$16 sps:$4 sm:$0xff]   ;;  %v10213_v46 = vld [vmem:[#allocation11 + $0x184] ss:$16 sps:$4 sm:$0xff]   ;;  %v10267_v19 = vld [vmem:[#allocation11 + $0x2c] ss:$16 sps:$4 sm:$0xff]  }
  0x6b   :  { %864 = vmatprep.mubr.bf16.mxu0 %v11821_v39  ;;  %v10216_v50 = vld [vmem:[#allocation11 + $0x180] ss:$16 sps:$4 sm:$0xff]   ;;  %v10219_v51 = vld [vmem:[#allocation11 + $0x164] ss:$16 sps:$4 sm:$0xff]   ;;  %v10255_v22 = vld [vmem:[#allocation11 + $0x2cc] ss:$16 sps:$4 sm:$0xff]   ;;  %p11547_p5 = por %p11546_p4, %p11545_p3 }
  0x6c   :  { %843 = vmatpush1.bf16.msra.mxu0 %v10183_v20  ;;  %954 = vmatpush1.bf16.msra.mxu1 %v10215_v26  ;;  %v192_v53 = vld [vmem:[#allocation8 + $0x40] sm:$0xff]  ;;  %v198_v0 = vld [vmem:[#allocation8 + $0x70] sm:$0xff]  ;;  %v10244_v20 = vld [vmem:[#allocation11 + $0x2e8] ss:$16 sps:$4 sm:$0xff]  }
  0x6d   :  { %844 = vmatprep.subr.bf16.mxu0 %v10184_v21  ;;  %955 = vmatprep.subr.bf16.mxu1 %v10217_v27  ;;  %v10222_v56 = vld [vmem:[#allocation11 + $0x160] ss:$16 sps:$4 sm:$0xff]   ;;  %v10225_v57 = vld [vmem:[#allocation11 + $0x144] ss:$16 sps:$4 sm:$0xff]   ;;  %v11828_v58 = vpack.c.bf16 %v195_v54, %v192_v53  ;;  %v11832_v6 = vpack.c.bf16 %v201_v2, %v198_v0  ;;  %v10265_v26 = vld [vmem:[#allocation11 + $0x28] ss:$16 sps:$4 sm:$0xff]   ;;  %p11548_p6 = pnand %p11547_p5, %p11541_p2 }
  0x6e   :  { %v10228_v61 = vld [vmem:[#allocation11 + $0x140] ss:$16 sps:$4 sm:$0xff]   ;;  %v10231_v62 = vld [vmem:[#allocation11 + $0x124] ss:$16 sps:$4 sm:$0xff]   ;;  %v10253_v27 = vld [vmem:[#allocation11 + $0x2c8] ss:$16 sps:$4 sm:$0xff]  }
  0x6f   :  { %v10234_v4 = vld [vmem:[#allocation11 + $0x120] ss:$16 sps:$4 sm:$0xff]   ;;  %v10238_v5 = vld [vmem:[#allocation11 + $0x104] ss:$16 sps:$4 sm:$0xff]   ;;  %v10276_v36 = vld [vmem:[#allocation11 + $0x1ec] ss:$16 sps:$4 sm:$0xff]  }
  0x70   :  { %845 = vmatpush1.bf16.msra.mxu0 %v10186_v24  ;;  %956 = vmatpush1.bf16.msra.mxu1 %v10221_v30  ;;  %v10240_v7 = vld [vmem:[#allocation11 + $0x100] ss:$16 sps:$4 sm:$0xff]   ;;  %v199_v43 = vld [vmem:[#allocation8 + $0x78] sm:$0xff]  ;;  %v205_v0 = vld [vmem:[#allocation8 + $0xa8] sm:$0xff] }
  0x71   :  { %846 = vmatprep.subr.bf16.mxu0 %v10189_v25  ;;  %957 = vmatprep.subr.bf16.mxu1 %v10223_v31  ;;  %v184_v8 = vld [vmem:[#allocation8] sm:$0xff]  ;;  %v194_v14 = vld [vmem:[#allocation8 + $0x50] sm:$0xff]  ;;  %v193_v25 = vld [vmem:[#allocation8 + $0x48] sm:$0xff] }
  0x72   :  { %v204_v16 = vld [vmem:[#allocation8 + $0xa0] sm:$0xff]  ;;  %v11836_v18 = vpack.c.bf16 %v187_v10, %v184_v8  ;;  %v11838_v21 = vpack.c.bf16 %v194_v14, %v191_v13  ;;  %v190_v24 = vld [vmem:[#allocation8 + $0x30] sm:$0xff]  ;;  %v10264_v31 = vld [vmem:[#allocation11 + $0x2ac] ss:$16 sps:$4 sm:$0xff]  }
  0x73   :  { %v11840_v23 = vpack.c.bf16 %v207_v17, %v204_v16  ;;  %v200_v30 = vld [vmem:[#allocation8 + $0x80] sm:$0xff]  ;;  %v219_v53 = vld [vmem:[#allocation8 + $0x118] sm:$0xff]  ;;  %v222_v8 = vld [vmem:[#allocation8 + $0x130] sm:$0xff] }
  0x74   :  { %847 = vmatpush1.bf16.msra.mxu0 %v10192_v28  ;;  %958 = vmatpush1.bf16.msra.mxu1 %v10227_v34  ;;  %v10270_v28 = vld [vmem:[#allocation11 + $0xc] ss:$16 sps:$4 sm:$0xff]   ;;  %v196_v42 = vld [vmem:[#allocation8 + $0x60] sm:$0xff]  ;;  %v10289_v2 = vld [vmem:[#allocation11 + $0x248] ss:$16 sps:$4 sm:$0xff]  }
  0x75   :  { %848 = vmatprep.subr.bf16.mxu0 %v10195_v29  ;;  %959 = vmatprep.subr.bf16.mxu1 %v10229_v35  ;;  %v197_v29 = vld [vmem:[#allocation8 + $0x68] sm:$0xff]  ;;  %v11846_v35 = vpack.c.bf16 %v193_v25, %v190_v24  ;;  %v11856_v54 = vpack.c.bf16 %v199_v43, %v196_v42  ;;  %v215_v24 = vld [vmem:[#allocation8 + $0xf8] sm:$0xff]  ;;  %v218_v25 = vld [vmem:[#allocation8 + $0x110] sm:$0xff] }
  0x76   :  { %v213_v34 = vld [vmem:[#allocation8 + $0xe8] sm:$0xff]  ;;  %v11848_v37 = vpack.c.bf16 %v200_v30, %v197_v29  ;;  %v224_v42 = vld [vmem:[#allocation8 + $0x140] sm:$0xff] }
  0x77   :  { %v10294_v10 = vld [vmem:[#allocation11 + $0x16c] ss:$16 sps:$4 sm:$0xff]   ;;  %v10304_v43 = vld [vmem:[#allocation11 + $0x108] ss:$16 sps:$4 sm:$0xff]  }
  0x78   :  { %849 = vmatpush2.bf16.msra.mxu0 %v10198_v32  ;;  %960 = vmatpush1.bf16.msra.mxu1 %v10233_v41  ;;  %v10268_v32 = vld [vmem:[#allocation11 + $0x8] ss:$16 sps:$4 sm:$0xff]   ;;  %v10309_v13 = vld [vmem:[#allocation11 + $0x20c] ss:$16 sps:$4 sm:$0xff]  }
  0x79   :  { %850 = vmatprep.subr.bf16.mxu0 %v10201_v33  ;;  %1058 = vmatprep.subr.bf16.mxu1 %v10237_v44  ;;  %v210_v33 = vld [vmem:[#allocation8 + $0xd0] sm:$0xff]  ;;  %v10274_v44 = vld [vmem:[#allocation11 + $0x1e8] ss:$16 sps:$4 sm:$0xff]   ;;  %v10297_v17 = vld [vmem:[#allocation11 + $0x14c] ss:$16 sps:$4 sm:$0xff]  }
  0x7a   :  { %v11850_v41 = vpack.c.bf16 %v213_v34, %v210_v33  ;;  %v10303_v29 = vld [vmem:[#allocation11 + $0x12c] ss:$16 sps:$4 sm:$0xff]  }
  0x7b   :  { %978 = vmatmul.mubr.bf16.vlgmr.msra.gmra.mxu1 %v11824_v47  ;;  %v10306_v34 = vld [vmem:[#allocation11 + $0x10c] ss:$16 sps:$4 sm:$0xff]  }
  0x7c   :  { %851 = vmatpush2.bf16.msra.mxu0 %v10204_v38  ;;  %1059 = vmatpush1.bf16.msra.mxu1 %v10235_v48  ;;  %v10262_v38 = vld [vmem:[#allocation11 + $0x2a8] ss:$16 sps:$4 sm:$0xff]   ;;  %v206_v48 = vld [vmem:[#allocation8 + $0xb0] sm:$0xff] }
  0x7d   :  { %852 = vmatprep.subr.bf16.mxu0 %v10207_v40  ;;  %987 = vmatprep.mubr.bf16.mxu1 %v16716_v1  ;;  %v10273_v40 = vld [vmem:[#allocation11 + $0x28c] ss:$16 sps:$4 sm:$0xff]  }
  0x7e   :  { %1060 = vmatprep.subr.bf16.mxu1 %v10243_v49  ;;  %v10271_v49 = vld [vmem:[#allocation11 + $0x288] ss:$16 sps:$4 sm:$0xff]  }
  0x80   :  { %853 = vmatpush2.bf16.msra.mxu0 %v10210_v45  ;;  %1061 = vmatpush1.bf16.msra.mxu1 %v10241_v52  ;;  %v203_v45 = vld [vmem:[#allocation8 + $0x98] sm:$0xff]  ;;  %v216_v52 = vld [vmem:[#allocation8 + $0x100] sm:$0xff] }
  0x81   :  { %854 = vmatprep.subr.bf16.mxu0 %v10213_v46  ;;  %1062 = vmatprep.subr.bf16.mxu1 %v10249_v55  ;;  %v10279_v46 = vld [vmem:[#allocation11 + $0x1cc] ss:$16 sps:$4 sm:$0xff]   ;;  %v10280_v55 = vld [vmem:[#allocation11 + $0x268] ss:$16 sps:$4 sm:$0xff]  }
  0x83   :  { %988 = vmatmul.mubr.bf16.gmra.mxu1 %v11828_v58 }
  0x84   :  { %855 = vmatpush2.bf16.msra.mxu0 %v10216_v50  ;;  %1063 = vmatpush1.bf16.msra.mxu1 %v10247_v59  ;;  %v10277_v50 = vld [vmem:[#allocation11 + $0x1c8] ss:$16 sps:$4 sm:$0xff]  }
  0x85   :  { %856 = vmatprep.subr.bf16.mxu0 %v10219_v51  ;;  %997 = vmatprep.mubr.bf16.mxu1 %v16716_v1  ;;  %v10282_v51 = vld [vmem:[#allocation11 + $0x26c] ss:$16 sps:$4 sm:$0xff]   ;;  %v10283_v59 = vld [vmem:[#allocation11 + $0x1a8] ss:$16 sps:$4 sm:$0xff]  }
  0x86   :  { %1064 = vmatprep.subr.bf16.mxu1 %v10252_v60  ;;  %v10291_v60 = vld [vmem:[#allocation11 + $0x24c] ss:$16 sps:$4 sm:$0xff]  }
  0x88   :  { %857 = vmatpush2.bf16.msra.mxu0 %v10222_v56  ;;  %1065 = vmatpush1.bf16.msra.mxu1 %v10250_v63  ;;  %v10285_v56 = vld [vmem:[#allocation11 + $0x1ac] ss:$16 sps:$4 sm:$0xff]   ;;  %v202_v63 = vld [vmem:[#allocation8 + $0x90] sm:$0xff] }
  0x89   :  { %858 = vmatprep.subr.bf16.mxu0 %v10225_v57  ;;  %1066 = vmatprep.subr.bf16.mxu1 %v10258_v3  ;;  %v11858_v57 = vpack.c.bf16 %v206_v48, %v203_v45  ;;  %v209_v3 = vld [vmem:[#allocation8 + $0xc8] sm:$0xff]  ;;  %v223_v48 = vld [vmem:[#allocation8 + $0x138] sm:$0xff] }
  0x8b   :  { %998 = vmatmul.mubr.bf16.gmra.mxu1 %v11832_v6 }
  0x8c   :  { %859 = vmatpush2.bf16.msra.mxu0 %v10228_v61  ;;  %1067 = vmatpush1.bf16.msra.mxu1 %v10256_v9  ;;  %v11860_v61 = vpack.c.bf16 %v219_v53, %v216_v52  ;;  %v225_v9 = vld [vmem:[#allocation8 + $0x148] sm:$0xff]  ;;  %v226_v53 = vld [vmem:[#allocation8 + $0x150] sm:$0xff] }
  0x8d   :  { %860 = vmatprep.subr.bf16.mxu0 %v10231_v62  ;;  %1007 = vmatprep.mubr.bf16.mxu1 %v16716_v1  ;;  %v10288_v62 = vld [vmem:[#allocation11 + $0x18c] ss:$16 sps:$4 sm:$0xff]   ;;  %v11870_v16 = vpack.c.bf16 %v225_v9, %v222_v8 }
  0x8e   :  { %1068 = vmatprep.subr.bf16.mxu1 %v10261_v11  ;;  %v10298_v11 = vld [vmem:[#allocation11 + $0x228] ss:$16 sps:$4 sm:$0xff]  }
  0x90   :  { %861 = vmatpush2.bf16.msra.mxu0 %v10234_v4  ;;  %1069 = vmatpush1.bf16.msra.mxu1 %v10259_v15  ;;  %v212_v4 = vld [vmem:[#allocation8 + $0xe0] sm:$0xff]  ;;  %v10292_v15 = vld [vmem:[#allocation11 + $0x168] ss:$16 sps:$4 sm:$0xff]  }
  0x91   :  { %862 = vmatprep.subr.bf16.mxu0 %v10238_v5  ;;  %1070 = vmatprep.subr.bf16.mxu1 %v10267_v19  ;;  %v10300_v5 = vld [vmem:[#allocation11 + $0x22c] ss:$16 sps:$4 sm:$0xff]   ;;  %v11868_v14 = vpack.c.bf16 %v212_v4, %v209_v3  ;;  %v208_v19 = vld [vmem:[#allocation8 + $0xc0] sm:$0xff] }
  0x93   :  { %1008 = vmatmul.mubr.bf16.gmra.mxu1 %v11840_v23 }
  0x94   :  { %863 = vmatpush2.bf16.msra.mxu0 %v10240_v7  ;;  %1071 = vmatpush1.bf16.msra.mxu1 %v10265_v26  ;;  %v10286_v7 = vld [vmem:[#allocation11 + $0x188] ss:$16 sps:$4 sm:$0xff]  }
  0x95   :  { %1171 = vmatprep.subr.bf16.mxu0 %v10246_v12  ;;  %1017 = vmatprep.mubr.bf16.mxu1 %v16716_v1  ;;  %v11866_v12 = vpack.c.bf16 %v205_v0, %v202_v63  ;;  %v10295_v26 = vld [vmem:[#allocation11 + $0x148] ss:$16 sps:$4 sm:$0xff]  }
  0x96   :  { %1072 = vmatprep.subr.bf16.mxu1 %v10270_v28  ;;  %v231_v28 = vld [vmem:[#allocation8 + $0x178] sm:$0xff] }
  0x97   :  { %865 = vmatmul.mubr.bf16.vlgmr.msra.gmra.mxu0 %v11836_v18 }
  0x98   :  { %1172 = vmatpush1.bf16.msra.mxu0 %v10244_v20  ;;  %874 = vmatprep.mubr.bf16.mxu0 %v11838_v21  ;;  %v211_v20 = vld [vmem:[#allocation8 + $0xd8] sm:$0xff] }
  0x99   :  { %1173 = vmatprep.subr.bf16.mxu0 %v10255_v22  ;;  %1073 = vmatpush1.bf16.msra.mxu1 %v10268_v32  ;;  %v10307_v22 = vld [vmem:[#allocation11 + $0x208] ss:$16 sps:$4 sm:$0xff]   ;;  %v340_v30 = vpack.c.bf16 %v211_v20, %v208_v19 }
  0x9a   :  { %1074 = vmatprep.subr.bf16.mxu1 %v10276_v36  ;;  %v10301_v32 = vld [vmem:[#allocation11 + $0x128] ss:$16 sps:$4 sm:$0xff]   ;;  %v214_v36 = vld [vmem:[#allocation8 + $0xf0] sm:$0xff] }
  0x9b   :  { %1018 = vmatmul.mubr.bf16.gmra.mxu1 %v11850_v41 }
  0x9c   :  { %1174 = vmatpush1.bf16.msra.mxu0 %v10253_v27  ;;  %1027 = vmatprep.mubr.bf16.mxu1 %v16716_v1  ;;  %v228_v27 = vld [vmem:[#allocation8 + $0x160] sm:$0xff] }
  0x9d   :  { %1175 = vmatprep.subr.bf16.mxu0 %v10264_v31  ;;  %1075 = vmatpush2.bf16.msra.mxu1 %v10274_v44  ;;  %v344_v31 = vpack.c.bf16 %v218_v25, %v215_v24  ;;  %v351_v33 = vpack.c.bf16 %v231_v28, %v228_v27 }
  0x9e   :  { %1076 = vmatprep.subr.bf16.mxu1 %v10279_v46  ;;  %v220_v46 = vld [vmem:[#allocation8 + $0x120] sm:$0xff] }
  0x9f   :  { %875 = vmatmul.mubr.bf16.gmra.mxu0 %v11846_v35 }
  0xa0   :  { %884 = vmatprep.mubr.bf16.mxu0 %v11848_v37  ;;  %1176 = vmatpush1.bf16.msra.mxu0 %v10262_v38  ;;  %v217_v38 = vld [vmem:[#allocation8 + $0x108] sm:$0xff] }
  0xa1   :  { %1177 = vmatprep.subr.bf16.mxu0 %v10273_v40  ;;  %1077 = vmatpush2.bf16.msra.mxu1 %v10277_v50  ;;  %v221_v40 = vld [vmem:[#allocation8 + $0x128] sm:$0xff]  ;;  %v343_v44 = vpack.c.bf16 %v217_v38, %v214_v36  ;;  %v230_v50 = vld [vmem:[#allocation8 + $0x170] sm:$0xff] }
  0xa2   :  { %1078 = vmatprep.subr.bf16.mxu1 %v10285_v56  ;;  %v347_v45 = vpack.c.bf16 %v224_v42, %v221_v40  ;;  %v10312_v36 = vld [vmem:[#allocation14 + $0xac] ss:$12 sps:$4 sm:$0xff]  }
  0xa3   :  { %1028 = vmatmul.mubr.bf16.gmra.mxu1 %v11860_v61  ;;  %v10315_v38 = vld [vmem:[#allocation14 + $0x22c] ss:$12 sps:$4 sm:$0xff]  }
  0xa4   :  { %1178 = vmatpush1.bf16.msra.mxu0 %v10271_v49  ;;  %1037 = vmatprep.mubr.bf16.mxu1 %v16716_v1  ;;  %v227_v49 = vld [vmem:[#allocation8 + $0x158] sm:$0xff] }
  0xa5   :  { %1179 = vmatprep.subr.bf16.mxu0 %v10282_v51  ;;  %1079 = vmatpush2.bf16.msra.mxu1 %v10283_v59  ;;  %v346_v51 = vpack.c.bf16 %v223_v48, %v220_v46  ;;  %v350_v52 = vpack.c.bf16 %v230_v50, %v227_v49  ;;  %v10318_v50 = vld [vmem:[#allocation14 + $0x94] ss:$12 sps:$4 sm:$0xff]  }
  0xa6   :  { %1080 = vmatprep.subr.bf16.mxu1 %v10288_v62 }
  0xa7   :  { %885 = vmatmul.mubr.bf16.gmra.mxu0 %v11856_v54 }
  0xa8   :  { %894 = vmatprep.mubr.bf16.mxu0 %v11858_v57  ;;  %1180 = vmatpush1.bf16.msra.mxu0 %v10280_v55  ;;  %v229_v55 = vld [vmem:[#allocation8 + $0x168] sm:$0xff] }
  0xa9   :  { %1181 = vmatprep.subr.bf16.mxu0 %v10291_v60  ;;  %1081 = vmatpush2.bf16.msra.mxu1 %v10286_v7 }
  0xaa   :  { %1082 = vmatprep.subr.bf16.mxu1 %v10294_v10 }
  0xab   :  { %1038 = vmatmul.mubr.bf16.gmra.mxu1 %v11870_v16 }
  0xac   :  { %1182 = vmatpush1.bf16.msra.mxu0 %v10289_v2  ;;  %1047 = vmatprep.mubr.bf16.mxu1 %v16716_v1 }
  0xad   :  { %1183 = vmatprep.subr.bf16.mxu0 %v10300_v5  ;;  %1083 = vmatpush2.bf16.msra.mxu1 %v10292_v15 }
  0xae   :  { %1084 = vmatprep.subr.bf16.mxu1 %v10297_v17 }
  0xaf   :  { %895 = vmatmul.mubr.bf16.gmra.mxu0 %v11866_v12 }
  0xb0   :  { %904 = vmatprep.mubr.bf16.mxu0 %v11868_v14  ;;  %1184 = vmatpush1.bf16.msra.mxu0 %v10298_v11 }
  0xb1   :  { %1185 = vmatprep.subr.bf16.mxu0 %v10309_v13  ;;  %1085 = vmatpush2.bf16.msra.mxu1 %v10295_v26 }
  0xb2   :  { %1086 = vmatprep.subr.bf16.mxu1 %v10303_v29 }
  0xb3   :  { %1048 = vmatmul.mubr.bf16.gmra.mxu1 %v351_v33 }
  0xb4   :  { %1186 = vmatpush1.bf16.msra.mxu0 %v10307_v22  ;;  %1090 = vmatprep.mubr.bf16.mxu1 %v11821_v39  ;;  %v349_v39 = vpack.c.bf16 %v229_v55, %v226_v53  ;;  %v10316_v55 = vld [vmem:[#allocation14 + $0x90] ss:$12 sps:$4 sm:$0xff]  }
  0xb5   :  { %1087 = vmatpush2.bf16.msra.mxu1 %v10301_v32  ;;  %2838 = vmatprep.subr.bf16.mxu0 %v10315_v38 }
  0xb6   :  { %1088 = vmatprep.subr.bf16.mxu1 %v10306_v34 }
  0xb7   :  { %905 = vmatmul.mubr.bf16.gmra.mxu0 %v340_v30 }
  0xb8   :  { %914 = vmatprep.mubr.bf16.mxu0 %v344_v31 }
  0xb9   :  { %1089 = vmatpush2.bf16.msra.mxu1 %v10304_v43  ;;  %v10310_v43 = vld [vmem:[#allocation14 + $0xa8] ss:$12 sps:$4 sm:$0xff]  }
  0xba   :  { %2725 = vmatprep.subr.bf16.mxu1 %v10312_v36 }
  0xbc   :  { %1091 = vmatmul.mubr.bf16.vlgmr.msra.gmra.mxu1 %v11836_v18 }
  0xbd   :  { %1100 = vmatprep.mubr.bf16.mxu1 %v11838_v21  ;;  %2726 = vmatpush1.bf16.msra.mxu1 %v10310_v43  ;;  %v10337_v43 = vld [vmem:[#allocation14 + $0x1c8] ss:$12 sps:$4 sm:$0xff]  }
  0xbe   :  { %2727 = vmatprep.subr.bf16.mxu1 %v10318_v50  ;;  %v10342_v50 = vld [vmem:[#allocation14 + $0x34] ss:$12 sps:$4 sm:$0xff]  }
  0xbf   :  { %915 = vmatmul.mubr.bf16.gmra.mxu0 %v343_v44 }
  0xc0   :  { %924 = vmatprep.mubr.bf16.mxu0 %v347_v45 }
  0xc1   :  { %2728 = vmatpush1.bf16.msra.mxu1 %v10316_v55 }
  0xc4   :  { %1101 = vmatmul.mubr.bf16.gmra.mxu1 %v11846_v35 }
  0xc5   :  { %1110 = vmatprep.mubr.bf16.mxu1 %v11848_v37 }
  0xc7   :  { %925 = vmatmul.mubr.bf16.gmra.mxu0 %v346_v51 }
  0xc8   :  { %934 = vmatprep.mubr.bf16.mxu0 %v350_v52 }
  0xcc   :  { %1111 = vmatmul.mubr.bf16.gmra.mxu1 %v11856_v54 }
  0xcd   :  { %1120 = vmatprep.mubr.bf16.mxu1 %v11858_v57 }
  0xcf   :  { %935 = vmatmul.mubr.bf16.gmra.mxu0 %v349_v39 }
  0xd0   :  { %1203 = vmatprep.mubr.bf16.mxu0 %v16716_v1 }
  0xd4   :  { %1121 = vmatmul.mubr.bf16.gmra.mxu1 %v11866_v12 }
  0xd5   :  { %1130 = vmatprep.mubr.bf16.mxu1 %v11868_v14 }
  0xd7   :  { %1204 = vmatmul.mubr.bf16.vlgmr.msra.gmra.mxu0 %v11824_v47 }
  0xd8   :  { %1213 = vmatprep.mubr.bf16.mxu0 %v16716_v1 }
  0xdc   :  { %1131 = vmatmul.mubr.bf16.gmra.mxu1 %v340_v30 }
  0xdd   :  { %1140 = vmatprep.mubr.bf16.mxu1 %v344_v31 }
  0xdf   :  { %1214 = vmatmul.mubr.bf16.gmra.mxu0 %v11828_v58 }
  0xe0   :  { %1223 = vmatprep.mubr.bf16.mxu0 %v16716_v1 }
  0xe4   :  { %1141 = vmatmul.mubr.bf16.gmra.mxu1 %v343_v44  ;;  %v10313_v44 = vld [vmem:[#allocation14 + $0x228] ss:$12 sps:$4 sm:$0xff]  }
  0xe5   :  { %1150 = vmatprep.mubr.bf16.mxu1 %v347_v45  ;;  %2839 = vmatpush1.bf16.msra.mxu0 %v10313_v44 }
  0xe7   :  { %1224 = vmatmul.mubr.bf16.gmra.mxu0 %v11832_v6 }
  0xe8   :  { %1233 = vmatprep.mubr.bf16.mxu0 %v16716_v1 }
  0xec   :  { %1151 = vmatmul.mubr.bf16.gmra.mxu1 %v346_v51  ;;  %v10321_v51 = vld [vmem:[#allocation14 + $0x214] ss:$12 sps:$4 sm:$0xff]  }
  0xed   :  { %1160 = vmatprep.mubr.bf16.mxu1 %v350_v52  ;;  %2840 = vmatprep.subr.bf16.mxu0 %v10321_v51  ;;  %v10345_v51 = vld [vmem:[#allocation14 + $0x1b4] ss:$12 sps:$4 sm:$0xff]  }
  0xef   :  { %1234 = vmatmul.mubr.bf16.gmra.mxu0 %v11840_v23 }
  0xf0   :  { %1243 = vmatprep.mubr.bf16.mxu0 %v16716_v1 }
  0xf4   :  { %1161 = vmatmul.mubr.bf16.gmra.mxu1 %v349_v39  ;;  %v10319_v39 = vld [vmem:[#allocation14 + $0x210] ss:$12 sps:$4 sm:$0xff]  }
  0xf5   :  { %2841 = vmatpush1.bf16.msra.mxu0 %v10319_v39 }
  0xf7   :  { %1244 = vmatmul.mubr.bf16.gmra.mxu0 %v11850_v41 }
  0xf8   :  { %1253 = vmatprep.mubr.bf16.mxu0 %v16716_v1 }
  0xff   :  { %1254 = vmatmul.mubr.bf16.gmra.mxu0 %v11860_v61 }
 0x100   :  { %1263 = vmatprep.mubr.bf16.mxu0 %v16716_v1 }
 0x107   :  { %1264 = vmatmul.mubr.bf16.gmra.mxu0 %v11870_v16 }
 0x108   :  { %1273 = vmatprep.mubr.bf16.mxu0 %v16716_v1 }
 0x10f   :  { %1274 = vmatmul.mubr.bf16.gmra.mxu0 %v351_v33 }
 0x13b   :  { %v979_v47 = vpop.f32.mrf.mxu1 }
 0x13d   :  { %v981_v58 = vpop.f32.mrf.mxu1 }
 0x13f   :  { %v983_v6 = vpop.f32.mrf.mxu1 }
 0x141   :  { %v11900_v18 = vpop.f32.mrf.mxu1 }
 0x143   :  { %v989_v21 = vpop.f32.mrf.mxu1 }
 0x145   :  { %v991_v23 = vpop.f32.mrf.mxu1 }
 0x147   :  { %v993_v35 = vpop.f32.mrf.mxu1 }
 0x149   :  { %v11902_v37 = vpop.f32.mrf.mxu1 }
 0x14b   :  { %v999_v41 = vpop.f32.mrf.mxu1 }
 0x14d   :  { %v1001_v54 = vpop.f32.mrf.mxu1 }
 0x14f   :  { %v1003_v56 = vpop.f32.mrf.mxu1 }
 0x151   :  { %v11904_v59 = vpop.f32.mrf.mxu1 }
 0x153   :  { %v1009_v62 = vpop.f32.mrf.mxu1 }
 0x155   :  { %v1011_v2 = vpop.f32.mrf.mxu1 }
 0x157   :  { %v866_v57 = vpop.f32.mrf.mxu0  ;;  %v1013_v5 = vpop.f32.mrf.mxu1 }
 0x158   :  { %v11906_v60 = vadd.f32 %v979_v47, %v866_v57 }
 0x159   :  { %v868_v61 = vpop.f32.mrf.mxu0  ;;  %v11914_v8 = vpop.f32.mrf.mxu1 }
 0x15a   :  { %v11908_v63 = vadd.f32 %v981_v58, %v868_v61 }
 0x15b   :  { %v870_v0 = vpop.f32.mrf.mxu0  ;;  %v1019_v11 = vpop.f32.mrf.mxu1 }
 0x15c   :  { %v11910_v3 = vadd.f32 %v983_v6, %v870_v0 }
 0x15d   :  { %v11912_v4 = vpop.f32.mrf.mxu0  ;;  %v1021_v14 = vpop.f32.mrf.mxu1 }
 0x15e   :  { %16918 = vst [vmem:[#allocation42_spill] sm:$0xff] %v11910_v3 }
 0x15f   :  { %v876_v7 = vpop.f32.mrf.mxu0  ;;  %v1023_v17 = vpop.f32.mrf.mxu1 }
 0x160   :  { %v11916_v9 = vadd.f32 %v989_v21, %v876_v7  ;;  %v10324_v21 = vld [vmem:[#allocation14 + $0x7c] ss:$12 sps:$4 sm:$0xff]  }
 0x161   :  { %v878_v10 = vpop.f32.mrf.mxu0  ;;  %v1025_v20 = vpop.f32.mrf.mxu1  ;;  %2729 = vmatprep.subr.bf16.mxu1 %v10324_v21  ;;  %v10343_v21 = vld [vmem:[#allocation14 + $0x1b0] ss:$12 sps:$4 sm:$0xff]  }
 0x162   :  { %16919 = vst [vmem:[#allocation43_spill] sm:$0xff] %v11916_v9  ;;  %v11918_v12 = vadd.f32 %v991_v23, %v878_v10  ;;  %v10327_v23 = vld [vmem:[#allocation14 + $0x1fc] ss:$12 sps:$4 sm:$0xff]  }
 0x163   :  { %v880_v13 = vpop.f32.mrf.mxu0  ;;  %v11926_v25 = vpop.f32.mrf.mxu1  ;;  %2842 = vmatprep.subr.bf16.mxu0 %v10327_v23 }
 0x164   :  { %16920 = vst [vmem:[#allocation44_spill] sm:$0xff] %v11918_v12  ;;  %v11920_v15 = vadd.f32 %v993_v35, %v880_v13  ;;  %v10331_v13 = vld [vmem:[#allocation14 + $0x1e0] ss:$12 sps:$4 sm:$0xff]  }
 0x165   :  { %v11922_v16 = vpop.f32.mrf.mxu0  ;;  %v11930_v28 = vpop.f32.mrf.mxu1 }
 0x166   :  { %16921 = vst [vmem:[#allocation45_spill] sm:$0xff] %v11920_v15 }
 0x167   :  { %v886_v19 = vpop.f32.mrf.mxu0  ;;  %v11936_v31 = vpop.f32.mrf.mxu1 }
 0x168   :  { %v11924_v22 = vadd.f32 %v999_v41, %v886_v19 }
 0x169   :  { %v888_v24 = vpop.f32.mrf.mxu0  ;;  %v11938_v33 = vpop.f32.mrf.mxu1 }
 0x16a   :  { %16922 = vst [vmem:[#allocation46_spill] sm:$0xff] %v11924_v22  ;;  %v11928_v26 = vadd.f32 %v1001_v54, %v888_v24  ;;  %v10322_v54 = vld [vmem:[#allocation14 + $0x78] ss:$12 sps:$4 sm:$0xff]  }
 0x16b   :  { %v890_v27 = vpop.f32.mrf.mxu0  ;;  %v11942_v42 = vpop.f32.mrf.mxu1  ;;  %2730 = vmatpush1.bf16.msra.mxu1 %v10322_v54  ;;  %v10348_v54 = vld [vmem:[#allocation14 + $0x1c] ss:$12 sps:$4 sm:$0xff]  }
 0x16c   :  { %16923 = vst [vmem:[#allocation47_spill] sm:$0xff] %v11928_v26  ;;  %v11932_v29 = vadd.f32 %v1003_v56, %v890_v27  ;;  %v10325_v56 = vld [vmem:[#allocation14 + $0x1f8] ss:$12 sps:$4 sm:$0xff]  }
 0x16d   :  { %v11934_v30 = vpop.f32.mrf.mxu0  ;;  %v11946_v48 = vpop.f32.mrf.mxu1  ;;  %2843 = vmatpush1.bf16.msra.mxu0 %v10325_v56  ;;  %v10351_v56 = vld [vmem:[#allocation14 + $0x19c] ss:$12 sps:$4 sm:$0xff]  }
 0x16e   :  { %16924 = vst [vmem:[#allocation48_spill] sm:$0xff] %v11932_v29 }
 0x16f   :  { %v896_v32 = vpop.f32.mrf.mxu0  ;;  %v11952_v53 = vpop.f32.mrf.mxu1 }
 0x170   :  { %v11940_v34 = vadd.f32 %v1009_v62, %v896_v32  ;;  %v10339_v32 = vld [vmem:[#allocation14 + $0x1cc] ss:$12 sps:$4 sm:$0xff]  }
 0x171   :  { %v898_v40 = vpop.f32.mrf.mxu0  ;;  %v11954_v58 = vpop.f32.mrf.mxu1 }
 0x172   :  { %16925 = vst [vmem:[#allocation49_spill] sm:$0xff] %v11940_v34  ;;  %v11944_v45 = vadd.f32 %v1011_v2, %v898_v40  ;;  %v10330_v2 = vld [vmem:[#allocation14 + $0x64] ss:$12 sps:$4 sm:$0xff]   ;;  %v10334_v40 = vld [vmem:[#allocation14 + $0x48] ss:$12 sps:$4 sm:$0xff]  }
 0x173   :  { %v900_v46 = vpop.f32.mrf.mxu0  ;;  %v11958_v41 = vpop.f32.mrf.mxu1  ;;  %2731 = vmatprep.subr.bf16.mxu1 %v10330_v2 }
 0x174   :  { %16926 = vst [vmem:[#allocation50_spill] sm:$0xff] %v11944_v45  ;;  %v11948_v49 = vadd.f32 %v1013_v5, %v900_v46  ;;  %v10333_v5 = vld [vmem:[#allocation14 + $0x1e4] ss:$12 sps:$4 sm:$0xff]  }
 0x175   :  { %v11950_v52 = vpop.f32.mrf.mxu0  ;;  %v11962_v62 = vpop.f32.mrf.mxu1  ;;  %2844 = vmatprep.subr.bf16.mxu0 %v10333_v5  ;;  %v10346_v5 = vld [vmem:[#allocation14 + $0x18] ss:$12 sps:$4 sm:$0xff]  }
 0x176   :  { %16927 = vst [vmem:[#allocation51_spill] sm:$0xff] %v11948_v49  ;;  %2845 = vmatpush1.bf16.msra.mxu0 %v10331_v13 }
 0x177   :  { %v906_v47 = vpop.f32.mrf.mxu0  ;;  %v11966_v10 = vpop.f32.mrf.mxu1  ;;  %2846 = vmatprep.subr.bf16.mxu0 %v10339_v32 }
 0x178   :  { %v11956_v6 = vadd.f32 %v1019_v11, %v906_v47  ;;  %v10328_v11 = vld [vmem:[#allocation14 + $0x60] ss:$12 sps:$4 sm:$0xff]   ;;  %v10340_v47 = vld [vmem:[#allocation14 + $0x30] ss:$12 sps:$4 sm:$0xff]  }
 0x179   :  { %v908_v35 = vpop.f32.mrf.mxu0  ;;  %v11970_v24 = vpop.f32.mrf.mxu1  ;;  %2732 = vmatpush1.bf16.msra.mxu1 %v10328_v11 }
 0x17a   :  { %16928 = vst [vmem:[#allocation52_spill] sm:$0xff] %v11956_v6  ;;  %v11960_v57 = vadd.f32 %v1021_v14, %v908_v35  ;;  %2847 = vmatpush1.bf16.msra.mxu0 %v10337_v43  ;;  %v10355_v43 = vld [vmem:[#allocation14 + $0x180] ss:$12 sps:$4 sm:$0xff]  }
 0x17b   :  { %v910_v61 = vpop.f32.mrf.mxu0  ;;  %2848 = vmatprep.subr.bf16.mxu0 %v10345_v51  ;;  %v1378_v51 = vmul.f32 %v11910_v3, %v11910_v3 }
 0x17c   :  { %16929 = vst [vmem:[#allocation53_spill] sm:$0xff] %v11960_v57  ;;  %v11964_v0 = vadd.f32 %v1023_v17, %v910_v61  ;;  %v10336_v17 = vld [vmem:[#allocation14 + $0x4c] ss:$12 sps:$4 sm:$0xff]   ;;  %v11975_v38 = vpop.f32.mrf.mxu1 }
 0x17d   :  { %v912_v7 = vpop.f32.mrf.mxu0  ;;  %2733 = vmatprep.subr.bf16.mxu1 %v10336_v17  ;;  %v10357_v17 = vld [vmem:[#allocation14 + $0x184] ss:$12 sps:$4 sm:$0xff]  }
 0x17e   :  { %16930 = vst [vmem:[#allocation54_spill] sm:$0xff] %v11964_v0  ;;  %v11968_v19 = vadd.f32 %v1025_v20, %v912_v7  ;;  %v11980_v46 = vpop.f32.mrf.mxu1  ;;  %2734 = vmatpush1.bf16.msra.mxu1 %v10334_v40  ;;  %2849 = vmatpush1.bf16.msra.mxu0 %v10343_v21  ;;  %v10349_v7 = vld [vmem:[#allocation14 + $0x198] ss:$12 sps:$4 sm:$0xff]   ;;  %v10352_v40 = vld [vmem:[#allocation14] ss:$12 sps:$4 sm:$0xff]  }
 0x17f   :  { %v916_v14 = vpop.f32.mrf.mxu0  ;;  %2735 = vmatprep.subr.bf16.mxu1 %v10342_v50  ;;  %2850 = vmatprep.subr.bf16.mxu0 %v10351_v56  ;;  %v10363_v21 = vld [vmem:[#allocation14 + $0x2ec] ss:$12 sps:$4 sm:$0xff]   ;;  %v10358_v56 = vld [vmem:[#allocation14 + $0x168] ss:$12 sps:$4 sm:$0xff]  }
 0x180   :  { %16931 = vst [vmem:[#allocation55_spill] sm:$0xff] %v11968_v19  ;;  %v11973_v27 = vadd.f32 %v11926_v25, %v916_v14  ;;  %v11985_v39 = vpop.f32.mrf.mxu1  ;;  %v10354_v14 = vld [vmem:[#allocation14 + $0x4] ss:$12 sps:$4 sm:$0xff]  }
 0x181   :  { %v918_v36 = vpop.f32.mrf.mxu0 }
 0x182   :  { %16932 = vst [vmem:[#allocation56_spill] sm:$0xff] %v11973_v27  ;;  %v11978_v20 = vadd.f32 %v11930_v28, %v918_v36  ;;  %v11990_v35 = vpop.f32.mrf.mxu1  ;;  %2736 = vmatpush1.bf16.msra.mxu1 %v10340_v47  ;;  %2851 = vmatpush1.bf16.msra.mxu0 %v10349_v7  ;;  %v10360_v47 = vld [vmem:[#allocation14 + $0x16c] ss:$12 sps:$4 sm:$0xff]  }
 0x183   :  { %v920_v44 = vpop.f32.mrf.mxu0  ;;  %2737 = vmatprep.subr.bf16.mxu1 %v10348_v54  ;;  %2852 = vmatprep.subr.bf16.mxu0 %v10357_v17 }
 0x184   :  { %16933 = vst [vmem:[#allocation57_spill] sm:$0xff] %v11978_v20  ;;  %v11983_v25 = vadd.f32 %v11936_v31, %v920_v44  ;;  %v11995_v2 = vpop.f32.mrf.mxu1 }
 0x185   :  { %v922_v55 = vpop.f32.mrf.mxu0 }
 0x186   :  { %16934 = vst [vmem:[#allocation58_spill] sm:$0xff] %v11983_v25  ;;  %v11988_v28 = vadd.f32 %v11938_v33, %v922_v55  ;;  %v12000_v13 = vpop.f32.mrf.mxu1  ;;  %2738 = vmatpush1.bf16.msra.mxu1 %v10346_v5  ;;  %2853 = vmatpush1.bf16.msra.mxu0 %v10355_v43  ;;  %v1374_v5 = vmul.f32 %v11906_v60, %v11906_v60  ;;  %v10366_v43 = vld [vmem:[#allocation14 + $0x154] ss:$12 sps:$4 sm:$0xff]  }
 0x187   :  { %v926_v23 = vpop.f32.mrf.mxu0  ;;  %2739 = vmatprep.subr.bf16.mxu1 %v10354_v14  ;;  %2854 = vmatprep.subr.bf16.mxu0 %v10363_v21 }
 0x188   :  { %v11993_v31 = vadd.f32 %v11942_v42, %v926_v23  ;;  %v12005_v36 = vpop.f32.mrf.mxu1 }
 0x189   :  { %v928_v61 = vpop.f32.mrf.mxu0 }
 0x18a   :  { %16935 = vst [vmem:[#allocation59_spill] sm:$0xff] %v11993_v31  ;;  %v11998_v33 = vadd.f32 %v11946_v48, %v928_v61  ;;  %v12010_v50 = vpop.f32.mrf.mxu1  ;;  %2740 = vmatpush1.bf16.msra.mxu1 %v10352_v40  ;;  %v10361_v61 = vld [vmem:[#allocation14 + $0x2e8] ss:$12 sps:$4 sm:$0xff]  }
 0x18b   :  { %v930_v11 = vpop.f32.mrf.mxu0  ;;  %2741 = vmatprep.subr.bf16.mxu1 %v10360_v47  ;;  %2855 = vmatpush2.bf16.msra.mxu0 %v10361_v61 }
 0x18c   :  { %16936 = vst [vmem:[#allocation60_spill] sm:$0xff] %v11998_v33  ;;  %v12003_v42 = vadd.f32 %v11952_v53, %v930_v11  ;;  %v1286_v53 = vadd.f32 %v11910_v3, %v11906_v60  ;;  %v12023_v54 = vpop.f32.mrf.mxu1 }
 0x18d   :  { %v932_v32 = vpop.f32.mrf.mxu0 }
 0x18e   :  { %16937 = vst [vmem:[#allocation61_spill] sm:$0xff] %v12003_v42  ;;  %v12008_v48 = vadd.f32 %v11954_v58, %v932_v32  ;;  %v12021_v58 = vadd.f32 %v11900_v18, %v11912_v4  ;;  %v1287_v7 = vadd.f32 %v1286_v53, %v11916_v9  ;;  %v12033_v18 = vpop.f32.mrf.mxu1  ;;  %2742 = vmatpush2.bf16.msra.mxu1 %v10358_v56  ;;  %v10367_v56 = vld [vmem:[#allocation14 + $0x2d0] ss:$12 sps:$4 sm:$0xff]  }
 0x18f   :  { %v936_v44 = vpop.f32.mrf.mxu0  ;;  %v1438_v4 = vadd.f32 %v1378_v51, %v1374_v5  ;;  %v1386_v32 = vmul.f32 %v11920_v15, %v11920_v15  ;;  %v12047_v51 = vadd.f32 %v11902_v37, %v11922_v16  ;;  %v1390_v5 = vmul.f32 %v11924_v22, %v11924_v22  ;;  %2743 = vmatprep.subr.bf16.mxu1 %v10366_v43  ;;  %v10372_v43 = vld [vmem:[#allocation14 + $0x13c] ss:$12 sps:$4 sm:$0xff]  }
 0x190   :  { %16938 = vst [vmem:[#allocation62_spill] sm:$0xff] %v12008_v48  ;;  %v12017_v55 = vadd.f32 %v11958_v41, %v936_v44  ;;  %v1382_v41 = vmul.f32 %v11916_v9, %v11916_v9  ;;  %v1288_v17 = vadd.f32 %v1287_v7, %v11920_v15  ;;  %v10369_v44 = vld [vmem:[#allocation14 + $0x2d4] ss:$12 sps:$4 sm:$0xff]   ;;  %v1379_v53 = vmul.f32 %v12021_v58, %v12021_v58  ;;  %v12049_v21 = vpop.f32.mrf.mxu1 }
 0x191   :  { %v938_v23 = vpop.f32.mrf.mxu0  ;;  %16942 = vst [vmem:[#allocation66_spill] sm:$0xff] %v12047_v51  ;;  %v1383_v16 = vmul.f32 %v11918_v12, %v11918_v12  ;;  %2856 = vmatprep.subr.bf16.mxu0 %v10369_v44  ;;  %v1387_v15 = vmul.f32 %v12047_v51, %v12047_v51  ;;  %v12074_v9 = vadd.f32 %v11904_v59, %v11934_v30 }
 0x192   :  { %16939 = vst [vmem:[#allocation63_spill] sm:$0xff] %v12017_v55  ;;  %v12031_v11 = vadd.f32 %v11962_v62, %v938_v23  ;;  %v1307_v62 = vadd.f32 %v12021_v58, %v11908_v63  ;;  %v10364_v23 = vld [vmem:[#allocation14 + $0x150] ss:$12 sps:$4 sm:$0xff]   ;;  %v1289_v61 = vadd.f32 %v1288_v17, %v11924_v22  ;;  %2857 = vmatpush2.bf16.msra.mxu0 %v10367_v56 }
 0x193   :  { %v940_v14 = vpop.f32.mrf.mxu0  ;;  %2744 = vmatpush2.bf16.msra.mxu1 %v10364_v23  ;;  %16944 = vst [vmem:[#allocation68_spill] sm:$0xff] %v12074_v9  ;;  %v10370_v23 = vld [vmem:[#allocation14 + $0x138] ss:$12 sps:$4 sm:$0xff]   ;;  %v1391_v59 = vmul.f32 %v11928_v26, %v11928_v26 }
 0x194   :  { %16940 = vst [vmem:[#allocation64_spill] sm:$0xff] %v12031_v11  ;;  %v12039_v40 = vadd.f32 %v11966_v10, %v940_v14  ;;  %v1439_v10 = vadd.f32 %v1438_v4, %v1382_v41  ;;  %v1375_v14 = vmul.f32 %v11908_v63, %v11908_v63  ;;  %v1308_v37 = vadd.f32 %v1307_v62, %v11918_v12  ;;  %v12064_v41 = vpop.f32.mrf.mxu1 }
 0x195   :  { %v942_v47 = vpop.f32.mrf.mxu0  ;;  %v1290_v17 = vadd.f32 %v1289_v61, %v11932_v29  ;;  %2745 = vmatprep.subr.bf16.mxu1 %v10372_v43 }
 0x196   :  { %16941 = vst [vmem:[#allocation65_spill] sm:$0xff] %v12039_v40  ;;  %v12055_v7 = vadd.f32 %v11970_v24, %v942_v47  ;;  %v1440_v4 = vadd.f32 %v1439_v10, %v1386_v32  ;;  %v1394_v24 = vmul.f32 %v11932_v29, %v11932_v29  ;;  %v10375_v47 = vld [vmem:[#allocation14 + $0x2bc] ss:$12 sps:$4 sm:$0xff]   ;;  %v1459_v22 = vadd.f32 %v1379_v53, %v1375_v14  ;;  %v12078_v32 = vpop.f32.mrf.mxu1  ;;  %v10373_v10 = vld [vmem:[#allocation14 + $0x2b8] ss:$12 sps:$4 sm:$0xff]  }
 0x197   :  { %v12062_v1 = vpop.f32.mrf.mxu0  ;;  %v1309_v62 = vadd.f32 %v1308_v37, %v12047_v51  ;;  %v1291_v56 = vadd.f32 %v1290_v17, %v11940_v34  ;;  %v1398_v53 = vmul.f32 %v11940_v34, %v11940_v34  ;;  %2858 = vmatprep.subr.bf16.mxu0 %v10375_v47  ;;  %2746 = vmatpush2.bf16.msra.mxu1 %v10370_v23  ;;  %v10376_v17 = vld [vmem:[#allocation14 + $0x120] ss:$12 sps:$4 sm:$0xff]   ;;  %v10378_v23 = vld [vmem:[#allocation14 + $0x124] ss:$12 sps:$4 sm:$0xff]  }
 0x198   :  { %16943 = vst [vmem:[#allocation67_spill] sm:$0xff] %v12055_v7  ;;  %v1441_v61 = vadd.f32 %v1440_v4, %v1390_v5  ;;  %v1460_v14 = vadd.f32 %v1459_v22, %v1383_v16  ;;  %v12088_v29 = vpop.f32.mrf.mxu1  ;;  %v1402_v4 = vmul.f32 %v11948_v49, %v11948_v49  ;;  %2859 = vmatpush2.bf16.msra.mxu0 %v10373_v10 }
 0x199   :  { %v12076_v44 = vpop.f32.mrf.mxu0  ;;  %v1310_v37 = vadd.f32 %v1309_v62, %v11928_v26  ;;  %v1292_v5 = vadd.f32 %v1291_v56, %v11948_v49  ;;  %v1395_v16 = vmul.f32 %v12074_v9, %v12074_v9  ;;  %v12098_v47 = vadd.f32 %v11914_v8, %v11950_v52  ;;  %v10381_v56 = vld [vmem:[#allocation14 + $0x2a4] ss:$12 sps:$4 sm:$0xff]   ;;  %2747 = vmatprep.subr.bf16.mxu1 %v10378_v23  ;;  %v10387_v26 = vld [vmem:[#allocation14 + $0x28c] ss:$12 sps:$4 sm:$0xff]  }
 0x19a   :  { %v1442_v51 = vadd.f32 %v1441_v61, %v1394_v24  ;;  %v1461_v43 = vadd.f32 %v1460_v14, %v1387_v15  ;;  %v12102_v24 = vpop.f32.mrf.mxu1  ;;  %v10379_v61 = vld [vmem:[#allocation14 + $0x2a0] ss:$12 sps:$4 sm:$0xff]   ;;  %v1406_v15 = vmul.f32 %v11956_v6, %v11956_v6  ;;  %v1399_v8 = vmul.f32 %v11944_v45, %v11944_v45  ;;  %2860 = vmatprep.subr.bf16.mxu0 %v10381_v56 }
 0x19b   :  { %v12086_v30 = vpop.f32.mrf.mxu0  ;;  %v1311_v22 = vadd.f32 %v1310_v37, %v12074_v9  ;;  %16945 = vst [vmem:[#allocation69_spill] sm:$0xff] %v12098_v47  ;;  %v1293_v10 = vadd.f32 %v1292_v5, %v11956_v6  ;;  %v10384_v14 = vld [vmem:[#allocation14 + $0x10c] ss:$12 sps:$4 sm:$0xff]   ;;  %2748 = vmatpush2.bf16.msra.mxu1 %v10376_v17  ;;  %v1414_v56 = vmul.f32 %v11973_v27, %v11973_v27  ;;  %v10390_v17 = vld [vmem:[#allocation14 + $0xf4] ss:$12 sps:$4 sm:$0xff]  }
 0x19c   :  { %v1443_v49 = vadd.f32 %v1442_v51, %v1398_v53  ;;  %v1462_v37 = vadd.f32 %v1461_v43, %v1391_v59  ;;  %v12112_v9 = vpop.f32.mrf.mxu1  ;;  %v1410_v53 = vmul.f32 %v11964_v0, %v11964_v0  ;;  %v10382_v59 = vld [vmem:[#allocation14 + $0x108] ss:$12 sps:$4 sm:$0xff]   ;;  %2861 = vmatpush2.bf16.msra.mxu0 %v10379_v61  ;;  %2749 = vmatprep.subr.bf16.mxu1 %v10384_v14 }
 0x19d   :  { %v12100_v62 = vpop.f32.mrf.mxu0  ;;  %v1312_v34 = vadd.f32 %v1311_v22, %v11944_v45  ;;  %v1294_v51 = vadd.f32 %v1293_v10, %v11964_v0  ;;  %v1403_v22 = vmul.f32 %v12098_v47, %v12098_v47  ;;  %2862 = vmatprep.subr.bf16.mxu0 %v10387_v26  ;;  %v10388_v26 = vld [vmem:[#allocation14 + $0xf0] ss:$12 sps:$4 sm:$0xff]  }
 0x19e   :  { %v1444_v12 = vadd.f32 %v1443_v49, %v1402_v4  ;;  %v1463_v5 = vadd.f32 %v1462_v37, %v1395_v16  ;;  %v12122_v45 = vpop.f32.mrf.mxu1  ;;  %v10385_v49 = vld [vmem:[#allocation14 + $0x288] ss:$12 sps:$4 sm:$0xff]   ;;  %v1407_v37 = vmul.f32 %v11960_v57, %v11960_v57 }
 0x19f   :  { %v12110_v52 = vpop.f32.mrf.mxu0  ;;  %v1313_v43 = vadd.f32 %v1312_v34, %v12098_v47  ;;  %v1295_v23 = vadd.f32 %v1294_v51, %v11973_v27  ;;  %v10393_v16 = vld [vmem:[#allocation14 + $0x274] ss:$12 sps:$4 sm:$0xff]   ;;  %v1418_v51 = vmul.f32 %v11983_v25, %v11983_v25  ;;  %2750 = vmatpush2.bf16.msra.mxu1 %v10382_v59  ;;  %v1422_v59 = vmul.f32 %v11993_v31, %v11993_v31 }
 0x1a0   :  { %v1445_v4 = vadd.f32 %v1444_v12, %v1406_v15  ;;  %v1464_v34 = vadd.f32 %v1463_v5, %v1399_v8  ;;  %v12132_v61 = vpop.f32.mrf.mxu1  ;;  %v1411_v5 = vmul.f32 %v11968_v19, %v11968_v19  ;;  %2863 = vmatpush2.bf16.msra.mxu0 %v10385_v49  ;;  %2751 = vmatprep.subr.bf16.mxu1 %v10390_v17  ;;  %v10394_v17 = vld [vmem:[#allocation14 + $0xd8] ss:$12 sps:$4 sm:$0xff]  }
 0x1a1   :  { %v12120_v6 = vpop.f32.mrf.mxu0  ;;  %v1314_v10 = vadd.f32 %v1313_v43, %v11960_v57  ;;  %v1296_v15 = vadd.f32 %v1295_v23, %v11983_v25  ;;  %v10391_v57 = vld [vmem:[#allocation14 + $0x270] ss:$12 sps:$4 sm:$0xff]   ;;  %2864 = vmatprep.subr.bf16.mxu0 %v10393_v16 }
 0x1a2   :  { %v1446_v12 = vadd.f32 %v1445_v4, %v1410_v53  ;;  %v1465_v14 = vadd.f32 %v1464_v34, %v1403_v22  ;;  %v12142_v27 = vpop.f32.mrf.mxu1  ;;  %v10396_v53 = vld [vmem:[#allocation14 + $0xdc] ss:$12 sps:$4 sm:$0xff]  }
 0x1a3   :  { %v12130_v0 = vpop.f32.mrf.mxu0  ;;  %v1315_v8 = vadd.f32 %v1314_v10, %v11968_v19  ;;  %v1297_v23 = vadd.f32 %v1296_v15, %v11993_v31  ;;  %v10399_v22 = vld [vmem:[#allocation14 + $0x25c] ss:$12 sps:$4 sm:$0xff]   ;;  %v1415_v10 = vmul.f32 %v11978_v20, %v11978_v20  ;;  %2752 = vmatpush2.bf16.msra.mxu1 %v10388_v26  ;;  %v10397_v31 = vld [vmem:[#allocation14 + $0x258] ss:$12 sps:$4 sm:$0xff]   ;;  %v1430_v26 = vmul.f32 %v12017_v55, %v12017_v55 }
 0x1a4   :  { %v1447_v4 = vadd.f32 %v1446_v12, %v1414_v56  ;;  %v1466_v34 = vadd.f32 %v1465_v14, %v1407_v37  ;;  %v12151_v19 = vpop.f32.mrf.mxu1  ;;  %v1426_v12 = vmul.f32 %v12003_v42, %v12003_v42  ;;  %v1419_v37 = vmul.f32 %v11988_v28, %v11988_v28  ;;  %2865 = vmatpush2.bf16.msra.mxu0 %v10391_v57 }
 0x1a5   :  { %v12140_v43 = vpop.f32.mrf.mxu0  ;;  %v1316_v49 = vadd.f32 %v1315_v8, %v11978_v20  ;;  %v1298_v56 = vadd.f32 %v1297_v23, %v12003_v42  ;;  %2753 = vmatprep.subr.bf16.mxu1 %v10396_v53  ;;  %v10402_v8 = vld [vmem:[#allocation14 + $0xc4] ss:$12 sps:$4 sm:$0xff]   ;;  %2866 = vmatprep.subr.bf16.mxu0 %v10399_v22  ;;  %v1423_v42 = vmul.f32 %v11998_v33, %v11998_v33 }
 0x1a6   :  { %v1448_v47 = vadd.f32 %v1447_v4, %v1418_v51  ;;  %v1467_v16 = vadd.f32 %v1466_v34, %v1411_v5  ;;  %v12161_v14 = vpop.f32.mrf.mxu1  ;;  %v10405_v5 = vld [vmem:[#allocation14 + $0x244] ss:$12 sps:$4 sm:$0xff]  }
 0x1a7   :  { %v12149_v25 = vpop.f32.mrf.mxu0  ;;  %v1317_v51 = vadd.f32 %v1316_v49, %v11988_v28  ;;  %v1299_v23 = vadd.f32 %v1298_v56, %v12017_v55  ;;  %2754 = vmatpush2.bf16.msra.mxu1 %v10394_v17 }
 0x1a8   :  { %v1449_v4 = vadd.f32 %v1448_v47, %v1422_v59  ;;  %v1468_v34 = vadd.f32 %v1467_v16, %v1415_v10  ;;  %v1434_v47 = vmul.f32 %v12039_v40, %v12039_v40  ;;  %v10400_v59 = vld [vmem:[#allocation14 + $0xc0] ss:$12 sps:$4 sm:$0xff]   ;;  %v12177_v22 = vpop.f32.mrf.mxu1  ;;  %2867 = vmatpush2.bf16.msra.mxu0 %v10397_v31  ;;  %2755 = vmatprep.subr.bf16.mxu1 %v10402_v8 }
 0x1a9   :  { %v12159_v15 = vpop.f32.mrf.mxu0  ;;  %v1318_v57 = vadd.f32 %v1317_v51, %v11998_v33  ;;  %v1300_v3 = vadd.f32 %v1299_v23, %v12039_v40  ;;  %v10403_v10 = vld [vmem:[#allocation14 + $0x240] ss:$12 sps:$4 sm:$0xff]   ;;  %2868 = vmatprep.subr.bf16.mxu0 %v10405_v5  ;;  %v12187_v31 = vadd.f32 %v12086_v30, %v11985_v39  ;;  %v1435_v5 = vmul.f32 %v12055_v7, %v12055_v7 }
 0x1aa   :  { %v1450_v53 = vadd.f32 %v1449_v4, %v1426_v12  ;;  %v1469_v49 = vadd.f32 %v1468_v34, %v1419_v37  ;;  %v1427_v12 = vmul.f32 %v12008_v48, %v12008_v48  ;;  %v1431_v37 = vmul.f32 %v12031_v11, %v12031_v11 }
 0x1ab   :  { %v12169_v20 = vpop.f32.mrf.mxu0  ;;  %v1319_v16 = vadd.f32 %v1318_v57, %v12008_v48  ;;  %v1301_v34 = vrot.slane %v1300_v3, 4  ;;  %2756 = vmatpush2.bf16.msra.mxu1 %v10400_v59  ;;  %v12189_v57 = vpop.f32.mrf.mxu1  ;;  %v12204_v39 = vadd.f32 %v12110_v52, %v11995_v2 }
 0x1ac   :  { %v1451_v51 = vadd.f32 %v1450_v53, %v1430_v26  ;;  %v1470_v4 = vadd.f32 %v1469_v49, %v1423_v42  ;;  %2869 = vmatpush2.bf16.msra.mxu0 %v10403_v10  ;;  %v12196_v53 = vadd.f32 %v12100_v62, %v11990_v35  ;;  %v1380_v35 = vmul.f32 %v12187_v31, %v12187_v31 }
 0x1ad   :  { %v12175_v56 = vpop.f32.mrf.mxu0  ;;  %v1320_v17 = vadd.f32 %v1319_v16, %v12031_v11  ;;  %v1302_v49 = vadd.f32 %v1301_v34, %v1300_v3  ;;  %v12208_v16 = vadd.f32 %v12076_v44, %v11980_v46  ;;  %v12214_v62 = vadd.f32 %v12120_v6, %v12000_v13  ;;  %v12220_v2 = vpop.f32.mrf.mxu1 }
 0x1ae   :  { %v1452_v40 = vadd.f32 %v1451_v51, %v1434_v47  ;;  %v1471_v26 = vadd.f32 %v1470_v4, %v1427_v12  ;;  %v12200_v47 = vadd.f32 %v12062_v1, %v11975_v38  ;;  %v12218_v1 = vadd.f32 %v12130_v0, %v12005_v36 }
 0x1af   :  { %v1235_v23 = vpop.f32.mrf.mxu0  ;;  %v1321_v42 = vadd.f32 %v1320_v17, %v12055_v7  ;;  %v1381_v46 = vmul.f32 %v12196_v53, %v12196_v53  ;;  %v1384_v6 = vmul.f32 %v12204_v39, %v12204_v39  ;;  %v12232_v13 = vadd.f32 %v12140_v43, %v12010_v50 }
 0x1b0   :  { %v1472_v59 = vadd.f32 %v1471_v26, %v1431_v37  ;;  %v1453_v10 = vrot.slane %v1452_v40, 4  ;;  %v1376_v44 = vmul.f32 %v12200_v47, %v12200_v47  ;;  %v12236_v0 = vadd.f32 %v12149_v25, %v12023_v54  ;;  %v10406_v37 = vld [vmem:[#allocation14 + $0x170] ss:$12 sps:$4 sm:$0xff]  }
 0x1b1   :  { %v1237_v8 = vpop.f32.mrf.mxu0  ;;  %v1322_v3 = vrot.slane %v1321_v42, 4  ;;  %v1303_v12 = vrot.slane %v1302_v49, 2  ;;  %v1377_v4 = vmul.f32 %v12208_v16, %v12208_v16  ;;  %v1328_v17 = vadd.f32 %v12187_v31, %v12200_v47  ;;  %9776 = vmatprep.subr.bf16.mxu1 %v10406_v37 }
 0x1b2   :  { %v12222_v52 = vadd.f32 %v1472_v59, %v1435_v5  ;;  %v12238_v51 = vadd.f32 %v1453_v10, %v1452_v40  ;;  %v1480_v34 = vadd.f32 %v1380_v35, %v1376_v44  ;;  %v1385_v50 = vmul.f32 %v12214_v62, %v12214_v62  ;;  %v12252_v40 = vpop.f32.mrf.mxu1 }
 0x1b3   :  { %v1239_v30 = vpop.f32.mrf.mxu0  ;;  %v1388_v43 = vmul.f32 %v12218_v1, %v12218_v1  ;;  %v12250_v25 = vadd.f32 %v12159_v15, %v12033_v18  ;;  %v12254_v26 = vadd.f32 %v1322_v3, %v1321_v42  ;;  %v1349_v5 = vadd.f32 %v12196_v53, %v12208_v16 }
 0x1b4   :  { %v1501_v59 = vadd.f32 %v1381_v46, %v1377_v4  ;;  %v12260_v10 = vadd.f32 %v12169_v20, %v12049_v21  ;;  %v1329_v35 = vadd.f32 %v1328_v17, %v12204_v39  ;;  %v1481_v44 = vadd.f32 %v1480_v34, %v1384_v6  ;;  %v10408_v21 = vld [vmem:[#allocation14 + $0x2f0] ss:$12 sps:$4 sm:$0xff]   ;;  %v12279_v7 = vpop.f32.mrf.mxu1 }
 0x1b5   :  { %v1241_v38 = vpop.f32.mrf.mxu0  ;;  %v1389_v18 = vmul.f32 %v12232_v13, %v12232_v13  ;;  %v1392_v15 = vmul.f32 %v12236_v0, %v12236_v0  ;;  %v1474_v3 = vrot.slane %v12222_v52, 4  ;;  %v1350_v55 = vadd.f32 %v1349_v5, %v12214_v62  ;;  %9840 = vmatprep.subr.bf16.mxu0 %v10408_v21 }
 0x1b6   :  { %v12271_v46 = vadd.f32 %v12175_v56, %v12064_v41  ;;  %v12274_v20 = vadd.f32 %v1235_v23, %v12078_v32  ;;  %v1502_v6 = vadd.f32 %v1501_v59, %v1385_v50  ;;  %v1330_v4 = vadd.f32 %v1329_v35, %v12218_v1 }
 0x1b7   :  { %v1245_v36 = vpop.f32.mrf.mxu0  ;;  %v1482_v17 = vadd.f32 %v1481_v44, %v1388_v43  ;;  %v1393_v37 = vmul.f32 %v12250_v25, %v12250_v25  ;;  %v12281_v11 = vadd.f32 %v1303_v12, %v1302_v49  ;;  %v1396_v41 = vmul.f32 %v12260_v10, %v12260_v10 }
 0x1b8   :  { %v12286_v56 = vadd.f32 %v1237_v8, %v12088_v29  ;;  %v12289_v32 = vadd.f32 %v1239_v30, %v12102_v24  ;;  %v1351_v23 = vadd.f32 %v1350_v55, %v12232_v13  ;;  %v1503_v50 = vadd.f32 %v1502_v6, %v1389_v18  ;;  %v1156_v18 = vpop.f32.mrf.mxu1 }
 0x1b9   :  { %v1247_v54 = vpop.f32.mrf.mxu0  ;;  %v1331_v43 = vadd.f32 %v1330_v4, %v12236_v0  ;;  %v1483_v5 = vadd.f32 %v1482_v17, %v1392_v15  ;;  %v1397_v49 = vmul.f32 %v12271_v46, %v12271_v46  ;;  %v1400_v12 = vmul.f32 %v12274_v20, %v12274_v20 }
 0x1ba   :  { %v12298_v29 = vadd.f32 %v1241_v38, %v12112_v9  ;;  %v12301_v24 = vadd.f32 %v1245_v36, %v12122_v45  ;;  %v1455_v8 = vrot.slane %v12238_v51, 2  ;;  %v1352_v55 = vadd.f32 %v1351_v23, %v12250_v25 }
 0x1bb   :  { %v1249_v42 = vpop.f32.mrf.mxu0  ;;  %v1504_v30 = vadd.f32 %v1503_v50, %v1393_v37  ;;  %v1332_v35 = vadd.f32 %v1331_v43, %v12260_v10  ;;  %v1484_v15 = vadd.f32 %v1483_v5, %v1396_v41  ;;  %v1401_v21 = vmul.f32 %v12286_v56, %v12286_v56 }
 0x1bc   :  { %v1404_v9 = vmul.f32 %v12289_v32, %v12289_v32  ;;  %v12311_v38 = vadd.f32 %v1247_v54, %v12132_v61  ;;  %v1324_v45 = vrot.slane %v12254_v26, 2  ;;  %v1353_v36 = vadd.f32 %v1352_v55, %v12271_v46 }
 0x1bd   :  { %v1251_v34 = vpop.f32.mrf.mxu0  ;;  %v1333_v6 = vadd.f32 %v1332_v35, %v12274_v20  ;;  %v12317_v4 = vadd.f32 %v1249_v42, %v12142_v27  ;;  %v1505_v37 = vadd.f32 %v1504_v30, %v1397_v49  ;;  %v1485_v41 = vadd.f32 %v1484_v15, %v1400_v12  ;;  %v1158_v42 = vpop.f32.mrf.mxu1 }
 0x1be   :  { %v1405_v23 = vmul.f32 %v12298_v29, %v12298_v29  ;;  %v1408_v50 = vmul.f32 %v12301_v24, %v12301_v24  ;;  %v1475_v61 = vadd.f32 %v1474_v3, %v12222_v52  ;;  %v1354_v54 = vadd.f32 %v1353_v36, %v12286_v56 }
 0x1bf   :  { %v1255_v59 = vpop.f32.mrf.mxu0  ;;  %v12326_v43 = vadd.f32 %v1251_v34, %v12151_v19  ;;  %v1506_v49 = vadd.f32 %v1505_v37, %v1401_v21  ;;  %v1334_v12 = vadd.f32 %v1333_v6, %v12289_v32  ;;  %v1486_v55 = vadd.f32 %v1485_v41, %v1404_v9 }
 0x1c0   :  { %v12329_v5 = vadd.f32 %v1255_v59, %v12161_v14  ;;  %v1409_v30 = vmul.f32 %v12311_v38, %v12311_v38  ;;  %v1325_v35 = vadd.f32 %v1324_v45, %v12254_v26  ;;  %v1412_v52 = vmul.f32 %v12317_v4, %v12317_v4 }
 0x1c1   :  { %v1257_v44 = vpop.f32.mrf.mxu0  ;;  %v1355_v34 = vadd.f32 %v1354_v54, %v12298_v29  ;;  %v1507_v59 = vadd.f32 %v1506_v49, %v1405_v23  ;;  %v1335_v15 = vadd.f32 %v1334_v12, %v12301_v24  ;;  %v1487_v21 = vadd.f32 %v1486_v55, %v1408_v50 }
 0x1c2   :  { %16946 = vst [vmem:[#allocation70_spill] sm:$0xff] %v12329_v5  ;;  %v12338_v19 = vadd.f32 %v1257_v44, %v12177_v22  ;;  %v1413_v9 = vmul.f32 %v12326_v43, %v12326_v43  ;;  %v1416_v26 = vmul.f32 %v12329_v5, %v12329_v5  ;;  %v1162_v44 = vpop.f32.mrf.mxu1  ;;  %v1476_v36 = vrot.slane %v1475_v61, 2 }
 0x1c3   :  { %v1259_v17 = vpop.f32.mrf.mxu0  ;;  %v1356_v6 = vadd.f32 %v1355_v34, %v12311_v38  ;;  %v1336_v37 = vadd.f32 %v1335_v15, %v12317_v4  ;;  %v1488_v41 = vadd.f32 %v1487_v21, %v1412_v52  ;;  %v1326_v54 = vrot.slane %v1325_v35, 1 }
 0x1c4   :  { %v12341_v14 = vadd.f32 %v1259_v17, %v12189_v57  ;;  %v1508_v17 = vadd.f32 %v1507_v59, %v1409_v30  ;;  %v1417_v23 = vmul.f32 %v12338_v19, %v12338_v19  ;;  %v1164_v34 = vpop.f32.mrf.mxu1 }
 0x1c5   :  { %v1261_v27 = vpop.f32.mrf.mxu0  ;;  %v1337_v49 = vadd.f32 %v1336_v37, %v12329_v5  ;;  %v1489_v30 = vadd.f32 %v1488_v41, %v1416_v26  ;;  %v1305_v37 = vrot.slane %v12281_v11, 1 }
 0x1c6   :  { %16947 = vst [vmem:[#allocation71_spill] sm:$0xff] %v12341_v14  ;;  %v12350_v45 = vadd.f32 %v1261_v27, %v12220_v2  ;;  %v1420_v50 = vmul.f32 %v12341_v14, %v12341_v14  ;;  %v1357_v27 = vadd.f32 %v1356_v6, %v12326_v43  ;;  %v1509_v55 = vadd.f32 %v1508_v17, %v1413_v9 }
 0x1c7   :  { %v1265_v3 = vpop.f32.mrf.mxu0  ;;  %v1338_v21 = vadd.f32 %v1337_v49, %v12341_v14 }
 0x1c8   :  { %v12353_v22 = vadd.f32 %v1265_v3, %v12252_v40  ;;  %v1421_v52 = vmul.f32 %v12350_v45, %v12350_v45  ;;  %v1358_v15 = vadd.f32 %v1357_v27, %v12338_v19  ;;  %v1510_v6 = vadd.f32 %v1509_v55, %v1417_v23  ;;  %v1166_v27 = vpop.f32.mrf.mxu1 }
 0x1c9   :  { %v1267_v57 = vpop.f32.mrf.mxu0 }
 0x1ca   :  { %16948 = vst [vmem:[#allocation72_spill] sm:$0xff] %v12353_v22  ;;  %v12362_v2 = vadd.f32 %v1267_v57, %v12279_v7  ;;  %v1424_v3 = vmul.f32 %v12353_v22, %v12353_v22  ;;  %v1477_v7 = vadd.f32 %v1476_v36, %v1475_v61  ;;  %v1359_v41 = vadd.f32 %v1358_v15, %v12350_v45 }
 0x1cb   :  { %v1269_v40 = vpop.f32.mrf.mxu0  ;;  %v1339_v61 = vadd.f32 %v1338_v21, %v12353_v22  ;;  %v1511_v23 = vadd.f32 %v1510_v6, %v1421_v52  ;;  %v1327_v15 = vadd.f32 %v1326_v54, %v1325_v35 }
 0x1cc   :  { %16949 = vst [vmem:[#allocation73_spill] sm:$0xff] %v12362_v2  ;;  %v12366_v12 = vadd.f32 %v1269_v40, %v1156_v18  ;;  %v1490_v18 = vadd.f32 %v1489_v30, %v1420_v50  ;;  %v1425_v9 = vmul.f32 %v12362_v2, %v12362_v2  ;;  %v1360_v55 = vadd.f32 %v1359_v41, %v12362_v2 }
 0x1cd   :  { %v1271_v59 = vpop.f32.mrf.mxu0  ;;  %v1478_v21 = vrot.slane %v1477_v7, 1  ;;  %v1306_v41 = vadd.f32 %v1305_v37, %v12281_v11 }
 0x1ce   :  { %16950 = vst [vmem:[#allocation74_spill] sm:$0xff] %v12366_v12  ;;  %v12374_v57 = vadd.f32 %v1271_v59, %v1158_v42  ;;  %v1428_v26 = vmul.f32 %v12366_v12, %v12366_v12  ;;  %v1456_v42 = vadd.f32 %v1455_v8, %v12238_v51  ;;  %v1491_v50 = vadd.f32 %v1490_v18, %v1424_v3 }
 0x1cf   :  { %v1275_v17 = vpop.f32.mrf.mxu0  ;;  %v1340_v30 = vadd.f32 %v1339_v61, %v12366_v12 }
 0x1d0   :  { %16951 = vst [vmem:[#allocation75_spill] sm:$0xff] %v12374_v57  ;;  %v12383_v36 = vadd.f32 %v1275_v17, %v1162_v44  ;;  %v1429_v40 = vmul.f32 %v12374_v57, %v12374_v57  ;;  %v1512_v17 = vadd.f32 %v1511_v23, %v1425_v9  ;;  %v1492_v51 = vadd.f32 %v1491_v50, %v1428_v26 }
 0x1d1   :  { %v1277_v49 = vpop.f32.mrf.mxu0  ;;  %v1361_v52 = vadd.f32 %v1360_v55, %v12374_v57  ;;  %v1457_v61 = vrot.slane %v1456_v42, 1  ;;  %v12409_v50 = vmul.f32 0.0078125, %v1327_v15 }
 0x1d2   :  { %16952 = vst [vmem:[#allocation76_spill] sm:$0xff] %v12383_v36  ;;  %v1432_v59 = vmul.f32 %v12383_v36, %v12383_v36  ;;  %v12394_v44 = vadd.f32 %v1277_v49, %v1164_v34  ;;  %v1341_v3 = vadd.f32 %v1340_v30, %v12383_v36  ;;  %v1513_v12 = vadd.f32 %v1512_v17, %v1429_v40  ;;  %v1168_v49 = vpop.f32.mrf.mxu1 }
 0x1d3   :  { %v1279_v8 = vpop.f32.mrf.mxu0  ;;  %v1458_v17 = vadd.f32 %v1457_v61, %v1456_v42  ;;  %v1527_v15 = vmul.f32 %v12409_v50, %v12409_v50 }
 0x1d4   :  { %16953 = vst [vmem:[#allocation77_spill] sm:$0xff] %v12394_v44  ;;  %v1433_v6 = vmul.f32 %v12394_v44, %v12394_v44  ;;  %v12400_v18 = vadd.f32 %v1279_v8, %v1166_v27  ;;  %v1493_v34 = vadd.f32 %v1492_v51, %v1432_v59  ;;  %v1362_v54 = vadd.f32 %v1361_v52, %v12394_v44 }
 0x1d5   :  { %v1281_v35 = vpop.f32.mrf.mxu0  ;;  %v1479_v27 = vadd.f32 %v1478_v21, %v1477_v7  ;;  %v12414_v59 = vmul.f32 0.0078125, %v1306_v41 }
 0x1d6   :  { %16954 = vst [vmem:[#allocation78_spill] sm:$0xff] %v12400_v18  ;;  %v1342_v9 = vadd.f32 %v1341_v3, %v12400_v18  ;;  %v1436_v26 = vmul.f32 %v12400_v18, %v12400_v18  ;;  %v12407_v23 = vadd.f32 %v1281_v35, %v1168_v49  ;;  %v1514_v55 = vadd.f32 %v1513_v12, %v1433_v6 }
 0x1d7   :  { %v1523_v49 = vmul.f32 0.0078125, %v1479_v27  ;;  %v1526_v35 = vmul.f32 %v12414_v59, %v12414_v59 }
 0x1d8   :  { %v1343_v30 = vrot.slane %v1342_v9, 4  ;;  %v1494_v11 = vadd.f32 %v1493_v34, %v1436_v26  ;;  %v1363_v37 = vadd.f32 %v1362_v54, %v12407_v23  ;;  %v1437_v40 = vmul.f32 %v12407_v23, %v12407_v23 }
 0x1d9   :  { %v1522_v34 = vmul.f32 0.0078125, %v1458_v17  ;;  %v1531_v61 = vsub.f32 %v1523_v49, %v1527_v15 }
 0x1da   :  { %v1344_v51 = vadd.f32 %v1343_v30, %v1342_v9  ;;  %v1495_v8 = vrot.slane %v1494_v11, 4  ;;  %v1364_v52 = vrot.slane %v1363_v37, 4  ;;  %v1515_v3 = vadd.f32 %v1514_v55, %v1437_v40 }
 0x1db   :  { %v1530_v40 = vsub.f32 %v1522_v34, %v1526_v35 }
 0x1dc   :  { %v1345_v7 = vrot.slane %v1344_v51, 2  ;;  %v1496_v12 = vadd.f32 %v1495_v8, %v1494_v11  ;;  %v1365_v21 = vadd.f32 %v1364_v52, %v1363_v37  ;;  %v1516_v6 = vrot.slane %v1515_v3, 4 }
 0x1dd   :  { %v1535_v37 = vmax.f32 %v1531_v61, 0.0  ;;  %v1534_v57 = vmax.f32 %v1530_v40, 0.0 }
 0x1de   :  { %v1346_v54 = vadd.f32 %v1345_v7, %v1344_v51  ;;  %v1497_v41 = vrot.slane %v1496_v12, 2  ;;  %v1366_v26 = vrot.slane %v1365_v21, 2  ;;  %v1517_v42 = vadd.f32 %v1516_v6, %v1515_v3 }
 0x1df   :  { %v1539_v49 = vadd.f32 1e-05, %v1535_v37  ;;  %v1538_v6 = vadd.f32 1e-05, %v1534_v57 }
 0x1e0   :  { %v1347_v9 = vrot.slane %v1346_v54, 1  ;;  %v1498_v30 = vadd.f32 %v1497_v41, %v1496_v12  ;;  %v1367_v55 = vadd.f32 %v1366_v26, %v1365_v21  ;;  %v1518_v27 = vrot.slane %v1517_v42, 2 }
 0x1e1   :  { %10438 = vrsqrt.f32 %v1539_v49  ;;  %v1555_v26 = vlaneseq }
 0x1e2   :  { %v1348_v18 = vadd.f32 %v1347_v9, %v1346_v54  ;;  %v1499_v36 = vrot.slane %v1498_v30, 1  ;;  %v1368_v44 = vrot.slane %v1367_v55, 1  ;;  %v1519_v11 = vadd.f32 %v1518_v27, %v1517_v42 }
 0x1e3   :  { %10440 = vrsqrt.f32 %v1538_v6  ;;  %v1556_v61 = vshrl.u32 %v1555_v26, 7 }
 0x1e4   :  { %v1372_v8 = vmul.f32 0.0078125, %v1348_v18  ;;  %v1500_v17 = vadd.f32 %v1499_v36, %v1498_v30  ;;  %v1369_v52 = vadd.f32 %v1368_v44, %v1367_v55  ;;  %v1520_v22 = vrot.slane %v1519_v11, 1 }
 0x1e5   :  { %v11685_v36 = vmov 1966171168   ;;  %v12432_v49 = vsub.s32 2, %v1556_v61 }
 0x1e6   :  { %v1524_v51 = vmul.f32 0.0078125, %v1500_v17  ;;  %v1528_v7 = vmul.f32 %v1372_v8, %v1372_v8  ;;  %v1373_v2 = vmul.f32 0.0078125, %v1369_v52  ;;  %v1521_v3 = vadd.f32 %v1520_v22, %v1519_v11  ;;  %v1284_v52 = vld [vmem:[%s16956_s4] sm:$0xf] }
 0x1e7   :  { %v1553_v44 = vunpack.c.l.s4 %v11685_v36  ;;  %16959 = vst [vmem:[#allocation82_spill] sm:$0xff] %v12432_v49 }
 0x1e8   :  { %v1532_v15 = vsub.f32 %v1524_v51, %v1528_v7  ;;  %v1525_v12 = vmul.f32 0.0078125, %v1521_v3  ;;  %v1529_v21 = vmul.f32 %v1373_v2, %v1373_v2  ;;  %v12427_v51 = vsub.s32 0, %v1556_v61 }
 0x1e9   :  { %v1554_v42 = vunpack.c.0.s8 %v1553_v44  ;;  %v12430_v3 = vsub.s32 1, %v1556_v61 }
 0x1ea   :  { %v1536_v34 = vmax.f32 %v1532_v15, 0.0  ;;  %v1533_v35 = vsub.f32 %v1525_v12, %v1529_v21  ;;  %16957 = vst [vmem:[#allocation80_spill] sm:$0xff] %v12427_v51  ;;  %v12434_v15 = vsub.s32 3, %v1556_v61 }
 0x1eb   :  { %v12420_v27 = vsub.s32 %v1554_v42, %v1556_v61  ;;  %16958 = vst [vmem:[#allocation81_spill] sm:$0xff] %v12430_v3 }
 0x1ec   :  { %v1540_v54 = vadd.f32 1e-05, %v1536_v34  ;;  %v1537_v41 = vmax.f32 %v1533_v35, 0.0  ;;  %16960 = vst [vmem:[#allocation83_spill] sm:$0xff] %v12434_v15 }
 0x1ed   :  { %16955 = vst [vmem:[#allocation79_spill] sm:$0xff] %v12420_v27 }
 0x1ee   :  { %v1541_v18 = vadd.f32 1e-05, %v1537_v41  ;;  %10442 = vrsqrt.f32 %v1540_v54  ;;  %v10439_v22 = vpop.eup %10438 }
 0x1f0   :  { %10444 = vrsqrt.f32 %v1541_v18  ;;  %v10441_v9 = vpop.eup %10440 }
 0x1f1   :  { %v1550_v55 = vcombine.low %v10441_v9, %v10439_v22  ;;  %v16964_v9 = vld [vmem:[#allocation44_spill] sm:$0xff] }
 0x1f3   :  { %v1558_v11 = vrot.slane %v1550_v55, %v12420_v27 }
 0x1fb   :  { %v10443_v30 = vpop.eup %10442 }
 0x1fd   :  { %v10445_v57 = vpop.eup %10444 }
 0x1fe   :  { %v1551_v40 = vcombine.low %v10443_v30, %v10445_v57 }
 0x200   :  { %v1565_v37 = vrot.slane %v1551_v40, %v12420_v27 }
 0x202   :  { %v1566_v17 = vcombine.low %v1558_v11, %v1565_v37 }
 0x204   :  { %v1573_v7 = vrot.slane %v1566_v17, %v12420_v27 }
 0x206   :  { %v1575_v12 = vmul.f32 %v1573_v7, %v1284_v52 }
 0x208   :  { %v12437_v21 = vrot.slane %v1575_v12, %v12427_v51  ;;  %v12440_v6 = vrot.slane %v1575_v12, %v12430_v3  ;;  %v12443_v34 = vrot.slane %v1575_v12, %v12432_v49  ;;  %v12446_v35 = vrot.slane %v1575_v12, %v12434_v15  ;;  %v16969_v12 = vld [vmem:[#allocation68_spill] sm:$0xff] }
 0x20a   :  { %16961 = vst [vmem:[#allocation84_spill] sm:$0xff] %v12437_v21  ;;  %16962 = vst [vmem:[#allocation85_spill] sm:$0xff] %v12443_v34  ;;  %v1597_v54 = vmul.f32 %v12437_v21, %v12414_v59  ;;  %v1598_v41 = vmul.f32 %v12440_v6, %v12409_v50  ;;  %v1599_v18 = vmul.f32 %v12443_v34, %v1372_v8  ;;  %v16963_v8 = vld [vmem:[#allocation42_spill] sm:$0xff] }
 0x20b   :  { %v1600_v36 = vmul.f32 %v12446_v35, %v1373_v2  ;;  %v1694_v44 = vmul.f32 %v12446_v35, %v12407_v23  ;;  %v1632_v26 = vmul.f32 %v12440_v6, %v11908_v63  ;;  %v1636_v42 = vmul.f32 %v12440_v6, %v12021_v58 }
 0x20c   :  { %v1634_v61 = vmul.f32 %v12446_v35, %v12208_v16  ;;  %v1605_v59 = vcombine.low %v1597_v54, %v1598_v41  ;;  %v1638_v50 = vmul.f32 %v12446_v35, %v12196_v53  ;;  %v1631_v2 = vmul.f32 %v12437_v21, %v11906_v60  ;;  %v16965_v53 = vld [vmem:[#allocation66_spill] sm:$0xff]  ;;  %v1285_v41 = vld [vmem:[#allocation13] sm:$0xf] }
 0x20d   :  { %v1606_v22 = vcombine.low %v1599_v18, %v1600_v36  ;;  %v1635_v23 = vmul.f32 %v12437_v21, %v16963_v8  ;;  %v1633_v63 = vmul.f32 %v12443_v34, %v12200_v47  ;;  %v1637_v58 = vmul.f32 %v12443_v34, %v12187_v31  ;;  %v16966_v47 = vld [vmem:[#allocation43_spill] sm:$0xff]  ;;  %v16967_v31 = vld [vmem:[#allocation45_spill] sm:$0xff]  ;;  %v16970_v36 = vld [vmem:[#allocation46_spill] sm:$0xff] }
 0x20e   :  { %v1640_v16 = vmul.f32 %v12440_v6, %v16964_v9  ;;  %v1613_v30 = vrot.slane %v1605_v59, %v12420_v27  ;;  %v1644_v57 = vmul.f32 %v12440_v6, %v16965_v53  ;;  %v1642_v60 = vmul.f32 %v12446_v35, %v12214_v62  ;;  %v16968_v62 = vld [vmem:[#allocation47_spill] sm:$0xff]  ;;  %v16971_v59 = vld [vmem:[#allocation48_spill] sm:$0xff] }
 0x20f   :  { %v1620_v55 = vrot.slane %v1606_v22, %v12420_v27  ;;  %v1646_v40 = vmul.f32 %v12446_v35, %v12232_v13  ;;  %v12484_v11 = vmul.f32 %v12437_v21, %v16966_v47  ;;  %v12488_v37 = vmul.f32 %v12437_v21, %v16967_v31  ;;  %v16974_v31 = vld [vmem:[#allocation49_spill] sm:$0xff] }
 0x210   :  { %v12492_v17 = vmul.f32 %v12443_v34, %v12204_v39  ;;  %v12496_v7 = vmul.f32 %v12443_v34, %v12218_v1  ;;  %v12500_v13 = vmul.f32 %v12440_v6, %v16968_v62  ;;  %v12504_v54 = vmul.f32 %v12440_v6, %v16969_v12  ;;  %v16975_v62 = vld [vmem:[#allocation51_spill] sm:$0xff] }
 0x211   :  { %v1621_v52 = vcombine.low %v1613_v30, %v1620_v55  ;;  %v12508_v18 = vmul.f32 %v12446_v35, %v12250_v25  ;;  %v12512_v39 = vmul.f32 %v12446_v35, %v12271_v46  ;;  %v12516_v1 = vmul.f32 %v12437_v21, %v16970_v36  ;;  %v16972_v46 = vld [vmem:[#allocation50_spill] sm:$0xff]  ;;  %v16973_v55 = vld [vmem:[#allocation69_spill] sm:$0xff] }
 0x212   :  { %v12520_v22 = vmul.f32 %v12437_v21, %v16971_v59  ;;  %v12525_v9 = vmul.f32 %v12443_v34, %v12236_v0  ;;  %v12529_v25 = vmul.f32 %v12443_v34, %v12260_v10  ;;  %v12533_v30 = vmul.f32 %v12440_v6, %v16972_v46  ;;  %v16976_v59 = vld [vmem:[#allocation53_spill] sm:$0xff]  ;;  %v16977_v46 = vld [vmem:[#allocation55_spill] sm:$0xff] }
 0x213   :  { %v1628_v8 = vrot.slane %v1621_v52, %v12420_v27  ;;  %v12537_v53 = vmul.f32 %v12440_v6, %v16973_v55  ;;  %v12541_v47 = vmul.f32 %v12446_v35, %v12286_v56  ;;  %v12545_v0 = vmul.f32 %v12446_v35, %v12298_v29 }
 0x214   :  { %v12549_v10 = vmul.f32 %v12437_v21, %v16974_v31  ;;  %v12553_v12 = vmul.f32 %v12437_v21, %v16975_v62  ;;  %v12557_v36 = vmul.f32 %v12443_v34, %v12274_v20  ;;  %v12561_v56 = vmul.f32 %v12443_v34, %v12289_v32 }
 0x215   :  { %v1630_v52 = vsub.f32 %v1285_v41, %v1628_v8  ;;  %v12565_v29 = vmul.f32 %v12440_v6, %v16976_v59  ;;  %v12569_v55 = vmul.f32 %v12440_v6, %v16977_v46  ;;  %v12573_v41 = vmul.f32 %v12446_v35, %v12311_v38  ;;  %v16978_v59 = vld [vmem:[#allocation52_spill] sm:$0xff]  ;;  %v16979_v46 = vld [vmem:[#allocation54_spill] sm:$0xff] }
 0x216   :  { %v12577_v20 = vmul.f32 %v12446_v35, %v12326_v43  ;;  %v12593_v38 = vmul.f32 %v12437_v21, %v16978_v59  ;;  %v12597_v43 = vmul.f32 %v12437_v21, %v16979_v46  ;;  %v12601_v27 = vmul.f32 %v12443_v34, %v12301_v24 }
 0x217   :  { %v12580_v8 = vrot.slane %v1630_v52, %v12427_v51  ;;  %v12583_v32 = vrot.slane %v1630_v52, %v12430_v3  ;;  %v12586_v31 = vrot.slane %v1630_v52, %v12432_v49  ;;  %v12589_v62 = vrot.slane %v1630_v52, %v12434_v15 }
 0x218   :  { %v12605_v3 = vmul.f32 %v12443_v34, %v12317_v4 }
 0x219   :  { %v1779_v49 = vadd.f32 %v12589_v62, %v1694_v44  ;;  %v1717_v52 = vadd.f32 %v12583_v32, %v1632_v26  ;;  %v1721_v15 = vadd.f32 %v12583_v32, %v1636_v42  ;;  %v1719_v59 = vadd.f32 %v12589_v62, %v1634_v61 }
 0x21a   :  { %v1723_v51 = vadd.f32 %v12589_v62, %v1638_v50  ;;  %v1716_v46 = vadd.f32 %v12580_v8, %v1631_v2  ;;  %v1720_v48 = vadd.f32 %v12580_v8, %v1635_v23  ;;  %v1718_v24 = vadd.f32 %v12586_v31, %v1633_v63 }
 0x21b   :  { %v1843_v33 = vmul.f32 0.5, %v1779_v49  ;;  %v1781_v14 = vmul.f32 0.5, %v1717_v52  ;;  %v1785_v4 = vmul.f32 0.5, %v1721_v15  ;;  %v1783_v34 = vmul.f32 0.5, %v1719_v59 }
 0x21c   :  { %v1787_v5 = vmul.f32 0.5, %v1723_v51  ;;  %v1780_v44 = vmul.f32 0.5, %v1716_v46  ;;  %v1784_v21 = vmul.f32 0.5, %v1720_v48  ;;  %v1722_v26 = vadd.f32 %v12586_v31, %v1637_v58 }
 0x21d   :  { %10446 = vtanh.f32 %v1843_v33  ;;  %v1782_v42 = vmul.f32 0.5, %v1718_v24  ;;  %v1725_v61 = vadd.f32 %v12583_v32, %v1640_v16  ;;  %v1729_v50 = vadd.f32 %v12583_v32, %v1644_v57 }
 0x21e   :  { %10448 = vtanh.f32 %v1781_v14  ;;  %v1786_v2 = vmul.f32 0.5, %v1722_v26  ;;  %v1727_v23 = vadd.f32 %v12589_v62, %v1642_v60  ;;  %v1731_v49 = vadd.f32 %v12589_v62, %v1646_v40 }
 0x21f   :  { %10450 = vtanh.f32 %v1785_v4  ;;  %v1789_v15 = vmul.f32 0.5, %v1725_v61  ;;  %v1793_v63 = vmul.f32 0.5, %v1729_v50  ;;  %v1724_v48 = vadd.f32 %v12580_v8, %v12484_v11 }
 0x220   :  { %10452 = vtanh.f32 %v1783_v34  ;;  %v1791_v51 = vmul.f32 0.5, %v1727_v23  ;;  %v1795_v33 = vmul.f32 0.5, %v1731_v49  ;;  %v1728_v58 = vadd.f32 %v12580_v8, %v12488_v37 }
 0x221   :  { %10454 = vtanh.f32 %v1787_v5  ;;  %v1788_v16 = vmul.f32 0.5, %v1724_v48  ;;  %v1726_v14 = vadd.f32 %v12586_v31, %v12492_v17  ;;  %v1730_v57 = vadd.f32 %v12586_v31, %v12496_v7 }
 0x222   :  { %10456 = vtanh.f32 %v1780_v44  ;;  %v1792_v60 = vmul.f32 0.5, %v1728_v58  ;;  %v1733_v40 = vadd.f32 %v12583_v32, %v12500_v13  ;;  %v1737_v34 = vadd.f32 %v12583_v32, %v12504_v54 }
 0x223   :  { %10458 = vtanh.f32 %v1784_v21  ;;  %v1790_v11 = vmul.f32 0.5, %v1726_v14  ;;  %v1794_v52 = vmul.f32 0.5, %v1730_v57  ;;  %v1735_v5 = vadd.f32 %v12589_v62, %v12508_v18 }
 0x224   :  { %10460 = vtanh.f32 %v1782_v42  ;;  %v1797_v37 = vmul.f32 0.5, %v1733_v40  ;;  %v1801_v17 = vmul.f32 0.5, %v1737_v34  ;;  %v1739_v7 = vadd.f32 %v12589_v62, %v12512_v39 }
 0x225   :  { %10462 = vtanh.f32 %v1786_v2  ;;  %v1799_v59 = vmul.f32 0.5, %v1735_v5  ;;  %v1732_v13 = vadd.f32 %v12580_v8, %v12516_v1  ;;  %v1736_v54 = vadd.f32 %v12580_v8, %v12520_v22 }
 0x226   :  { %10464 = vtanh.f32 %v1789_v15  ;;  %v1803_v21 = vmul.f32 0.5, %v1739_v7  ;;  %v1734_v46 = vadd.f32 %v12586_v31, %v12525_v9  ;;  %v1738_v18 = vadd.f32 %v12586_v31, %v12529_v25 }
 0x227   :  { %10466 = vtanh.f32 %v1793_v63  ;;  %v1796_v24 = vmul.f32 0.5, %v1732_v13  ;;  %v1800_v4 = vmul.f32 0.5, %v1736_v54  ;;  %v1741_v39 = vadd.f32 %v12583_v32, %v12533_v30 }
 0x228   :  { %10468 = vtanh.f32 %v1791_v51  ;;  %v1798_v44 = vmul.f32 0.5, %v1734_v46  ;;  %v12646_v1 = vmul.f32 0.5, %v1738_v18  ;;  %v1745_v22 = vadd.f32 %v12583_v32, %v12537_v53 }
 0x229   :  { %10470 = vtanh.f32 %v1795_v33  ;;  %v12650_v26 = vmul.f32 0.5, %v1741_v39  ;;  %v1743_v9 = vadd.f32 %v12589_v62, %v12541_v47  ;;  %v1747_v25 = vadd.f32 %v12589_v62, %v12545_v0 }
 0x22a   :  { %v12656_v42 = vpop.eup %10446  ;;  %10472 = vtanh.f32 %v1788_v16  ;;  %v12658_v30 = vmul.f32 0.5, %v1745_v22  ;;  %v1740_v61 = vadd.f32 %v12580_v8, %v12549_v10  ;;  %v1744_v53 = vadd.f32 %v12580_v8, %v12553_v12 }
 0x22b   :  { %v10449_v50 = vpop.eup %10448  ;;  %10474 = vtanh.f32 %v1792_v60  ;;  %v12664_v2 = vmul.f32 0.5, %v1743_v9  ;;  %v12666_v23 = vmul.f32 0.5, %v1747_v25  ;;  %v1742_v47 = vadd.f32 %v12586_v31, %v12557_v36 }
 0x22c   :  { %v10451_v0 = vpop.eup %10450  ;;  %v1909_v49 = vmul.f32 0.5, %v10449_v50  ;;  %10476 = vtanh.f32 %v1790_v11  ;;  %v12670_v15 = vmul.f32 0.5, %v1740_v61  ;;  %v12672_v63 = vmul.f32 0.5, %v1744_v53  ;;  %v10407_v61 = vld [vmem:[#allocation14 + $0xb0] ss:$12 sps:$4 sm:$0xff]  }
 0x22d   :  { %v10453_v10 = vpop.eup %10452  ;;  %v1913_v48 = vmul.f32 0.5, %v10451_v0  ;;  %10478 = vtanh.f32 %v1794_v52  ;;  %v1746_v12 = vadd.f32 %v12586_v31, %v12561_v56  ;;  %v12676_v51 = vmul.f32 0.5, %v1742_v47  ;;  %v10410_v0 = vld [vmem:[#allocation14 + $0x158] ss:$12 sps:$4 sm:$0xff]  }
 0x22e   :  { %v10455_v33 = vpop.eup %10454  ;;  %v1973_v58 = vadd.f32 0.5, %v1909_v49  ;;  %v1911_v16 = vmul.f32 0.5, %v10453_v10  ;;  %10480 = vtanh.f32 %v1797_v37  ;;  %v1749_v36 = vadd.f32 %v12583_v32, %v12565_v29 }
 0x22f   :  { %v10457_v14 = vpop.eup %10456  ;;  %v1977_v57 = vadd.f32 0.5, %v1913_v48  ;;  %v1915_v60 = vmul.f32 0.5, %v10455_v33  ;;  %10482 = vtanh.f32 %v1801_v17  ;;  %v12680_v40 = vmul.f32 0.5, %v1746_v12  ;;  %v10409_v48 = vld [vmem:[#allocation14 + $0x230] ss:$12 sps:$4 sm:$0xff]  }
 0x230   :  { %v10459_v34 = vpop.eup %10458  ;;  %v1975_v11 = vadd.f32 0.5, %v1911_v16  ;;  %v1908_v52 = vmul.f32 0.5, %v10457_v14  ;;  %10484 = vtanh.f32 %v1799_v59  ;;  %v1753_v56 = vadd.f32 %v12583_v32, %v12569_v55 }
 0x231   :  { %v10461_v5 = vpop.eup %10460  ;;  %v12684_v7 = vpack.c.bf16 %v1977_v57, %v1973_v58  ;;  %v1979_v37 = vadd.f32 0.5, %v1915_v60  ;;  %v1912_v13 = vmul.f32 0.5, %v10459_v34  ;;  %10486 = vtanh.f32 %v1803_v21  ;;  %v10411_v60 = vld [vmem:[#allocation14 + $0x98] ss:$12 sps:$4 sm:$0xff]  }
 0x232   :  { %v10463_v29 = vpop.eup %10462  ;;  %v1972_v54 = vadd.f32 0.5, %v1908_v52  ;;  %v1910_v46 = vmul.f32 0.5, %v10461_v5  ;;  %10488 = vtanh.f32 %v1796_v24  ;;  %v12686_v17 = vmul.f32 0.5, %v1749_v36  ;;  %v10412_v36 = vld [vmem:[#allocation14 + $0x2d8] ss:$12 sps:$4 sm:$0xff]  }
 0x233   :  { %v10465_v18 = vpop.eup %10464  ;;  %2757 = vmatprep.mubr.bf16.mxu1 %v12684_v7  ;;  %v12689_v39 = vpack.c.bf16 %v1979_v37, %v1975_v11  ;;  %v1976_v59 = vadd.f32 0.5, %v1912_v13  ;;  %v1914_v22 = vmul.f32 0.5, %v10463_v29  ;;  %10490 = vtanh.f32 %v1800_v4  ;;  %v10413_v13 = vld [vmem:[#allocation14 + $0x218] ss:$12 sps:$4 sm:$0xff]  }
 0x234   :  { %v10467_v55 = vpop.eup %10466  ;;  %v1974_v9 = vadd.f32 0.5, %v1910_v46  ;;  %v1917_v25 = vmul.f32 0.5, %v10465_v18  ;;  %10492 = vtanh.f32 %v1798_v44  ;;  %v12691_v21 = vmul.f32 0.5, %v1753_v56  ;;  %v10414_v56 = vld [vmem:[#allocation14 + $0x140] ss:$12 sps:$4 sm:$0xff]  }
 0x235   :  { %v10469_v53 = vpop.eup %10468  ;;  %2870 = vmatprep.mubr.bf16.mxu0 %v12689_v39  ;;  %v12694_v24 = vpack.c.bf16 %v1976_v59, %v1972_v54  ;;  %v1978_v50 = vadd.f32 0.5, %v1914_v22  ;;  %v1921_v47 = vmul.f32 0.5, %v10467_v55  ;;  %10494 = vtanh.f32 %v12646_v1  ;;  %v10416_v18 = vld [vmem:[#allocation14 + $0x2c0] ss:$12 sps:$4 sm:$0xff]  }
 0x236   :  { %v10471_v49 = vpop.eup %10470  ;;  %v1981_v10 = vadd.f32 0.5, %v1917_v25  ;;  %v1919_v4 = vmul.f32 0.5, %v10469_v53  ;;  %10496 = vtanh.f32 %v12650_v26  ;;  %v1751_v44 = vadd.f32 %v12589_v62, %v12573_v41  ;;  %v10415_v55 = vld [vmem:[#allocation14 + $0x80] ss:$12 sps:$4 sm:$0xff]  }
 0x237   :  { %v10473_v12 = vpop.eup %10472  ;;  %2758 = vmatmul.mubr.bf16.vlgmr.msra.gmra.mxu1 %v12694_v24  ;;  %v12701_v33 = vpack.c.bf16 %v1978_v50, %v1974_v9  ;;  %v1985_v58 = vadd.f32 0.5, %v1921_v47  ;;  %v1923_v16 = vmul.f32 0.5, %v10471_v49  ;;  %10498 = vtanh.f32 %v12658_v30  ;;  %v10418_v50 = vld [vmem:[#allocation14 + $0x128] ss:$12 sps:$4 sm:$0xff]   ;;  %v10417_v49 = vld [vmem:[#allocation14 + $0x200] ss:$12 sps:$4 sm:$0xff]  }
 0x238   :  { %v10475_v1 = vpop.eup %10474  ;;  %v1983_v14 = vadd.f32 0.5, %v1919_v4  ;;  %9777 = vmatpush3.bf16.msra.mxu1 %v10407_v61  ;;  %v1916_v57 = vmul.f32 0.5, %v10473_v12  ;;  %10500 = vtanh.f32 %v12664_v2  ;;  %v1755_v41 = vadd.f32 %v12589_v62, %v12577_v20 }
 0x239   :  { %v10477_v26 = vpop.eup %10476  ;;  %2871 = vmatmul.mubr.bf16.vlgmr.msra.gmra.mxu0 %v12701_v33  ;;  %v12708_v34 = vpack.c.bf16 %v1985_v58, %v1981_v10  ;;  %v1987_v11 = vadd.f32 0.5, %v1923_v16  ;;  %v1920_v52 = vmul.f32 0.5, %v10475_v1  ;;  %9778 = vmatprep.subr.bf16.mxu1 %v10410_v0  ;;  %10502 = vtanh.f32 %v12666_v23 }
 0x23a   :  { %v10479_v30 = vpop.eup %10478  ;;  %9841 = vmatpush3.bf16.msra.mxu0 %v10409_v48  ;;  %v1980_v5 = vadd.f32 0.5, %v1916_v57  ;;  %v1918_v37 = vmul.f32 0.5, %v10477_v26  ;;  %10504 = vtanh.f32 %v12670_v15  ;;  %v1815_v2 = vmul.f32 0.5, %v1751_v44 }
 0x23b   :  { %v10481_v20 = vpop.eup %10480  ;;  %2767 = vmatprep.mubr.bf16.mxu1 %v12708_v34  ;;  %v12713_v29 = vpack.c.bf16 %v1987_v11, %v1983_v14  ;;  %v1984_v54 = vadd.f32 0.5, %v1920_v52  ;;  %v1922_v46 = vmul.f32 0.5, %v10479_v30  ;;  %9842 = vmatprep.subr.bf16.mxu0 %v10412_v36  ;;  %10506 = vtanh.f32 %v12672_v63  ;;  %v10421_v11 = vld [vmem:[#allocation14 + $0x1e8] ss:$12 sps:$4 sm:$0xff]  }
 0x23c   :  { %v10483_v23 = vpop.eup %10482  ;;  %v1982_v59 = vadd.f32 0.5, %v1918_v37  ;;  %v1925_v22 = vmul.f32 0.5, %v10481_v20  ;;  %9779 = vmatpush3.bf16.msra.mxu1 %v10411_v60  ;;  %10508 = vtanh.f32 %v12676_v51  ;;  %v1819_v15 = vmul.f32 0.5, %v1755_v41 }
 0x23d   :  { %v10485_v9 = vpop.eup %10484  ;;  %2880 = vmatprep.mubr.bf16.mxu0 %v12713_v29  ;;  %v12718_v25 = vpack.c.bf16 %v1984_v54, %v1980_v5  ;;  %v1986_v61 = vadd.f32 0.5, %v1922_v46  ;;  %v1929_v53 = vmul.f32 0.5, %v10483_v23  ;;  %9780 = vmatprep.subr.bf16.mxu1 %v10414_v56  ;;  %10510 = vtanh.f32 %v12680_v40  ;;  %v10420_v40 = vld [vmem:[#allocation14 + $0x2a8] ss:$12 sps:$4 sm:$0xff]   ;;  %v10423_v23 = vld [vmem:[#allocation14 + $0x50] ss:$12 sps:$4 sm:$0xff]  }
 0x23e   :  { %v10487_v63 = vpop.eup %10486  ;;  %v1989_v47 = vadd.f32 0.5, %v1925_v22  ;;  %v1927_v0 = vmul.f32 0.5, %v10485_v9  ;;  %9843 = vmatpush3.bf16.msra.mxu0 %v10413_v13  ;;  %10512 = vtanh.f32 %v12686_v17  ;;  %v1748_v51 = vadd.f32 %v12580_v8, %v12593_v38  ;;  %v10419_v17 = vld [vmem:[#allocation14 + $0x68] ss:$12 sps:$4 sm:$0xff]  }
 0x23f   :  { %v10489_v10 = vpop.eup %10488  ;;  %2768 = vmatmul.mubr.bf16.gmra.mxu1 %v12718_v25  ;;  %v12725_v4 = vpack.c.bf16 %v1986_v61, %v1982_v59  ;;  %v1993_v48 = vadd.f32 0.5, %v1929_v53  ;;  %v1931_v44 = vmul.f32 0.5, %v10487_v63  ;;  %9844 = vmatprep.subr.bf16.mxu0 %v10416_v18  ;;  %10514 = vtanh.f32 %v12691_v21  ;;  %v10422_v21 = vld [vmem:[#allocation14 + $0x110] ss:$12 sps:$4 sm:$0xff]  }
 0x240   :  { %v10491_v12 = vpop.eup %10490  ;;  %v1991_v58 = vadd.f32 0.5, %v1927_v0  ;;  %v1924_v16 = vmul.f32 0.5, %v10489_v10  ;;  %9781 = vmatpush3.bf16.msra.mxu1 %v10415_v55  ;;  %10516 = vtanh.f32 %v1815_v2  ;;  %v1752_v38 = vadd.f32 %v12580_v8, %v12597_v43  ;;  %v10424_v2 = vld [vmem:[#allocation14 + $0x290] ss:$12 sps:$4 sm:$0xff]   ;;  %v16980_v10 = vld [vmem:[#allocation57_spill] sm:$0xff] }
 0x241   :  { %v10493_v36 = vpop.eup %10492  ;;  %2881 = vmatmul.mubr.bf16.gmra.mxu0 %v12725_v4  ;;  %v12731_v1 = vpack.c.bf16 %v1993_v48, %v1989_v47  ;;  %v1995_v14 = vadd.f32 0.5, %v1931_v44  ;;  %v1928_v57 = vmul.f32 0.5, %v10491_v12  ;;  %9782 = vmatprep.subr.bf16.mxu1 %v10418_v50  ;;  %10518 = vtanh.f32 %v1819_v15  ;;  %v10425_v47 = vld [vmem:[#allocation14 + $0x1d0] ss:$12 sps:$4 sm:$0xff]   ;;  %v10428_v44 = vld [vmem:[#allocation14 + $0x278] ss:$12 sps:$4 sm:$0xff]  }
 0x242   :  { %v10495_v60 = vpop.eup %10494  ;;  %v1988_v41 = vadd.f32 0.5, %v1924_v16  ;;  %v1926_v26 = vmul.f32 0.5, %v10493_v36  ;;  %9845 = vmatpush3.bf16.msra.mxu0 %v10417_v49  ;;  %v1812_v52 = vmul.f32 0.5, %v1748_v51  ;;  %v1816_v56 = vmul.f32 0.5, %v1752_v38 }
 0x243   :  { %v10497_v30 = vpop.eup %10496  ;;  %2777 = vmatprep.mubr.bf16.mxu1 %v12731_v1  ;;  %v12734_v43 = vpack.c.bf16 %v1995_v14, %v1991_v58  ;;  %v1992_v5 = vadd.f32 0.5, %v1928_v57  ;;  %v1930_v37 = vmul.f32 0.5, %v10495_v60  ;;  %9846 = vmatprep.subr.bf16.mxu0 %v10420_v40  ;;  %v1750_v13 = vadd.f32 %v12586_v31, %v12601_v27  ;;  %v10426_v27 = vld [vmem:[#allocation14 + $0xf8] ss:$12 sps:$4 sm:$0xff]  }
 0x244   :  { %v10499_v20 = vpop.eup %10498  ;;  %v1990_v54 = vadd.f32 0.5, %v1926_v26  ;;  %v1933_v46 = vmul.f32 0.5, %v10497_v30  ;;  %9783 = vmatpush3.bf16.msra.mxu1 %v10419_v17  ;;  %10520 = vtanh.f32 %v1812_v52  ;;  %v1754_v18 = vadd.f32 %v12586_v31, %v12605_v3  ;;  %v10427_v17 = vld [vmem:[#allocation14 + $0x38] ss:$12 sps:$4 sm:$0xff]  }
 0x245   :  { %v10501_v59 = vpop.eup %10500  ;;  %2890 = vmatprep.mubr.bf16.mxu0 %v12734_v43  ;;  %v12741_v22 = vpack.c.bf16 %v1992_v5, %v1988_v41  ;;  %v1994_v55 = vadd.f32 0.5, %v1930_v37  ;;  %v1937_v15 = vmul.f32 0.5, %v10499_v20  ;;  %10522 = vtanh.f32 %v1816_v56  ;;  %9784 = vmatprep.subr.bf16.mxu1 %v10422_v21  ;;  %v10430_v21 = vld [vmem:[#allocation14 + $0xe0] ss:$12 sps:$4 sm:$0xff]  }
 0x246   :  { %v10503_v9 = vpop.eup %10502  ;;  %v1997_v61 = vadd.f32 0.5, %v1933_v46  ;;  %v1935_v53 = vmul.f32 0.5, %v10501_v59  ;;  %9847 = vmatpush3.bf16.msra.mxu0 %v10421_v11  ;;  %v1814_v50 = vmul.f32 0.5, %v1750_v13  ;;  %v1818_v63 = vmul.f32 0.5, %v1754_v18  ;;  %v10431_v59 = vld [vmem:[#allocation14 + $0x20] ss:$12 sps:$4 sm:$0xff]  }
 0x247   :  { %v10505_v0 = vpop.eup %10504  ;;  %2778 = vmatmul.mubr.bf16.gmra.mxu1 %v12741_v22  ;;  %v12744_v3 = vpack.c.bf16 %v1994_v55, %v1990_v54  ;;  %v2001_v49 = vadd.f32 0.5, %v1937_v15  ;;  %v1939_v51 = vmul.f32 0.5, %v10503_v9  ;;  %v1672_v48 = vmul.f32 %v12440_v6, %v16980_v10  ;;  %9848 = vmatprep.subr.bf16.mxu0 %v10424_v2  ;;  %v10432_v2 = vld [vmem:[#allocation14 + $0x260] ss:$12 sps:$4 sm:$0xff]  }
 0x248   :  { %v10507_v40 = vpop.eup %10506  ;;  %v1999_v12 = vadd.f32 0.5, %v1935_v53  ;;  %v1932_v58 = vmul.f32 0.5, %v10505_v0  ;;  %10524 = vtanh.f32 %v1814_v50  ;;  %v1676_v16 = vmul.f32 %v12440_v6, %v11988_v28  ;;  %9785 = vmatpush3.bf16.msra.mxu1 %v10423_v23  ;;  %v10429_v28 = vld [vmem:[#allocation14 + $0x1b8] ss:$12 sps:$4 sm:$0xff]   ;;  %v10433_v0 = vld [vmem:[#allocation14 + $0x1a0] ss:$12 sps:$4 sm:$0xff]  }
 0x249   :  { %v10509_v38 = vpop.eup %10508  ;;  %2891 = vmatmul.mubr.bf16.gmra.mxu0 %v12744_v3  ;;  %v12751_v36 = vpack.c.bf16 %v2001_v49, %v1997_v61  ;;  %v2003_v14 = vadd.f32 0.5, %v1939_v51  ;;  %v1936_v57 = vmul.f32 0.5, %v10507_v40  ;;  %10526 = vtanh.f32 %v1818_v63  ;;  %9786 = vmatprep.subr.bf16.mxu1 %v10426_v27 }
 0x24a   :  { %v10511_v60 = vpop.eup %10510  ;;  %v1996_v41 = vadd.f32 0.5, %v1932_v58  ;;  %v1934_v26 = vmul.f32 0.5, %v10509_v38  ;;  %v1757_v11 = vadd.f32 %v12583_v32, %v1672_v48  ;;  %v1761_v52 = vadd.f32 %v12583_v32, %v1676_v16  ;;  %9849 = vmatpush3.bf16.msra.mxu0 %v10425_v47  ;;  %v10436_v48 = vld [vmem:[#allocation14 + $0x248] ss:$12 sps:$4 sm:$0xff]   ;;  %v16982_v58 = vld [vmem:[#allocation84_spill] sm:$0xff] }
 0x24b   :  { %v10513_v56 = vpop.eup %10512  ;;  %2787 = vmatprep.mubr.bf16.mxu1 %v12751_v36  ;;  %v12756_v30 = vpack.c.bf16 %v2003_v14, %v1999_v12  ;;  %v2000_v5 = vadd.f32 0.5, %v1936_v57  ;;  %v1938_v37 = vmul.f32 0.5, %v10511_v60  ;;  %v1674_v13 = vmul.f32 %v12446_v35, %v12338_v19  ;;  %9850 = vmatprep.subr.bf16.mxu0 %v10428_v44  ;;  %v10434_v19 = vld [vmem:[#allocation14 + $0xc8] ss:$12 sps:$4 sm:$0xff]   ;;  %v16981_v12 = vld [vmem:[#allocation56_spill] sm:$0xff] }
 0x24c   :  { %v10515_v20 = vpop.eup %10514  ;;  %v1998_v54 = vadd.f32 0.5, %v1934_v26  ;;  %v1941_v46 = vmul.f32 0.5, %v10513_v56  ;;  %v1821_v18 = vmul.f32 0.5, %v1757_v11  ;;  %v1825_v23 = vmul.f32 0.5, %v1761_v52  ;;  %9787 = vmatpush3.bf16.msra.mxu1 %v10427_v17  ;;  %v10435_v17 = vld [vmem:[#allocation14 + $0x8] ss:$12 sps:$4 sm:$0xff]  }
 0x24d   :  { %v10517_v55 = vpop.eup %10516  ;;  %2900 = vmatprep.mubr.bf16.mxu0 %v12756_v30  ;;  %v12761_v15 = vpack.c.bf16 %v2000_v5, %v1996_v41  ;;  %v2002_v27 = vadd.f32 0.5, %v1938_v37  ;;  %v1945_v9 = vmul.f32 0.5, %v10515_v20  ;;  %v1678_v61 = vmul.f32 %v12446_v35, %v12350_v45  ;;  %9788 = vmatprep.subr.bf16.mxu1 %v10430_v21  ;;  %v16983_v21 = vld [vmem:[#allocation58_spill] sm:$0xff]  ;;  %v16985_v26 = vld [vmem:[#allocation85_spill] sm:$0xff] }
 0x24e   :  { %v10519_v53 = vpop.eup %10518  ;;  %v2005_v50 = vadd.f32 0.5, %v1941_v46  ;;  %v1943_v63 = vmul.f32 0.5, %v10517_v55  ;;  %10528 = vtanh.f32 %v1821_v18  ;;  %v1759_v47 = vadd.f32 %v12589_v62, %v1674_v13  ;;  %9851 = vmatpush3.bf16.msra.mxu0 %v10429_v28  ;;  %v16984_v41 = vld [vmem:[#allocation70_spill] sm:$0xff] }
 0x24f   :  { %2788 = vmatmul.mubr.bf16.gmra.mxu1 %v12761_v15  ;;  %v12767_v49 = vpack.c.bf16 %v2002_v27, %v1998_v54  ;;  %v2009_v51 = vadd.f32 0.5, %v1945_v9  ;;  %v1947_v10 = vmul.f32 0.5, %v10519_v53  ;;  %10530 = vtanh.f32 %v1825_v23  ;;  %9852 = vmatprep.subr.bf16.mxu0 %v10432_v2  ;;  %v10437_v37 = vld [vmem:[#allocation14 + $0x188] ss:$12 sps:$4 sm:$0xff]  }
 0x250   :  { %v2007_v45 = vadd.f32 0.5, %v1943_v63  ;;  %v1763_v44 = vadd.f32 %v12589_v62, %v1678_v61  ;;  %v1823_v40 = vmul.f32 0.5, %v1759_v47  ;;  %v1671_v16 = vmul.f32 %v16982_v58, %v16981_v12  ;;  %9789 = vmatpush3.bf16.msra.mxu1 %v10431_v59  ;;  %v16986_v54 = vld [vmem:[#allocation71_spill] sm:$0xff] }
 0x251   :  { %v10521_v38 = vpop.eup %10520  ;;  %2901 = vmatmul.mubr.bf16.gmra.mxu0 %v12767_v49  ;;  %v12773_v14 = vpack.c.bf16 %v2009_v51, %v2005_v50  ;;  %v2011_v57 = vadd.f32 0.5, %v1947_v10  ;;  %v1675_v60 = vmul.f32 %v16982_v58, %v16983_v21  ;;  %v1673_v11 = vmul.f32 %v16985_v26, %v16984_v41  ;;  %9790 = vmatprep.subr.bf16.mxu1 %v10434_v19  ;;  %v16987_v19 = vld [vmem:[#allocation60_spill] sm:$0xff] }
 0x252   :  { %v10523_v52 = vpop.eup %10522  ;;  %v1940_v28 = vmul.f32 0.5, %v10521_v38  ;;  %v1827_v56 = vmul.f32 0.5, %v1763_v44  ;;  %10532 = vtanh.f32 %v1823_v40  ;;  %v1756_v5 = vadd.f32 %v12580_v8, %v1671_v16  ;;  %9853 = vmatpush3.bf16.msra.mxu0 %v10433_v0  ;;  %v16988_v0 = vld [vmem:[#allocation62_spill] sm:$0xff] }
 0x253   :  { %2797 = vmatprep.mubr.bf16.mxu1 %v12773_v14  ;;  %v12781_v13 = vpack.c.bf16 %v2011_v57, %v2007_v45  ;;  %v1944_v2 = vmul.f32 0.5, %v10523_v52  ;;  %v1760_v20 = vadd.f32 %v12580_v8, %v1675_v60  ;;  %v1677_v46 = vmul.f32 %v16985_v26, %v16986_v54  ;;  %9854 = vmatprep.subr.bf16.mxu0 %v10436_v48  ;;  %v16990_v57 = vld [vmem:[#allocation75_spill] sm:$0xff]  ;;  %v16993_v54 = vld [vmem:[#allocation72_spill] sm:$0xff] }
 0x254   :  { %v2004_v18 = vadd.f32 0.5, %v1940_v28  ;;  %10534 = vtanh.f32 %v1827_v56  ;;  %v1820_v23 = vmul.f32 0.5, %v1756_v5  ;;  %v1758_v59 = vadd.f32 %v12586_v31, %v1673_v11  ;;  %9791 = vmatpush3.bf16.msra.mxu1 %v10435_v17  ;;  %v16989_v17 = vld [vmem:[#allocation73_spill] sm:$0xff]  ;;  %v16991_v11 = vld [vmem:[#allocation59_spill] sm:$0xff] }
 0x255   :  { %v10525_v55 = vpop.eup %10524  ;;  %2910 = vmatprep.mubr.bf16.mxu0 %v12781_v13  ;;  %v2008_v27 = vadd.f32 0.5, %v1944_v2  ;;  %v1824_v9 = vmul.f32 0.5, %v1760_v20  ;;  %v1762_v61 = vadd.f32 %v12586_v31, %v1677_v46  ;;  %v1680_v53 = vmul.f32 %v12440_v6, %v16987_v19  ;;  %v16992_v28 = vld [vmem:[#allocation61_spill] sm:$0xff] }
 0x256   :  { %v10527_v50 = vpop.eup %10526  ;;  %v1942_v63 = vmul.f32 0.5, %v10525_v55  ;;  %10536 = vtanh.f32 %v1820_v23  ;;  %v1822_v47 = vmul.f32 0.5, %v1758_v59  ;;  %v1684_v51 = vmul.f32 %v12440_v6, %v16988_v0  ;;  %9855 = vmatpush3.bf16.msra.mxu0 %v10437_v37 }
 0x257   :  { %v12793_v10 = vpack.c.bf16 %v2008_v27, %v2004_v18  ;;  %v1946_v48 = vmul.f32 0.5, %v10527_v50  ;;  %10538 = vtanh.f32 %v1824_v9  ;;  %v1826_v45 = vmul.f32 0.5, %v1762_v61 }
 0x258   :  { %v2006_v44 = vadd.f32 0.5, %v1942_v63  ;;  %10540 = vtanh.f32 %v1822_v47  ;;  %v1765_v40 = vadd.f32 %v12583_v32, %v1680_v53  ;;  %v1769_v12 = vadd.f32 %v12583_v32, %v1684_v51  ;;  %v16994_v63 = vld [vmem:[#allocation74_spill] sm:$0xff] }
 0x259   :  { %2798 = vmatmul.mubr.bf16.gmra.mxu1 %v12793_v10  ;;  %v2010_v16 = vadd.f32 0.5, %v1946_v48  ;;  %10542 = vtanh.f32 %v1826_v45  ;;  %v1682_v38 = vmul.f32 %v12446_v35, %v16989_v17  ;;  %v1686_v21 = vmul.f32 %v12446_v35, %v16990_v57  ;;  %v16995_v45 = vld [vmem:[#allocation64_spill] sm:$0xff] }
 0x25a   :  { %v1829_v60 = vmul.f32 0.5, %v1765_v40  ;;  %v1833_v41 = vmul.f32 0.5, %v1769_v12  ;;  %v1679_v52 = vmul.f32 %v16982_v58, %v16991_v11  ;;  %v1683_v56 = vmul.f32 %v16982_v58, %v16992_v28 }
 0x25b   :  { %v10529_v5 = vpop.eup %10528  ;;  %v12806_v37 = vpack.c.bf16 %v2010_v16, %v2006_v44  ;;  %v1767_v2 = vadd.f32 %v12589_v62, %v1682_v38  ;;  %v1771_v20 = vadd.f32 %v12589_v62, %v1686_v21  ;;  %v1681_v46 = vmul.f32 %v16985_v26, %v16993_v54  ;;  %v16996_v16 = vld [vmem:[#allocation67_spill] sm:$0xff] }
 0x25c   :  { %v10531_v18 = vpop.eup %10530  ;;  %v1949_v23 = vmul.f32 0.5, %v10529_v5  ;;  %10544 = vtanh.f32 %v1829_v60  ;;  %v1764_v59 = vadd.f32 %v12580_v8, %v1679_v52  ;;  %v1768_v55 = vadd.f32 %v12580_v8, %v1683_v56 }
 0x25d   :  { %2911 = vmatmul.mubr.bf16.gmra.mxu0 %v12806_v37  ;;  %v1953_v27 = vmul.f32 0.5, %v10531_v18  ;;  %10546 = vtanh.f32 %v1833_v41  ;;  %v1831_v9 = vmul.f32 0.5, %v1767_v2  ;;  %v1835_v61 = vmul.f32 0.5, %v1771_v20  ;;  %v16997_v2 = vld [vmem:[#allocation77_spill] sm:$0xff] }
 0x25e   :  { %v2013_v19 = vadd.f32 0.5, %v1949_v23  ;;  %v1828_v53 = vmul.f32 0.5, %v1764_v59  ;;  %v1832_v50 = vmul.f32 0.5, %v1768_v55  ;;  %v1685_v47 = vmul.f32 %v16985_v26, %v16994_v63  ;;  %v16998_v63 = vld [vmem:[#allocation63_spill] sm:$0xff] }
 0x25f   :  { %v10533_v0 = vpop.eup %10532  ;;  %v2017_v51 = vadd.f32 0.5, %v1953_v27  ;;  %10548 = vtanh.f32 %v1831_v9  ;;  %v1766_v48 = vadd.f32 %v12586_v31, %v1681_v46  ;;  %v1688_v44 = vmul.f32 %v12440_v6, %v16995_v45 }
 0x260   :  { %v1951_v40 = vmul.f32 0.5, %v10533_v0  ;;  %10550 = vtanh.f32 %v1835_v61  ;;  %v1770_v12 = vadd.f32 %v12586_v31, %v1685_v47  ;;  %v1692_v17 = vmul.f32 %v12440_v6, %v16996_v16  ;;  %v16999_v0 = vld [vmem:[#allocation65_spill] sm:$0xff] }
 0x261   :  { %v10535_v38 = vpop.eup %10534  ;;  %v12823_v57 = vpack.c.bf16 %v2017_v51, %v2013_v19  ;;  %10552 = vtanh.f32 %v1828_v53  ;;  %v1830_v21 = vmul.f32 0.5, %v1766_v48  ;;  %v1773_v60 = vadd.f32 %v12583_v32, %v1688_v44  ;;  %v17000_v48 = vld [vmem:[#allocation76_spill] sm:$0xff] }
 0x262   :  { %v1955_v41 = vmul.f32 0.5, %v10535_v38  ;;  %v2015_v11 = vadd.f32 0.5, %v1951_v40  ;;  %10554 = vtanh.f32 %v1832_v50  ;;  %v1834_v52 = vmul.f32 0.5, %v1770_v12  ;;  %v17001_v12 = vld [vmem:[#allocation78_spill] sm:$0xff] }
 0x263   :  { %v10537_v28 = vpop.eup %10536  ;;  %2807 = vmatprep.mubr.bf16.mxu1 %v12823_v57  ;;  %10556 = vtanh.f32 %v1830_v21  ;;  %v1777_v56 = vadd.f32 %v12583_v32, %v1692_v17  ;;  %v1837_v5 = vmul.f32 0.5, %v1773_v60  ;;  %v1690_v6 = vmul.f32 %v12446_v35, %v16997_v2 }
 0x264   :  { %v10539_v20 = vpop.eup %10538  ;;  %v2019_v54 = vadd.f32 0.5, %v1955_v41  ;;  %v1948_v46 = vmul.f32 0.5, %v10537_v28  ;;  %10558 = vtanh.f32 %v1834_v52  ;;  %v1687_v47 = vmul.f32 %v16982_v58, %v16998_v63 }
 0x265   :  { %v10541_v18 = vpop.eup %10540  ;;  %v1952_v23 = vmul.f32 0.5, %v10539_v20  ;;  %v1841_v59 = vmul.f32 0.5, %v1777_v56  ;;  %10560 = vtanh.f32 %v1837_v5  ;;  %v1775_v55 = vadd.f32 %v12589_v62, %v1690_v6 }
 0x266   :  { %v10543_v27 = vpop.eup %10542  ;;  %v12831_v9 = vpack.c.bf16 %v2019_v54, %v2015_v11  ;;  %v2012_v61 = vadd.f32 0.5, %v1948_v46  ;;  %v1950_v19 = vmul.f32 0.5, %v10541_v18  ;;  %v1691_v51 = vmul.f32 %v16982_v58, %v16999_v0 }
 0x267   :  { %v2016_v32 = vadd.f32 0.5, %v1952_v23  ;;  %v1954_v53 = vmul.f32 0.5, %v10543_v27  ;;  %10562 = vtanh.f32 %v1841_v59  ;;  %v1839_v50 = vmul.f32 0.5, %v1775_v55 }
 0x268   :  { %2920 = vmatprep.mubr.bf16.mxu0 %v12831_v9  ;;  %v2014_v35 = vadd.f32 0.5, %v1950_v19  ;;  %v1689_v62 = vmul.f32 %v16985_v26, %v17000_v48  ;;  %v1693_v16 = vmul.f32 %v16985_v26, %v17001_v12  ;;  %v1772_v21 = vadd.f32 %v12580_v8, %v1687_v47 }
 0x269   :  { %v10545_v45 = vpop.eup %10544  ;;  %v12840_v44 = vpack.c.bf16 %v2016_v32, %v2012_v61  ;;  %v2018_v40 = vadd.f32 0.5, %v1954_v53  ;;  %10564 = vtanh.f32 %v1839_v50  ;;  %v1776_v60 = vadd.f32 %v12580_v8, %v1691_v51 }
 0x26a   :  { %v10547_v17 = vpop.eup %10546  ;;  %v1957_v38 = vmul.f32 0.5, %v10545_v45  ;;  %v1774_v41 = vadd.f32 %v12586_v31, %v1689_v62  ;;  %v1778_v52 = vadd.f32 %v12586_v31, %v1693_v16  ;;  %v1836_v5 = vmul.f32 0.5, %v1772_v21 }
 0x26b   :  { %2808 = vmatmul.mubr.bf16.gmra.mxu1 %v12840_v44  ;;  %v12848_v58 = vpack.c.bf16 %v2018_v40, %v2014_v35  ;;  %v1961_v11 = vmul.f32 0.5, %v10547_v17  ;;  %v1840_v2 = vmul.f32 0.5, %v1776_v60  ;;  %v1971_v62 = vmul.f32 0.5, %v12656_v42 }
 0x26c   :  { %v10549_v28 = vpop.eup %10548  ;;  %v2021_v56 = vadd.f32 0.5, %v1957_v38  ;;  %v1838_v26 = vmul.f32 0.5, %v1774_v41  ;;  %v1842_v8 = vmul.f32 0.5, %v1778_v52  ;;  %10566 = vtanh.f32 %v1836_v5 }
 0x26d   :  { %v10551_v6 = vpop.eup %10550  ;;  %2921 = vmatmul.mubr.bf16.gmra.mxu0 %v12848_v58  ;;  %v2025_v20 = vadd.f32 0.5, %v1961_v11  ;;  %v1959_v54 = vmul.f32 0.5, %v10549_v28  ;;  %10568 = vtanh.f32 %v1840_v2  ;;  %v2035_v11 = vadd.f32 0.5, %v1971_v62 }
 0x26e   :  { %v10553_v46 = vpop.eup %10552  ;;  %v1963_v18 = vmul.f32 0.5, %v10551_v6  ;;  %10570 = vtanh.f32 %v1838_v26 }
 0x26f   :  { %v10555_v23 = vpop.eup %10554  ;;  %v12852_v59 = vpack.c.bf16 %v2025_v20, %v2021_v56  ;;  %v2023_v55 = vadd.f32 0.5, %v1959_v54  ;;  %v1956_v27 = vmul.f32 0.5, %v10553_v46  ;;  %10572 = vtanh.f32 %v1842_v8 }
 0x270   :  { %v10557_v31 = vpop.eup %10556  ;;  %v2027_v61 = vadd.f32 0.5, %v1963_v18  ;;  %v1960_v19 = vmul.f32 0.5, %v10555_v23 }
 0x271   :  { %v10559_v32 = vpop.eup %10558  ;;  %2817 = vmatprep.mubr.bf16.mxu1 %v12852_v59  ;;  %v2020_v53 = vadd.f32 0.5, %v1956_v27  ;;  %v1958_v50 = vmul.f32 0.5, %v10557_v31 }
 0x272   :  { %v10561_v35 = vpop.eup %10560  ;;  %v12855_v63 = vpack.c.bf16 %v2027_v61, %v2023_v55  ;;  %v2024_v47 = vadd.f32 0.5, %v1960_v19  ;;  %v1962_v0 = vmul.f32 0.5, %v10559_v32 }
 0x273   :  { %v2022_v51 = vadd.f32 0.5, %v1958_v50  ;;  %v1965_v48 = vmul.f32 0.5, %v10561_v35 }
 0x274   :  { %v10563_v45 = vpop.eup %10562  ;;  %2930 = vmatprep.mubr.bf16.mxu0 %v12855_v63  ;;  %v2188_v40 = vpack.c.bf16 %v2024_v47, %v2020_v53  ;;  %v2026_v12 = vadd.f32 0.5, %v1962_v0 }
 0x275   :  { %v1969_v16 = vmul.f32 0.5, %v10563_v45  ;;  %v2029_v17 = vadd.f32 0.5, %v1965_v48 }
 0x276   :  { %v10565_v38 = vpop.eup %10564  ;;  %2818 = vmatmul.mubr.bf16.gmra.mxu1 %v2188_v40  ;;  %v2190_v21 = vpack.c.bf16 %v2026_v12, %v2022_v51 }
 0x277   :  { %v2033_v60 = vadd.f32 0.5, %v1969_v16  ;;  %v1967_v41 = vmul.f32 0.5, %v10565_v38 }
 0x278   :  { %2931 = vmatmul.mubr.bf16.gmra.mxu0 %v2190_v21 }
 0x279   :  { %v2193_v52 = vpack.c.bf16 %v2033_v60, %v2029_v17  ;;  %v2031_v28 = vadd.f32 0.5, %v1967_v41  ;;  %v10567_v56 = vpop.eup %10566 }
 0x27a   :  { %v10569_v42 = vpop.eup %10568  ;;  %v1964_v2 = vmul.f32 0.5, %v10567_v56 }
 0x27b   :  { %2827 = vmatprep.mubr.bf16.mxu1 %v2193_v52  ;;  %v2195_v5 = vpack.c.bf16 %v2035_v11, %v2031_v28  ;;  %v10571_v26 = vpop.eup %10570  ;;  %v1968_v6 = vmul.f32 0.5, %v10569_v42 }
 0x27c   :  { %v10573_v20 = vpop.eup %10572  ;;  %v2028_v54 = vadd.f32 0.5, %v1964_v2  ;;  %v1966_v8 = vmul.f32 0.5, %v10571_v26 }
 0x27d   :  { %2940 = vmatprep.mubr.bf16.mxu0 %v2195_v5  ;;  %v2032_v46 = vadd.f32 0.5, %v1968_v6  ;;  %v1970_v18 = vmul.f32 0.5, %v10573_v20 }
 0x27e   :  { %v2030_v23 = vadd.f32 0.5, %v1966_v8 }
 0x27f   :  { %v2192_v55 = vpack.c.bf16 %v2032_v46, %v2028_v54  ;;  %v2034_v27 = vadd.f32 0.5, %v1970_v18 }
 0x281   :  { %2828 = vmatmul.mubr.bf16.gmra.mxu1 %v2192_v55  ;;  %v2194_v31 = vpack.c.bf16 %v2034_v27, %v2030_v23 }
 0x282   :  { %2983 = vmatprep.mubr.bf16.mxu1 %v12684_v7  ;;  %v12885_v7 = vld [vmem:[#allocation16] sm:$0x7] }
 0x283   :  { %2941 = vmatmul.mubr.bf16.gmra.mxu0 %v2194_v31 }
 0x284   :  { %3080 = vmatprep.mubr.bf16.mxu0 %v12689_v39  ;;  %v17002_v39 = vld [vmem:[#allocation80_spill] sm:$0xff] }
 0x289   :  { %2984 = vmatmul.mubr.bf16.vlgmr.msra.gmra.mxu1 %v12694_v24  ;;  %v12889_v24 = vrot.slane %v12885_v7, %v17002_v39 }
 0x28a   :  { %2991 = vmatprep.mubr.bf16.mxu1 %v12708_v34 }
 0x28b   :  { %3081 = vmatmul.mubr.bf16.vlgmr.msra.gmra.mxu0 %v12701_v33  ;;  %v17003_v33 = vld [vmem:[#allocation81_spill] sm:$0xff] }
 0x28c   :  { %3088 = vmatprep.mubr.bf16.mxu0 %v12713_v29  ;;  %v12893_v34 = vrot.slane %v12885_v7, %v17003_v33 }
 0x291   :  { %2992 = vmatmul.mubr.bf16.gmra.mxu1 %v12718_v25 }
 0x292   :  { %2999 = vmatprep.mubr.bf16.mxu1 %v12731_v1 }
 0x293   :  { %3089 = vmatmul.mubr.bf16.gmra.mxu0 %v12725_v4 }
 0x294   :  { %3096 = vmatprep.mubr.bf16.mxu0 %v12734_v43 }
 0x299   :  { %3000 = vmatmul.mubr.bf16.gmra.mxu1 %v12741_v22 }
 0x29a   :  { %3007 = vmatprep.mubr.bf16.mxu1 %v12751_v36 }
 0x29b   :  { %3097 = vmatmul.mubr.bf16.gmra.mxu0 %v12744_v3 }
 0x29c   :  { %3104 = vmatprep.mubr.bf16.mxu0 %v12756_v30 }
 0x2a1   :  { %3008 = vmatmul.mubr.bf16.gmra.mxu1 %v12761_v15 }
 0x2a2   :  { %3015 = vmatprep.mubr.bf16.mxu1 %v12773_v14 }
 0x2a3   :  { %3105 = vmatmul.mubr.bf16.gmra.mxu0 %v12767_v49 }
 0x2a4   :  { %3112 = vmatprep.mubr.bf16.mxu0 %v12781_v13 }
 0x2a9   :  { %3016 = vmatmul.mubr.bf16.gmra.mxu1 %v12793_v10 }
 0x2aa   :  { %3023 = vmatprep.mubr.bf16.mxu1 %v12823_v57 }
 0x2ab   :  { %3113 = vmatmul.mubr.bf16.gmra.mxu0 %v12806_v37 }
 0x2ac   :  { %3120 = vmatprep.mubr.bf16.mxu0 %v12831_v9 }
 0x2b1   :  { %3024 = vmatmul.mubr.bf16.gmra.mxu1 %v12840_v44 }
 0x2b2   :  { %3031 = vmatprep.mubr.bf16.mxu1 %v12852_v59 }
 0x2b3   :  { %3121 = vmatmul.mubr.bf16.gmra.mxu0 %v12848_v58 }
 0x2b4   :  { %3128 = vmatprep.mubr.bf16.mxu0 %v12855_v63 }
 0x2b9   :  { %3032 = vmatmul.mubr.bf16.gmra.mxu1 %v2188_v40 }
 0x2ba   :  { %3039 = vmatprep.mubr.bf16.mxu1 %v2193_v52 }
 0x2bb   :  { %3129 = vmatmul.mubr.bf16.gmra.mxu0 %v2190_v21 }
 0x2bc   :  { %3136 = vmatprep.mubr.bf16.mxu0 %v2195_v5 }
 0x2c1   :  { %3040 = vmatmul.mubr.bf16.gmra.mxu1 %v2192_v55 }
 0x2c3   :  { %3137 = vmatmul.mubr.bf16.gmra.mxu0 %v2194_v31 }
 0x2f7   :  { %v2759_v29 = vpop.f32.mrf.mxu1 }
 0x2f8   :  { %v2760_v25 = vadd.f32 %v2759_v29, %v12889_v24 }
 0x2f9   :  { %v2872_v4 = vpop.f32.mrf.mxu0  ;;  %v2761_v1 = vpop.f32.mrf.mxu1 }
 0x2fa   :  { %v12896_v43 = vadd.f32 %v2872_v4, %v2760_v25  ;;  %v2762_v22 = vadd.f32 %v2761_v1, %v12893_v34 }
 0x2fb   :  { %v2874_v3 = vpop.f32.mrf.mxu0  ;;  %v2763_v36 = vpop.f32.mrf.mxu1 }
 0x2fc   :  { %v12899_v30 = vadd.f32 %v2874_v3, %v2762_v22  ;;  %v2764_v15 = vadd.f32 %v2763_v36, %v12889_v24 }
 0x2fd   :  { %v2876_v49 = vpop.f32.mrf.mxu0  ;;  %v2765_v14 = vpop.f32.mrf.mxu1 }
 0x2fe   :  { %v12902_v13 = vadd.f32 %v2876_v49, %v2764_v15  ;;  %v2766_v10 = vadd.f32 %v2765_v14, %v12893_v34 }
 0x2ff   :  { %v2878_v37 = vpop.f32.mrf.mxu0  ;;  %v2769_v57 = vpop.f32.mrf.mxu1 }
 0x300   :  { %v12905_v9 = vadd.f32 %v2878_v37, %v2766_v10  ;;  %v2770_v44 = vadd.f32 %v2769_v57, %v12889_v24 }
 0x301   :  { %v2882_v58 = vpop.f32.mrf.mxu0  ;;  %v2771_v59 = vpop.f32.mrf.mxu1 }
 0x302   :  { %v12908_v61 = vadd.f32 %v2882_v58, %v2770_v44  ;;  %v2772_v19 = vadd.f32 %v2771_v59, %v12893_v34 }
 0x303   :  { %v2884_v32 = vpop.f32.mrf.mxu0  ;;  %v2773_v53 = vpop.f32.mrf.mxu1 }
 0x304   :  { %v12911_v50 = vadd.f32 %v2884_v32, %v2772_v19  ;;  %v2774_v35 = vadd.f32 %v2773_v53, %v12889_v24 }
 0x305   :  { %v2886_v63 = vpop.f32.mrf.mxu0  ;;  %v2775_v47 = vpop.f32.mrf.mxu1 }
 0x306   :  { %v12914_v0 = vadd.f32 %v2886_v63, %v2774_v35  ;;  %v2776_v51 = vadd.f32 %v2775_v47, %v12893_v34 }
 0x307   :  { %v2888_v48 = vpop.f32.mrf.mxu0  ;;  %v2779_v62 = vpop.f32.mrf.mxu1 }
 0x308   :  { %v12917_v45 = vadd.f32 %v2888_v48, %v2776_v51  ;;  %v2780_v40 = vadd.f32 %v2779_v62, %v12889_v24 }
 0x309   :  { %v2892_v12 = vpop.f32.mrf.mxu0  ;;  %v2781_v16 = vpop.f32.mrf.mxu1 }
 0x30a   :  { %v12920_v17 = vadd.f32 %v2892_v12, %v2780_v40  ;;  %v2782_v38 = vadd.f32 %v2781_v16, %v12893_v34 }
 0x30b   :  { %v2894_v21 = vpop.f32.mrf.mxu0  ;;  %v2783_v60 = vpop.f32.mrf.mxu1 }
 0x30c   :  { %v12923_v41 = vadd.f32 %v2894_v21, %v2782_v38  ;;  %v2784_v11 = vadd.f32 %v2783_v60, %v12889_v24 }
 0x30d   :  { %v2896_v52 = vpop.f32.mrf.mxu0  ;;  %v2785_v28 = vpop.f32.mrf.mxu1 }
 0x30e   :  { %v12926_v56 = vadd.f32 %v2896_v52, %v2784_v11  ;;  %v2786_v5 = vadd.f32 %v2785_v28, %v12893_v34 }
 0x30f   :  { %v2898_v42 = vpop.f32.mrf.mxu0  ;;  %v2789_v2 = vpop.f32.mrf.mxu1 }
 0x310   :  { %v12929_v26 = vadd.f32 %v2898_v42, %v2786_v5  ;;  %v2790_v6 = vadd.f32 %v2789_v2, %v12889_v24 }
 0x311   :  { %v2902_v20 = vpop.f32.mrf.mxu0  ;;  %v2791_v54 = vpop.f32.mrf.mxu1 }
 0x312   :  { %11551 = shalt.err (!%p11548_p6)  }
 0x313   :  { %147 = dma.hbm_to_vmem [thread:$0]  %s16701_s6, 12288, %s145_s0, [#allocation6]  ;;  %v12935_v8 = vadd.f32 %v2902_v20, %v2790_v6  ;;  %v2792_v46 = vadd.f32 %v2791_v54, %v12893_v34 }
 0x314   :  { %s11560_s24 = scalar_lea.vmem %s157_s1, 16384  ;;  %p11565_p8 = scmp.lt.s32.totalorder %s157_s1, %s157_s1 }
 0x315   :  { %p11561_p7 = scmp.ne.s32.totalorder %s157_s1, %s11560_s24  ;;  %p11566_p9 = scmp.lt.s32.totalorder %s11560_s24, %s11560_s24 }
 0x317   :  { %p11567_p10 = por %p11566_p9, %p11565_p8 }
 0x319   :  { %p11568_p11 = pnand %p11567_p10, %p11561_p7 }
 0x31b   :  { %11571 = shalt.err (!%p11568_p11)  }
 0x31c   :  { %159 = dma.hbm_to_vmem [thread:$0]  %s16704_s9, 16384, %s157_s1, [#allocation6 + $0x1]  ;;  %v2904_v18 = vpop.f32.mrf.mxu0  ;;  %v2793_v23 = vpop.f32.mrf.mxu1 }
 0x31d   :  { %v12941_v55 = vadd.f32 %v2904_v18, %v2792_v46  ;;  %v2794_v27 = vadd.f32 %v2793_v23, %v12889_v24  ;;  %s11688_s6 = smov [#allocation4]   ;;  %s11689_s26 = smov [#allocation5]  }
 0x31e   :  { %s168_s18 = sshll.u32 %s11688_s6, 4  ;;  %s180_s27 = sshll.u32 %s11689_s26, 4  ;;  %v2906_v31 = vpop.f32.mrf.mxu0  ;;  %v2795_v29 = vpop.f32.mrf.mxu1  ;;  %s169_s18 = int_to_ptr.vmem [resolvable:$true] %s168_s18  ;;  %s181_s27 = int_to_ptr.vmem [resolvable:$true] %s180_s27 }
 0x31f   :  { %v12944_v25 = vadd.f32 %v2906_v31, %v2794_v27  ;;  %v2796_v4 = vadd.f32 %v2795_v29, %v12893_v34  ;;  %s11580_s28 = scalar_lea.vmem %s169_s18, 4096  ;;  %p11585_p13 = scmp.lt.s32.totalorder %s169_s18, %s169_s18 }
 0x320   :  { %p11581_p12 = scmp.ne.s32.totalorder %s169_s18, %s11580_s28  ;;  %p11586_p0 = scmp.lt.s32.totalorder %s11580_s28, %s11580_s28 }
 0x322   :  { %p11587_p1 = por %p11586_p0, %p11585_p13 }
 0x324   :  { %p11588_p2 = pnand %p11587_p1, %p11581_p12 }
 0x326   :  { %11591 = shalt.err (!%p11588_p2)  }
 0x327   :  { %171 = dma.hbm_to_vmem [thread:$0]  %s16707_s12, 4096, %s169_s18, [#allocation6 + $0x2]  ;;  %v2908_v1 = vpop.f32.mrf.mxu0 }
 0x328   :  { %s11600_s5 = scalar_lea.vmem %s181_s27, 9216  ;;  %p11605_p4 = scmp.lt.s32.totalorder %s181_s27, %s181_s27 }
 0x329   :  { %p11601_p3 = scmp.ne.s32.totalorder %s181_s27, %s11600_s5  ;;  %p11606_p5 = scmp.lt.s32.totalorder %s11600_s5, %s11600_s5 }
 0x32b   :  { %p11607_p6 = por %p11606_p5, %p11605_p4 }
 0x32d   :  { %p11608_p7 = pnand %p11607_p6, %p11601_p3 }
 0x32f   :  { %11611 = shalt.err (!%p11608_p7)  }
 0x330   :  { %183 = dma.hbm_to_vmem [thread:$0]  %s16709_s14, 9216, %s181_s27, [#allocation6 + $0x3]  ;;  %v12953_v22 = vadd.f32 %v2908_v1, %v2796_v4  ;;  %v2799_v3 = vpop.f32.mrf.mxu1  ;;  %v2912_v14 = vpop.f32.mrf.mxu0 }
 0x331   :  { %v2800_v36 = vadd.f32 %v2799_v3, %v12889_v24 }
 0x332   :  { %v2801_v15 = vpop.f32.mrf.mxu1  ;;  %v2914_v44 = vpop.f32.mrf.mxu0 }
 0x333   :  { %v2802_v49 = vadd.f32 %v2801_v15, %v12893_v34  ;;  %v12957_v37 = vadd.f32 %v2912_v14, %v2800_v36 }
 0x334   :  { %v2803_v10 = vpop.f32.mrf.mxu1  ;;  %v2916_v32 = vpop.f32.mrf.mxu0 }
 0x335   :  { %v2804_v57 = vadd.f32 %v2803_v10, %v12889_v24  ;;  %v12960_v59 = vadd.f32 %v2914_v44, %v2802_v49 }
 0x336   :  { %v2805_v58 = vpop.f32.mrf.mxu1  ;;  %v2918_v35 = vpop.f32.mrf.mxu0 }
 0x337   :  { %v2806_v19 = vadd.f32 %v2805_v58, %v12893_v34  ;;  %v12963_v53 = vadd.f32 %v2916_v32, %v2804_v57 }
 0x338   :  { %v2809_v47 = vpop.f32.mrf.mxu1  ;;  %v2922_v48 = vpop.f32.mrf.mxu0 }
 0x339   :  { %v12965_v63 = vadd.f32 %v2918_v35, %v2806_v19  ;;  %v2810_v51 = vadd.f32 %v2809_v47, %v12889_v24 }
 0x33a   :  { %v2811_v62 = vpop.f32.mrf.mxu1  ;;  %v2924_v16 = vpop.f32.mrf.mxu0 }
 0x33b   :  { %v12968_v40 = vadd.f32 %v2922_v48, %v2810_v51  ;;  %v2812_v12 = vadd.f32 %v2811_v62, %v12893_v34 }
 0x33c   :  { %v2813_v38 = vpop.f32.mrf.mxu1  ;;  %v2926_v11 = vpop.f32.mrf.mxu0 }
 0x33d   :  { %v12971_v21 = vadd.f32 %v2924_v16, %v2812_v12  ;;  %v2814_v60 = vadd.f32 %v2813_v38, %v12889_v24 }
 0x33e   :  { %v2815_v52 = vpop.f32.mrf.mxu1  ;;  %v2928_v42 = vpop.f32.mrf.mxu0 }
 0x33f   :  { %v12974_v28 = vadd.f32 %v2926_v11, %v2814_v60  ;;  %v2816_v5 = vadd.f32 %v2815_v52, %v12893_v34  ;;  %v17006_v52 = vld [vmem:[#allocation82_spill] sm:$0xff] }
 0x340   :  { %v2819_v6 = vpop.f32.mrf.mxu1  ;;  %v2932_v54 = vpop.f32.mrf.mxu0 }
 0x341   :  { %v12977_v2 = vadd.f32 %v2928_v42, %v2816_v5  ;;  %v2820_v20 = vadd.f32 %v2819_v6, %v12889_v24  ;;  %v13003_v5 = vrot.slane %v12885_v7, %v17006_v52 }
 0x342   :  { %v2821_v46 = vpop.f32.mrf.mxu1  ;;  %v2934_v27 = vpop.f32.mrf.mxu0 }
 0x343   :  { %v12980_v18 = vadd.f32 %v2932_v54, %v2820_v20  ;;  %v2822_v23 = vadd.f32 %v2821_v46, %v12893_v34 }
 0x344   :  { %v2823_v31 = vpop.f32.mrf.mxu1  ;;  %v2936_v1 = vpop.f32.mrf.mxu0 }
 0x345   :  { %v12983_v29 = vadd.f32 %v2934_v27, %v2822_v23  ;;  %v2824_v4 = vadd.f32 %v2823_v31, %v12889_v24 }
 0x346   :  { %v2825_v3 = vpop.f32.mrf.mxu1  ;;  %v2938_v49 = vpop.f32.mrf.mxu0 }
 0x347   :  { %v12986_v36 = vadd.f32 %v2936_v1, %v2824_v4  ;;  %v2826_v15 = vadd.f32 %v2825_v3, %v12893_v34 }
 0x348   :  { %v2829_v10 = vpop.f32.mrf.mxu1  ;;  %v2942_v44 = vpop.f32.mrf.mxu0 }
 0x349   :  { %v12989_v14 = vadd.f32 %v2938_v49, %v2826_v15  ;;  %v2830_v57 = vadd.f32 %v2829_v10, %v12889_v24 }
 0x34a   :  { %v2831_v58 = vpop.f32.mrf.mxu1  ;;  %v2944_v35 = vpop.f32.mrf.mxu0 }
 0x34b   :  { %v12992_v19 = vadd.f32 %v2942_v44, %v2830_v57  ;;  %v2832_v32 = vadd.f32 %v2831_v58, %v12893_v34 }
 0x34c   :  { %v2833_v47 = vpop.f32.mrf.mxu1  ;;  %v2946_v62 = vpop.f32.mrf.mxu0 }
 0x34d   :  { %17004 = vst [vmem:[#allocation42_spill] sm:$0xff] %v12992_v19  ;;  %v12995_v51 = vadd.f32 %v2944_v35, %v2832_v32  ;;  %v2834_v48 = vadd.f32 %v2833_v47, %v12889_v24 }
 0x34e   :  { %v2835_v12 = vpop.f32.mrf.mxu1  ;;  %v2948_v60 = vpop.f32.mrf.mxu0 }
 0x34f   :  { %v12998_v16 = vadd.f32 %v2946_v62, %v2834_v48  ;;  %v2836_v38 = vadd.f32 %v2835_v12, %v12893_v34 }
 0x350   :  { %v9792_v11 = vpop.f32.mrf.mxu1  ;;  %v9856_v6 = vpop.f32.mrf.mxu0 }
 0x351   :  { %17005 = vst [vmem:[#allocation44_spill] sm:$0xff] %v12998_v16  ;;  %v13005_v42 = vadd.f32 %v2948_v60, %v2836_v38 }
 0x352   :  { %v9793_v20 = vpop.f32.mrf.mxu1  ;;  %v9857_v46 = vpop.f32.mrf.mxu0 }
 0x353   :  { %v9794_v54 = vadd.f32 %v9793_v20, %v9792_v11  ;;  %v9858_v27 = vadd.f32 %v9857_v46, %v9856_v6 }
 0x354   :  { %v9795_v23 = vpop.f32.mrf.mxu1  ;;  %v9859_v31 = vpop.f32.mrf.mxu0 }
 0x355   :  { %v2986_v24 = vadd.f32 %v9794_v54, %v13003_v5 }
 0x356   :  { %v9796_v4 = vpop.f32.mrf.mxu1  ;;  %v9860_v3 = vpop.f32.mrf.mxu0 }
 0x357   :  { %v13008_v1 = vadd.f32 %v9858_v27, %v2986_v24  ;;  %v9797_v34 = vadd.f32 %v9796_v4, %v9795_v23  ;;  %v9861_v49 = vadd.f32 %v9860_v3, %v9859_v31 }
 0x358   :  { %v9798_v15 = vpop.f32.mrf.mxu1  ;;  %v9862_v10 = vpop.f32.mrf.mxu0 }
 0x359   :  { %v2989_v7 = vadd.f32 %v9797_v34, %v13003_v5 }
 0x35a   :  { %v9799_v57 = vpop.f32.mrf.mxu1  ;;  %v9863_v32 = vpop.f32.mrf.mxu0 }
 0x35b   :  { %v13011_v44 = vadd.f32 %v9861_v49, %v2989_v7  ;;  %v9800_v58 = vadd.f32 %v9799_v57, %v9798_v15  ;;  %v9864_v48 = vadd.f32 %v9863_v32, %v9862_v10 }
 0x35c   :  { %v9801_v35 = vpop.f32.mrf.mxu1  ;;  %v9865_v62 = vpop.f32.mrf.mxu0 }
 0x35d   :  { %v2994_v47 = vadd.f32 %v9800_v58, %v13003_v5 }
 0x35e   :  { %v9802_v12 = vpop.f32.mrf.mxu1  ;;  %v9866_v11 = vpop.f32.mrf.mxu0 }
 0x35f   :  { %v13014_v38 = vadd.f32 %v9864_v48, %v2994_v47  ;;  %v9803_v60 = vadd.f32 %v9802_v12, %v9801_v35  ;;  %v9867_v54 = vadd.f32 %v9866_v11, %v9865_v62 }
 0x360   :  { %v9804_v6 = vpop.f32.mrf.mxu1  ;;  %v9868_v46 = vpop.f32.mrf.mxu0 }
 0x361   :  { %v2997_v20 = vadd.f32 %v9803_v60, %v13003_v5 }
 0x362   :  { %v9805_v23 = vpop.f32.mrf.mxu1  ;;  %v9869_v31 = vpop.f32.mrf.mxu0 }
 0x363   :  { %v13017_v24 = vadd.f32 %v9867_v54, %v2997_v20  ;;  %v9806_v27 = vadd.f32 %v9805_v23, %v9804_v6  ;;  %v9870_v3 = vadd.f32 %v9869_v31, %v9868_v46 }
 0x364   :  { %v9807_v4 = vpop.f32.mrf.mxu1  ;;  %v9871_v15 = vpop.f32.mrf.mxu0 }
 0x365   :  { %v3002_v34 = vadd.f32 %v9806_v27, %v13003_v5 }
 0x366   :  { %v9808_v7 = vpop.f32.mrf.mxu1  ;;  %v9872_v57 = vpop.f32.mrf.mxu0 }
 0x367   :  { %v13020_v49 = vadd.f32 %v9870_v3, %v3002_v34  ;;  %v9809_v10 = vadd.f32 %v9808_v7, %v9807_v4  ;;  %v9873_v35 = vadd.f32 %v9872_v57, %v9871_v15 }
 0x368   :  { %v9810_v58 = vpop.f32.mrf.mxu1  ;;  %v9874_v47 = vpop.f32.mrf.mxu0 }
 0x369   :  { %v3005_v32 = vadd.f32 %v9809_v10, %v13003_v5 }
 0x36a   :  { %v9811_v48 = vpop.f32.mrf.mxu1  ;;  %v9875_v60 = vpop.f32.mrf.mxu0 }
 0x36b   :  { %v13023_v62 = vadd.f32 %v9873_v35, %v3005_v32  ;;  %v9812_v12 = vadd.f32 %v9811_v48, %v9810_v58  ;;  %v9876_v20 = vadd.f32 %v9875_v60, %v9874_v47 }
 0x36c   :  { %v9813_v11 = vpop.f32.mrf.mxu1  ;;  %v9877_v54 = vpop.f32.mrf.mxu0 }
 0x36d   :  { %v3010_v6 = vadd.f32 %v9812_v12, %v13003_v5 }
 0x36e   :  { %v9814_v46 = vpop.f32.mrf.mxu1  ;;  %v9878_v31 = vpop.f32.mrf.mxu0 }
 0x36f   :  { %v13026_v23 = vadd.f32 %v9876_v20, %v3010_v6  ;;  %v9815_v27 = vadd.f32 %v9814_v46, %v9813_v11  ;;  %v9879_v3 = vadd.f32 %v9878_v31, %v9877_v54 }
 0x370   :  { %v9816_v4 = vpop.f32.mrf.mxu1  ;;  %v9880_v15 = vpop.f32.mrf.mxu0 }
 0x371   :  { %v3013_v34 = vadd.f32 %v9815_v27, %v13003_v5 }
 0x372   :  { %v9817_v7 = vpop.f32.mrf.mxu1  ;;  %v9881_v58 = vpop.f32.mrf.mxu0 }
 0x373   :  { %v13029_v10 = vadd.f32 %v9879_v3, %v3013_v34  ;;  %v9818_v57 = vadd.f32 %v9817_v7, %v9816_v4  ;;  %v9882_v47 = vadd.f32 %v9881_v58, %v9880_v15 }
 0x374   :  { %v9819_v32 = vpop.f32.mrf.mxu1  ;;  %v9883_v48 = vpop.f32.mrf.mxu0 }
 0x375   :  { %v3018_v35 = vadd.f32 %v9818_v57, %v13003_v5 }
 0x376   :  { %v9820_v12 = vpop.f32.mrf.mxu1  ;;  %v9884_v6 = vpop.f32.mrf.mxu0 }
 0x377   :  { %v13032_v60 = vadd.f32 %v9882_v47, %v3018_v35  ;;  %v9821_v11 = vadd.f32 %v9820_v12, %v9819_v32  ;;  %v9885_v54 = vadd.f32 %v9884_v6, %v9883_v48 }
 0x378   :  { %v9822_v20 = vpop.f32.mrf.mxu1  ;;  %v9886_v27 = vpop.f32.mrf.mxu0 }
 0x379   :  { %v3021_v46 = vadd.f32 %v9821_v11, %v13003_v5 }
 0x37a   :  { %v9823_v31 = vpop.f32.mrf.mxu1  ;;  %v9887_v3 = vpop.f32.mrf.mxu0 }
 0x37b   :  { %v13035_v34 = vadd.f32 %v9885_v54, %v3021_v46  ;;  %v9824_v4 = vadd.f32 %v9823_v31, %v9822_v20  ;;  %v9888_v15 = vadd.f32 %v9887_v3, %v9886_v27 }
 0x37c   :  { %v9825_v7 = vpop.f32.mrf.mxu1  ;;  %v9889_v58 = vpop.f32.mrf.mxu0 }
 0x37d   :  { %v3026_v57 = vadd.f32 %v9824_v4, %v13003_v5 }
 0x37e   :  { %v9826_v52 = vpop.f32.mrf.mxu1  ;;  %v9890_v47 = vpop.f32.mrf.mxu0 }
 0x37f   :  { %v13038_v35 = vadd.f32 %v9888_v15, %v3026_v57  ;;  %v9827_v32 = vadd.f32 %v9826_v52, %v9825_v7  ;;  %v9891_v48 = vadd.f32 %v9890_v47, %v9889_v58 }
 0x380   :  { %v9828_v12 = vpop.f32.mrf.mxu1  ;;  %v9892_v6 = vpop.f32.mrf.mxu0 }
 0x381   :  { %v3029_v11 = vadd.f32 %v9827_v32, %v13003_v5 }
 0x382   :  { %v9829_v33 = vpop.f32.mrf.mxu1  ;;  %v9893_v54 = vpop.f32.mrf.mxu0 }
 0x383   :  { %v13041_v46 = vadd.f32 %v9891_v48, %v3029_v11  ;;  %v9830_v20 = vadd.f32 %v9829_v33, %v9828_v12  ;;  %v9894_v27 = vadd.f32 %v9893_v54, %v9892_v6 }
 0x384   :  { %v9831_v31 = vpop.f32.mrf.mxu1  ;;  %v9895_v3 = vpop.f32.mrf.mxu0 }
 0x385   :  { %v3034_v4 = vadd.f32 %v9830_v20, %v13003_v5 }
 0x386   :  { %v9832_v39 = vpop.f32.mrf.mxu1  ;;  %v9896_v7 = vpop.f32.mrf.mxu0 }
 0x387   :  { %v13044_v57 = vadd.f32 %v9894_v27, %v3034_v4  ;;  %v9833_v52 = vadd.f32 %v9832_v39, %v9831_v31  ;;  %v9897_v58 = vadd.f32 %v9896_v7, %v9895_v3 }
 0x388   :  { %v9834_v15 = vpop.f32.mrf.mxu1  ;;  %v9898_v47 = vpop.f32.mrf.mxu0 }
 0x389   :  { %v3037_v32 = vadd.f32 %v9833_v52, %v13003_v5 }
 0x38a   :  { %v9835_v16 = vpop.f32.mrf.mxu1  ;;  %v9899_v12 = vpop.f32.mrf.mxu0 }
 0x38b   :  { %v13047_v11 = vadd.f32 %v9897_v58, %v3037_v32  ;;  %v9836_v33 = vadd.f32 %v9835_v16, %v9834_v15  ;;  %v9900_v6 = vadd.f32 %v9899_v12, %v9898_v47 }
 0x38c   :  { %v9837_v48 = vpop.f32.mrf.mxu1  ;;  %v9901_v54 = vpop.f32.mrf.mxu0 }
 0x38d   :  { %v3042_v20 = vadd.f32 %v9836_v33, %v13003_v5 }
 0x38e   :  { %v9838_v19 = vpop.f32.mrf.mxu1  ;;  %v9902_v31 = vpop.f32.mrf.mxu0 }
 0x38f   :  { %v13050_v4 = vadd.f32 %v9900_v6, %v3042_v20  ;;  %v9839_v39 = vadd.f32 %v9838_v19, %v9837_v48  ;;  %v9903_v52 = vadd.f32 %v9902_v31, %v9901_v54 }
 0x391   :  { %v3045_v27 = vadd.f32 %v9839_v39, %v13003_v5 }
 0x393   :  { %v13053_v3 = vadd.f32 %v9903_v52, %v3045_v27 }
 0x394   :  { %11660 = dma.done.wait [#allocation6], 12288 }
 0x395   :  { %11661 = vsyncadd [#allocation6], 4294955008  ;;  %v17007_v7 = vmov 0   ;;  %v13058_v16 = vpack.c.bf16 %v12905_v9, %v12899_v30  ;;  %v10574_v15 = vld [vmem:[#allocation2 + $0xe4] ss:$16 sps:$4 sm:$0xff]  }
 0x396   :  { %3894 = vmatprep.mubr.bf16.mxu0 %v17007_v7  ;;  %v10576_v32 = vld [vmem:[#allocation2 + $0xe0] ss:$16 sps:$4 sm:$0xff]   ;;  %3749 = vmatprep.subr.bf16.mxu1 %v10574_v15  ;;  %v10577_v19 = vld [vmem:[#allocation2 + $0xc4] ss:$16 sps:$4 sm:$0xff]  }
 0x397   :  { %17008 = vst [vmem:[#allocation66_spill] sm:$0xff] %v13058_v16  ;;  %3781 = vmatprep.mubr.bf16.mxu1 %v13058_v16  ;;  %3750 = vmatpush1.bf16.msra.mxu1 %v10576_v32  ;;  %v10579_v58 = vld [vmem:[#allocation2 + $0xc0] ss:$16 sps:$4 sm:$0xff]   ;;  %v10580_v5 = vld [vmem:[#allocation2 + $0xa4] ss:$16 sps:$4 sm:$0xff]  }
 0x398   :  { %3751 = vmatprep.subr.bf16.mxu1 %v10577_v19  ;;  %v10582_v47 = vld [vmem:[#allocation2 + $0xa0] ss:$16 sps:$4 sm:$0xff]   ;;  %v10583_v33 = vld [vmem:[#allocation2 + $0x84] ss:$16 sps:$4 sm:$0xff]  }
 0x399   :  { %v10595_v12 = vld [vmem:[#allocation2 + $0x2e4] ss:$16 sps:$4 sm:$0xff]   ;;  %v10585_v48 = vld [vmem:[#allocation2 + $0x80] ss:$16 sps:$4 sm:$0xff]  }
 0x39a   :  { %v10586_v20 = vld [vmem:[#allocation2 + $0x64] ss:$16 sps:$4 sm:$0xff]   ;;  %v10599_v30 = vld [vmem:[#allocation2 + $0x2e0] ss:$16 sps:$4 sm:$0xff]   ;;  %3862 = vmatprep.subr.bf16.mxu0 %v10595_v12 }
 0x39b   :  { %3752 = vmatpush1.bf16.msra.mxu1 %v10579_v58  ;;  %v10601_v9 = vld [vmem:[#allocation2 + $0x2c4] ss:$16 sps:$4 sm:$0xff]   ;;  %3863 = vmatpush1.bf16.msra.mxu0 %v10599_v30  ;;  %v10588_v6 = vld [vmem:[#allocation2 + $0x60] ss:$16 sps:$4 sm:$0xff]  }
 0x39c   :  { %3753 = vmatprep.subr.bf16.mxu1 %v10580_v5  ;;  %3864 = vmatprep.subr.bf16.mxu0 %v10601_v9  ;;  %v10605_v54 = vld [vmem:[#allocation2 + $0x2c0] ss:$16 sps:$4 sm:$0xff]   ;;  %v10607_v39 = vld [vmem:[#allocation2 + $0x2a4] ss:$16 sps:$4 sm:$0xff]  }
 0x39d   :  { %v10589_v31 = vld [vmem:[#allocation2 + $0x44] ss:$16 sps:$4 sm:$0xff]   ;;  %v10611_v27 = vld [vmem:[#allocation2 + $0x2a0] ss:$16 sps:$4 sm:$0xff]  }
 0x39e   :  { %v10613_v52 = vld [vmem:[#allocation2 + $0x284] ss:$16 sps:$4 sm:$0xff]   ;;  %v10591_v15 = vld [vmem:[#allocation2 + $0x40] ss:$16 sps:$4 sm:$0xff]  }
 0x39f   :  { %3754 = vmatpush1.bf16.msra.mxu1 %v10582_v47  ;;  %3865 = vmatpush1.bf16.msra.mxu0 %v10605_v54  ;;  %v10592_v32 = vld [vmem:[#allocation2 + $0x24] ss:$16 sps:$4 sm:$0xff]   ;;  %v10617_v19 = vld [vmem:[#allocation2 + $0x280] ss:$16 sps:$4 sm:$0xff]  }
 0x3a0   :  { %3755 = vmatprep.subr.bf16.mxu1 %v10583_v33  ;;  %3866 = vmatprep.subr.bf16.mxu0 %v10607_v39  ;;  %v10619_v58 = vld [vmem:[#allocation2 + $0x264] ss:$16 sps:$4 sm:$0xff]   ;;  %v10594_v5 = vld [vmem:[#allocation2 + $0x20] ss:$16 sps:$4 sm:$0xff]  }
 0x3a1   :  { %v10597_v47 = vld [vmem:[#allocation2 + $0x4] ss:$16 sps:$4 sm:$0xff]   ;;  %v10623_v33 = vld [vmem:[#allocation2 + $0x260] ss:$16 sps:$4 sm:$0xff]  }
 0x3a2   :  { %v10625_v12 = vld [vmem:[#allocation2 + $0x244] ss:$16 sps:$4 sm:$0xff]   ;;  %v10629_v30 = vld [vmem:[#allocation2 + $0x240] ss:$16 sps:$4 sm:$0xff]  }
 0x3a3   :  { %3756 = vmatpush1.bf16.msra.mxu1 %v10585_v48  ;;  %3867 = vmatpush1.bf16.msra.mxu0 %v10611_v27  ;;  %v10600_v48 = vld [vmem:[#allocation2] ss:$16 sps:$4 sm:$0xff]   ;;  %v10631_v9 = vld [vmem:[#allocation2 + $0x224] ss:$16 sps:$4 sm:$0xff]  }
 0x3a4   :  { %3757 = vmatprep.subr.bf16.mxu1 %v10586_v20  ;;  %3868 = vmatprep.subr.bf16.mxu0 %v10613_v52  ;;  %v10603_v20 = vld [vmem:[#allocation2 + $0x1e4] ss:$16 sps:$4 sm:$0xff]   ;;  %v10635_v39 = vld [vmem:[#allocation2 + $0x220] ss:$16 sps:$4 sm:$0xff]  }
 0x3a5   :  { %v10609_v54 = vld [vmem:[#allocation2 + $0x1c4] ss:$16 sps:$4 sm:$0xff]   ;;  %v10612_v27 = vld [vmem:[#allocation2 + $0x1c0] ss:$16 sps:$4 sm:$0xff]  }
 0x3a6   :  { %v10615_v52 = vld [vmem:[#allocation2 + $0x1a4] ss:$16 sps:$4 sm:$0xff]  }
 0x3a7   :  { %3758 = vmatpush1.bf16.msra.mxu1 %v10588_v6  ;;  %3869 = vmatpush1.bf16.msra.mxu0 %v10617_v19  ;;  %v10606_v6 = vld [vmem:[#allocation2 + $0x1e0] ss:$16 sps:$4 sm:$0xff]  }
 0x3a8   :  { %3759 = vmatprep.subr.bf16.mxu1 %v10589_v31  ;;  %3870 = vmatprep.subr.bf16.mxu0 %v10619_v58  ;;  %v10637_v31 = vld [vmem:[#allocation2 + $0x204] ss:$16 sps:$4 sm:$0xff]   ;;  %v10618_v19 = vld [vmem:[#allocation2 + $0x1a0] ss:$16 sps:$4 sm:$0xff]  }
 0x3a9   :  { %v10621_v58 = vld [vmem:[#allocation2 + $0x184] ss:$16 sps:$4 sm:$0xff]  }
 0x3ab   :  { %3760 = vmatpush1.bf16.msra.mxu1 %v10591_v15  ;;  %3871 = vmatpush1.bf16.msra.mxu0 %v10623_v33  ;;  %v10641_v15 = vld [vmem:[#allocation2 + $0x200] ss:$16 sps:$4 sm:$0xff]   ;;  %v10660_v33 = vld [vmem:[#allocation2 + $0x2cc] ss:$16 sps:$4 sm:$0xff]  }
 0x3ac   :  { %3761 = vmatprep.subr.bf16.mxu1 %v10592_v32  ;;  %3872 = vmatprep.subr.bf16.mxu0 %v10625_v12  ;;  %v10651_v32 = vld [vmem:[#allocation2 + $0x2ec] ss:$16 sps:$4 sm:$0xff]   ;;  %v10624_v12 = vld [vmem:[#allocation2 + $0x180] ss:$16 sps:$4 sm:$0xff]  }
 0x3af   :  { %3762 = vmatpush1.bf16.msra.mxu1 %v10594_v5  ;;  %3873 = vmatpush1.bf16.msra.mxu0 %v10629_v30  ;;  %v13063_v5 = vpack.c.bf16 %v13011_v44, %v13008_v1  ;;  %v10669_v30 = vld [vmem:[#allocation2 + $0x2ac] ss:$16 sps:$4 sm:$0xff]   ;;  %v10633_v1 = vld [vmem:[#allocation2 + $0x144] ss:$16 sps:$4 sm:$0xff]   ;;  %v13069_v44 = vpack.c.bf16 %v13017_v24, %v13014_v38  ;;  %v13075_v24 = vpack.c.bf16 %v13023_v62, %v13020_v49  ;;  %v10646_v62 = vld [vmem:[#allocation2 + $0xe8] ss:$16 sps:$4 sm:$0xff]  }
 0x3b0   :  { %3763 = vmatprep.subr.bf16.mxu1 %v10597_v47  ;;  %3874 = vmatprep.subr.bf16.mxu0 %v10631_v9  ;;  %v10649_v47 = vld [vmem:[#allocation2 + $0x2e8] ss:$16 sps:$4 sm:$0xff]   ;;  %v10630_v9 = vld [vmem:[#allocation2 + $0x160] ss:$16 sps:$4 sm:$0xff]   ;;  %v10643_v38 = vld [vmem:[#allocation2 + $0x104] ss:$16 sps:$4 sm:$0xff]  }
 0x3b1   :  { %17009 = vst [vmem:[#allocation43_spill] sm:$0xff] %v13063_v5  ;;  %17010 = vst [vmem:[#allocation45_spill] sm:$0xff] %v13069_v44  ;;  %v10705_v49 = vld [vmem:[#allocation2 + $0x22c] ss:$16 sps:$4 sm:$0xff]  }
 0x3b2   :  { %17011 = vst [vmem:[#allocation47_spill] sm:$0xff] %v13075_v24 }
 0x3b3   :  { %3764 = vmatpush1.bf16.msra.mxu1 %v10600_v48  ;;  %3875 = vmatpush1.bf16.msra.mxu0 %v10635_v39  ;;  %v10627_v48 = vld [vmem:[#allocation2 + $0x164] ss:$16 sps:$4 sm:$0xff]   ;;  %v10636_v39 = vld [vmem:[#allocation2 + $0x140] ss:$16 sps:$4 sm:$0xff]  }
 0x3b4   :  { %3765 = vmatprep.subr.bf16.mxu1 %v10603_v20  ;;  %3876 = vmatprep.subr.bf16.mxu0 %v10637_v31  ;;  %v10658_v20 = vld [vmem:[#allocation2 + $0x2c8] ss:$16 sps:$4 sm:$0xff]   ;;  %v10639_v31 = vld [vmem:[#allocation2 + $0x124] ss:$16 sps:$4 sm:$0xff]  }
 0x3b7   :  { %3766 = vmatpush2.bf16.msra.mxu1 %v10606_v6  ;;  %3877 = vmatpush1.bf16.msra.mxu0 %v10641_v15  ;;  %v10667_v6 = vld [vmem:[#allocation2 + $0x2a8] ss:$16 sps:$4 sm:$0xff]   ;;  %v10642_v15 = vld [vmem:[#allocation2 + $0x120] ss:$16 sps:$4 sm:$0xff]  }
 0x3b8   :  { %3767 = vmatprep.subr.bf16.mxu1 %v10609_v54  ;;  %4088 = vmatprep.subr.bf16.mxu0 %v10651_v32  ;;  %v10678_v54 = vld [vmem:[#allocation2 + $0x28c] ss:$16 sps:$4 sm:$0xff]   ;;  %v10685_v32 = vld [vmem:[#allocation2 + $0x268] ss:$16 sps:$4 sm:$0xff]  }
 0x3ba   :  { %3895 = vmatmul.mubr.bf16.vlgmr.msra.gmra.mxu0 %v13063_v5 }
 0x3bb   :  { %3768 = vmatpush2.bf16.msra.mxu1 %v10612_v27  ;;  %4089 = vmatpush1.bf16.msra.mxu0 %v10649_v47  ;;  %v10676_v27 = vld [vmem:[#allocation2 + $0x288] ss:$16 sps:$4 sm:$0xff]   ;;  %v10648_v47 = vld [vmem:[#allocation2 + $0xec] ss:$16 sps:$4 sm:$0xff]  }
 0x3bc   :  { %3769 = vmatprep.subr.bf16.mxu1 %v10615_v52  ;;  %3904 = vmatprep.mubr.bf16.mxu0 %v17007_v7  ;;  %v10687_v52 = vld [vmem:[#allocation2 + $0x26c] ss:$16 sps:$4 sm:$0xff]  }
 0x3bd   :  { %4090 = vmatprep.subr.bf16.mxu0 %v10660_v33  ;;  %v10694_v33 = vld [vmem:[#allocation2 + $0x248] ss:$16 sps:$4 sm:$0xff]  }
 0x3bf   :  { %3770 = vmatpush2.bf16.msra.mxu1 %v10618_v19  ;;  %4091 = vmatpush1.bf16.msra.mxu0 %v10658_v20  ;;  %v10696_v19 = vld [vmem:[#allocation2 + $0x24c] ss:$16 sps:$4 sm:$0xff]  }
 0x3c0   :  { %3771 = vmatprep.subr.bf16.mxu1 %v10621_v58  ;;  %4092 = vmatprep.subr.bf16.mxu0 %v10669_v30  ;;  %v10645_v58 = vld [vmem:[#allocation2 + $0x100] ss:$16 sps:$4 sm:$0xff]   ;;  %v10654_v20 = vld [vmem:[#allocation2 + $0xcc] ss:$16 sps:$4 sm:$0xff]   ;;  %v13089_v30 = vpack.c.bf16 %v13029_v10, %v13026_v23  ;;  %v10655_v23 = vld [vmem:[#allocation2 + $0xa8] ss:$16 sps:$4 sm:$0xff]   ;;  %v13101_v10 = vpack.c.bf16 %v12929_v26, %v12923_v41  ;;  %v13117_v26 = vpack.c.bf16 %v12953_v22, %v12941_v55 }
 0x3c1   :  { %v10664_v41 = vld [vmem:[#allocation2 + $0x68] ss:$16 sps:$4 sm:$0xff]   ;;  %v13133_v22 = vpack.c.bf16 %v12965_v63, %v12960_v59  ;;  %v13149_v63 = vpack.c.bf16 %v12977_v2, %v12971_v21  ;;  %v13165_v2 = vpack.c.bf16 %v12989_v14, %v12983_v29  ;;  %v13177_v29 = vpack.c.bf16 %v13005_v42, %v12995_v51  ;;  %v10708_v14 = vld [vmem:[#allocation2 + $0x14c] ss:$16 sps:$4 sm:$0xff]  }
 0x3c2   :  { %3905 = vmatmul.mubr.bf16.gmra.mxu0 %v13069_v44  ;;  %17014 = vst [vmem:[#allocation48_spill] sm:$0xff] %v13089_v30  ;;  %17016 = vst [vmem:[#allocation69_spill] sm:$0xff] %v13101_v10  ;;  %v10673_v55 = vld [vmem:[#allocation2 + $0x28] ss:$16 sps:$4 sm:$0xff]   ;;  %v10717_v42 = vld [vmem:[#allocation2 + $0x10c] ss:$16 sps:$4 sm:$0xff]  }
 0x3c3   :  { %3772 = vmatpush2.bf16.msra.mxu1 %v10624_v12  ;;  %3914 = vmatprep.mubr.bf16.mxu0 %v17007_v7  ;;  %v13081_v12 = vpack.c.bf16 %v12902_v13, %v12896_v43  ;;  %v10711_v43 = vld [vmem:[#allocation2 + $0x20c] ss:$16 sps:$4 sm:$0xff]   ;;  %v10652_v13 = vld [vmem:[#allocation2 + $0xc8] ss:$16 sps:$4 sm:$0xff]   ;;  %17019 = vst [vmem:[#allocation53_spill] sm:$0xff] %v13117_v26  ;;  %17022 = vst [vmem:[#allocation54_spill] sm:$0xff] %v13133_v22 }
 0x3c4   :  { %3773 = vmatprep.subr.bf16.mxu1 %v10627_v48  ;;  %4093 = vmatpush1.bf16.msra.mxu0 %v10667_v6  ;;  %v13085_v48 = vpack.c.bf16 %v12917_v45, %v12911_v50  ;;  %v10709_v50 = vld [vmem:[#allocation2 + $0x208] ss:$16 sps:$4 sm:$0xff]   ;;  %v13097_v45 = vpack.c.bf16 %v12914_v0, %v12908_v61  ;;  %v10663_v6 = vld [vmem:[#allocation2 + $0x8c] ss:$16 sps:$4 sm:$0xff]   ;;  %v13113_v0 = vpack.c.bf16 %v12926_v56, %v12920_v17 }
 0x3c5   :  { %4094 = vmatprep.subr.bf16.mxu0 %v10678_v54  ;;  %17012 = vst [vmem:[#allocation68_spill] sm:$0xff] %v13081_v12  ;;  %v13105_v54 = vpack.c.bf16 %v13035_v34, %v13032_v60  ;;  %v10666_v61 = vld [vmem:[#allocation2 + $0x6c] ss:$16 sps:$4 sm:$0xff]   ;;  %v13121_v34 = vpack.c.bf16 %v13041_v46, %v13038_v35  ;;  %v13129_v56 = vpack.c.bf16 %v12944_v25, %v12935_v8  ;;  %v10682_v59 = vld [vmem:[#allocation2 + $0x1e8] ss:$16 sps:$4 sm:$0xff]   ;;  %17025 = vst [vmem:[#allocation84_spill] sm:$0xff] %v13149_v63 }
 0x3c6   :  { %17013 = vst [vmem:[#allocation46_spill] sm:$0xff] %v13085_v48  ;;  %17015 = vst [vmem:[#allocation50_spill] sm:$0xff] %v13097_v45  ;;  %v10672_v60 = vld [vmem:[#allocation2 + $0x4c] ss:$16 sps:$4 sm:$0xff]   ;;  %v13137_v46 = vpack.c.bf16 %v13047_v11, %v13044_v57  ;;  %v13145_v25 = vpack.c.bf16 %v12963_v53, %v12957_v37  ;;  %v13153_v11 = vpack.c.bf16 %v13053_v3, %v13050_v4  ;;  %v10691_v21 = vld [vmem:[#allocation2 + $0x1a8] ss:$16 sps:$4 sm:$0xff]  }
 0x3c7   :  { %3774 = vmatpush2.bf16.msra.mxu1 %v10630_v9  ;;  %v10703_v9 = vld [vmem:[#allocation2 + $0x228] ss:$16 sps:$4 sm:$0xff]   ;;  %17017 = vst [vmem:[#allocation49_spill] sm:$0xff] %v13105_v54  ;;  %17018 = vst [vmem:[#allocation51_spill] sm:$0xff] %v13113_v0  ;;  %v10675_v17 = vld [vmem:[#allocation2 + $0x2c] ss:$16 sps:$4 sm:$0xff]   ;;  %v13161_v53 = vpack.c.bf16 %v12974_v28, %v12968_v40  ;;  %v13173_v40 = vpack.c.bf16 %v12986_v36, %v12980_v18 }
 0x3c8   :  { %3775 = vmatprep.subr.bf16.mxu1 %v10633_v1  ;;  %4095 = vmatpush1.bf16.msra.mxu0 %v10676_v27  ;;  %v10657_v1 = vld [vmem:[#allocation2 + $0xac] ss:$16 sps:$4 sm:$0xff]   ;;  %17020 = vst [vmem:[#allocation55_spill] sm:$0xff] %v13121_v34  ;;  %17021 = vst [vmem:[#allocation52_spill] sm:$0xff] %v13129_v56  ;;  %v10679_v27 = vld [vmem:[#allocation2 + $0x8] ss:$16 sps:$4 sm:$0xff]  }
 0x3c9   :  { %4096 = vmatprep.subr.bf16.mxu0 %v10687_v52  ;;  %v10681_v35 = vld [vmem:[#allocation2 + $0xc] ss:$16 sps:$4 sm:$0xff]   ;;  %17023 = vst [vmem:[#allocation57_spill] sm:$0xff] %v13137_v46  ;;  %17024 = vst [vmem:[#allocation56_spill] sm:$0xff] %v13145_v25  ;;  %v10688_v52 = vld [vmem:[#allocation2 + $0x1c8] ss:$16 sps:$4 sm:$0xff]  }
 0x3ca   :  { %3915 = vmatmul.mubr.bf16.gmra.mxu0 %v13075_v24  ;;  %v10684_v8 = vld [vmem:[#allocation2 + $0x1ec] ss:$16 sps:$4 sm:$0xff]   ;;  %17026 = vst [vmem:[#allocation58_spill] sm:$0xff] %v13153_v11  ;;  %17027 = vst [vmem:[#allocation70_spill] sm:$0xff] %v13161_v53  ;;  %v10697_v3 = vld [vmem:[#allocation2 + $0x188] ss:$16 sps:$4 sm:$0xff]  }
 0x3cb   :  { %3776 = vmatpush2.bf16.msra.mxu1 %v10636_v39  ;;  %3924 = vmatprep.mubr.bf16.mxu0 %v17007_v7  ;;  %v10661_v39 = vld [vmem:[#allocation2 + $0x88] ss:$16 sps:$4 sm:$0xff]   ;;  %v10690_v57 = vld [vmem:[#allocation2 + $0x1cc] ss:$16 sps:$4 sm:$0xff]   ;;  %17028 = vst [vmem:[#allocation85_spill] sm:$0xff] %v13165_v2  ;;  %17029 = vst [vmem:[#allocation71_spill] sm:$0xff] %v13173_v40 }
 0x3cc   :  { %3777 = vmatprep.subr.bf16.mxu1 %v10639_v31  ;;  %4097 = vmatpush1.bf16.msra.mxu0 %v10685_v32  ;;  %v10670_v31 = vld [vmem:[#allocation2 + $0x48] ss:$16 sps:$4 sm:$0xff]   ;;  %v10693_v37 = vld [vmem:[#allocation2 + $0x1ac] ss:$16 sps:$4 sm:$0xff]   ;;  %17030 = vst [vmem:[#allocation60_spill] sm:$0xff] %v13177_v29 }
 0x3cd   :  { %4098 = vmatprep.subr.bf16.mxu0 %v10696_v19  ;;  %v10699_v4 = vld [vmem:[#allocation2 + $0x18c] ss:$16 sps:$4 sm:$0xff]   ;;  %v10700_v28 = vld [vmem:[#allocation2 + $0x168] ss:$16 sps:$4 sm:$0xff]  }
 0x3ce   :  { %v10714_v32 = vld [vmem:[#allocation2 + $0x12c] ss:$16 sps:$4 sm:$0xff]   ;;  %v10712_v51 = vld [vmem:[#allocation2 + $0x128] ss:$16 sps:$4 sm:$0xff]  }
 0x3cf   :  { %3778 = vmatpush2.bf16.msra.mxu1 %v10642_v15  ;;  %v10702_v15 = vld [vmem:[#allocation2 + $0x16c] ss:$16 sps:$4 sm:$0xff]  }
 0x3d0   :  { %3779 = vmatprep.subr.bf16.mxu1 %v10643_v38  ;;  %4099 = vmatpush1.bf16.msra.mxu0 %v10694_v33  ;;  %v10706_v38 = vld [vmem:[#allocation2 + $0x148] ss:$16 sps:$4 sm:$0xff]   ;;  %v17031_v18 = vld [vmem:[#allocation42_spill] sm:$0xff]  ;;  %v17032_v36 = vld [vmem:[#allocation44_spill] sm:$0xff] }
 0x3d1   :  { %4100 = vmatprep.subr.bf16.mxu0 %v10705_v49  ;;  %v13185_v19 = vpack.c.bf16 %v17032_v36, %v17031_v18 }
 0x3d2   :  { %3925 = vmatmul.mubr.bf16.gmra.mxu0 %v13089_v30 }
 0x3d3   :  { %3780 = vmatpush2.bf16.msra.mxu1 %v10645_v58  ;;  %3934 = vmatprep.mubr.bf16.mxu0 %v17007_v7  ;;  %17033 = vst [vmem:[#allocation62_spill] sm:$0xff] %v13185_v19  ;;  %v10715_v58 = vld [vmem:[#allocation2 + $0x108] ss:$16 sps:$4 sm:$0xff]  }
 0x3d4   :  { %3975 = vmatprep.subr.bf16.mxu1 %v10648_v47  ;;  %4101 = vmatpush1.bf16.msra.mxu0 %v10703_v9 }
 0x3d5   :  { %4102 = vmatprep.subr.bf16.mxu0 %v10711_v43 }
 0x3d6   :  { %3782 = vmatmul.mubr.bf16.vlgmr.msra.gmra.mxu1 %v13081_v12 }
 0x3d7   :  { %3976 = vmatpush1.bf16.msra.mxu1 %v10646_v62  ;;  %3791 = vmatprep.mubr.bf16.mxu1 %v13085_v48 }
 0x3d8   :  { %3977 = vmatprep.subr.bf16.mxu1 %v10654_v20  ;;  %4103 = vmatpush1.bf16.msra.mxu0 %v10709_v50 }
 0x3da   :  { %3935 = vmatmul.mubr.bf16.gmra.mxu0 %v13105_v54 }
 0x3db   :  { %3978 = vmatpush1.bf16.msra.mxu1 %v10652_v13  ;;  %3944 = vmatprep.mubr.bf16.mxu0 %v17007_v7 }
 0x3dc   :  { %3979 = vmatprep.subr.bf16.mxu1 %v10657_v1 }
 0x3de   :  { %3792 = vmatmul.mubr.bf16.gmra.mxu1 %v13097_v45 }
 0x3df   :  { %3980 = vmatpush1.bf16.msra.mxu1 %v10655_v23  ;;  %3801 = vmatprep.mubr.bf16.mxu1 %v13101_v10 }
 0x3e0   :  { %3981 = vmatprep.subr.bf16.mxu1 %v10663_v6 }
 0x3e2   :  { %3945 = vmatmul.mubr.bf16.gmra.mxu0 %v13121_v34 }
 0x3e3   :  { %3982 = vmatpush1.bf16.msra.mxu1 %v10661_v39  ;;  %3954 = vmatprep.mubr.bf16.mxu0 %v17007_v7 }
 0x3e4   :  { %3983 = vmatprep.subr.bf16.mxu1 %v10666_v61 }
 0x3e6   :  { %3802 = vmatmul.mubr.bf16.gmra.mxu1 %v13113_v0 }
 0x3e7   :  { %3984 = vmatpush1.bf16.msra.mxu1 %v10664_v41  ;;  %3811 = vmatprep.mubr.bf16.mxu1 %v13117_v26 }
 0x3e8   :  { %3985 = vmatprep.subr.bf16.mxu1 %v10672_v60 }
 0x3ea   :  { %3955 = vmatmul.mubr.bf16.gmra.mxu0 %v13137_v46 }
 0x3eb   :  { %3986 = vmatpush1.bf16.msra.mxu1 %v10670_v31  ;;  %3964 = vmatprep.mubr.bf16.mxu0 %v17007_v7 }
 0x3ec   :  { %3987 = vmatprep.subr.bf16.mxu1 %v10675_v17 }
 0x3ee   :  { %3812 = vmatmul.mubr.bf16.gmra.mxu1 %v13129_v56 }
 0x3ef   :  { %3988 = vmatpush1.bf16.msra.mxu1 %v10673_v55  ;;  %3821 = vmatprep.mubr.bf16.mxu1 %v13133_v22 }
 0x3f0   :  { %3989 = vmatprep.subr.bf16.mxu1 %v10681_v35 }
 0x3f2   :  { %3965 = vmatmul.mubr.bf16.gmra.mxu0 %v13153_v11 }
 0x3f3   :  { %3990 = vmatpush1.bf16.msra.mxu1 %v10679_v27  ;;  %4120 = vmatprep.mubr.bf16.mxu0 %v17007_v7 }
 0x3f4   :  { %3991 = vmatprep.subr.bf16.mxu1 %v10684_v8 }
 0x3f6   :  { %3822 = vmatmul.mubr.bf16.gmra.mxu1 %v13145_v25 }
 0x3f7   :  { %3992 = vmatpush2.bf16.msra.mxu1 %v10682_v59  ;;  %3831 = vmatprep.mubr.bf16.mxu1 %v13149_v63 }
 0x3f8   :  { %3993 = vmatprep.subr.bf16.mxu1 %v10690_v57 }
 0x3fa   :  { %4121 = vmatmul.mubr.bf16.vlgmr.msra.gmra.mxu0 %v13063_v5 }
 0x3fb   :  { %3994 = vmatpush2.bf16.msra.mxu1 %v10688_v52  ;;  %4130 = vmatprep.mubr.bf16.mxu0 %v17007_v7 }
 0x3fc   :  { %3995 = vmatprep.subr.bf16.mxu1 %v10693_v37 }
 0x3fe   :  { %3832 = vmatmul.mubr.bf16.gmra.mxu1 %v13161_v53 }
 0x3ff   :  { %3996 = vmatpush2.bf16.msra.mxu1 %v10691_v21  ;;  %3841 = vmatprep.mubr.bf16.mxu1 %v13165_v2 }
 0x400   :  { %3997 = vmatprep.subr.bf16.mxu1 %v10699_v4 }
 0x402   :  { %4131 = vmatmul.mubr.bf16.gmra.mxu0 %v13069_v44 }
 0x403   :  { %3998 = vmatpush2.bf16.msra.mxu1 %v10697_v3  ;;  %4140 = vmatprep.mubr.bf16.mxu0 %v17007_v7 }
 0x404   :  { %3999 = vmatprep.subr.bf16.mxu1 %v10702_v15 }
 0x406   :  { %3842 = vmatmul.mubr.bf16.gmra.mxu1 %v13173_v40 }
 0x407   :  { %4000 = vmatpush2.bf16.msra.mxu1 %v10700_v28  ;;  %3851 = vmatprep.mubr.bf16.mxu1 %v13177_v29 }
 0x408   :  { %4001 = vmatprep.subr.bf16.mxu1 %v10708_v14 }
 0x40a   :  { %4141 = vmatmul.mubr.bf16.gmra.mxu0 %v13075_v24 }
 0x40b   :  { %4002 = vmatpush2.bf16.msra.mxu1 %v10706_v38  ;;  %4150 = vmatprep.mubr.bf16.mxu0 %v17007_v7 }
 0x40c   :  { %4003 = vmatprep.subr.bf16.mxu1 %v10714_v32 }
 0x40e   :  { %3852 = vmatmul.mubr.bf16.gmra.mxu1 %v13185_v19 }
 0x40f   :  { %4004 = vmatpush2.bf16.msra.mxu1 %v10712_v51  ;;  %4007 = vmatprep.mubr.bf16.mxu1 %v13058_v16 }
 0x410   :  { %4005 = vmatprep.subr.bf16.mxu1 %v10717_v42 }
 0x412   :  { %4151 = vmatmul.mubr.bf16.gmra.mxu0 %v13089_v30 }
 0x413   :  { %4006 = vmatpush2.bf16.msra.mxu1 %v10715_v58  ;;  %4160 = vmatprep.mubr.bf16.mxu0 %v17007_v7 }
 0x416   :  { %4008 = vmatmul.mubr.bf16.vlgmr.msra.gmra.mxu1 %v13081_v12 }
 0x417   :  { %4017 = vmatprep.mubr.bf16.mxu1 %v13085_v48 }
 0x41a   :  { %4161 = vmatmul.mubr.bf16.gmra.mxu0 %v13105_v54 }
 0x41b   :  { %4170 = vmatprep.mubr.bf16.mxu0 %v17007_v7 }
 0x41e   :  { %4018 = vmatmul.mubr.bf16.gmra.mxu1 %v13097_v45 }
 0x41f   :  { %4027 = vmatprep.mubr.bf16.mxu1 %v13101_v10 }
 0x422   :  { %4171 = vmatmul.mubr.bf16.gmra.mxu0 %v13121_v34 }
 0x423   :  { %4180 = vmatprep.mubr.bf16.mxu0 %v17007_v7 }
 0x426   :  { %4028 = vmatmul.mubr.bf16.gmra.mxu1 %v13113_v0 }
 0x427   :  { %4037 = vmatprep.mubr.bf16.mxu1 %v13117_v26 }
 0x42a   :  { %4181 = vmatmul.mubr.bf16.gmra.mxu0 %v13137_v46 }
 0x42b   :  { %4190 = vmatprep.mubr.bf16.mxu0 %v17007_v7 }
 0x42e   :  { %4038 = vmatmul.mubr.bf16.gmra.mxu1 %v13129_v56 }
 0x42f   :  { %4047 = vmatprep.mubr.bf16.mxu1 %v13133_v22 }
 0x432   :  { %4191 = vmatmul.mubr.bf16.gmra.mxu0 %v13153_v11 }
 0x436   :  { %4048 = vmatmul.mubr.bf16.gmra.mxu1 %v13145_v25 }
 0x437   :  { %4057 = vmatprep.mubr.bf16.mxu1 %v13149_v63 }
 0x43e   :  { %4058 = vmatmul.mubr.bf16.gmra.mxu1 %v13161_v53 }
 0x43f   :  { %4067 = vmatprep.mubr.bf16.mxu1 %v13165_v2 }
 0x446   :  { %4068 = vmatmul.mubr.bf16.gmra.mxu1 %v13173_v40 }
 0x447   :  { %4077 = vmatprep.mubr.bf16.mxu1 %v13177_v29 }
 0x44e   :  { %4078 = vmatmul.mubr.bf16.gmra.mxu1 %v13185_v19 }
 0x47a   :  { %v3896_v47 = vpop.f32.mrf.mxu0 }
 0x47c   :  { %v3898_v33 = vpop.f32.mrf.mxu0 }
 0x47e   :  { %v3900_v49 = vpop.f32.mrf.mxu0 }
 0x480   :  { %v3902_v62 = vpop.f32.mrf.mxu0 }
 0x482   :  { %v3906_v20 = vpop.f32.mrf.mxu0 }
 0x484   :  { %v3908_v9 = vpop.f32.mrf.mxu0 }
 0x486   :  { %v3910_v43 = vpop.f32.mrf.mxu0 }
 0x488   :  { %v3912_v13 = vpop.f32.mrf.mxu0 }
 0x48a   :  { %v3916_v1 = vpop.f32.mrf.mxu0 }
 0x48c   :  { %v3918_v50 = vpop.f32.mrf.mxu0 }
 0x48e   :  { %v3920_v23 = vpop.f32.mrf.mxu0 }
 0x490   :  { %v3922_v39 = vpop.f32.mrf.mxu0 }
 0x492   :  { %v3926_v60 = vpop.f32.mrf.mxu0 }
 0x494   :  { %v3928_v55 = vpop.f32.mrf.mxu0 }
 0x496   :  { %v3783_v6 = vpop.f32.mrf.mxu1  ;;  %v3930_v8 = vpop.f32.mrf.mxu0 }
 0x497   :  { %v13215_v61 = vadd.f32 %v3896_v47, %v3783_v6 }
 0x498   :  { %v3785_v41 = vpop.f32.mrf.mxu1  ;;  %v3932_v52 = vpop.f32.mrf.mxu0 }
 0x499   :  { %v13217_v31 = vadd.f32 %v3898_v33, %v3785_v41 }
 0x49a   :  { %v3787_v17 = vpop.f32.mrf.mxu1  ;;  %v3936_v4 = vpop.f32.mrf.mxu0 }
 0x49b   :  { %v13219_v35 = vadd.f32 %v3900_v49, %v3787_v17 }
 0x49c   :  { %v3789_v27 = vpop.f32.mrf.mxu1  ;;  %v3938_v28 = vpop.f32.mrf.mxu0 }
 0x49d   :  { %v13221_v59 = vadd.f32 %v3902_v62, %v3789_v27 }
 0x49e   :  { %v3793_v57 = vpop.f32.mrf.mxu1  ;;  %v3940_v32 = vpop.f32.mrf.mxu0 }
 0x49f   :  { %v13223_v37 = vadd.f32 %v3906_v20, %v3793_v57  ;;  %v4224_v2 = vadd.f32 %v13221_v59, %v13217_v31 }
 0x4a0   :  { %v3795_v21 = vpop.f32.mrf.mxu1  ;;  %v3942_v51 = vpop.f32.mrf.mxu0 }
 0x4a1   :  { %v13225_v3 = vadd.f32 %v3908_v9, %v3795_v21 }
 0x4a2   :  { %v3797_v15 = vpop.f32.mrf.mxu1  ;;  %v3946_v47 = vpop.f32.mrf.mxu0 }
 0x4a3   :  { %v13227_v14 = vadd.f32 %v3910_v43, %v3797_v15  ;;  %v4225_v46 = vadd.f32 %v4224_v2, %v13225_v3 }
 0x4a4   :  { %v3799_v38 = vpop.f32.mrf.mxu1  ;;  %v13235_v62 = vpop.f32.mrf.mxu0 }
 0x4a5   :  { %v13229_v18 = vadd.f32 %v3912_v13, %v3799_v38  ;;  %v4303_v19 = vmul.f32 %v13227_v14, %v13227_v14 }
 0x4a6   :  { %v3803_v36 = vpop.f32.mrf.mxu1  ;;  %v13239_v43 = vpop.f32.mrf.mxu0 }
 0x4a7   :  { %v13231_v42 = vadd.f32 %v3916_v1, %v3803_v36  ;;  %v4295_v36 = vmul.f32 %v13219_v35, %v13219_v35 }
 0x4a8   :  { %v3805_v58 = vpop.f32.mrf.mxu1  ;;  %v13243_v41 = vpop.f32.mrf.mxu0 }
 0x4a9   :  { %v13233_v33 = vadd.f32 %v3918_v50, %v3805_v58 }
 0x4aa   :  { %v3807_v49 = vpop.f32.mrf.mxu1  ;;  %v13247_v27 = vpop.f32.mrf.mxu0 }
 0x4ab   :  { %17034 = vst [vmem:[#allocation73_spill] sm:$0xff] %v13233_v33  ;;  %v13237_v20 = vadd.f32 %v3920_v23, %v3807_v49 }
 0x4ac   :  { %v3809_v9 = vpop.f32.mrf.mxu1  ;;  %v13251_v21 = vpop.f32.mrf.mxu0 }
 0x4ad   :  { %17035 = vst [vmem:[#allocation75_spill] sm:$0xff] %v13237_v20  ;;  %v13241_v6 = vadd.f32 %v3922_v39, %v3809_v9  ;;  %v4299_v9 = vmul.f32 %v13223_v37, %v13223_v37 }
 0x4ae   :  { %v3813_v13 = vpop.f32.mrf.mxu1  ;;  %v13255_v38 = vpop.f32.mrf.mxu0 }
 0x4af   :  { %17036 = vst [vmem:[#allocation59_spill] sm:$0xff] %v13241_v6  ;;  %v13245_v17 = vadd.f32 %v3926_v60, %v3813_v13 }
 0x4b0   :  { %v3815_v1 = vpop.f32.mrf.mxu1  ;;  %v13261_v58 = vpop.f32.mrf.mxu0 }
 0x4b1   :  { %17037 = vst [vmem:[#allocation61_spill] sm:$0xff] %v13245_v17  ;;  %v13249_v50 = vadd.f32 %v3928_v55, %v3815_v1  ;;  %v4291_v55 = vmul.f32 %v13215_v61, %v13215_v61  ;;  %v4203_v1 = vadd.f32 %v13219_v35, %v13215_v61 }
 0x4b2   :  { %v3817_v57 = vpop.f32.mrf.mxu1 }
 0x4b3   :  { %17038 = vst [vmem:[#allocation72_spill] sm:$0xff] %v13249_v50  ;;  %v13253_v23 = vadd.f32 %v3930_v8, %v3817_v57  ;;  %v4296_v8 = vmul.f32 %v13221_v59, %v13221_v59  ;;  %v4204_v53 = vadd.f32 %v4203_v1, %v13223_v37 }
 0x4b4   :  { %v3819_v15 = vpop.f32.mrf.mxu1 }
 0x4b5   :  { %17039 = vst [vmem:[#allocation74_spill] sm:$0xff] %v13253_v23  ;;  %v13257_v39 = vadd.f32 %v3932_v52, %v3819_v15  ;;  %v13271_v52 = vpop.f32.mrf.mxu0  ;;  %v4355_v15 = vadd.f32 %v4295_v36, %v4291_v55  ;;  %v4304_v36 = vmul.f32 %v13229_v18, %v13229_v18  ;;  %v4307_v55 = vmul.f32 %v13231_v42, %v13231_v42 }
 0x4b6   :  { %v3823_v60 = vpop.f32.mrf.mxu1  ;;  %v4205_v22 = vadd.f32 %v4204_v53, %v13227_v14 }
 0x4b7   :  { %17040 = vst [vmem:[#allocation64_spill] sm:$0xff] %v13257_v39  ;;  %v13263_v49 = vadd.f32 %v3936_v4, %v3823_v60  ;;  %v4292_v4 = vmul.f32 %v13217_v31, %v13217_v31  ;;  %v4300_v60 = vmul.f32 %v13225_v3, %v13225_v3  ;;  %v13283_v40 = vpop.f32.mrf.mxu0  ;;  %v4356_v11 = vadd.f32 %v4355_v15, %v4299_v9 }
 0x4b8   :  { %v3825_v13 = vpop.f32.mrf.mxu1  ;;  %v4226_v15 = vadd.f32 %v4225_v46, %v13229_v18  ;;  %v4206_v34 = vadd.f32 %v4205_v22, %v13231_v42 }
 0x4b9   :  { %17041 = vst [vmem:[#allocation67_spill] sm:$0xff] %v13263_v49  ;;  %v13275_v57 = vadd.f32 %v3938_v28, %v3825_v13  ;;  %v4376_v13 = vadd.f32 %v4296_v8, %v4292_v4  ;;  %v13294_v25 = vpop.f32.mrf.mxu0  ;;  %v4311_v8 = vmul.f32 %v13237_v20, %v13237_v20 }
 0x4ba   :  { %v3827_v29 = vpop.f32.mrf.mxu1  ;;  %v4207_v26 = vadd.f32 %v4206_v34, %v13237_v20 }
 0x4bb   :  { %17042 = vst [vmem:[#allocation77_spill] sm:$0xff] %v13275_v57  ;;  %v13288_v28 = vadd.f32 %v3940_v32, %v3827_v29  ;;  %v4377_v1 = vadd.f32 %v4376_v13, %v4300_v60  ;;  %v4357_v29 = vadd.f32 %v4356_v11, %v4303_v19  ;;  %v4308_v32 = vmul.f32 %v13233_v33, %v13233_v33  ;;  %v13304_v4 = vpop.f32.mrf.mxu0 }
 0x4bc   :  { %v3829_v63 = vpop.f32.mrf.mxu1  ;;  %v4312_v11 = vmul.f32 %v13241_v6, %v13241_v6  ;;  %v4315_v19 = vmul.f32 %v13245_v17, %v13245_v17  ;;  %v4227_v13 = vadd.f32 %v4226_v15, %v13233_v33  ;;  %v4208_v15 = vadd.f32 %v4207_v26, %v13245_v17 }
 0x4bd   :  { %17043 = vst [vmem:[#allocation63_spill] sm:$0xff] %v13288_v28  ;;  %v13298_v56 = vadd.f32 %v3942_v51, %v3829_v63  ;;  %v4378_v53 = vadd.f32 %v4377_v1, %v4304_v36  ;;  %v4358_v63 = vadd.f32 %v4357_v29, %v4307_v55  ;;  %v13314_v60 = vpop.f32.mrf.mxu0  ;;  %v4316_v36 = vmul.f32 %v13249_v50, %v13249_v50 }
 0x4be   :  { %v3833_v9 = vpop.f32.mrf.mxu1  ;;  %v4319_v55 = vmul.f32 %v13253_v23, %v13253_v23 }
 0x4bf   :  { %17044 = vst [vmem:[#allocation65_spill] sm:$0xff] %v13298_v56  ;;  %v13308_v2 = vadd.f32 %v3946_v47, %v3833_v9  ;;  %v4379_v22 = vadd.f32 %v4378_v53, %v4308_v32  ;;  %v4359_v47 = vadd.f32 %v4358_v63, %v4311_v8  ;;  %v13325_v29 = vpop.f32.mrf.mxu0  ;;  %v4228_v9 = vadd.f32 %v4227_v13, %v13241_v6 }
 0x4c0   :  { %v3835_v51 = vpop.f32.mrf.mxu1  ;;  %v4320_v32 = vmul.f32 %v13257_v39, %v13257_v39  ;;  %v4323_v8 = vmul.f32 %v13263_v49, %v13263_v49  ;;  %v4209_v13 = vadd.f32 %v4208_v15, %v13253_v23 }
 0x4c1   :  { %17045 = vst [vmem:[#allocation76_spill] sm:$0xff] %v13308_v2  ;;  %v13319_v46 = vadd.f32 %v13235_v62, %v3835_v51  ;;  %v4380_v62 = vadd.f32 %v4379_v22, %v4312_v11  ;;  %v4360_v51 = vadd.f32 %v4359_v47, %v4315_v19  ;;  %v13336_v63 = vpop.f32.mrf.mxu0  ;;  %v4229_v0 = vadd.f32 %v4228_v9, %v13249_v50 }
 0x4c2   :  { %v3837_v1 = vpop.f32.mrf.mxu1  ;;  %v4324_v11 = vmul.f32 %v13275_v57, %v13275_v57  ;;  %v4327_v19 = vmul.f32 %v13288_v28, %v13288_v28  ;;  %v4210_v9 = vadd.f32 %v4209_v13, %v13263_v49 }
 0x4c3   :  { %17046 = vst [vmem:[#allocation78_spill] sm:$0xff] %v13319_v46  ;;  %v13330_v34 = vadd.f32 %v13239_v43, %v3837_v1  ;;  %v4381_v43 = vadd.f32 %v4380_v62, %v4316_v36  ;;  %v4361_v1 = vadd.f32 %v4360_v51, %v4319_v55  ;;  %v13347_v47 = vpop.f32.mrf.mxu0  ;;  %v4230_v54 = vadd.f32 %v4229_v0, %v13257_v39 }
 0x4c4   :  { %v3839_v53 = vpop.f32.mrf.mxu1  ;;  %v4328_v36 = vmul.f32 %v13298_v56, %v13298_v56  ;;  %v4331_v55 = vmul.f32 %v13308_v2, %v13308_v2  ;;  %v4211_v0 = vadd.f32 %v4210_v9, %v13288_v28 }
 0x4c5   :  { %17047 = vst [vmem:[#allocation42_spill] sm:$0xff] %v13330_v34  ;;  %v13341_v26 = vadd.f32 %v13243_v41, %v3839_v53  ;;  %v4382_v41 = vadd.f32 %v4381_v43, %v4320_v32  ;;  %v4362_v53 = vadd.f32 %v4361_v1, %v4323_v8  ;;  %v13358_v51 = vpop.f32.mrf.mxu0  ;;  %v4231_v10 = vadd.f32 %v4230_v54, %v13275_v57 }
 0x4c6   :  { %v3843_v22 = vpop.f32.mrf.mxu1  ;;  %v4332_v32 = vmul.f32 %v13319_v46, %v13319_v46  ;;  %v4335_v8 = vmul.f32 %v13330_v34, %v13330_v34  ;;  %v4212_v54 = vadd.f32 %v4211_v0, %v13308_v2 }
 0x4c7   :  { %17048 = vst [vmem:[#allocation44_spill] sm:$0xff] %v13341_v26  ;;  %v13352_v15 = vadd.f32 %v13247_v27, %v3843_v22  ;;  %v4383_v27 = vadd.f32 %v4382_v41, %v4324_v11  ;;  %v4363_v22 = vadd.f32 %v4362_v53, %v4327_v19  ;;  %v13369_v1 = vpop.f32.mrf.mxu0  ;;  %v4232_v45 = vadd.f32 %v4231_v10, %v13298_v56 }
 0x4c8   :  { %v3845_v62 = vpop.f32.mrf.mxu1  ;;  %v4336_v11 = vmul.f32 %v13341_v26, %v13341_v26  ;;  %v4213_v10 = vadd.f32 %v4212_v54, %v13330_v34 }
 0x4c9   :  { %17049 = vst [vmem:[#allocation86_spill] sm:$0xff] %v13352_v15  ;;  %v13363_v13 = vadd.f32 %v13251_v21, %v3845_v62  ;;  %v4384_v21 = vadd.f32 %v4383_v27, %v4328_v36  ;;  %v4364_v62 = vadd.f32 %v4363_v22, %v4331_v55  ;;  %v4339_v19 = vmul.f32 %v13352_v15, %v13352_v15  ;;  %v13380_v53 = vpop.f32.mrf.mxu0 }
 0x4ca   :  { %v3847_v43 = vpop.f32.mrf.mxu1  ;;  %v4233_v30 = vadd.f32 %v4232_v45, %v13319_v46  ;;  %v4214_v45 = vadd.f32 %v4213_v10, %v13352_v15 }
 0x4cb   :  { %17050 = vst [vmem:[#allocation87_spill] sm:$0xff] %v13363_v13  ;;  %v13374_v9 = vadd.f32 %v13255_v38, %v3847_v43  ;;  %v4385_v38 = vadd.f32 %v4384_v21, %v4332_v32  ;;  %v4365_v43 = vadd.f32 %v4364_v62, %v4335_v8  ;;  %v4340_v36 = vmul.f32 %v13363_v13, %v13363_v13  ;;  %v13391_v22 = vpop.f32.mrf.mxu0 }
 0x4cc   :  { %v3849_v41 = vpop.f32.mrf.mxu1  ;;  %v4234_v48 = vadd.f32 %v4233_v30, %v13341_v26 }
 0x4cd   :  { %17051 = vst [vmem:[#allocation88_spill] sm:$0xff] %v13374_v9  ;;  %v13385_v0 = vadd.f32 %v13261_v58, %v3849_v41  ;;  %v4343_v55 = vmul.f32 %v13374_v9, %v13374_v9  ;;  %v4386_v58 = vadd.f32 %v4385_v38, %v4336_v11  ;;  %v4366_v41 = vadd.f32 %v4365_v43, %v4339_v19  ;;  %v13400_v21 = vpop.f32.mrf.mxu0 }
 0x4ce   :  { %v3853_v27 = vpop.f32.mrf.mxu1  ;;  %v4235_v62 = vadd.f32 %v4234_v48, %v13363_v13  ;;  %v4215_v12 = vadd.f32 %v4214_v45, %v13374_v9 }
 0x4cf   :  { %17052 = vst [vmem:[#allocation89_spill] sm:$0xff] %v13385_v0  ;;  %v13396_v54 = vadd.f32 %v13271_v52, %v3853_v27  ;;  %v4344_v32 = vmul.f32 %v13385_v0, %v13385_v0  ;;  %v4387_v52 = vadd.f32 %v4386_v58, %v4340_v36  ;;  %v4367_v27 = vadd.f32 %v4366_v41, %v4343_v55  ;;  %v13409_v19 = vpop.f32.mrf.mxu0 }
 0x4d0   :  { %v3855_v8 = vpop.f32.mrf.mxu1  ;;  %v4236_v38 = vadd.f32 %v4235_v62, %v13385_v0 }
 0x4d1   :  { %17053 = vst [vmem:[#allocation90_spill] sm:$0xff] %v13396_v54  ;;  %v4347_v30 = vmul.f32 %v13396_v54, %v13396_v54  ;;  %v13407_v10 = vadd.f32 %v13283_v40, %v3855_v8  ;;  %v4216_v43 = vadd.f32 %v4215_v12, %v13396_v54  ;;  %v4388_v24 = vadd.f32 %v4387_v52, %v4344_v32  ;;  %v13418_v40 = vpop.f32.mrf.mxu0 }
 0x4d2   :  { %v3857_v11 = vpop.f32.mrf.mxu1 }
 0x4d3   :  { %17054 = vst [vmem:[#allocation91_spill] sm:$0xff] %v13407_v10  ;;  %v4348_v48 = vmul.f32 %v13407_v10, %v13407_v10  ;;  %v13416_v45 = vadd.f32 %v13294_v25, %v3857_v11  ;;  %v4368_v44 = vadd.f32 %v4367_v27, %v4347_v30  ;;  %v4237_v36 = vadd.f32 %v4236_v38, %v13407_v10  ;;  %v13429_v25 = vpop.f32.mrf.mxu0 }
 0x4d4   :  { %v3859_v5 = vpop.f32.mrf.mxu1 }
 0x4d5   :  { %17055 = vst [vmem:[#allocation92_spill] sm:$0xff] %v13416_v45  ;;  %v4217_v55 = vadd.f32 %v4216_v43, %v13416_v45  ;;  %v4351_v58 = vmul.f32 %v13416_v45, %v13416_v45  ;;  %v13425_v12 = vadd.f32 %v13304_v4, %v3859_v5  ;;  %v4389_v41 = vadd.f32 %v4388_v24, %v4348_v48  ;;  %v13436_v11 = vpop.f32.mrf.mxu0 }
 0x4d6   :  { %v13427_v8 = vpop.f32.mrf.mxu1 }
 0x4d7   :  { %17056 = vst [vmem:[#allocation93_spill] sm:$0xff] %v13425_v12  ;;  %v4218_v32 = vrot.slane %v4217_v55, 4  ;;  %v4369_v62 = vadd.f32 %v4368_v44, %v4351_v58  ;;  %v4238_v30 = vadd.f32 %v4237_v36, %v13425_v12  ;;  %v4352_v52 = vmul.f32 %v13425_v12, %v13425_v12  ;;  %v13438_v48 = vpop.f32.mrf.mxu0 }
 0x4d8   :  { %v13434_v27 = vpop.f32.mrf.mxu1 }
 0x4d9   :  { %v4219_v38 = vadd.f32 %v4218_v32, %v4217_v55  ;;  %v4370_v43 = vrot.slane %v4369_v62, 4  ;;  %v4239_v5 = vrot.slane %v4238_v30, 4  ;;  %v4390_v4 = vadd.f32 %v4389_v41, %v4352_v52  ;;  %v13440_v36 = vpop.f32.mrf.mxu0 }
 0x4da   :  { %v4013_v24 = vpop.f32.mrf.mxu1 }
 0x4db   :  { %v4220_v7 = vrot.slane %v4219_v38, 2  ;;  %v4371_v16 = vadd.f32 %v4370_v43, %v4369_v62  ;;  %v4240_v45 = vadd.f32 %v4239_v5, %v4238_v30  ;;  %v4391_v44 = vrot.slane %v4390_v4, 4  ;;  %v13442_v13 = vpop.f32.mrf.mxu0 }
 0x4dc   :  { %v4015_v58 = vpop.f32.mrf.mxu1 }
 0x4dd   :  { %v4221_v10 = vadd.f32 %v4220_v7, %v4219_v38  ;;  %v4372_v12 = vrot.slane %v4371_v16, 2  ;;  %v4241_v54 = vrot.slane %v4240_v45, 2  ;;  %v4392_v0 = vadd.f32 %v4391_v44, %v4390_v4  ;;  %v13444_v26 = vpop.f32.mrf.mxu0 }
 0x4de   :  { %v4019_v9 = vpop.f32.mrf.mxu1  ;;  %v13470_v39 = vadd.f32 %v13347_v47, %v4015_v58 }
 0x4df   :  { %v4222_v55 = vrot.slane %v4221_v10, 1  ;;  %v4373_v32 = vadd.f32 %v4372_v12, %v4371_v16  ;;  %v4242_v41 = vadd.f32 %v4241_v54, %v4240_v45  ;;  %v4393_v52 = vrot.slane %v4392_v0, 2  ;;  %v13446_v46 = vpop.f32.mrf.mxu0 }
 0x4e0   :  { %v4021_v15 = vpop.f32.mrf.mxu1 }
 0x4e1   :  { %v4223_v62 = vadd.f32 %v4222_v55, %v4221_v10  ;;  %v4374_v30 = vrot.slane %v4373_v32, 1  ;;  %v4243_v43 = vrot.slane %v4242_v41, 1  ;;  %v4394_v5 = vadd.f32 %v4393_v52, %v4392_v0  ;;  %v13450_v56 = vpop.f32.mrf.mxu0 }
 0x4e2   :  { %v4023_v34 = vpop.f32.mrf.mxu1 }
 0x4e3   :  { %v13448_v7 = vmul.f32 0.0078125, %v4223_v62  ;;  %v4375_v38 = vadd.f32 %v4374_v30, %v4373_v32  ;;  %v4244_v4 = vadd.f32 %v4243_v43, %v4242_v41  ;;  %v4395_v44 = vrot.slane %v4394_v5, 1  ;;  %v13456_v0 = vpop.f32.mrf.mxu0 }
 0x4e4   :  { %v4025_v2 = vpop.f32.mrf.mxu1  ;;  %v13489_v47 = vadd.f32 %v13380_v53, %v4023_v34 }
 0x4e5   :  { %v4439_v16 = vmul.f32 0.0078125, %v4375_v38  ;;  %v4443_v54 = vmul.f32 %v13448_v7, %v13448_v7  ;;  %v13454_v45 = vmul.f32 0.0078125, %v4244_v4  ;;  %v4396_v10 = vadd.f32 %v4395_v44, %v4394_v5  ;;  %v13460_v62 = vpop.f32.mrf.mxu0 }
 0x4e6   :  { %v4029_v12 = vpop.f32.mrf.mxu1 }
 0x4e7   :  { %v4447_v55 = vsub.f32 %v4439_v16, %v4443_v54  ;;  %v4440_v52 = vmul.f32 0.0078125, %v4396_v10  ;;  %v4444_v32 = vmul.f32 %v13454_v45, %v13454_v45  ;;  %v13462_v4 = vpop.f32.mrf.mxu0  ;;  %v13465_v16 = vadd.f32 %v13336_v63, %v4013_v24 }
 0x4e8   :  { %v4031_v41 = vpop.f32.mrf.mxu1  ;;  %v13486_v24 = vadd.f32 %v13369_v1, %v4021_v15  ;;  %v13503_v15 = vadd.f32 %v13400_v21, %v4029_v12 }
 0x4e9   :  { %v4451_v30 = vmax.f32 %v4447_v55, 0.0  ;;  %v4448_v43 = vsub.f32 %v4440_v52, %v4444_v32  ;;  %v13467_v10 = vpop.f32.mrf.mxu0  ;;  %v13474_v55 = vadd.f32 %v13314_v60, %v13427_v8  ;;  %v13477_v52 = vadd.f32 %v13358_v51, %v4019_v9 }
 0x4ea   :  { %v4033_v38 = vpop.f32.mrf.mxu1  ;;  %v4297_v63 = vmul.f32 %v13465_v16, %v13465_v16  ;;  %v4298_v51 = vmul.f32 %v13470_v39, %v13470_v39  ;;  %v13500_v8 = vadd.f32 %v13391_v22, %v4025_v2  ;;  %v4302_v32 = vmul.f32 %v13486_v24, %v13486_v24 }
 0x4eb   :  { %v4455_v28 = vadd.f32 1e-05, %v4451_v30  ;;  %v4452_v57 = vmax.f32 %v4448_v43, 0.0  ;;  %v13491_v60 = vpop.f32.mrf.mxu0  ;;  %v4293_v9 = vmul.f32 %v13474_v55, %v13474_v55  ;;  %v4245_v53 = vadd.f32 %v13465_v16, %v13474_v55 }
 0x4ec   :  { %v4035_v49 = vpop.f32.mrf.mxu1  ;;  %v4305_v30 = vmul.f32 %v13489_v47, %v13489_v47  ;;  %v13514_v2 = vadd.f32 %v13409_v19, %v4031_v41  ;;  %v4306_v23 = vmul.f32 %v13500_v8, %v13500_v8  ;;  %v4309_v19 = vmul.f32 %v13503_v15, %v13503_v15 }
 0x4ed   :  { %v4456_v5 = vadd.f32 1e-05, %v4452_v57  ;;  %10718 = vrsqrt.f32 %v4455_v28  ;;  %v13481_v28 = vadd.f32 %v13325_v29, %v13434_v27  ;;  %v4301_v29 = vmul.f32 %v13477_v52, %v13477_v52  ;;  %v13516_v21 = vpop.f32.mrf.mxu0 }
 0x4ee   :  { %v4039_v44 = vpop.f32.mrf.mxu1  ;;  %v4397_v27 = vadd.f32 %v4297_v63, %v4293_v9  ;;  %v4246_v63 = vadd.f32 %v4245_v53, %v13477_v52  ;;  %v13532_v6 = vadd.f32 %v13429_v25, %v4035_v49  ;;  %v4310_v53 = vmul.f32 %v13514_v2, %v13514_v2 }
 0x4ef   :  { %10720 = vrsqrt.f32 %v4456_v5  ;;  %v4294_v1 = vmul.f32 %v13481_v28, %v13481_v28  ;;  %v4266_v12 = vadd.f32 %v13470_v39, %v13481_v28  ;;  %v13521_v5 = vadd.f32 %v13418_v40, %v4033_v38  ;;  %v4184_v20 = vpop.f32.mrf.mxu0 }
 0x4f0   :  { %v4041_v54 = vpop.f32.mrf.mxu1  ;;  %v4398_v9 = vadd.f32 %v4397_v27, %v4301_v29  ;;  %v13535_v40 = vadd.f32 %v13436_v11, %v4039_v44  ;;  %v4247_v29 = vadd.f32 %v4246_v63, %v13489_v47 }
 0x4f1   :  { %v4418_v43 = vadd.f32 %v4298_v51, %v4294_v1  ;;  %v4267_v17 = vadd.f32 %v4266_v12, %v13486_v24  ;;  %v4313_v49 = vmul.f32 %v13521_v5, %v13521_v5  ;;  %v13547_v25 = vadd.f32 %v13438_v48, %v4041_v54 }
 0x4f2   :  { %v4043_v57 = vpop.f32.mrf.mxu1  ;;  %v4399_v1 = vadd.f32 %v4398_v9, %v4305_v30  ;;  %v4248_v30 = vadd.f32 %v4247_v29, %v13503_v15  ;;  %v4314_v9 = vmul.f32 %v13532_v6, %v13532_v6  ;;  %v4317_v12 = vmul.f32 %v13535_v40, %v13535_v40 }
 0x4f3   :  { %v4419_v51 = vadd.f32 %v4418_v43, %v4302_v32  ;;  %v13550_v11 = vadd.f32 %v13440_v36, %v4043_v57  ;;  %v4268_v44 = vadd.f32 %v4267_v17, %v13500_v8  ;;  %v4186_v57 = vpop.f32.mrf.mxu0 }
 0x4f4   :  { %v4045_v58 = vpop.f32.mrf.mxu1  ;;  %v4400_v43 = vadd.f32 %v4399_v1, %v4309_v19 }
 0x4f5   :  { %v4420_v32 = vadd.f32 %v4419_v51, %v4306_v23  ;;  %v13559_v33 = vadd.f32 %v13442_v13, %v4045_v58  ;;  %v4269_v36 = vadd.f32 %v4268_v44, %v13514_v2  ;;  %v4249_v23 = vadd.f32 %v4248_v30, %v13521_v5 }
 0x4f6   :  { %v4049_v34 = vpop.f32.mrf.mxu1  ;;  %v4401_v19 = vadd.f32 %v4400_v43, %v4313_v49  ;;  %v4318_v51 = vmul.f32 %v13547_v25, %v13547_v25  ;;  %v4321_v29 = vmul.f32 %v13550_v11, %v13550_v11 }
 0x4f7   :  { %v13562_v48 = vadd.f32 %v13444_v26, %v4049_v34  ;;  %v4421_v17 = vadd.f32 %v4420_v32, %v4310_v53  ;;  %v4270_v26 = vadd.f32 %v4269_v36, %v13532_v6  ;;  %v4250_v58 = vadd.f32 %v4249_v23, %v13535_v40 }
 0x4f8   :  { %v4051_v22 = vpop.f32.mrf.mxu1  ;;  %v4402_v44 = vadd.f32 %v4401_v19, %v4317_v12  ;;  %v4322_v49 = vmul.f32 %v13559_v33, %v13559_v33 }
 0x4f9   :  { %v13571_v13 = vadd.f32 %v13446_v46, %v4051_v22  ;;  %v4422_v53 = vadd.f32 %v4421_v17, %v4314_v9  ;;  %v4325_v32 = vmul.f32 %v13562_v48, %v13562_v48  ;;  %v4271_v30 = vadd.f32 %v4270_v26, %v13547_v25 }
 0x4fa   :  { %v4053_v41 = vpop.f32.mrf.mxu1  ;;  %v13528_v50 = vpop.eup %10718  ;;  %v4251_v9 = vadd.f32 %v4250_v58, %v13550_v11  ;;  %v4403_v12 = vadd.f32 %v4402_v44, %v4321_v29 }
 0x4fb   :  { %v13576_v34 = vadd.f32 %v13450_v56, %v4053_v41  ;;  %v4188_v56 = vpop.f32.mrf.mxu0  ;;  %v4423_v41 = vadd.f32 %v4422_v53, %v4318_v51  ;;  %v4326_v36 = vmul.f32 %v13571_v13, %v13571_v13 }
 0x4fc   :  { %v13537_v38 = vpop.eup %10720  ;;  %v4055_v27 = vpop.f32.mrf.mxu1  ;;  %v4252_v19 = vadd.f32 %v4251_v9, %v13562_v48  ;;  %v4404_v51 = vadd.f32 %v4403_v12, %v4325_v32 }
 0x4fd   :  { %v13584_v46 = vadd.f32 %v13456_v0, %v4055_v27  ;;  %v4329_v17 = vmul.f32 %v13576_v34, %v13576_v34  ;;  %v4272_v27 = vadd.f32 %v4271_v30, %v13559_v33 }
 0x4fe   :  { %v4059_v63 = vpop.f32.mrf.mxu1  ;;  %v4253_v44 = vadd.f32 %v4252_v19, %v13576_v34 }
 0x4ff   :  { %v13587_v22 = vadd.f32 %v13460_v62, %v4059_v63  ;;  %v4424_v63 = vadd.f32 %v4423_v41, %v4322_v49  ;;  %v4330_v29 = vmul.f32 %v13584_v46, %v13584_v46  ;;  %v4405_v49 = vadd.f32 %v4404_v51, %v4329_v17 }
 0x500   :  { %v4061_v54 = vpop.f32.mrf.mxu1 }
 0x501   :  { %v13595_v23 = vadd.f32 %v13462_v4, %v4061_v54  ;;  %v4333_v26 = vmul.f32 %v13587_v22, %v13587_v22  ;;  %v4192_v54 = vpop.f32.mrf.mxu0  ;;  %v4425_v53 = vadd.f32 %v4424_v63, %v4326_v36 }
 0x502   :  { %v4063_v1 = vpop.f32.mrf.mxu1 }
 0x503   :  { %v13598_v0 = vadd.f32 %v13467_v10, %v4063_v1  ;;  %v4273_v1 = vadd.f32 %v4272_v27, %v13571_v13  ;;  %v4334_v32 = vmul.f32 %v13595_v23, %v13595_v23  ;;  %v4426_v12 = vadd.f32 %v4425_v53, %v4330_v29  ;;  %v4194_v27 = vpop.f32.mrf.mxu0 }
 0x504   :  { %v4065_v43 = vpop.f32.mrf.mxu1  ;;  %v4406_v36 = vadd.f32 %v4405_v49, %v4333_v26 }
 0x505   :  { %v13607_v58 = vadd.f32 %v13491_v60, %v4065_v43  ;;  %v4337_v30 = vmul.f32 %v13598_v0, %v13598_v0  ;;  %v4254_v43 = vadd.f32 %v4253_v44, %v13587_v22 }
 0x506   :  { %v4069_v62 = vpop.f32.mrf.mxu1 }
 0x507   :  { %v13610_v4 = vadd.f32 %v13516_v21, %v4069_v62  ;;  %v4274_v21 = vadd.f32 %v4273_v1, %v13584_v46  ;;  %v4338_v17 = vmul.f32 %v13607_v58, %v13607_v58  ;;  %v4255_v19 = vadd.f32 %v4254_v43, %v13598_v0 }
 0x508   :  { %v4071_v10 = vpop.f32.mrf.mxu1  ;;  %v4407_v1 = vadd.f32 %v4406_v36, %v4337_v30 }
 0x509   :  { %17057 = vst [vmem:[#allocation94_spill] sm:$0xff] %v13610_v4  ;;  %v13618_v41 = vadd.f32 %v4184_v20, %v4071_v10  ;;  %v4341_v62 = vmul.f32 %v13610_v4, %v13610_v4  ;;  %v4275_v20 = vadd.f32 %v4274_v21, %v13595_v23  ;;  %v4427_v10 = vadd.f32 %v4426_v12, %v4334_v32  ;;  %v4196_v32 = vpop.f32.mrf.mxu0 }
 0x50a   :  { %v4073_v60 = vpop.f32.mrf.mxu1  ;;  %v4256_v44 = vadd.f32 %v4255_v19, %v13610_v4 }
 0x50b   :  { %17058 = vst [vmem:[#allocation95_spill] sm:$0xff] %v13618_v41  ;;  %v13622_v9 = vadd.f32 %v4186_v57, %v4073_v60  ;;  %v4342_v57 = vmul.f32 %v13618_v41, %v13618_v41  ;;  %v4276_v53 = vadd.f32 %v4275_v20, %v13607_v58  ;;  %v4428_v60 = vadd.f32 %v4427_v10, %v4338_v17 }
 0x50c   :  { %v4075_v63 = vpop.f32.mrf.mxu1  ;;  %v4408_v21 = vadd.f32 %v4407_v1, %v4341_v62 }
 0x50d   :  { %17059 = vst [vmem:[#allocation96_spill] sm:$0xff] %v13622_v9  ;;  %v13630_v51 = vadd.f32 %v4188_v56, %v4075_v63  ;;  %v4345_v29 = vmul.f32 %v13622_v9, %v13622_v9  ;;  %v4277_v43 = vadd.f32 %v4276_v53, %v13618_v41  ;;  %v4257_v12 = vadd.f32 %v4256_v44, %v13622_v9  ;;  %v4198_v44 = vpop.f32.mrf.mxu0 }
 0x50e   :  { %v4079_v26 = vpop.f32.mrf.mxu1  ;;  %v4429_v20 = vadd.f32 %v4428_v60, %v4342_v57 }
 0x50f   :  { %17060 = vst [vmem:[#allocation97_spill] sm:$0xff] %v13630_v51  ;;  %v13638_v49 = vadd.f32 %v4192_v54, %v4079_v26  ;;  %v4346_v56 = vmul.f32 %v13630_v51, %v13630_v51  ;;  %v4409_v19 = vadd.f32 %v4408_v21, %v4345_v29  ;;  %v4278_v17 = vadd.f32 %v4277_v43, %v13630_v51 }
 0x510   :  { %v4081_v30 = vpop.f32.mrf.mxu1 }
 0x511   :  { %17061 = vst [vmem:[#allocation98_spill] sm:$0xff] %v13638_v49  ;;  %v4349_v36 = vmul.f32 %v13638_v49, %v13638_v49  ;;  %v13646_v63 = vadd.f32 %v4194_v27, %v4081_v30  ;;  %v4258_v62 = vadd.f32 %v4257_v12, %v13638_v49  ;;  %v4430_v26 = vadd.f32 %v4429_v20, %v4346_v56 }
 0x512   :  { %v4083_v54 = vpop.f32.mrf.mxu1 }
 0x513   :  { %17062 = vst [vmem:[#allocation99_spill] sm:$0xff] %v13646_v63  ;;  %v4350_v10 = vmul.f32 %v13646_v63, %v13646_v63  ;;  %v13652_v1 = vadd.f32 %v4196_v32, %v4083_v54  ;;  %v4410_v53 = vadd.f32 %v4409_v19, %v4349_v36  ;;  %v4279_v41 = vadd.f32 %v4278_v17, %v13646_v63 }
 0x514   :  { %v4085_v9 = vpop.f32.mrf.mxu1 }
 0x515   :  { %17063 = vst [vmem:[#allocation100_spill] sm:$0xff] %v13652_v1  ;;  %v4259_v27 = vadd.f32 %v4258_v62, %v13652_v1  ;;  %v4353_v57 = vmul.f32 %v13652_v1, %v13652_v1  ;;  %v13658_v29 = vadd.f32 %v4198_v44, %v4085_v9  ;;  %v4431_v60 = vadd.f32 %v4430_v26, %v4350_v10 }
 0x517   :  { %17064 = vst [vmem:[#allocation101_spill] sm:$0xff] %v13658_v29  ;;  %v4260_v21 = vrot.slane %v4259_v27, 4  ;;  %v4411_v30 = vadd.f32 %v4410_v53, %v4353_v57  ;;  %v4280_v43 = vadd.f32 %v4279_v41, %v13658_v29  ;;  %v4354_v56 = vmul.f32 %v13658_v29, %v13658_v29 }
 0x519   :  { %v4261_v32 = vadd.f32 %v4260_v21, %v4259_v27  ;;  %v4412_v12 = vrot.slane %v4411_v30, 4  ;;  %v4281_v36 = vrot.slane %v4280_v43, 4  ;;  %v4432_v20 = vadd.f32 %v4431_v60, %v4354_v56 }
 0x51b   :  { %v4262_v19 = vrot.slane %v4261_v32, 2  ;;  %v4413_v54 = vadd.f32 %v4412_v12, %v4411_v30  ;;  %v4282_v17 = vadd.f32 %v4281_v36, %v4280_v43  ;;  %v4433_v62 = vrot.slane %v4432_v20, 4 }
 0x51d   :  { %v4263_v51 = vadd.f32 %v4262_v19, %v4261_v32  ;;  %v4414_v1 = vrot.slane %v4413_v54, 2  ;;  %v4283_v9 = vrot.slane %v4282_v17, 2  ;;  %v4434_v44 = vadd.f32 %v4433_v62, %v4432_v20 }
 0x51f   :  { %v4264_v10 = vrot.slane %v4263_v51, 1  ;;  %v4415_v26 = vadd.f32 %v4414_v1, %v4413_v54  ;;  %v4284_v53 = vadd.f32 %v4283_v9, %v4282_v17  ;;  %v4435_v57 = vrot.slane %v4434_v44, 2 }
 0x521   :  { %v4265_v41 = vadd.f32 %v4264_v10, %v4263_v51  ;;  %v4416_v63 = vrot.slane %v4415_v26, 1  ;;  %v4285_v49 = vrot.slane %v4284_v53, 1  ;;  %v4436_v29 = vadd.f32 %v4435_v57, %v4434_v44 }
 0x523   :  { %v4289_v27 = vmul.f32 0.0078125, %v4265_v41  ;;  %v4417_v21 = vadd.f32 %v4416_v63, %v4415_v26  ;;  %v4286_v4 = vadd.f32 %v4285_v49, %v4284_v53  ;;  %v4437_v60 = vrot.slane %v4436_v29, 1  ;;  %v17065_v63 = vld [vmem:[#allocation79_spill] sm:$0xff]  ;;  %v4201_v26 = vld [vmem:[%s16702_s7] sm:$0xf] }
 0x524   :  { %v17066_v49 = vcombine.low %v13528_v50, %v13537_v38  ;;  %v17067_v41 = vld [vmem:[#allocation80_spill] sm:$0xff]  ;;  %v17070_v50 = vld [vmem:[#allocation83_spill] sm:$0xff] }
 0x525   :  { %v4441_v56 = vmul.f32 0.0078125, %v4417_v21  ;;  %v4445_v30 = vmul.f32 %v4289_v27, %v4289_v27  ;;  %v4290_v43 = vmul.f32 0.0078125, %v4286_v4  ;;  %v4438_v12 = vadd.f32 %v4437_v60, %v4436_v29  ;;  %v17068_v60 = vld [vmem:[#allocation81_spill] sm:$0xff] }
 0x526   :  { %v4475_v10 = vrot.slane %v17066_v49, %v17065_v63  ;;  %v17072_v49 = vld [vmem:[#allocation75_spill] sm:$0xff] }
 0x527   :  { %v4449_v32 = vsub.f32 %v4441_v56, %v4445_v30  ;;  %v4442_v36 = vmul.f32 0.0078125, %v4438_v12  ;;  %v4446_v19 = vmul.f32 %v4290_v43, %v4290_v43  ;;  %v17069_v30 = vld [vmem:[#allocation82_spill] sm:$0xff] }
 0x529   :  { %v4453_v20 = vmax.f32 %v4449_v32, 0.0  ;;  %v4450_v62 = vsub.f32 %v4442_v36, %v4446_v19 }
 0x52b   :  { %v4457_v1 = vadd.f32 1e-05, %v4453_v20  ;;  %v4454_v54 = vmax.f32 %v4450_v62, 0.0 }
 0x52d   :  { %v4458_v17 = vadd.f32 1e-05, %v4454_v54  ;;  %10722 = vrsqrt.f32 %v4457_v1 }
 0x52f   :  { %10724 = vrsqrt.f32 %v4458_v17 }
 0x53a   :  { %v10723_v51 = vpop.eup %10722 }
 0x53c   :  { %v10725_v9 = vpop.eup %10724 }
 0x53d   :  { %v4468_v44 = vcombine.low %v10723_v51, %v10725_v9 }
 0x53f   :  { %v4482_v4 = vrot.slane %v4468_v44, %v17065_v63  ;;  %v17071_v44 = vld [vmem:[#allocation73_spill] sm:$0xff] }
 0x541   :  { %v4483_v29 = vcombine.low %v4475_v10, %v4482_v4  ;;  %v17073_v10 = vld [vmem:[#allocation59_spill] sm:$0xff] }
 0x543   :  { %v4490_v53 = vrot.slane %v4483_v29, %v17065_v63 }
 0x545   :  { %v4492_v57 = vmul.f32 %v4490_v53, %v4201_v26 }
 0x547   :  { %v13673_v21 = vrot.slane %v4492_v57, %v17067_v41  ;;  %v13676_v56 = vrot.slane %v4492_v57, %v17068_v60  ;;  %v13679_v12 = vrot.slane %v4492_v57, %v17069_v30  ;;  %v13682_v38 = vrot.slane %v4492_v57, %v17070_v50  ;;  %v17075_v57 = vld [vmem:[#allocation72_spill] sm:$0xff] }
 0x549   :  { %v4514_v32 = vmul.f32 %v13673_v21, %v13448_v7  ;;  %v4515_v36 = vmul.f32 %v13676_v56, %v13454_v45  ;;  %v4516_v19 = vmul.f32 %v13679_v12, %v4289_v27  ;;  %v4517_v20 = vmul.f32 %v13682_v38, %v4290_v43 }
 0x54a   :  { %v13692_v62 = vmul.f32 %v13673_v21, %v13215_v61  ;;  %v13696_v1 = vmul.f32 %v13676_v56, %v13217_v31  ;;  %v13700_v54 = vmul.f32 %v13679_v12, %v13474_v55  ;;  %v13704_v45 = vmul.f32 %v13682_v38, %v13481_v28 }
 0x54b   :  { %v4522_v7 = vcombine.low %v4514_v32, %v4515_v36  ;;  %v4523_v17 = vcombine.low %v4516_v19, %v4517_v20  ;;  %v13708_v27 = vmul.f32 %v13673_v21, %v13219_v35  ;;  %v13712_v61 = vmul.f32 %v13676_v56, %v13221_v59  ;;  %v17076_v19 = vld [vmem:[#allocation74_spill] sm:$0xff] }
 0x54c   :  { %v13716_v31 = vmul.f32 %v13679_v12, %v13465_v16  ;;  %v13720_v55 = vmul.f32 %v13682_v38, %v13470_v39  ;;  %v13724_v28 = vmul.f32 %v13673_v21, %v13223_v37  ;;  %v13730_v59 = vmul.f32 %v13676_v56, %v13225_v3 }
 0x54d   :  { %v4530_v43 = vrot.slane %v4522_v7, %v17065_v63  ;;  %v4537_v35 = vrot.slane %v4523_v17, %v17065_v63  ;;  %v13734_v16 = vmul.f32 %v13679_v12, %v13477_v52  ;;  %v13738_v39 = vmul.f32 %v13682_v38, %v13486_v24  ;;  %v17077_v7 = vld [vmem:[#allocation64_spill] sm:$0xff] }
 0x54e   :  { %v13742_v37 = vmul.f32 %v13673_v21, %v13227_v14  ;;  %v13746_v51 = vmul.f32 %v13676_v56, %v13229_v18  ;;  %v13750_v3 = vmul.f32 %v13679_v12, %v13489_v47  ;;  %v13754_v52 = vmul.f32 %v13682_v38, %v13500_v8  ;;  %v4202_v18 = vld [vmem:[%s16703_s8] sm:$0xf] }
 0x54f   :  { %v4538_v9 = vcombine.low %v4530_v43, %v4537_v35  ;;  %v13758_v24 = vmul.f32 %v13673_v21, %v13231_v42  ;;  %v13762_v14 = vmul.f32 %v13676_v56, %v17071_v44  ;;  %v13769_v47 = vmul.f32 %v13679_v12, %v13503_v15  ;;  %v17078_v35 = vld [vmem:[#allocation67_spill] sm:$0xff] }
 0x550   :  { %v13773_v8 = vmul.f32 %v13682_v38, %v13514_v2  ;;  %v13777_v42 = vmul.f32 %v13673_v21, %v17072_v49  ;;  %v13781_v4 = vmul.f32 %v13676_v56, %v17073_v10  ;;  %v13786_v26 = vmul.f32 %v13679_v12, %v13521_v5  ;;  %v17074_v2 = vld [vmem:[#allocation61_spill] sm:$0xff]  ;;  %v17080_v49 = vld [vmem:[#allocation63_spill] sm:$0xff] }
 0x551   :  { %v4545_v29 = vrot.slane %v4538_v9, %v17065_v63  ;;  %v13790_v15 = vmul.f32 %v13682_v38, %v13532_v6  ;;  %v13794_v53 = vmul.f32 %v13673_v21, %v17074_v2  ;;  %v13798_v32 = vmul.f32 %v13676_v56, %v17075_v57  ;;  %v17079_v9 = vld [vmem:[#allocation77_spill] sm:$0xff]  ;;  %v17082_v57 = vld [vmem:[#allocation76_spill] sm:$0xff]  ;;  %v17092_v63 = vld [vmem:[#allocation87_spill] sm:$0xff] }
 0x552   :  { %v13802_v36 = vmul.f32 %v13679_v12, %v13535_v40  ;;  %v13806_v5 = vmul.f32 %v13682_v38, %v13547_v25  ;;  %v13810_v6 = vmul.f32 %v13673_v21, %v17076_v19  ;;  %v13814_v17 = vmul.f32 %v13676_v56, %v17077_v7  ;;  %v17081_v10 = vld [vmem:[#allocation65_spill] sm:$0xff]  ;;  %v17083_v19 = vld [vmem:[#allocation78_spill] sm:$0xff] }
 0x553   :  { %v4547_v20 = vsub.f32 %v4202_v18, %v4545_v29  ;;  %v13818_v43 = vmul.f32 %v13679_v12, %v13550_v11  ;;  %v13822_v40 = vmul.f32 %v13682_v38, %v13559_v33  ;;  %v13826_v25 = vmul.f32 %v13673_v21, %v17078_v35 }
 0x554   :  { %v13830_v44 = vmul.f32 %v13676_v56, %v17079_v9  ;;  %v13834_v18 = vmul.f32 %v13679_v12, %v13562_v48  ;;  %v13838_v11 = vmul.f32 %v13682_v38, %v13571_v13  ;;  %v13842_v33 = vmul.f32 %v13673_v21, %v17080_v49  ;;  %v17084_v9 = vld [vmem:[#allocation42_spill] sm:$0xff]  ;;  %v17086_v49 = vld [vmem:[#allocation44_spill] sm:$0xff] }
 0x555   :  { %v13846_v29 = vmul.f32 %v13676_v56, %v17081_v10  ;;  %v13850_v2 = vmul.f32 %v13679_v12, %v13576_v34  ;;  %v13854_v48 = vmul.f32 %v13682_v38, %v13584_v46  ;;  %v13858_v13 = vmul.f32 %v13673_v21, %v17082_v57 }
 0x556   :  { %v13862_v7 = vmul.f32 %v13676_v56, %v17083_v19  ;;  %v13866_v35 = vmul.f32 %v13679_v12, %v13587_v22  ;;  %v13870_v34 = vmul.f32 %v13682_v38, %v13595_v23  ;;  %v13874_v46 = vmul.f32 %v13673_v21, %v17084_v9  ;;  %v17090_v19 = vld [vmem:[#allocation86_spill] sm:$0xff] }
 0x557   :  { %v13878_v10 = vmul.f32 %v13676_v56, %v17086_v49  ;;  %v13882_v57 = vmul.f32 %v13679_v12, %v13598_v0  ;;  %v13886_v22 = vmul.f32 %v13682_v38, %v13607_v58  ;;  %v13890_v23 = vmul.f32 %v13673_v21, %v17090_v19 }
 0x558   :  { %17085 = vst [vmem:[#allocation73_spill] sm:$0xff] %v13874_v46  ;;  %v13894_v9 = vmul.f32 %v13676_v56, %v17092_v63  ;;  %v17094_v46 = vld [vmem:[#allocation94_spill] sm:$0xff] }
 0x559   :  { %17087 = vst [vmem:[#allocation75_spill] sm:$0xff] %v13878_v10  ;;  %17088 = vst [vmem:[#allocation59_spill] sm:$0xff] %v13882_v57  ;;  %v13898_v49 = vmul.f32 %v13679_v12, %v17094_v46  ;;  %v17096_v10 = vld [vmem:[#allocation95_spill] sm:$0xff]  ;;  %v17098_v57 = vld [vmem:[#allocation88_spill] sm:$0xff] }
 0x55a   :  { %17089 = vst [vmem:[#allocation61_spill] sm:$0xff] %v13886_v22  ;;  %17091 = vst [vmem:[#allocation72_spill] sm:$0xff] %v13890_v23  ;;  %v13902_v0 = vmul.f32 %v13682_v38, %v17096_v10  ;;  %v13906_v58 = vmul.f32 %v13673_v21, %v17098_v57  ;;  %v17100_v22 = vld [vmem:[#allocation89_spill] sm:$0xff]  ;;  %v17102_v23 = vld [vmem:[#allocation96_spill] sm:$0xff] }
 0x55b   :  { %17093 = vst [vmem:[#allocation74_spill] sm:$0xff] %v13894_v9  ;;  %17095 = vst [vmem:[#allocation64_spill] sm:$0xff] %v13898_v49  ;;  %v13910_v19 = vmul.f32 %v13676_v56, %v17100_v22  ;;  %v13914_v63 = vmul.f32 %v13679_v12, %v17102_v23  ;;  %v17104_v9 = vld [vmem:[#allocation90_spill] sm:$0xff]  ;;  %v17106_v49 = vld [vmem:[#allocation91_spill] sm:$0xff] }
 0x55c   :  { %17097 = vst [vmem:[#allocation67_spill] sm:$0xff] %v13902_v0  ;;  %17099 = vst [vmem:[#allocation77_spill] sm:$0xff] %v13906_v58  ;;  %v13918_v46 = vmul.f32 %v13673_v21, %v17104_v9  ;;  %v13922_v10 = vmul.f32 %v13676_v56, %v17106_v49  ;;  %v17108_v0 = vld [vmem:[#allocation98_spill] sm:$0xff]  ;;  %v17110_v58 = vld [vmem:[#allocation99_spill] sm:$0xff] }
 0x55d   :  { %17101 = vst [vmem:[#allocation63_spill] sm:$0xff] %v13910_v19  ;;  %17103 = vst [vmem:[#allocation65_spill] sm:$0xff] %v13914_v63  ;;  %v13926_v57 = vmul.f32 %v13679_v12, %v17108_v0  ;;  %v13930_v22 = vmul.f32 %v13682_v38, %v17110_v58  ;;  %v17112_v19 = vld [vmem:[#allocation92_spill] sm:$0xff]  ;;  %v17113_v63 = vld [vmem:[#allocation97_spill] sm:$0xff] }
 0x55e   :  { %17105 = vst [vmem:[#allocation76_spill] sm:$0xff] %v13918_v46  ;;  %17107 = vst [vmem:[#allocation78_spill] sm:$0xff] %v13922_v10  ;;  %v13934_v23 = vmul.f32 %v13673_v21, %v17112_v19  ;;  %v13938_v9 = vmul.f32 %v13682_v38, %v17113_v63  ;;  %v17114_v46 = vld [vmem:[#allocation93_spill] sm:$0xff]  ;;  %v17115_v10 = vld [vmem:[#allocation100_spill] sm:$0xff]  ;;  %v13956_v21 = vrot.slane %v4547_v20, %v17068_v60 }
 0x55f   :  { %17109 = vst [vmem:[#allocation42_spill] sm:$0xff] %v13926_v57  ;;  %17111 = vst [vmem:[#allocation44_spill] sm:$0xff] %v13930_v22  ;;  %v13942_v49 = vmul.f32 %v13676_v56, %v17114_v46  ;;  %v13946_v0 = vmul.f32 %v13679_v12, %v17115_v10  ;;  %v13949_v57 = vrot.slane %v4547_v20, %v17067_v41  ;;  %v17116_v58 = vld [vmem:[#allocation101_spill] sm:$0xff] }
 0x560   :  { %v13953_v22 = vmul.f32 %v13682_v38, %v17116_v58  ;;  %v13959_v19 = vrot.slane %v4547_v20, %v17069_v30  ;;  %v13962_v56 = vrot.slane %v4547_v20, %v17070_v50  ;;  %v4634_v20 = vadd.f32 %v13956_v21, %v13696_v1  ;;  %v17119_v58 = vld [vmem:[#allocation75_spill] sm:$0xff] }
 0x561   :  { %v13966_v12 = vadd.f32 %v13949_v57, %v13692_v62  ;;  %v13970_v63 = vadd.f32 %v13949_v57, %v13708_v27  ;;  %v13974_v38 = vadd.f32 %v13949_v57, %v13724_v28  ;;  %v13978_v46 = vadd.f32 %v13949_v57, %v13742_v37  ;;  %v17121_v50 = vld [vmem:[#allocation59_spill] sm:$0xff]  ;;  %v17123_v30 = vld [vmem:[#allocation61_spill] sm:$0xff]  ;;  %v17125_v60 = vld [vmem:[#allocation72_spill] sm:$0xff] }
 0x562   :  { %v4635_v10 = vadd.f32 %v13959_v19, %v13700_v54  ;;  %v4636_v62 = vadd.f32 %v13962_v56, %v13704_v45  ;;  %v4638_v27 = vadd.f32 %v13956_v21, %v13712_v61  ;;  %v13990_v28 = vadd.f32 %v13959_v19, %v13716_v31  ;;  %v17127_v41 = vld [vmem:[#allocation74_spill] sm:$0xff] }
 0x563   :  { %v13994_v37 = vadd.f32 %v13962_v56, %v13720_v55  ;;  %v13998_v1 = vadd.f32 %v13956_v21, %v13730_v59  ;;  %v14002_v54 = vadd.f32 %v13959_v19, %v13734_v16  ;;  %v14006_v45 = vadd.f32 %v13962_v56, %v13738_v39 }
 0x564   :  { %v14010_v61 = vadd.f32 %v13956_v21, %v13746_v51  ;;  %v14014_v31 = vadd.f32 %v13959_v19, %v13750_v3  ;;  %v14018_v55 = vadd.f32 %v13962_v56, %v13754_v52  ;;  %v14022_v59 = vadd.f32 %v13949_v57, %v13758_v24 }
 0x565   :  { %v14026_v16 = vadd.f32 %v13956_v21, %v13762_v14  ;;  %v14030_v39 = vadd.f32 %v13959_v19, %v13769_v47  ;;  %v14034_v51 = vadd.f32 %v13962_v56, %v13773_v8  ;;  %v14038_v3 = vadd.f32 %v13949_v57, %v13777_v42 }
 0x566   :  { %v14042_v52 = vadd.f32 %v13956_v21, %v13781_v4  ;;  %v14046_v24 = vadd.f32 %v13959_v19, %v13786_v26  ;;  %v14050_v14 = vadd.f32 %v13962_v56, %v13790_v15  ;;  %v14054_v47 = vadd.f32 %v13949_v57, %v13794_v53 }
 0x567   :  { %v14058_v8 = vadd.f32 %v13956_v21, %v13798_v32  ;;  %v14062_v42 = vadd.f32 %v13959_v19, %v13802_v36  ;;  %v14066_v4 = vadd.f32 %v13962_v56, %v13806_v5  ;;  %v14070_v26 = vadd.f32 %v13949_v57, %v13810_v6 }
 0x568   :  { %v14074_v15 = vadd.f32 %v13956_v21, %v13814_v17  ;;  %v14078_v53 = vadd.f32 %v13959_v19, %v13818_v43  ;;  %v14082_v32 = vadd.f32 %v13962_v56, %v13822_v40  ;;  %v14086_v36 = vadd.f32 %v13949_v57, %v13826_v25 }
 0x569   :  { %v14090_v5 = vadd.f32 %v13956_v21, %v13830_v44  ;;  %v14094_v6 = vadd.f32 %v13959_v19, %v13834_v18  ;;  %v14098_v17 = vadd.f32 %v13962_v56, %v13838_v11  ;;  %v14102_v43 = vadd.f32 %v13949_v57, %v13842_v33 }
 0x56a   :  { %v14106_v40 = vadd.f32 %v13956_v21, %v13846_v29  ;;  %v14110_v25 = vadd.f32 %v13959_v19, %v13850_v2  ;;  %v14114_v44 = vadd.f32 %v13962_v56, %v13854_v48  ;;  %v14118_v18 = vadd.f32 %v13949_v57, %v13858_v13  ;;  %v17117_v2 = vld [vmem:[#allocation73_spill] sm:$0xff] }
 0x56b   :  { %v14122_v11 = vadd.f32 %v13956_v21, %v13862_v7  ;;  %v14126_v33 = vadd.f32 %v13959_v19, %v13866_v35  ;;  %v14130_v29 = vadd.f32 %v13962_v56, %v13870_v34  ;;  %v14134_v48 = vadd.f32 %v13949_v57, %v17117_v2 }
 0x56c   :  { %v14138_v13 = vadd.f32 %v13956_v21, %v17119_v58  ;;  %v14142_v7 = vadd.f32 %v13959_v19, %v17121_v50  ;;  %v14146_v35 = vadd.f32 %v13962_v56, %v17123_v30  ;;  %v14150_v34 = vadd.f32 %v13949_v57, %v17125_v60 }
 0x56d   :  { %17118 = vst [vmem:[#allocation86_spill] sm:$0xff] %v14134_v48  ;;  %v14154_v2 = vadd.f32 %v13956_v21, %v17127_v41  ;;  %v17128_v48 = vld [vmem:[#allocation64_spill] sm:$0xff] }
 0x56e   :  { %17120 = vst [vmem:[#allocation87_spill] sm:$0xff] %v14138_v13  ;;  %17122 = vst [vmem:[#allocation94_spill] sm:$0xff] %v14142_v7  ;;  %v14158_v58 = vadd.f32 %v13959_v19, %v17128_v48  ;;  %v17130_v13 = vld [vmem:[#allocation67_spill] sm:$0xff]  ;;  %v17132_v7 = vld [vmem:[#allocation77_spill] sm:$0xff]  ;;  %v14178_v48 = vadd.f32 %v13962_v56, %v13938_v9  ;;  %v14198_v9 = vadd.f32 %v13949_v57, %v13934_v23  ;;  %v4702_v23 = vmul.f32 0.5, %v4638_v27 }
 0x56f   :  { %17124 = vst [vmem:[#allocation95_spill] sm:$0xff] %v14146_v35  ;;  %17126 = vst [vmem:[#allocation88_spill] sm:$0xff] %v14150_v34  ;;  %v14162_v50 = vadd.f32 %v13962_v56, %v17130_v13  ;;  %v14166_v30 = vadd.f32 %v13949_v57, %v17132_v7  ;;  %v17134_v35 = vld [vmem:[#allocation63_spill] sm:$0xff]  ;;  %v17136_v34 = vld [vmem:[#allocation65_spill] sm:$0xff]  ;;  %v4714_v27 = vmul.f32 0.5, %v14026_v16  ;;  %v4718_v16 = vmul.f32 0.5, %v14042_v52 }
 0x570   :  { %17129 = vst [vmem:[#allocation89_spill] sm:$0xff] %v14158_v58  ;;  %v14170_v60 = vadd.f32 %v13956_v21, %v17134_v35  ;;  %v14174_v41 = vadd.f32 %v13959_v19, %v17136_v34  ;;  %v17137_v58 = vld [vmem:[#allocation76_spill] sm:$0xff]  ;;  %v4721_v52 = vmul.f32 0.5, %v14054_v47  ;;  %v4724_v47 = vmul.f32 0.5, %v14066_v4 }
 0x571   :  { %17131 = vst [vmem:[#allocation96_spill] sm:$0xff] %v14162_v50  ;;  %17133 = vst [vmem:[#allocation90_spill] sm:$0xff] %v14166_v30  ;;  %v14182_v13 = vadd.f32 %v13949_v57, %v17137_v58  ;;  %v17138_v50 = vld [vmem:[#allocation78_spill] sm:$0xff]  ;;  %v14202_v58 = vadd.f32 %v13956_v21, %v13942_v49  ;;  %v4701_v57 = vmul.f32 0.5, %v13970_v63  ;;  %v4703_v49 = vmul.f32 0.5, %v13990_v28 }
 0x572   :  { %17135 = vst [vmem:[#allocation91_spill] sm:$0xff] %v14170_v60  ;;  %v14186_v7 = vadd.f32 %v13956_v21, %v17138_v50  ;;  %v17140_v30 = vld [vmem:[#allocation42_spill] sm:$0xff]  ;;  %v17142_v60 = vld [vmem:[#allocation44_spill] sm:$0xff]  ;;  %v14206_v50 = vadd.f32 %v13959_v19, %v13946_v0  ;;  %v4704_v0 = vmul.f32 0.5, %v13994_v37  ;;  %v4705_v21 = vmul.f32 0.5, %v13974_v38 }
 0x573   :  { %v14190_v35 = vadd.f32 %v13959_v19, %v17140_v30  ;;  %v14194_v34 = vadd.f32 %v13962_v56, %v17142_v60  ;;  %v14210_v30 = vadd.f32 %v13962_v56, %v13953_v22  ;;  %v4698_v60 = vmul.f32 0.5, %v4634_v20 }
 0x574   :  { %17139 = vst [vmem:[#allocation98_spill] sm:$0xff] %v14186_v7  ;;  %v4700_v7 = vmul.f32 0.5, %v4636_v62  ;;  %v4706_v22 = vmul.f32 0.5, %v13998_v1  ;;  %v4707_v19 = vmul.f32 0.5, %v14002_v54  ;;  %v4708_v56 = vmul.f32 0.5, %v14006_v45 }
 0x575   :  { %17141 = vst [vmem:[#allocation99_spill] sm:$0xff] %v14190_v35  ;;  %17143 = vst [vmem:[#allocation92_spill] sm:$0xff] %v14194_v34  ;;  %v4697_v35 = vmul.f32 0.5, %v13966_v12  ;;  %v4699_v34 = vmul.f32 0.5, %v4635_v10  ;;  %v4709_v12 = vmul.f32 0.5, %v13978_v46  ;;  %v4710_v63 = vmul.f32 0.5, %v14010_v61 }
 0x576   :  { %v4711_v20 = vmul.f32 0.5, %v14014_v31  ;;  %v4712_v38 = vmul.f32 0.5, %v14018_v55  ;;  %v4713_v10 = vmul.f32 0.5, %v14022_v59  ;;  %v4715_v46 = vmul.f32 0.5, %v14030_v39 }
 0x577   :  { %10726 = vtanh.f32 %v4697_v35  ;;  %v4716_v54 = vmul.f32 0.5, %v14034_v51  ;;  %v4717_v31 = vmul.f32 0.5, %v14038_v3  ;;  %v4720_v3 = vmul.f32 0.5, %v14050_v14 }
 0x578   :  { %10728 = vtanh.f32 %v4698_v60  ;;  %v4719_v60 = vmul.f32 0.5, %v14046_v24  ;;  %v4722_v24 = vmul.f32 0.5, %v14058_v8  ;;  %v4723_v14 = vmul.f32 0.5, %v14062_v42 }
 0x579   :  { %10730 = vtanh.f32 %v4699_v34  ;;  %v4725_v8 = vmul.f32 0.5, %v14070_v26  ;;  %v4726_v42 = vmul.f32 0.5, %v14074_v15  ;;  %v4727_v4 = vmul.f32 0.5, %v14078_v53 }
 0x57a   :  { %10732 = vtanh.f32 %v4700_v7  ;;  %v4728_v26 = vmul.f32 0.5, %v14082_v32  ;;  %v4729_v15 = vmul.f32 0.5, %v14086_v36  ;;  %v4730_v53 = vmul.f32 0.5, %v14090_v5 }
 0x57b   :  { %10734 = vtanh.f32 %v4701_v57  ;;  %v4731_v32 = vmul.f32 0.5, %v14094_v6  ;;  %v4732_v36 = vmul.f32 0.5, %v14098_v17  ;;  %v4733_v5 = vmul.f32 0.5, %v14102_v43 }
 0x57c   :  { %10736 = vtanh.f32 %v4702_v23  ;;  %v4734_v6 = vmul.f32 0.5, %v14106_v40  ;;  %v4735_v17 = vmul.f32 0.5, %v14110_v25  ;;  %v4736_v43 = vmul.f32 0.5, %v14114_v44 }
 0x57d   :  { %10738 = vtanh.f32 %v4703_v49  ;;  %v4737_v40 = vmul.f32 0.5, %v14118_v18  ;;  %v4738_v25 = vmul.f32 0.5, %v14122_v11  ;;  %v4739_v44 = vmul.f32 0.5, %v14126_v33  ;;  %v17144_v11 = vld [vmem:[#allocation86_spill] sm:$0xff]  ;;  %v17145_v33 = vld [vmem:[#allocation87_spill] sm:$0xff] }
 0x57e   :  { %10740 = vtanh.f32 %v4704_v0  ;;  %v4740_v18 = vmul.f32 0.5, %v14130_v29  ;;  %v17146_v29 = vld [vmem:[#allocation94_spill] sm:$0xff] }
 0x57f   :  { %10742 = vtanh.f32 %v4705_v21 }
 0x580   :  { %10744 = vtanh.f32 %v4706_v22 }
 0x581   :  { %10746 = vtanh.f32 %v4707_v19 }
 0x582   :  { %10748 = vtanh.f32 %v4708_v56 }
 0x583   :  { %10750 = vtanh.f32 %v4709_v12 }
 0x584   :  { %v10727_v62 = vpop.eup %10726  ;;  %10752 = vtanh.f32 %v4710_v63 }
 0x585   :  { %v10729_v28 = vpop.eup %10728  ;;  %10754 = vtanh.f32 %v4711_v20  ;;  %v4825_v37 = vmul.f32 0.5, %v10727_v62 }
 0x586   :  { %v10731_v1 = vpop.eup %10730  ;;  %10756 = vtanh.f32 %v4712_v38  ;;  %v4826_v45 = vmul.f32 0.5, %v10729_v28 }
 0x587   :  { %v10733_v61 = vpop.eup %10732  ;;  %10758 = vtanh.f32 %v4713_v10  ;;  %v4827_v55 = vmul.f32 0.5, %v10731_v1  ;;  %v14229_v59 = vadd.f32 0.5, %v4825_v37 }
 0x588   :  { %v10735_v7 = vpop.eup %10734  ;;  %10760 = vtanh.f32 %v4714_v27  ;;  %v4828_v35 = vmul.f32 0.5, %v10733_v61  ;;  %v14232_v39 = vadd.f32 0.5, %v4826_v45 }
 0x589   :  { %v10737_v34 = vpop.eup %10736  ;;  %10762 = vtanh.f32 %v4715_v46  ;;  %v4829_v51 = vmul.f32 0.5, %v10735_v7  ;;  %v14235_v57 = vadd.f32 0.5, %v4827_v55 }
 0x58a   :  { %v10739_v23 = vpop.eup %10738  ;;  %10764 = vtanh.f32 %v4716_v54  ;;  %v4830_v49 = vmul.f32 0.5, %v10737_v34  ;;  %v14238_v0 = vadd.f32 0.5, %v4828_v35 }
 0x58b   :  { %v10741_v21 = vpop.eup %10740  ;;  %10766 = vtanh.f32 %v4717_v31  ;;  %v4831_v22 = vmul.f32 0.5, %v10739_v23  ;;  %v14241_v19 = vadd.f32 0.5, %v4829_v51 }
 0x58c   :  { %v10743_v56 = vpop.eup %10742  ;;  %10768 = vtanh.f32 %v4718_v16  ;;  %v4832_v12 = vmul.f32 0.5, %v10741_v21  ;;  %v14244_v63 = vadd.f32 0.5, %v4830_v49 }
 0x58d   :  { %v10745_v20 = vpop.eup %10744  ;;  %10770 = vtanh.f32 %v4719_v60  ;;  %v4833_v38 = vmul.f32 0.5, %v10743_v56  ;;  %v14247_v10 = vadd.f32 0.5, %v4831_v22 }
 0x58e   :  { %v10747_v62 = vpop.eup %10746  ;;  %10772 = vtanh.f32 %v4720_v3  ;;  %v4834_v27 = vmul.f32 0.5, %v10745_v20  ;;  %v14250_v28 = vadd.f32 0.5, %v4832_v12 }
 0x58f   :  { %v10749_v46 = vpop.eup %10748  ;;  %10774 = vtanh.f32 %v4721_v52  ;;  %v4835_v37 = vmul.f32 0.5, %v10747_v62  ;;  %v14253_v1 = vadd.f32 0.5, %v4833_v38 }
 0x590   :  { %v10751_v54 = vpop.eup %10750  ;;  %10776 = vtanh.f32 %v4722_v24  ;;  %v4836_v45 = vmul.f32 0.5, %v10749_v46  ;;  %v14256_v61 = vadd.f32 0.5, %v4834_v27 }
 0x591   :  { %v10753_v31 = vpop.eup %10752  ;;  %10778 = vtanh.f32 %v4723_v14  ;;  %v4837_v55 = vmul.f32 0.5, %v10751_v54  ;;  %v14259_v7 = vadd.f32 0.5, %v4835_v37 }
 0x592   :  { %v10755_v16 = vpop.eup %10754  ;;  %10780 = vtanh.f32 %v4724_v47  ;;  %v4838_v35 = vmul.f32 0.5, %v10753_v31  ;;  %v14262_v34 = vadd.f32 0.5, %v4836_v45 }
 0x593   :  { %v10757_v60 = vpop.eup %10756  ;;  %10782 = vtanh.f32 %v4725_v8  ;;  %v4839_v51 = vmul.f32 0.5, %v10755_v16  ;;  %v14265_v23 = vadd.f32 0.5, %v4837_v55 }
 0x594   :  { %v10759_v3 = vpop.eup %10758  ;;  %10784 = vtanh.f32 %v4726_v42  ;;  %v4840_v49 = vmul.f32 0.5, %v10757_v60  ;;  %v14268_v21 = vadd.f32 0.5, %v4838_v35 }
 0x595   :  { %v10761_v52 = vpop.eup %10760  ;;  %10786 = vtanh.f32 %v4727_v4  ;;  %v4841_v22 = vmul.f32 0.5, %v10759_v3  ;;  %v14271_v56 = vadd.f32 0.5, %v4839_v51 }
 0x596   :  { %v10763_v24 = vpop.eup %10762  ;;  %10788 = vtanh.f32 %v4728_v26  ;;  %v4842_v12 = vmul.f32 0.5, %v10761_v52  ;;  %v14274_v20 = vadd.f32 0.5, %v4840_v49 }
 0x597   :  { %v10765_v14 = vpop.eup %10764  ;;  %10790 = vtanh.f32 %v4729_v15  ;;  %v4843_v38 = vmul.f32 0.5, %v10763_v24  ;;  %v14277_v62 = vadd.f32 0.5, %v4841_v22  ;;  %v4741_v22 = vmul.f32 0.5, %v17144_v11 }
 0x598   :  { %v10767_v47 = vpop.eup %10766  ;;  %10792 = vtanh.f32 %v4730_v53  ;;  %v4844_v27 = vmul.f32 0.5, %v10765_v14  ;;  %v14280_v46 = vadd.f32 0.5, %v4842_v12  ;;  %v4742_v14 = vmul.f32 0.5, %v17145_v33 }
 0x599   :  { %v10769_v8 = vpop.eup %10768  ;;  %10794 = vtanh.f32 %v4731_v32  ;;  %v4845_v37 = vmul.f32 0.5, %v10767_v47  ;;  %v14283_v54 = vadd.f32 0.5, %v4843_v38 }
 0x59a   :  { %v10771_v42 = vpop.eup %10770  ;;  %10796 = vtanh.f32 %v4732_v36  ;;  %v4846_v45 = vmul.f32 0.5, %v10769_v8  ;;  %v14286_v31 = vadd.f32 0.5, %v4844_v27 }
 0x59b   :  { %v10773_v4 = vpop.eup %10772  ;;  %10798 = vtanh.f32 %v4733_v5  ;;  %v4847_v55 = vmul.f32 0.5, %v10771_v42  ;;  %v14289_v16 = vadd.f32 0.5, %v4845_v37  ;;  %v17147_v37 = vld [vmem:[#allocation95_spill] sm:$0xff] }
 0x59c   :  { %v10775_v26 = vpop.eup %10774  ;;  %10800 = vtanh.f32 %v4734_v6  ;;  %v4848_v35 = vmul.f32 0.5, %v10773_v4  ;;  %v14292_v60 = vadd.f32 0.5, %v4846_v45  ;;  %v4743_v6 = vmul.f32 0.5, %v17146_v29 }
 0x59d   :  { %v10777_v15 = vpop.eup %10776  ;;  %10802 = vtanh.f32 %v4735_v17  ;;  %v4849_v51 = vmul.f32 0.5, %v10775_v26  ;;  %v14295_v3 = vadd.f32 0.5, %v4847_v55  ;;  %v4744_v42 = vmul.f32 0.5, %v17147_v37  ;;  %v17152_v37 = vld [vmem:[#allocation91_spill] sm:$0xff] }
 0x59e   :  { %v10779_v53 = vpop.eup %10778  ;;  %10804 = vtanh.f32 %v4736_v43  ;;  %v4850_v49 = vmul.f32 0.5, %v10777_v15  ;;  %v14298_v52 = vadd.f32 0.5, %v4848_v35  ;;  %v4746_v15 = vmul.f32 0.5, %v14154_v2  ;;  %v17151_v2 = vld [vmem:[#allocation90_spill] sm:$0xff] }
 0x59f   :  { %v10781_v32 = vpop.eup %10780  ;;  %10806 = vtanh.f32 %v4737_v40  ;;  %v4851_v24 = vmul.f32 0.5, %v10779_v53  ;;  %v14301_v36 = vadd.f32 0.5, %v4849_v51  ;;  %v17148_v40 = vld [vmem:[#allocation88_spill] sm:$0xff] }
 0x5a0   :  { %v10783_v12 = vpop.eup %10782  ;;  %10808 = vtanh.f32 %v4738_v25  ;;  %v4852_v5 = vmul.f32 0.5, %v10781_v32  ;;  %v14304_v38 = vadd.f32 0.5, %v4850_v49  ;;  %v4745_v55 = vmul.f32 0.5, %v17148_v40  ;;  %v17149_v49 = vld [vmem:[#allocation89_spill] sm:$0xff] }
 0x5a1   :  { %v10785_v47 = vpop.eup %10784  ;;  %10810 = vtanh.f32 %v4739_v44  ;;  %v4853_v27 = vmul.f32 0.5, %v10783_v12  ;;  %v14307_v8 = vadd.f32 0.5, %v4851_v24  ;;  %v17150_v12 = vld [vmem:[#allocation96_spill] sm:$0xff] }
 0x5a2   :  { %v10787_v17 = vpop.eup %10786  ;;  %10812 = vtanh.f32 %v4740_v18  ;;  %v4854_v43 = vmul.f32 0.5, %v10785_v47  ;;  %v14310_v45 = vadd.f32 0.5, %v4852_v5  ;;  %v4747_v18 = vmul.f32 0.5, %v17149_v49 }
 0x5a3   :  { %v10789_v4 = vpop.eup %10788  ;;  %10814 = vtanh.f32 %v4741_v22  ;;  %v4855_v26 = vmul.f32 0.5, %v10787_v17  ;;  %v14313_v25 = vadd.f32 0.5, %v4853_v27  ;;  %v4748_v22 = vmul.f32 0.5, %v17150_v12 }
 0x5a4   :  { %v10791_v35 = vpop.eup %10790  ;;  %10816 = vtanh.f32 %v4742_v14  ;;  %v4856_v44 = vmul.f32 0.5, %v10789_v4  ;;  %v14316_v51 = vadd.f32 0.5, %v4854_v43  ;;  %v4749_v14 = vmul.f32 0.5, %v17151_v2 }
 0x5a5   :  { %v10793_v53 = vpop.eup %10792  ;;  %10818 = vtanh.f32 %v4743_v6  ;;  %v4857_v32 = vmul.f32 0.5, %v10791_v35  ;;  %v14319_v11 = vadd.f32 0.5, %v4855_v26  ;;  %v4750_v6 = vmul.f32 0.5, %v17152_v37 }
 0x5a6   :  { %v10795_v24 = vpop.eup %10794  ;;  %10820 = vtanh.f32 %v4744_v42  ;;  %v4858_v33 = vmul.f32 0.5, %v10793_v53  ;;  %v14322_v5 = vadd.f32 0.5, %v4856_v44  ;;  %v4751_v42 = vmul.f32 0.5, %v14174_v41  ;;  %v17153_v41 = vld [vmem:[#allocation98_spill] sm:$0xff] }
 0x5a7   :  { %v10797_v47 = vpop.eup %10796  ;;  %10822 = vtanh.f32 %v4745_v55  ;;  %v4859_v29 = vmul.f32 0.5, %v10795_v24  ;;  %v14325_v27 = vadd.f32 0.5, %v4857_v32  ;;  %v4752_v55 = vmul.f32 0.5, %v14178_v48  ;;  %v17154_v48 = vld [vmem:[#allocation99_spill] sm:$0xff] }
 0x5a8   :  { %v10799_v17 = vpop.eup %10798  ;;  %10824 = vtanh.f32 %v4746_v15  ;;  %v4860_v43 = vmul.f32 0.5, %v10797_v47  ;;  %v14328_v4 = vadd.f32 0.5, %v4858_v33  ;;  %v4753_v15 = vmul.f32 0.5, %v14182_v13  ;;  %v17155_v13 = vld [vmem:[#allocation92_spill] sm:$0xff] }
 0x5a9   :  { %v10801_v40 = vpop.eup %10800  ;;  %10826 = vtanh.f32 %v4747_v18  ;;  %v4861_v26 = vmul.f32 0.5, %v10799_v17  ;;  %v14331_v35 = vadd.f32 0.5, %v4859_v29  ;;  %v4754_v18 = vmul.f32 0.5, %v17153_v41 }
 0x5aa   :  { %v10803_v44 = vpop.eup %10802  ;;  %10828 = vtanh.f32 %v4748_v22  ;;  %v4862_v53 = vmul.f32 0.5, %v10801_v40  ;;  %v14334_v49 = vadd.f32 0.5, %v4860_v43  ;;  %v4755_v22 = vmul.f32 0.5, %v17154_v48 }
 0x5ab   :  { %v10805_v32 = vpop.eup %10804  ;;  %10830 = vtanh.f32 %v4749_v14  ;;  %v4863_v24 = vmul.f32 0.5, %v10803_v44  ;;  %v14337_v12 = vadd.f32 0.5, %v4861_v26  ;;  %v4756_v14 = vmul.f32 0.5, %v17155_v13 }
 0x5ac   :  { %v10807_v33 = vpop.eup %10806  ;;  %10832 = vtanh.f32 %v4750_v6  ;;  %v4864_v47 = vmul.f32 0.5, %v10805_v32  ;;  %v14340_v2 = vadd.f32 0.5, %v4862_v53  ;;  %v4757_v6 = vmul.f32 0.5, %v14198_v9 }
 0x5ad   :  { %v10809_v29 = vpop.eup %10808  ;;  %10834 = vtanh.f32 %v4751_v42  ;;  %v4865_v17 = vmul.f32 0.5, %v10807_v33  ;;  %v14343_v37 = vadd.f32 0.5, %v4863_v24  ;;  %v4758_v42 = vmul.f32 0.5, %v14202_v58 }
 0x5ae   :  { %v10811_v43 = vpop.eup %10810  ;;  %10836 = vtanh.f32 %v4752_v55  ;;  %v4866_v40 = vmul.f32 0.5, %v10809_v29  ;;  %v14346_v26 = vadd.f32 0.5, %v4864_v47  ;;  %v4759_v55 = vmul.f32 0.5, %v14206_v50 }
 0x5af   :  { %v10813_v44 = vpop.eup %10812  ;;  %10838 = vtanh.f32 %v4753_v15  ;;  %v4867_v53 = vmul.f32 0.5, %v10811_v43  ;;  %v14349_v32 = vadd.f32 0.5, %v4865_v17  ;;  %v4760_v9 = vmul.f32 0.5, %v14210_v30 }
 0x5b0   :  { %v10815_v41 = vpop.eup %10814  ;;  %10840 = vtanh.f32 %v4754_v18  ;;  %v4868_v24 = vmul.f32 0.5, %v10813_v44  ;;  %v14352_v33 = vadd.f32 0.5, %v4866_v40 }
 0x5b1   :  { %v10817_v48 = vpop.eup %10816  ;;  %10842 = vtanh.f32 %v4755_v22  ;;  %v4869_v47 = vmul.f32 0.5, %v10815_v41  ;;  %v14355_v29 = vadd.f32 0.5, %v4867_v53 }
 0x5b2   :  { %v10819_v13 = vpop.eup %10818  ;;  %10844 = vtanh.f32 %v4756_v14  ;;  %v4870_v15 = vmul.f32 0.5, %v10817_v48  ;;  %v14358_v17 = vadd.f32 0.5, %v4868_v24 }
 0x5b3   :  { %17156 = vst [vmem:[#allocation97_spill] sm:$0xff] %v14355_v29  ;;  %v10821_v43 = vpop.eup %10820  ;;  %10846 = vtanh.f32 %v4757_v6  ;;  %v4871_v58 = vmul.f32 0.5, %v10819_v13  ;;  %v14360_v18 = vadd.f32 0.5, %v4869_v47 }
 0x5b4   :  { %v10823_v40 = vpop.eup %10822  ;;  %10848 = vtanh.f32 %v4758_v42  ;;  %v4872_v44 = vmul.f32 0.5, %v10821_v43  ;;  %v14362_v50 = vadd.f32 0.5, %v4870_v15 }
 0x5b5   :  { %17157 = vst [vmem:[#allocation93_spill] sm:$0xff] %v14360_v18  ;;  %v10825_v22 = vpop.eup %10824  ;;  %10850 = vtanh.f32 %v4759_v55  ;;  %v4873_v53 = vmul.f32 0.5, %v10823_v40  ;;  %v14364_v41 = vadd.f32 0.5, %v4871_v58 }
 0x5b6   :  { %v10827_v30 = vpop.eup %10826  ;;  %10852 = vtanh.f32 %v4760_v9  ;;  %v4874_v14 = vmul.f32 0.5, %v10825_v22  ;;  %v14366_v24 = vadd.f32 0.5, %v4872_v44 }
 0x5b7   :  { %17158 = vst [vmem:[#allocation100_spill] sm:$0xff] %v14364_v41  ;;  %v10829_v48 = vpop.eup %10828  ;;  %v4875_v6 = vmul.f32 0.5, %v10827_v30  ;;  %v14368_v13 = vadd.f32 0.5, %v4873_v53 }
 0x5b8   :  { %v10831_v47 = vpop.eup %10830  ;;  %v4876_v29 = vmul.f32 0.5, %v10829_v48  ;;  %v14370_v42 = vadd.f32 0.5, %v4874_v14 }
 0x5b9   :  { %17159 = vst [vmem:[#allocation101_spill] sm:$0xff] %v14368_v13  ;;  %v10833_v15 = vpop.eup %10832  ;;  %v4877_v43 = vmul.f32 0.5, %v10831_v47  ;;  %v14372_v18 = vadd.f32 0.5, %v4875_v6 }
 0x5ba   :  { %17160 = vst [vmem:[#allocation73_spill] sm:$0xff] %v14370_v42  ;;  %v10835_v55 = vpop.eup %10834  ;;  %v4878_v58 = vmul.f32 0.5, %v10833_v15  ;;  %v14374_v40 = vadd.f32 0.5, %v4876_v29 }
 0x5bb   :  { %17161 = vst [vmem:[#allocation75_spill] sm:$0xff] %v14372_v18  ;;  %v10837_v9 = vpop.eup %10836  ;;  %v4879_v22 = vmul.f32 0.5, %v10835_v55  ;;  %v14376_v44 = vadd.f32 0.5, %v4877_v43 }
 0x5bc   :  { %17162 = vst [vmem:[#allocation59_spill] sm:$0xff] %v14374_v40  ;;  %v10839_v41 = vpop.eup %10838  ;;  %v4880_v30 = vmul.f32 0.5, %v10837_v9  ;;  %v14378_v53 = vadd.f32 0.5, %v4878_v58 }
 0x5bd   :  { %17163 = vst [vmem:[#allocation61_spill] sm:$0xff] %v14376_v44  ;;  %v10841_v13 = vpop.eup %10840  ;;  %v4881_v48 = vmul.f32 0.5, %v10839_v41  ;;  %v14380_v14 = vadd.f32 0.5, %v4879_v22 }
 0x5be   :  { %17164 = vst [vmem:[#allocation72_spill] sm:$0xff] %v14378_v53  ;;  %v10843_v42 = vpop.eup %10842  ;;  %v4882_v47 = vmul.f32 0.5, %v10841_v13  ;;  %v14382_v6 = vadd.f32 0.5, %v4880_v30 }
 0x5bf   :  { %17165 = vst [vmem:[#allocation74_spill] sm:$0xff] %v14380_v14  ;;  %v10845_v18 = vpop.eup %10844  ;;  %v4883_v15 = vmul.f32 0.5, %v10843_v42  ;;  %v14384_v29 = vadd.f32 0.5, %v4881_v48 }
 0x5c0   :  { %17166 = vst [vmem:[#allocation64_spill] sm:$0xff] %v14382_v6  ;;  %v10847_v40 = vpop.eup %10846  ;;  %v4884_v55 = vmul.f32 0.5, %v10845_v18  ;;  %v14386_v43 = vadd.f32 0.5, %v4882_v47 }
 0x5c1   :  { %v10849_v44 = vpop.eup %10848  ;;  %v4885_v9 = vmul.f32 0.5, %v10847_v40  ;;  %v14388_v58 = vadd.f32 0.5, %v4883_v15 }
 0x5c2   :  { %v10851_v53 = vpop.eup %10850  ;;  %v4886_v41 = vmul.f32 0.5, %v10849_v44  ;;  %v14390_v22 = vadd.f32 0.5, %v4884_v55 }
 0x5c3   :  { %v10853_v14 = vpop.eup %10852  ;;  %v4887_v13 = vmul.f32 0.5, %v10851_v53  ;;  %v14392_v30 = vadd.f32 0.5, %v4885_v9 }
 0x5c4   :  { %v4888_v6 = vmul.f32 0.5, %v10853_v14  ;;  %v14394_v42 = vadd.f32 0.5, %v4886_v41 }
 0x5c5   :  { %v14396_v48 = vadd.f32 0.5, %v4887_v13 }
 0x5c6   :  { %v14398_v18 = vadd.f32 0.5, %v4888_v6 }
 0x5c7   :  { %11662 = dma.done.wait [#allocation6 + $0x1], 16384 }
 0x5c8   :  { %11663 = vsyncadd [#allocation6 + $0x1], 4294950912  ;;  %v14402_v40 = vpack.c.bf16 %v14244_v63, %v14232_v39  ;;  %v14406_v44 = vpack.c.bf16 %v14250_v28, %v14238_v0  ;;  %v10854_v53 = vld [vmem:[#allocation3 + $0xe4] ss:$16 sps:$4 sm:$0xff]   ;;  %v10858_v47 = vld [vmem:[#allocation3 + $0xe0] ss:$16 sps:$4 sm:$0xff]  }
 0x5c9   :  { %v10856_v14 = vld [vmem:[#allocation3 + $0x2e4] ss:$16 sps:$4 sm:$0xff]   ;;  %5757 = vmatprep.subr.bf16.mxu1 %v10854_v53  ;;  %v10859_v6 = vld [vmem:[#allocation3 + $0x2e0] ss:$16 sps:$4 sm:$0xff]  }
 0x5ca   :  { %17167 = vst [vmem:[#allocation67_spill] sm:$0xff] %v14402_v40  ;;  %17168 = vst [vmem:[#allocation77_spill] sm:$0xff] %v14406_v44  ;;  %5789 = vmatprep.mubr.bf16.mxu1 %v14402_v40  ;;  %5902 = vmatprep.mubr.bf16.mxu0 %v14406_v44  ;;  %v10860_v15 = vld [vmem:[#allocation3 + $0xc4] ss:$16 sps:$4 sm:$0xff]   ;;  %v10864_v39 = vld [vmem:[#allocation3 + $0xc0] ss:$16 sps:$4 sm:$0xff]  }
 0x5cb   :  { %5870 = vmatprep.subr.bf16.mxu0 %v10856_v14  ;;  %5758 = vmatpush1.bf16.msra.mxu1 %v10858_v47  ;;  %v10862_v55 = vld [vmem:[#allocation3 + $0x2c4] ss:$16 sps:$4 sm:$0xff]   ;;  %v10865_v63 = vld [vmem:[#allocation3 + $0x2c0] ss:$16 sps:$4 sm:$0xff]  }
 0x5cc   :  { %5871 = vmatpush1.bf16.msra.mxu0 %v10859_v6  ;;  %5759 = vmatprep.subr.bf16.mxu1 %v10860_v15  ;;  %v10866_v0 = vld [vmem:[#allocation3 + $0xa4] ss:$16 sps:$4 sm:$0xff]   ;;  %v10870_v9 = vld [vmem:[#allocation3 + $0xa0] ss:$16 sps:$4 sm:$0xff]  }
 0x5cd   :  { %5872 = vmatprep.subr.bf16.mxu0 %v10862_v55  ;;  %v10868_v28 = vld [vmem:[#allocation3 + $0x2a4] ss:$16 sps:$4 sm:$0xff]   ;;  %v10871_v41 = vld [vmem:[#allocation3 + $0x2a0] ss:$16 sps:$4 sm:$0xff]  }
 0x5ce   :  { %v10872_v13 = vld [vmem:[#allocation3 + $0x84] ss:$16 sps:$4 sm:$0xff]   ;;  %v10876_v44 = vld [vmem:[#allocation3 + $0x80] ss:$16 sps:$4 sm:$0xff]  }
 0x5cf   :  { %5760 = vmatpush1.bf16.msra.mxu1 %v10864_v39  ;;  %v10874_v53 = vld [vmem:[#allocation3 + $0x284] ss:$16 sps:$4 sm:$0xff]   ;;  %v10877_v14 = vld [vmem:[#allocation3 + $0x280] ss:$16 sps:$4 sm:$0xff]  }
 0x5d0   :  { %5873 = vmatpush1.bf16.msra.mxu0 %v10865_v63  ;;  %5761 = vmatprep.subr.bf16.mxu1 %v10866_v0  ;;  %v10878_v47 = vld [vmem:[#allocation3 + $0x64] ss:$16 sps:$4 sm:$0xff]   ;;  %v10882_v15 = vld [vmem:[#allocation3 + $0x60] ss:$16 sps:$4 sm:$0xff]  }
 0x5d1   :  { %5874 = vmatprep.subr.bf16.mxu0 %v10868_v28  ;;  %v10880_v6 = vld [vmem:[#allocation3 + $0x264] ss:$16 sps:$4 sm:$0xff]   ;;  %v10883_v55 = vld [vmem:[#allocation3 + $0x260] ss:$16 sps:$4 sm:$0xff]  }
 0x5d2   :  { %v10884_v40 = vld [vmem:[#allocation3 + $0x44] ss:$16 sps:$4 sm:$0xff]   ;;  %v10888_v63 = vld [vmem:[#allocation3 + $0x40] ss:$16 sps:$4 sm:$0xff]  }
 0x5d3   :  { %5762 = vmatpush1.bf16.msra.mxu1 %v10870_v9  ;;  %v10886_v39 = vld [vmem:[#allocation3 + $0x244] ss:$16 sps:$4 sm:$0xff]   ;;  %v10889_v0 = vld [vmem:[#allocation3 + $0x240] ss:$16 sps:$4 sm:$0xff]  }
 0x5d4   :  { %5875 = vmatpush1.bf16.msra.mxu0 %v10871_v41  ;;  %5763 = vmatprep.subr.bf16.mxu1 %v10872_v13  ;;  %v10890_v28 = vld [vmem:[#allocation3 + $0x24] ss:$16 sps:$4 sm:$0xff]   ;;  %v10894_v41 = vld [vmem:[#allocation3 + $0x20] ss:$16 sps:$4 sm:$0xff]  }
 0x5d5   :  { %5876 = vmatprep.subr.bf16.mxu0 %v10874_v53  ;;  %v10892_v9 = vld [vmem:[#allocation3 + $0x224] ss:$16 sps:$4 sm:$0xff]   ;;  %v10895_v13 = vld [vmem:[#allocation3 + $0x220] ss:$16 sps:$4 sm:$0xff]  }
 0x5d6   :  { %v10896_v53 = vld [vmem:[#allocation3 + $0x4] ss:$16 sps:$4 sm:$0xff]  }
 0x5d7   :  { %5764 = vmatpush1.bf16.msra.mxu1 %v10876_v44  ;;  %v10898_v44 = vld [vmem:[#allocation3 + $0x204] ss:$16 sps:$4 sm:$0xff]  }
 0x5d8   :  { %5877 = vmatpush1.bf16.msra.mxu0 %v10877_v14  ;;  %5765 = vmatprep.subr.bf16.mxu1 %v10878_v47  ;;  %v10900_v14 = vld [vmem:[#allocation3] ss:$16 sps:$4 sm:$0xff]  }
 0x5d9   :  { %5878 = vmatprep.subr.bf16.mxu0 %v10880_v6  ;;  %v10901_v47 = vld [vmem:[#allocation3 + $0x200] ss:$16 sps:$4 sm:$0xff]   ;;  %v10902_v6 = vld [vmem:[#allocation3 + $0x1e4] ss:$16 sps:$4 sm:$0xff]  }
 0x5db   :  { %5766 = vmatpush1.bf16.msra.mxu1 %v10882_v15  ;;  %v10904_v15 = vld [vmem:[#allocation3 + $0x3e4] ss:$16 sps:$4 sm:$0xff]  }
 0x5dc   :  { %5879 = vmatpush1.bf16.msra.mxu0 %v10883_v55  ;;  %5767 = vmatprep.subr.bf16.mxu1 %v10884_v40  ;;  %v10906_v55 = vld [vmem:[#allocation3 + $0x1e0] ss:$16 sps:$4 sm:$0xff]  }
 0x5dd   :  { %5880 = vmatprep.subr.bf16.mxu0 %v10886_v39  ;;  %v10907_v40 = vld [vmem:[#allocation3 + $0x3e0] ss:$16 sps:$4 sm:$0xff]   ;;  %v10908_v39 = vld [vmem:[#allocation3 + $0x1c4] ss:$16 sps:$4 sm:$0xff]  }
 0x5df   :  { %5768 = vmatpush1.bf16.msra.mxu1 %v10888_v63  ;;  %v10910_v63 = vld [vmem:[#allocation3 + $0x3c4] ss:$16 sps:$4 sm:$0xff]  }
 0x5e0   :  { %5881 = vmatpush1.bf16.msra.mxu0 %v10889_v0  ;;  %5769 = vmatprep.subr.bf16.mxu1 %v10890_v28  ;;  %v10912_v0 = vld [vmem:[#allocation3 + $0x1c0] ss:$16 sps:$4 sm:$0xff]  }
 0x5e1   :  { %5882 = vmatprep.subr.bf16.mxu0 %v10892_v9  ;;  %v10913_v28 = vld [vmem:[#allocation3 + $0x3c0] ss:$16 sps:$4 sm:$0xff]   ;;  %v10914_v9 = vld [vmem:[#allocation3 + $0x1a4] ss:$16 sps:$4 sm:$0xff]  }
 0x5e3   :  { %5770 = vmatpush1.bf16.msra.mxu1 %v10894_v41  ;;  %v10916_v41 = vld [vmem:[#allocation3 + $0x3a4] ss:$16 sps:$4 sm:$0xff]  }
 0x5e4   :  { %5883 = vmatpush1.bf16.msra.mxu0 %v10895_v13  ;;  %5771 = vmatprep.subr.bf16.mxu1 %v10896_v53  ;;  %v10918_v13 = vld [vmem:[#allocation3 + $0x1a0] ss:$16 sps:$4 sm:$0xff]  }
 0x5e5   :  { %5884 = vmatprep.subr.bf16.mxu0 %v10898_v44  ;;  %v10919_v53 = vld [vmem:[#allocation3 + $0x3a0] ss:$16 sps:$4 sm:$0xff]   ;;  %v10920_v44 = vld [vmem:[#allocation3 + $0x184] ss:$16 sps:$4 sm:$0xff]  }
 0x5e7   :  { %5772 = vmatpush1.bf16.msra.mxu1 %v10900_v14  ;;  %v10922_v14 = vld [vmem:[#allocation3 + $0x384] ss:$16 sps:$4 sm:$0xff]  }
 0x5e8   :  { %5885 = vmatpush1.bf16.msra.mxu0 %v10901_v47  ;;  %5773 = vmatprep.subr.bf16.mxu1 %v10902_v6  ;;  %v10924_v47 = vld [vmem:[#allocation3 + $0x180] ss:$16 sps:$4 sm:$0xff]  }
 0x5e9   :  { %5886 = vmatprep.subr.bf16.mxu0 %v10904_v15  ;;  %v10925_v6 = vld [vmem:[#allocation3 + $0x380] ss:$16 sps:$4 sm:$0xff]   ;;  %v10926_v15 = vld [vmem:[#allocation3 + $0x164] ss:$16 sps:$4 sm:$0xff]  }
 0x5eb   :  { %5774 = vmatpush2.bf16.msra.mxu1 %v10906_v55  ;;  %v10928_v55 = vld [vmem:[#allocation3 + $0x364] ss:$16 sps:$4 sm:$0xff]  }
 0x5ec   :  { %5887 = vmatpush2.bf16.msra.mxu0 %v10907_v40  ;;  %5775 = vmatprep.subr.bf16.mxu1 %v10908_v39  ;;  %v10930_v40 = vld [vmem:[#allocation3 + $0x160] ss:$16 sps:$4 sm:$0xff]  }
 0x5ed   :  { %5888 = vmatprep.subr.bf16.mxu0 %v10910_v63  ;;  %v10931_v39 = vld [vmem:[#allocation3 + $0x360] ss:$16 sps:$4 sm:$0xff]   ;;  %v10932_v63 = vld [vmem:[#allocation3 + $0x144] ss:$16 sps:$4 sm:$0xff]  }
 0x5ef   :  { %5776 = vmatpush2.bf16.msra.mxu1 %v10912_v0  ;;  %v10934_v0 = vld [vmem:[#allocation3 + $0x344] ss:$16 sps:$4 sm:$0xff]  }
 0x5f0   :  { %5889 = vmatpush2.bf16.msra.mxu0 %v10913_v28  ;;  %5777 = vmatprep.subr.bf16.mxu1 %v10914_v9  ;;  %v10936_v28 = vld [vmem:[#allocation3 + $0x140] ss:$16 sps:$4 sm:$0xff]  }
 0x5f1   :  { %5890 = vmatprep.subr.bf16.mxu0 %v10916_v41  ;;  %v10937_v9 = vld [vmem:[#allocation3 + $0x340] ss:$16 sps:$4 sm:$0xff]   ;;  %v10938_v41 = vld [vmem:[#allocation3 + $0x124] ss:$16 sps:$4 sm:$0xff]  }
 0x5f3   :  { %5778 = vmatpush2.bf16.msra.mxu1 %v10918_v13  ;;  %v10940_v13 = vld [vmem:[#allocation3 + $0x324] ss:$16 sps:$4 sm:$0xff]  }
 0x5f4   :  { %5891 = vmatpush2.bf16.msra.mxu0 %v10919_v53  ;;  %5779 = vmatprep.subr.bf16.mxu1 %v10920_v44  ;;  %v10942_v53 = vld [vmem:[#allocation3 + $0x120] ss:$16 sps:$4 sm:$0xff]  }
 0x5f5   :  { %5892 = vmatprep.subr.bf16.mxu0 %v10922_v14  ;;  %v10943_v44 = vld [vmem:[#allocation3 + $0x320] ss:$16 sps:$4 sm:$0xff]   ;;  %v10944_v14 = vld [vmem:[#allocation3 + $0x104] ss:$16 sps:$4 sm:$0xff]  }
 0x5f7   :  { %5780 = vmatpush2.bf16.msra.mxu1 %v10924_v47  ;;  %v10946_v47 = vld [vmem:[#allocation3 + $0x304] ss:$16 sps:$4 sm:$0xff]  }
 0x5f8   :  { %5893 = vmatpush2.bf16.msra.mxu0 %v10925_v6  ;;  %5781 = vmatprep.subr.bf16.mxu1 %v10926_v15  ;;  %v10948_v6 = vld [vmem:[#allocation3 + $0x100] ss:$16 sps:$4 sm:$0xff]  }
 0x5f9   :  { %5894 = vmatprep.subr.bf16.mxu0 %v10928_v55  ;;  %v10949_v15 = vld [vmem:[#allocation3 + $0x300] ss:$16 sps:$4 sm:$0xff]   ;;  %v10952_v55 = vld [vmem:[#allocation3 + $0xec] ss:$16 sps:$4 sm:$0xff]  }
 0x5fb   :  { %5782 = vmatpush2.bf16.msra.mxu1 %v10930_v40  ;;  %v10955_v40 = vld [vmem:[#allocation3 + $0x2ec] ss:$16 sps:$4 sm:$0xff]  }
 0x5fc   :  { %5895 = vmatpush2.bf16.msra.mxu0 %v10931_v39  ;;  %5783 = vmatprep.subr.bf16.mxu1 %v10932_v63  ;;  %v14412_v39 = vpack.c.bf16 %v14241_v19, %v14229_v59  ;;  %v14416_v63 = vpack.c.bf16 %v14247_v10, %v14235_v57  ;;  %v14424_v59 = vpack.c.bf16 %v14274_v20, %v14262_v34  ;;  %v10956_v57 = vld [vmem:[#allocation3 + $0xc8] ss:$16 sps:$4 sm:$0xff]   ;;  %v10964_v10 = vld [vmem:[#allocation3 + $0xac] ss:$16 sps:$4 sm:$0xff]  }
 0x5fd   :  { %5896 = vmatprep.subr.bf16.mxu0 %v10934_v0  ;;  %v10950_v0 = vld [vmem:[#allocation3 + $0xe8] ss:$16 sps:$4 sm:$0xff]   ;;  %v14436_v34 = vpack.c.bf16 %v14271_v56, %v14259_v7  ;;  %v10976_v56 = vld [vmem:[#allocation3 + $0x6c] ss:$16 sps:$4 sm:$0xff]  }
 0x5fe   :  { %v10959_v19 = vld [vmem:[#allocation3 + $0x2c8] ss:$16 sps:$4 sm:$0xff]  }
 0x5ff   :  { %5784 = vmatpush2.bf16.msra.mxu1 %v10936_v28  ;;  %v10953_v28 = vld [vmem:[#allocation3 + $0x2e8] ss:$16 sps:$4 sm:$0xff]  }
 0x600   :  { %5897 = vmatpush2.bf16.msra.mxu0 %v10937_v9  ;;  %5785 = vmatprep.subr.bf16.mxu1 %v10938_v41  ;;  %v10958_v9 = vld [vmem:[#allocation3 + $0xcc] ss:$16 sps:$4 sm:$0xff]   ;;  %v10965_v20 = vld [vmem:[#allocation3 + $0x2a8] ss:$16 sps:$4 sm:$0xff]  }
 0x601   :  { %5898 = vmatprep.subr.bf16.mxu0 %v10940_v13  ;;  %v10961_v41 = vld [vmem:[#allocation3 + $0x2cc] ss:$16 sps:$4 sm:$0xff]   ;;  %v14420_v13 = vpack.c.bf16 %v14268_v21, %v14256_v61  ;;  %v14432_v61 = vpack.c.bf16 %v14265_v23, %v14253_v1  ;;  %v10962_v21 = vld [vmem:[#allocation3 + $0xa8] ss:$16 sps:$4 sm:$0xff]   ;;  %v14444_v1 = vpack.c.bf16 %v14298_v52, %v14286_v31  ;;  %v14456_v31 = vpack.c.bf16 %v14295_v3, %v14283_v54 }
 0x602   :  { %v10968_v7 = vld [vmem:[#allocation3 + $0x88] ss:$16 sps:$4 sm:$0xff]   ;;  %v10988_v3 = vld [vmem:[#allocation3 + $0x2c] ss:$16 sps:$4 sm:$0xff]  }
 0x603   :  { %5786 = vmatpush2.bf16.msra.mxu1 %v10942_v53  ;;  %v10967_v53 = vld [vmem:[#allocation3 + $0x2ac] ss:$16 sps:$4 sm:$0xff]   ;;  %v10971_v23 = vld [vmem:[#allocation3 + $0x288] ss:$16 sps:$4 sm:$0xff]  }
 0x604   :  { %5899 = vmatpush2.bf16.msra.mxu0 %v10943_v44  ;;  %5787 = vmatprep.subr.bf16.mxu1 %v10944_v14  ;;  %v10970_v44 = vld [vmem:[#allocation3 + $0x8c] ss:$16 sps:$4 sm:$0xff]   ;;  %v10977_v52 = vld [vmem:[#allocation3 + $0x268] ss:$16 sps:$4 sm:$0xff]  }
 0x605   :  { %5900 = vmatprep.subr.bf16.mxu0 %v10946_v47  ;;  %v10973_v14 = vld [vmem:[#allocation3 + $0x28c] ss:$16 sps:$4 sm:$0xff]   ;;  %v14440_v47 = vpack.c.bf16 %v14292_v60, %v14280_v46  ;;  %v14452_v46 = vpack.c.bf16 %v14289_v16, %v14277_v62  ;;  %v10974_v60 = vld [vmem:[#allocation3 + $0x68] ss:$16 sps:$4 sm:$0xff]   ;;  %v14464_v62 = vpack.c.bf16 %v14322_v5, %v14310_v45  ;;  %v14476_v45 = vpack.c.bf16 %v14319_v11, %v14307_v8 }
 0x606   :  { %v10980_v54 = vld [vmem:[#allocation3 + $0x48] ss:$16 sps:$4 sm:$0xff]   ;;  %v11000_v11 = vld [vmem:[#allocation3 + $0x1ec] ss:$16 sps:$4 sm:$0xff]  }
 0x607   :  { %5788 = vmatpush2.bf16.msra.mxu1 %v10948_v6  ;;  %v10979_v6 = vld [vmem:[#allocation3 + $0x26c] ss:$16 sps:$4 sm:$0xff]   ;;  %v10983_v16 = vld [vmem:[#allocation3 + $0x248] ss:$16 sps:$4 sm:$0xff]  }
 0x608   :  { %5901 = vmatpush2.bf16.msra.mxu0 %v10949_v15  ;;  %5983 = vmatprep.subr.bf16.mxu1 %v10952_v55  ;;  %v10982_v15 = vld [vmem:[#allocation3 + $0x4c] ss:$16 sps:$4 sm:$0xff]   ;;  %v10989_v5 = vld [vmem:[#allocation3 + $0x228] ss:$16 sps:$4 sm:$0xff]  }
 0x609   :  { %6096 = vmatprep.subr.bf16.mxu0 %v10955_v40  ;;  %v10985_v55 = vld [vmem:[#allocation3 + $0x24c] ss:$16 sps:$4 sm:$0xff]   ;;  %v14460_v40 = vpack.c.bf16 %v14316_v51, %v14304_v38  ;;  %v14472_v38 = vpack.c.bf16 %v14313_v25, %v14301_v36  ;;  %v10986_v51 = vld [vmem:[#allocation3 + $0x28] ss:$16 sps:$4 sm:$0xff]   ;;  %v14484_v36 = vpack.c.bf16 %v14346_v26, %v14334_v49  ;;  %v14496_v49 = vpack.c.bf16 %v14343_v37, %v14331_v35 }
 0x60a   :  { %5790 = vmatmul.mubr.bf16.vlgmr.msra.gmra.mxu1 %v14412_v39  ;;  %v10992_v8 = vld [vmem:[#allocation3 + $0x8] ss:$16 sps:$4 sm:$0xff]   ;;  %v11012_v37 = vld [vmem:[#allocation3 + $0x1ac] ss:$16 sps:$4 sm:$0xff]  }
 0x60b   :  { %5903 = vmatmul.mubr.bf16.vlgmr.msra.gmra.mxu0 %v14416_v63  ;;  %5984 = vmatpush1.bf16.msra.mxu1 %v10950_v0  ;;  %v10991_v0 = vld [vmem:[#allocation3 + $0x22c] ss:$16 sps:$4 sm:$0xff]   ;;  %v10995_v25 = vld [vmem:[#allocation3 + $0x208] ss:$16 sps:$4 sm:$0xff]  }
 0x60c   :  { %6097 = vmatpush1.bf16.msra.mxu0 %v10953_v28  ;;  %5985 = vmatprep.subr.bf16.mxu1 %v10958_v9  ;;  %v10994_v28 = vld [vmem:[#allocation3 + $0xc] ss:$16 sps:$4 sm:$0xff]   ;;  %v11001_v26 = vld [vmem:[#allocation3 + $0x3e8] ss:$16 sps:$4 sm:$0xff]  }
 0x60d   :  { %6098 = vmatprep.subr.bf16.mxu0 %v10961_v41  ;;  %5799 = vmatprep.mubr.bf16.mxu1 %v14420_v13  ;;  %v10997_v9 = vld [vmem:[#allocation3 + $0x20c] ss:$16 sps:$4 sm:$0xff]   ;;  %v14480_v41 = vpack.c.bf16 %v14340_v2, %v14328_v4  ;;  %v14492_v4 = vpack.c.bf16 %v14337_v12, %v14325_v27  ;;  %v10998_v2 = vld [vmem:[#allocation3 + $0x1e8] ss:$16 sps:$4 sm:$0xff]   ;;  %v14504_v27 = vpack.c.bf16 %v14366_v24, %v14358_v17 }
 0x60e   :  { %5912 = vmatprep.mubr.bf16.mxu0 %v14424_v59  ;;  %v11004_v35 = vld [vmem:[#allocation3 + $0x1c8] ss:$16 sps:$4 sm:$0xff]   ;;  %v17171_v24 = vld [vmem:[#allocation100_spill] sm:$0xff] }
 0x60f   :  { %5986 = vmatpush1.bf16.msra.mxu1 %v10956_v57  ;;  %v11003_v57 = vld [vmem:[#allocation3 + $0x3ec] ss:$16 sps:$4 sm:$0xff]   ;;  %v11007_v12 = vld [vmem:[#allocation3 + $0x3c8] ss:$16 sps:$4 sm:$0xff]  }
 0x610   :  { %6099 = vmatpush1.bf16.msra.mxu0 %v10959_v19  ;;  %5987 = vmatprep.subr.bf16.mxu1 %v10964_v10  ;;  %v11006_v19 = vld [vmem:[#allocation3 + $0x1cc] ss:$16 sps:$4 sm:$0xff]  }
 0x611   :  { %6100 = vmatprep.subr.bf16.mxu0 %v10967_v53  ;;  %v11009_v10 = vld [vmem:[#allocation3 + $0x3cc] ss:$16 sps:$4 sm:$0xff]   ;;  %v14500_v53 = vpack.c.bf16 %v14362_v50, %v14352_v33 }
 0x612   :  { %5800 = vmatmul.mubr.bf16.gmra.mxu1 %v14432_v61  ;;  %v17169_v33 = vld [vmem:[#allocation93_spill] sm:$0xff] }
 0x613   :  { %5913 = vmatmul.mubr.bf16.gmra.mxu0 %v14436_v34  ;;  %5988 = vmatpush1.bf16.msra.mxu1 %v10962_v21  ;;  %v11015_v21 = vld [vmem:[#allocation3 + $0x3ac] ss:$16 sps:$4 sm:$0xff]   ;;  %v14512_v17 = vpack.c.bf16 %v17169_v33, %v14349_v32 }
 0x614   :  { %6101 = vmatpush1.bf16.msra.mxu0 %v10965_v20  ;;  %5989 = vmatprep.subr.bf16.mxu1 %v10970_v44  ;;  %v17170_v50 = vld [vmem:[#allocation97_spill] sm:$0xff] }
 0x615   :  { %6102 = vmatprep.subr.bf16.mxu0 %v10973_v14  ;;  %5809 = vmatprep.mubr.bf16.mxu1 %v14440_v47  ;;  %v14516_v20 = vpack.c.bf16 %v17171_v24, %v17170_v50  ;;  %v11010_v44 = vld [vmem:[#allocation3 + $0x1a8] ss:$16 sps:$4 sm:$0xff]   ;;  %v11045_v33 = vld [vmem:[#allocation3 + $0x30c] ss:$16 sps:$4 sm:$0xff]  }
 0x616   :  { %5922 = vmatprep.mubr.bf16.mxu0 %v14444_v1  ;;  %v11013_v14 = vld [vmem:[#allocation3 + $0x3a8] ss:$16 sps:$4 sm:$0xff]  }
 0x617   :  { %5990 = vmatpush1.bf16.msra.mxu1 %v10968_v7  ;;  %v11018_v7 = vld [vmem:[#allocation3 + $0x18c] ss:$16 sps:$4 sm:$0xff]   ;;  %v11040_v50 = vld [vmem:[#allocation3 + $0x108] ss:$16 sps:$4 sm:$0xff]  }
 0x618   :  { %6103 = vmatpush1.bf16.msra.mxu0 %v10971_v23  ;;  %5991 = vmatprep.subr.bf16.mxu1 %v10976_v56  ;;  %v11021_v23 = vld [vmem:[#allocation3 + $0x38c] ss:$16 sps:$4 sm:$0xff]   ;;  %v11043_v24 = vld [vmem:[#allocation3 + $0x308] ss:$16 sps:$4 sm:$0xff]  }
 0x619   :  { %6104 = vmatprep.subr.bf16.mxu0 %v10979_v6  ;;  %v17172_v56 = vld [vmem:[#allocation73_spill] sm:$0xff]  ;;  %v17173_v6 = vld [vmem:[#allocation72_spill] sm:$0xff] }
 0x61a   :  { %5810 = vmatmul.mubr.bf16.gmra.mxu1 %v14452_v46 }
 0x61b   :  { %5923 = vmatmul.mubr.bf16.gmra.mxu0 %v14456_v31  ;;  %5992 = vmatpush1.bf16.msra.mxu1 %v10974_v60  ;;  %v14520_v60 = vpack.c.bf16 %v17173_v6, %v17172_v56 }
 0x61c   :  { %6105 = vmatpush1.bf16.msra.mxu0 %v10977_v52  ;;  %5993 = vmatprep.subr.bf16.mxu1 %v10982_v15  ;;  %v17174_v52 = vld [vmem:[#allocation59_spill] sm:$0xff]  ;;  %v17175_v15 = vld [vmem:[#allocation64_spill] sm:$0xff] }
 0x61d   :  { %6106 = vmatprep.subr.bf16.mxu0 %v10985_v55  ;;  %5819 = vmatprep.mubr.bf16.mxu1 %v14460_v40  ;;  %v14524_v32 = vpack.c.bf16 %v17175_v15, %v17174_v52  ;;  %v11016_v55 = vld [vmem:[#allocation3 + $0x188] ss:$16 sps:$4 sm:$0xff]  }
 0x61e   :  { %5932 = vmatprep.mubr.bf16.mxu0 %v14464_v62 }
 0x61f   :  { %5994 = vmatpush1.bf16.msra.mxu1 %v10980_v54  ;;  %v11019_v54 = vld [vmem:[#allocation3 + $0x388] ss:$16 sps:$4 sm:$0xff]  }
 0x620   :  { %6107 = vmatpush1.bf16.msra.mxu0 %v10983_v16  ;;  %5995 = vmatprep.subr.bf16.mxu1 %v10988_v3  ;;  %v11024_v16 = vld [vmem:[#allocation3 + $0x16c] ss:$16 sps:$4 sm:$0xff]  }
 0x621   :  { %6108 = vmatprep.subr.bf16.mxu0 %v10991_v0  ;;  %v11027_v3 = vld [vmem:[#allocation3 + $0x36c] ss:$16 sps:$4 sm:$0xff]  }
 0x622   :  { %5820 = vmatmul.mubr.bf16.gmra.mxu1 %v14472_v38  ;;  %v17176_v0 = vld [vmem:[#allocation101_spill] sm:$0xff] }
 0x623   :  { %5933 = vmatmul.mubr.bf16.gmra.mxu0 %v14476_v45  ;;  %5996 = vmatpush1.bf16.msra.mxu1 %v10986_v51  ;;  %v17177_v51 = vld [vmem:[#allocation61_spill] sm:$0xff] }
 0x624   :  { %6109 = vmatpush1.bf16.msra.mxu0 %v10989_v5  ;;  %5997 = vmatprep.subr.bf16.mxu1 %v10994_v28  ;;  %v14532_v5 = vpack.c.bf16 %v17177_v51, %v17176_v0  ;;  %v17178_v28 = vld [vmem:[#allocation75_spill] sm:$0xff] }
 0x625   :  { %6110 = vmatprep.subr.bf16.mxu0 %v10997_v9  ;;  %5829 = vmatprep.mubr.bf16.mxu1 %v14480_v41  ;;  %v17179_v9 = vld [vmem:[#allocation74_spill] sm:$0xff] }
 0x626   :  { %5942 = vmatprep.mubr.bf16.mxu0 %v14484_v36 }
 0x627   :  { %5998 = vmatpush1.bf16.msra.mxu1 %v10992_v8  ;;  %v14536_v8 = vpack.c.bf16 %v17179_v9, %v17178_v28 }
 0x628   :  { %6111 = vmatpush1.bf16.msra.mxu0 %v10995_v25  ;;  %5999 = vmatprep.subr.bf16.mxu1 %v11000_v11  ;;  %v11022_v25 = vld [vmem:[#allocation3 + $0x168] ss:$16 sps:$4 sm:$0xff]  }
 0x629   :  { %6112 = vmatprep.subr.bf16.mxu0 %v11003_v57  ;;  %v11025_v11 = vld [vmem:[#allocation3 + $0x368] ss:$16 sps:$4 sm:$0xff]   ;;  %v11030_v57 = vld [vmem:[#allocation3 + $0x14c] ss:$16 sps:$4 sm:$0xff]  }
 0x62a   :  { %5830 = vmatmul.mubr.bf16.gmra.mxu1 %v14492_v4 }
 0x62b   :  { %5943 = vmatmul.mubr.bf16.gmra.mxu0 %v14496_v49  ;;  %6000 = vmatpush2.bf16.msra.mxu1 %v10998_v2  ;;  %v11033_v2 = vld [vmem:[#allocation3 + $0x34c] ss:$16 sps:$4 sm:$0xff]  }
 0x62c   :  { %6113 = vmatpush2.bf16.msra.mxu0 %v11001_v26  ;;  %6001 = vmatprep.subr.bf16.mxu1 %v11006_v19  ;;  %v5114_v26 = vpack.c.bf16 %v14394_v42, %v14386_v43  ;;  %v5116_v19 = vpack.c.bf16 %v14398_v18, %v14390_v22  ;;  %v5113_v43 = vpack.c.bf16 %v14392_v30, %v14384_v29  ;;  %v11034_v42 = vld [vmem:[#allocation3 + $0x128] ss:$16 sps:$4 sm:$0xff]  }
 0x62d   :  { %6114 = vmatprep.subr.bf16.mxu0 %v11009_v10  ;;  %5839 = vmatprep.mubr.bf16.mxu1 %v14500_v53  ;;  %v11028_v10 = vld [vmem:[#allocation3 + $0x148] ss:$16 sps:$4 sm:$0xff]   ;;  %v5115_v22 = vpack.c.bf16 %v14396_v48, %v14388_v58 }
 0x62e   :  { %5952 = vmatprep.mubr.bf16.mxu0 %v14504_v27  ;;  %v11037_v18 = vld [vmem:[#allocation3 + $0x328] ss:$16 sps:$4 sm:$0xff]  }
 0x62f   :  { %6002 = vmatpush2.bf16.msra.mxu1 %v11004_v35  ;;  %v11031_v35 = vld [vmem:[#allocation3 + $0x348] ss:$16 sps:$4 sm:$0xff]  }
 0x630   :  { %6115 = vmatpush2.bf16.msra.mxu0 %v11007_v12  ;;  %6003 = vmatprep.subr.bf16.mxu1 %v11012_v37  ;;  %v11036_v12 = vld [vmem:[#allocation3 + $0x12c] ss:$16 sps:$4 sm:$0xff]  }
 0x631   :  { %6116 = vmatprep.subr.bf16.mxu0 %v11015_v21  ;;  %v11039_v37 = vld [vmem:[#allocation3 + $0x32c] ss:$16 sps:$4 sm:$0xff]  }
 0x632   :  { %5840 = vmatmul.mubr.bf16.gmra.mxu1 %v14512_v17  ;;  %v11042_v21 = vld [vmem:[#allocation3 + $0x10c] ss:$16 sps:$4 sm:$0xff]  }
 0x633   :  { %5953 = vmatmul.mubr.bf16.gmra.mxu0 %v14516_v20  ;;  %6004 = vmatpush2.bf16.msra.mxu1 %v11010_v44  ;;  %v17180_v29 = vld [vmem:[#allocation67_spill] sm:$0xff]  ;;  %v17181_v30 = vld [vmem:[#allocation77_spill] sm:$0xff] }
 0x634   :  { %6117 = vmatpush2.bf16.msra.mxu0 %v11013_v14  ;;  %6005 = vmatprep.subr.bf16.mxu1 %v11018_v7 }
 0x635   :  { %6118 = vmatprep.subr.bf16.mxu0 %v11021_v23  ;;  %5849 = vmatprep.mubr.bf16.mxu1 %v14520_v60 }
 0x636   :  { %5962 = vmatprep.mubr.bf16.mxu0 %v14524_v32 }
 0x637   :  { %6006 = vmatpush2.bf16.msra.mxu1 %v11016_v55 }
 0x638   :  { %6119 = vmatpush2.bf16.msra.mxu0 %v11019_v54  ;;  %6007 = vmatprep.subr.bf16.mxu1 %v11024_v16 }
 0x639   :  { %6120 = vmatprep.subr.bf16.mxu0 %v11027_v3 }
 0x63a   :  { %5850 = vmatmul.mubr.bf16.gmra.mxu1 %v14532_v5 }
 0x63b   :  { %5963 = vmatmul.mubr.bf16.gmra.mxu0 %v14536_v8  ;;  %6008 = vmatpush2.bf16.msra.mxu1 %v11022_v25 }
 0x63c   :  { %6121 = vmatpush2.bf16.msra.mxu0 %v11025_v11  ;;  %6009 = vmatprep.subr.bf16.mxu1 %v11030_v57 }
 0x63d   :  { %6122 = vmatprep.subr.bf16.mxu0 %v11033_v2  ;;  %5859 = vmatprep.mubr.bf16.mxu1 %v5114_v26 }
 0x63e   :  { %5972 = vmatprep.mubr.bf16.mxu0 %v5116_v19 }
 0x63f   :  { %6010 = vmatpush2.bf16.msra.mxu1 %v11028_v10 }
 0x640   :  { %6123 = vmatpush2.bf16.msra.mxu0 %v11031_v35  ;;  %6011 = vmatprep.subr.bf16.mxu1 %v11036_v12 }
 0x641   :  { %6124 = vmatprep.subr.bf16.mxu0 %v11039_v37 }
 0x642   :  { %5860 = vmatmul.mubr.bf16.gmra.mxu1 %v5113_v43 }
 0x643   :  { %5973 = vmatmul.mubr.bf16.gmra.mxu0 %v5115_v22  ;;  %6012 = vmatpush2.bf16.msra.mxu1 %v11034_v42 }
 0x644   :  { %6125 = vmatpush2.bf16.msra.mxu0 %v11037_v18  ;;  %6013 = vmatprep.subr.bf16.mxu1 %v11042_v21 }
 0x645   :  { %6126 = vmatprep.subr.bf16.mxu0 %v11045_v33  ;;  %6015 = vmatprep.mubr.bf16.mxu1 %v17180_v29 }
 0x646   :  { %6128 = vmatprep.mubr.bf16.mxu0 %v17181_v30 }
 0x647   :  { %6014 = vmatpush2.bf16.msra.mxu1 %v11040_v50 }
 0x648   :  { %6127 = vmatpush2.bf16.msra.mxu0 %v11043_v24 }
 0x64a   :  { %6016 = vmatmul.mubr.bf16.vlgmr.msra.gmra.mxu1 %v14412_v39 }
 0x64b   :  { %6129 = vmatmul.mubr.bf16.vlgmr.msra.gmra.mxu0 %v14416_v63  ;;  %6025 = vmatprep.mubr.bf16.mxu1 %v14420_v13 }
 0x64c   :  { %6138 = vmatprep.mubr.bf16.mxu0 %v14424_v59 }
 0x652   :  { %6026 = vmatmul.mubr.bf16.gmra.mxu1 %v14432_v61 }
 0x653   :  { %6139 = vmatmul.mubr.bf16.gmra.mxu0 %v14436_v34  ;;  %6035 = vmatprep.mubr.bf16.mxu1 %v14440_v47 }
 0x654   :  { %6148 = vmatprep.mubr.bf16.mxu0 %v14444_v1 }
 0x65a   :  { %6036 = vmatmul.mubr.bf16.gmra.mxu1 %v14452_v46 }
 0x65b   :  { %6149 = vmatmul.mubr.bf16.gmra.mxu0 %v14456_v31  ;;  %6045 = vmatprep.mubr.bf16.mxu1 %v14460_v40 }
 0x65c   :  { %6158 = vmatprep.mubr.bf16.mxu0 %v14464_v62 }
 0x662   :  { %6046 = vmatmul.mubr.bf16.gmra.mxu1 %v14472_v38 }
 0x663   :  { %6159 = vmatmul.mubr.bf16.gmra.mxu0 %v14476_v45  ;;  %6055 = vmatprep.mubr.bf16.mxu1 %v14480_v41 }
 0x664   :  { %6168 = vmatprep.mubr.bf16.mxu0 %v14484_v36 }
 0x66a   :  { %6056 = vmatmul.mubr.bf16.gmra.mxu1 %v14492_v4 }
 0x66b   :  { %6169 = vmatmul.mubr.bf16.gmra.mxu0 %v14496_v49  ;;  %6065 = vmatprep.mubr.bf16.mxu1 %v14500_v53 }
 0x66c   :  { %6178 = vmatprep.mubr.bf16.mxu0 %v14504_v27 }
 0x672   :  { %6066 = vmatmul.mubr.bf16.gmra.mxu1 %v14512_v17 }
 0x673   :  { %6179 = vmatmul.mubr.bf16.gmra.mxu0 %v14516_v20  ;;  %6075 = vmatprep.mubr.bf16.mxu1 %v14520_v60 }
 0x674   :  { %6188 = vmatprep.mubr.bf16.mxu0 %v14524_v32 }
 0x67a   :  { %6076 = vmatmul.mubr.bf16.gmra.mxu1 %v14532_v5 }
 0x67b   :  { %6189 = vmatmul.mubr.bf16.gmra.mxu0 %v14536_v8  ;;  %6085 = vmatprep.mubr.bf16.mxu1 %v5114_v26 }
 0x67c   :  { %6198 = vmatprep.mubr.bf16.mxu0 %v5116_v19 }
 0x682   :  { %6086 = vmatmul.mubr.bf16.gmra.mxu1 %v5113_v43 }
 0x683   :  { %6199 = vmatmul.mubr.bf16.gmra.mxu0 %v5115_v22 }
 0x6ca   :  { %v5791_v58 = vpop.f32.mrf.mxu1 }
 0x6cb   :  { %v5904_v48 = vpop.f32.mrf.mxu0 }
 0x6cc   :  { %v14576_v39 = vadd.f32 %v5904_v48, %v5791_v58  ;;  %v5793_v63 = vpop.f32.mrf.mxu1 }
 0x6cd   :  { %v5906_v13 = vpop.f32.mrf.mxu0 }
 0x6ce   :  { %v14578_v59 = vadd.f32 %v5906_v13, %v5793_v63  ;;  %v5795_v61 = vpop.f32.mrf.mxu1  ;;  %v6299_v12 = vmul.f32 %v14576_v39, %v14576_v39 }
 0x6cf   :  { %v5908_v34 = vpop.f32.mrf.mxu0 }
 0x6d0   :  { %v14580_v47 = vadd.f32 %v5908_v34, %v5795_v61  ;;  %v5797_v1 = vpop.f32.mrf.mxu1  ;;  %v6300_v33 = vmul.f32 %v14578_v59, %v14578_v59 }
 0x6d1   :  { %v5910_v46 = vpop.f32.mrf.mxu0 }
 0x6d2   :  { %v14582_v31 = vadd.f32 %v5910_v46, %v5797_v1  ;;  %v5801_v40 = vpop.f32.mrf.mxu1  ;;  %v6303_v26 = vmul.f32 %v14580_v47, %v14580_v47  ;;  %v6211_v18 = vadd.f32 %v14580_v47, %v14576_v39 }
 0x6d3   :  { %v5914_v62 = vpop.f32.mrf.mxu0 }
 0x6d4   :  { %v14584_v38 = vadd.f32 %v5914_v62, %v5801_v40  ;;  %v5803_v45 = vpop.f32.mrf.mxu1  ;;  %v6304_v37 = vmul.f32 %v14582_v31, %v14582_v31  ;;  %v6363_v50 = vadd.f32 %v6303_v26, %v6299_v12  ;;  %v6232_v48 = vadd.f32 %v14582_v31, %v14578_v59 }
 0x6d5   :  { %v5916_v41 = vpop.f32.mrf.mxu0 }
 0x6d6   :  { %v14586_v36 = vadd.f32 %v5916_v41, %v5803_v45  ;;  %v5805_v4 = vpop.f32.mrf.mxu1  ;;  %v6307_v43 = vmul.f32 %v14584_v38, %v14584_v38  ;;  %v6212_v63 = vadd.f32 %v6211_v18, %v14584_v38  ;;  %v6384_v61 = vadd.f32 %v6304_v37, %v6300_v33 }
 0x6d7   :  { %v5918_v49 = vpop.f32.mrf.mxu0 }
 0x6d8   :  { %v14588_v53 = vadd.f32 %v5918_v49, %v5805_v4  ;;  %v5807_v27 = vpop.f32.mrf.mxu1  ;;  %v6308_v24 = vmul.f32 %v14586_v36, %v14586_v36  ;;  %v6364_v34 = vadd.f32 %v6363_v50, %v6307_v43  ;;  %v6233_v45 = vadd.f32 %v6232_v48, %v14586_v36 }
 0x6d9   :  { %v5920_v17 = vpop.f32.mrf.mxu0 }
 0x6da   :  { %v14590_v20 = vadd.f32 %v5920_v17, %v5807_v27  ;;  %v5811_v44 = vpop.f32.mrf.mxu1  ;;  %v6311_v29 = vmul.f32 %v14588_v53, %v14588_v53  ;;  %v6213_v41 = vadd.f32 %v6212_v63, %v14588_v53  ;;  %v6385_v49 = vadd.f32 %v6384_v61, %v6308_v24 }
 0x6db   :  { %v5924_v14 = vpop.f32.mrf.mxu0 }
 0x6dc   :  { %v14592_v7 = vadd.f32 %v5924_v14, %v5811_v44  ;;  %v5813_v23 = vpop.f32.mrf.mxu1  ;;  %v6312_v1 = vmul.f32 %v14590_v20, %v14590_v20  ;;  %v6365_v27 = vadd.f32 %v6364_v34, %v6311_v29 }
 0x6dd   :  { %v5926_v56 = vpop.f32.mrf.mxu0 }
 0x6de   :  { %v14594_v6 = vadd.f32 %v5926_v56, %v5813_v23  ;;  %v5815_v60 = vpop.f32.mrf.mxu1  ;;  %v6315_v46 = vmul.f32 %v14592_v7, %v14592_v7  ;;  %v6234_v56 = vadd.f32 %v6233_v45, %v14590_v20 }
 0x6df   :  { %v5928_v52 = vpop.f32.mrf.mxu0 }
 0x6e0   :  { %v14596_v15 = vadd.f32 %v5928_v52, %v5815_v60  ;;  %v5817_v32 = vpop.f32.mrf.mxu1  ;;  %v6316_v17 = vmul.f32 %v14594_v6, %v14594_v6  ;;  %v6214_v60 = vadd.f32 %v6213_v41, %v14592_v7 }
 0x6e1   :  { %v5930_v55 = vpop.f32.mrf.mxu0 }
 0x6e2   :  { %v14598_v54 = vadd.f32 %v5930_v55, %v5817_v32  ;;  %v5821_v16 = vpop.f32.mrf.mxu1  ;;  %v6319_v44 = vmul.f32 %v14596_v15, %v14596_v15  ;;  %v6386_v32 = vadd.f32 %v6385_v49, %v6312_v1  ;;  %v6366_v55 = vadd.f32 %v6365_v27, %v6315_v46 }
 0x6e3   :  { %v5934_v3 = vpop.f32.mrf.mxu0 }
 0x6e4   :  { %v14600_v0 = vadd.f32 %v5934_v3, %v5821_v16  ;;  %v5823_v51 = vpop.f32.mrf.mxu1  ;;  %v6320_v16 = vmul.f32 %v14598_v54, %v14598_v54  ;;  %v6367_v26 = vadd.f32 %v6366_v55, %v6319_v44 }
 0x6e5   :  { %v5936_v5 = vpop.f32.mrf.mxu0 }
 0x6e6   :  { %v14602_v28 = vadd.f32 %v5936_v5, %v5823_v51  ;;  %v5825_v9 = vpop.f32.mrf.mxu1  ;;  %v6323_v3 = vmul.f32 %v14600_v0, %v14600_v0 }
 0x6e7   :  { %v5938_v8 = vpop.f32.mrf.mxu0 }
 0x6e8   :  { %v14604_v25 = vadd.f32 %v5938_v8, %v5825_v9  ;;  %v5827_v11 = vpop.f32.mrf.mxu1  ;;  %v6235_v9 = vadd.f32 %v6234_v56, %v14594_v6  ;;  %v6215_v8 = vadd.f32 %v6214_v60, %v14596_v15  ;;  %v6368_v33 = vadd.f32 %v6367_v26, %v6323_v3 }
 0x6e9   :  { %v5940_v57 = vpop.f32.mrf.mxu0 }
 0x6ea   :  { %17182 = vst [vmem:[#allocation63_spill] sm:$0xff] %v14604_v25  ;;  %v14606_v2 = vadd.f32 %v5940_v57, %v5827_v11  ;;  %v5831_v19 = vpop.f32.mrf.mxu1  ;;  %v6387_v57 = vadd.f32 %v6386_v32, %v6316_v17  ;;  %v6236_v43 = vadd.f32 %v6235_v9, %v14598_v54 }
 0x6eb   :  { %v5944_v10 = vpop.f32.mrf.mxu0 }
 0x6ec   :  { %17183 = vst [vmem:[#allocation65_spill] sm:$0xff] %v14606_v2  ;;  %v14610_v35 = vadd.f32 %v5944_v10, %v5831_v19  ;;  %v5833_v22 = vpop.f32.mrf.mxu1  ;;  %v6324_v19 = vmul.f32 %v14602_v28, %v14602_v28  ;;  %v6327_v10 = vmul.f32 %v14604_v25, %v14604_v25  ;;  %v6388_v18 = vadd.f32 %v6387_v57, %v6320_v16 }
 0x6ed   :  { %v5946_v42 = vpop.f32.mrf.mxu0  ;;  %v6328_v50 = vmul.f32 %v14606_v2, %v14606_v2 }
 0x6ee   :  { %17184 = vst [vmem:[#allocation76_spill] sm:$0xff] %v14610_v35  ;;  %v14620_v21 = vadd.f32 %v5946_v42, %v5833_v22  ;;  %v5835_v30 = vpop.f32.mrf.mxu1  ;;  %v6216_v22 = vadd.f32 %v6215_v8, %v14600_v0  ;;  %v6331_v24 = vmul.f32 %v14610_v35, %v14610_v35  ;;  %v6389_v61 = vadd.f32 %v6388_v18, %v6324_v19 }
 0x6ef   :  { %v5948_v58 = vpop.f32.mrf.mxu0  ;;  %v6369_v34 = vadd.f32 %v6368_v33, %v6327_v10 }
 0x6f0   :  { %17185 = vst [vmem:[#allocation78_spill] sm:$0xff] %v14620_v21  ;;  %v14631_v13 = vadd.f32 %v5948_v58, %v5835_v30  ;;  %v5837_v40 = vpop.f32.mrf.mxu1  ;;  %v6237_v58 = vadd.f32 %v6236_v43, %v14602_v28  ;;  %v6217_v48 = vadd.f32 %v6216_v22, %v14604_v25  ;;  %v6332_v1 = vmul.f32 %v14620_v21, %v14620_v21 }
 0x6f1   :  { %v5950_v62 = vpop.f32.mrf.mxu0  ;;  %v6390_v27 = vadd.f32 %v6389_v61, %v6328_v50  ;;  %v6370_v17 = vadd.f32 %v6369_v34, %v6331_v24 }
 0x6f2   :  { %17186 = vst [vmem:[#allocation42_spill] sm:$0xff] %v14631_v13  ;;  %v14639_v4 = vadd.f32 %v5950_v62, %v5837_v40  ;;  %v5841_v14 = vpop.f32.mrf.mxu1  ;;  %v6335_v46 = vmul.f32 %v14631_v13, %v14631_v13  ;;  %v6238_v45 = vadd.f32 %v6237_v58, %v14606_v2  ;;  %v6218_v41 = vadd.f32 %v6217_v48, %v14610_v35 }
 0x6f3   :  { %v5954_v23 = vpop.f32.mrf.mxu0  ;;  %v6391_v16 = vadd.f32 %v6390_v27, %v6332_v1 }
 0x6f4   :  { %17187 = vst [vmem:[#allocation44_spill] sm:$0xff] %v14639_v4  ;;  %v14647_v52 = vadd.f32 %v5954_v23, %v5841_v14  ;;  %v5843_v51 = vpop.f32.mrf.mxu1  ;;  %v6336_v44 = vmul.f32 %v14639_v4, %v14639_v4  ;;  %v6239_v60 = vadd.f32 %v6238_v45, %v14620_v21  ;;  %v6219_v32 = vadd.f32 %v6218_v41, %v14631_v13 }
 0x6f5   :  { %v5956_v5 = vpop.f32.mrf.mxu0  ;;  %v6371_v3 = vadd.f32 %v6370_v17, %v6335_v46 }
 0x6f6   :  { %17188 = vst [vmem:[#allocation86_spill] sm:$0xff] %v14647_v52  ;;  %v14655_v11 = vadd.f32 %v5956_v5, %v5843_v51  ;;  %v5845_v12 = vpop.f32.mrf.mxu1  ;;  %v6339_v14 = vmul.f32 %v14647_v52, %v14647_v52  ;;  %v6240_v57 = vadd.f32 %v6239_v60, %v14639_v4  ;;  %v6220_v26 = vadd.f32 %v6219_v32, %v14647_v52 }
 0x6f7   :  { %v5958_v37 = vpop.f32.mrf.mxu0  ;;  %v6392_v10 = vadd.f32 %v6391_v16, %v6336_v44 }
 0x6f8   :  { %17189 = vst [vmem:[#allocation87_spill] sm:$0xff] %v14655_v11  ;;  %v14663_v42 = vadd.f32 %v5958_v37, %v5845_v12  ;;  %v5847_v29 = vpop.f32.mrf.mxu1  ;;  %v6340_v51 = vmul.f32 %v14655_v11, %v14655_v11  ;;  %v6372_v12 = vadd.f32 %v6371_v3, %v6339_v14  ;;  %v6241_v33 = vadd.f32 %v6240_v57, %v14655_v11 }
 0x6f9   :  { %v5960_v30 = vpop.f32.mrf.mxu0 }
 0x6fa   :  { %17190 = vst [vmem:[#allocation94_spill] sm:$0xff] %v14663_v42  ;;  %v14671_v63 = vadd.f32 %v5960_v30, %v5847_v29  ;;  %v5851_v40 = vpop.f32.mrf.mxu1  ;;  %v6343_v5 = vmul.f32 %v14663_v42, %v14663_v42  ;;  %v6221_v50 = vadd.f32 %v6220_v26, %v14663_v42  ;;  %v6393_v29 = vadd.f32 %v6392_v10, %v6340_v51 }
 0x6fb   :  { %v5964_v62 = vpop.f32.mrf.mxu0 }
 0x6fc   :  { %17191 = vst [vmem:[#allocation95_spill] sm:$0xff] %v14671_v63  ;;  %v14679_v49 = vadd.f32 %v5964_v62, %v5851_v40  ;;  %v5853_v23 = vpop.f32.mrf.mxu1  ;;  %v6344_v37 = vmul.f32 %v14671_v63, %v14671_v63  ;;  %v6373_v30 = vadd.f32 %v6372_v12, %v6343_v5  ;;  %v6242_v1 = vadd.f32 %v6241_v33, %v14671_v63 }
 0x6fd   :  { %v5966_v56 = vpop.f32.mrf.mxu0 }
 0x6fe   :  { %17192 = vst [vmem:[#allocation88_spill] sm:$0xff] %v14679_v49  ;;  %v14687_v55 = vadd.f32 %v5966_v56, %v5853_v23  ;;  %v5855_v9 = vpop.f32.mrf.mxu1  ;;  %v6347_v43 = vmul.f32 %v14679_v49, %v14679_v49  ;;  %v6222_v46 = vadd.f32 %v6221_v50, %v14679_v49  ;;  %v6394_v62 = vadd.f32 %v6393_v29, %v6344_v37 }
 0x6ff   :  { %v5968_v8 = vpop.f32.mrf.mxu0 }
 0x700   :  { %17193 = vst [vmem:[#allocation89_spill] sm:$0xff] %v14687_v55  ;;  %v14695_v19 = vadd.f32 %v5968_v8, %v5855_v9  ;;  %v5857_v22 = vpop.f32.mrf.mxu1  ;;  %v6348_v58 = vmul.f32 %v14687_v55, %v14687_v55  ;;  %v6374_v45 = vadd.f32 %v6373_v30, %v6347_v43  ;;  %v6243_v44 = vadd.f32 %v6242_v1, %v14687_v55 }
 0x701   :  { %v5970_v18 = vpop.f32.mrf.mxu0 }
 0x702   :  { %17194 = vst [vmem:[#allocation96_spill] sm:$0xff] %v14695_v19  ;;  %v14703_v24 = vadd.f32 %v5970_v18, %v5857_v22  ;;  %v6351_v48 = vmul.f32 %v14695_v19, %v14695_v19  ;;  %v5861_v61 = vpop.f32.mrf.mxu1  ;;  %v6223_v14 = vadd.f32 %v6222_v46, %v14695_v19  ;;  %v6395_v60 = vadd.f32 %v6394_v62, %v6348_v58 }
 0x703   :  { %v5974_v34 = vpop.f32.mrf.mxu0 }
 0x704   :  { %17195 = vst [vmem:[#allocation90_spill] sm:$0xff] %v14703_v24  ;;  %v14711_v40 = vadd.f32 %v5974_v34, %v5861_v61  ;;  %v6352_v41 = vmul.f32 %v14703_v24, %v14703_v24  ;;  %v5863_v27 = vpop.f32.mrf.mxu1  ;;  %v6375_v32 = vadd.f32 %v6374_v45, %v6351_v48  ;;  %v6244_v51 = vadd.f32 %v6243_v44, %v14703_v24 }
 0x705   :  { %v5976_v17 = vpop.f32.mrf.mxu0 }
 0x706   :  { %17196 = vst [vmem:[#allocation91_spill] sm:$0xff] %v14711_v40  ;;  %v6355_v23 = vmul.f32 %v14711_v40, %v14711_v40  ;;  %v14719_v56 = vadd.f32 %v5976_v17, %v5863_v27  ;;  %v5865_v16 = vpop.f32.mrf.mxu1  ;;  %v6224_v5 = vadd.f32 %v6223_v14, %v14711_v40  ;;  %v6396_v57 = vadd.f32 %v6395_v60, %v6352_v41 }
 0x707   :  { %v5978_v3 = vpop.f32.mrf.mxu0 }
 0x708   :  { %17197 = vst [vmem:[#allocation98_spill] sm:$0xff] %v14719_v56  ;;  %v6356_v9 = vmul.f32 %v14719_v56, %v14719_v56  ;;  %v14725_v8 = vadd.f32 %v5978_v3, %v5865_v16  ;;  %v6376_v26 = vadd.f32 %v6375_v32, %v6355_v23  ;;  %v5867_v10 = vpop.f32.mrf.mxu1  ;;  %v6245_v37 = vadd.f32 %v6244_v51, %v14719_v56 }
 0x709   :  { %v5980_v12 = vpop.f32.mrf.mxu0 }
 0x70a   :  { %17198 = vst [vmem:[#allocation99_spill] sm:$0xff] %v14725_v8  ;;  %v6225_v43 = vadd.f32 %v6224_v5, %v14725_v8  ;;  %v6359_v22 = vmul.f32 %v14725_v8, %v14725_v8  ;;  %v14731_v18 = vadd.f32 %v5980_v12, %v5867_v10  ;;  %v6397_v33 = vadd.f32 %v6396_v57, %v6356_v9  ;;  %v14733_v50 = vpop.f32.mrf.mxu1 }
 0x70b   :  { %v14735_v29 = vpop.f32.mrf.mxu0 }
 0x70c   :  { %17199 = vst [vmem:[#allocation92_spill] sm:$0xff] %v14731_v18  ;;  %v6226_v30 = vrot.slane %v6225_v43, 4  ;;  %v6377_v58 = vadd.f32 %v6376_v26, %v6359_v22  ;;  %v6246_v48 = vadd.f32 %v6245_v37, %v14731_v18  ;;  %v6360_v61 = vmul.f32 %v14731_v18, %v14731_v18  ;;  %v14740_v34 = vpop.f32.mrf.mxu1 }
 0x70d   :  { %v14742_v1 = vpop.f32.mrf.mxu0 }
 0x70e   :  { %v6227_v46 = vadd.f32 %v6226_v30, %v6225_v43  ;;  %v6378_v62 = vrot.slane %v6377_v58, 4  ;;  %v6247_v45 = vrot.slane %v6246_v48, 4  ;;  %v6398_v41 = vadd.f32 %v6397_v33, %v6360_v61  ;;  %v6021_v27 = vpop.f32.mrf.mxu1 }
 0x70f   :  { %v6134_v17 = vpop.f32.mrf.mxu0 }
 0x710   :  { %v6228_v44 = vrot.slane %v6227_v46, 2  ;;  %v6379_v14 = vadd.f32 %v6378_v62, %v6377_v58  ;;  %v6248_v23 = vadd.f32 %v6247_v45, %v6246_v48  ;;  %v6399_v60 = vrot.slane %v6398_v41, 4  ;;  %v6023_v32 = vpop.f32.mrf.mxu1 }
 0x711   :  { %v6136_v16 = vpop.f32.mrf.mxu0 }
 0x712   :  { %v6229_v3 = vadd.f32 %v6228_v44, %v6227_v46  ;;  %v6380_v51 = vrot.slane %v6379_v14, 2  ;;  %v6249_v5 = vrot.slane %v6248_v23, 2  ;;  %v6400_v9 = vadd.f32 %v6399_v60, %v6398_v41  ;;  %v6027_v57 = vpop.f32.mrf.mxu1 }
 0x713   :  { %v6140_v26 = vpop.f32.mrf.mxu0  ;;  %v14754_v49 = vadd.f32 %v6136_v16, %v6023_v32 }
 0x714   :  { %v6230_v10 = vrot.slane %v6229_v3, 1  ;;  %v6381_v12 = vadd.f32 %v6380_v51, %v6379_v14  ;;  %v6250_v37 = vadd.f32 %v6249_v5, %v6248_v23  ;;  %v6401_v43 = vrot.slane %v6400_v9, 2  ;;  %v6029_v22 = vpop.f32.mrf.mxu1 }
 0x715   :  { %v6142_v33 = vpop.f32.mrf.mxu0 }
 0x716   :  { %v6231_v30 = vadd.f32 %v6230_v10, %v6229_v3  ;;  %v6382_v61 = vrot.slane %v6381_v12, 1  ;;  %v6251_v18 = vrot.slane %v6250_v37, 1  ;;  %v6402_v58 = vadd.f32 %v6401_v43, %v6400_v9  ;;  %v6031_v48 = vpop.f32.mrf.mxu1 }
 0x717   :  { %v6144_v62 = vpop.f32.mrf.mxu0 }
 0x718   :  { %v14744_v45 = vmul.f32 0.0078125, %v6231_v30  ;;  %v6383_v46 = vadd.f32 %v6382_v61, %v6381_v12  ;;  %v6252_v44 = vadd.f32 %v6251_v18, %v6250_v37  ;;  %v6403_v8 = vrot.slane %v6402_v58, 1  ;;  %v6033_v41 = vpop.f32.mrf.mxu1 }
 0x719   :  { %v6146_v60 = vpop.f32.mrf.mxu0 }
 0x71a   :  { %v6447_v56 = vmul.f32 0.0078125, %v6383_v46  ;;  %v6451_v14 = vmul.f32 %v14744_v45, %v14744_v45  ;;  %v14748_v23 = vmul.f32 0.0078125, %v6252_v44  ;;  %v6404_v51 = vadd.f32 %v6403_v8, %v6402_v58  ;;  %v6037_v3 = vpop.f32.mrf.mxu1 }
 0x71b   :  { %v6150_v5 = vpop.f32.mrf.mxu0 }
 0x71c   :  { %v6455_v10 = vsub.f32 %v6447_v56, %v6451_v14  ;;  %v6448_v9 = vmul.f32 0.0078125, %v6404_v51  ;;  %v6452_v43 = vmul.f32 %v14748_v23, %v14748_v23  ;;  %v6039_v30 = vpop.f32.mrf.mxu1  ;;  %v14752_v56 = vadd.f32 %v6134_v17, %v6021_v27 }
 0x71d   :  { %v6152_v12 = vpop.f32.mrf.mxu0  ;;  %v14768_v17 = vadd.f32 %v6142_v33, %v6029_v22 }
 0x71e   :  { %v6459_v18 = vmax.f32 %v6455_v10, 0.0  ;;  %v6456_v37 = vsub.f32 %v6448_v9, %v6452_v43  ;;  %v6041_v61 = vpop.f32.mrf.mxu1  ;;  %v14758_v10 = vadd.f32 %v14735_v29, %v14733_v50  ;;  %v14760_v9 = vadd.f32 %v6140_v26, %v6027_v57 }
 0x71f   :  { %v6154_v40 = vpop.f32.mrf.mxu0  ;;  %v6305_v27 = vmul.f32 %v14752_v56, %v14752_v56  ;;  %v6306_v50 = vmul.f32 %v14754_v49, %v14754_v49  ;;  %v14790_v63 = vadd.f32 %v6152_v12, %v6039_v30 }
 0x720   :  { %v6463_v46 = vadd.f32 1e-05, %v6459_v18  ;;  %v6460_v24 = vmax.f32 %v6456_v37, 0.0  ;;  %v6043_v19 = vpop.f32.mrf.mxu1  ;;  %v14770_v37 = vadd.f32 %v6144_v62, %v6031_v48  ;;  %v6301_v29 = vmul.f32 %v14758_v10, %v14758_v10 }
 0x721   :  { %v6156_v55 = vpop.f32.mrf.mxu0  ;;  %v6309_v57 = vmul.f32 %v14760_v9, %v14760_v9  ;;  %v6253_v48 = vadd.f32 %v14752_v56, %v14758_v10  ;;  %v14794_v42 = vadd.f32 %v6154_v40, %v6041_v61 }
 0x722   :  { %v6464_v44 = vadd.f32 1e-05, %v6460_v24  ;;  %11046 = vrsqrt.f32 %v6463_v46  ;;  %v6047_v8 = vpop.f32.mrf.mxu1  ;;  %v14764_v24 = vadd.f32 %v14742_v1, %v14740_v34  ;;  %v14778_v34 = vadd.f32 %v6146_v60, %v6033_v41 }
 0x723   :  { %v6160_v58 = vpop.f32.mrf.mxu0  ;;  %v14780_v1 = vadd.f32 %v6150_v5, %v6037_v3  ;;  %v6405_v62 = vadd.f32 %v6305_v27, %v6301_v29  ;;  %v6310_v46 = vmul.f32 %v14768_v17, %v14768_v17  ;;  %v6254_v11 = vadd.f32 %v6253_v48, %v14760_v9 }
 0x724   :  { %11048 = vrsqrt.f32 %v6464_v44  ;;  %v6049_v14 = vpop.f32.mrf.mxu1  ;;  %v6302_v33 = vmul.f32 %v14764_v24, %v14764_v24  ;;  %v6313_v44 = vmul.f32 %v14770_v37, %v14770_v37  ;;  %v6274_v3 = vadd.f32 %v14754_v49, %v14764_v24 }
 0x725   :  { %v6162_v51 = vpop.f32.mrf.mxu0  ;;  %v6406_v52 = vadd.f32 %v6405_v62, %v6309_v57  ;;  %v6314_v27 = vmul.f32 %v14778_v34, %v14778_v34  ;;  %v6317_v29 = vmul.f32 %v14780_v1, %v14780_v1  ;;  %v14804_v21 = vadd.f32 %v6156_v55, %v6043_v19 }
 0x726   :  { %v6051_v43 = vpop.f32.mrf.mxu1  ;;  %v6426_v5 = vadd.f32 %v6306_v50, %v6302_v33  ;;  %v6275_v13 = vadd.f32 %v6274_v3, %v14768_v17  ;;  %v14806_v50 = vadd.f32 %v6160_v58, %v6047_v8  ;;  %v6255_v57 = vadd.f32 %v6254_v11, %v14770_v37 }
 0x727   :  { %v6164_v18 = vpop.f32.mrf.mxu0  ;;  %v6407_v33 = vadd.f32 %v6406_v52, %v6313_v44  ;;  %v6318_v48 = vmul.f32 %v14790_v63, %v14790_v63  ;;  %v6321_v55 = vmul.f32 %v14794_v42, %v14794_v42  ;;  %v14817_v19 = vadd.f32 %v6162_v51, %v6049_v14 }
 0x728   :  { %v6053_v32 = vpop.f32.mrf.mxu1  ;;  %17200 = vst [vmem:[#allocation93_spill] sm:$0xff] %v14806_v50  ;;  %v6427_v61 = vadd.f32 %v6426_v5, %v6310_v46  ;;  %v14819_v8 = vadd.f32 %v6164_v18, %v6051_v43  ;;  %v6276_v58 = vadd.f32 %v6275_v13, %v14778_v34  ;;  %v6256_v52 = vadd.f32 %v6255_v57, %v14780_v1 }
 0x729   :  { %v6166_v16 = vpop.f32.mrf.mxu0  ;;  %v6408_v11 = vadd.f32 %v6407_v33, %v6317_v29  ;;  %v6322_v5 = vmul.f32 %v14804_v21, %v14804_v21  ;;  %v6325_v2 = vmul.f32 %v14806_v50, %v14806_v50 }
 0x72a   :  { %v6057_v26 = vpop.f32.mrf.mxu1  ;;  %v6428_v46 = vadd.f32 %v6427_v61, %v6314_v27  ;;  %v14827_v25 = vadd.f32 %v6166_v16, %v6053_v32  ;;  %v6277_v51 = vadd.f32 %v6276_v58, %v14790_v63  ;;  %v6257_v13 = vadd.f32 %v6256_v52, %v14794_v42 }
 0x72b   :  { %v6170_v22 = vpop.f32.mrf.mxu0  ;;  %v6409_v29 = vadd.f32 %v6408_v11, %v6321_v55  ;;  %v6326_v61 = vmul.f32 %v14817_v19, %v14817_v19  ;;  %v6329_v57 = vmul.f32 %v14819_v8, %v14819_v8 }
 0x72c   :  { %v6059_v41 = vpop.f32.mrf.mxu1  ;;  %v14829_v14 = vadd.f32 %v6170_v22, %v6057_v26  ;;  %v6429_v43 = vadd.f32 %v6428_v46, %v6318_v48  ;;  %v6278_v32 = vadd.f32 %v6277_v51, %v14804_v21  ;;  %v6258_v16 = vadd.f32 %v6257_v13, %v14806_v50 }
 0x72d   :  { %v6172_v60 = vpop.f32.mrf.mxu0  ;;  %v6410_v46 = vadd.f32 %v6409_v29, %v6325_v2  ;;  %v6330_v55 = vmul.f32 %v14827_v25, %v14827_v25 }
 0x72e   :  { %v6061_v4 = vpop.f32.mrf.mxu1  ;;  %v14837_v33 = vadd.f32 %v6172_v60, %v6059_v41  ;;  %v6430_v58 = vadd.f32 %v6429_v43, %v6322_v5  ;;  %v6333_v52 = vmul.f32 %v14829_v14, %v14829_v14  ;;  %v6279_v11 = vadd.f32 %v6278_v32, %v14817_v19 }
 0x72f   :  { %v6174_v30 = vpop.f32.mrf.mxu0  ;;  %v14801_v12 = vpop.eup %11046  ;;  %v6411_v50 = vadd.f32 %v6410_v46, %v6329_v57 }
 0x730   :  { %v6063_v62 = vpop.f32.mrf.mxu1  ;;  %v14841_v26 = vadd.f32 %v6174_v30, %v6061_v4  ;;  %v6431_v4 = vadd.f32 %v6430_v58, %v6326_v61  ;;  %v6259_v30 = vadd.f32 %v6258_v16, %v14819_v8  ;;  %v6334_v2 = vmul.f32 %v14837_v33, %v14837_v33 }
 0x731   :  { %v14808_v40 = vpop.eup %11048  ;;  %v6176_v35 = vpop.f32.mrf.mxu0  ;;  %v6412_v32 = vadd.f32 %v6411_v50, %v6333_v52 }
 0x732   :  { %v6067_v44 = vpop.f32.mrf.mxu1  ;;  %17201 = vst [vmem:[#allocation97_spill] sm:$0xff] %v14841_v26  ;;  %v14848_v41 = vadd.f32 %v6176_v35, %v6063_v62  ;;  %v6337_v5 = vmul.f32 %v14841_v26, %v14841_v26  ;;  %v6260_v61 = vadd.f32 %v6259_v30, %v14829_v14 }
 0x733   :  { %v6180_v3 = vpop.f32.mrf.mxu0 }
 0x734   :  { %v6069_v18 = vpop.f32.mrf.mxu1  ;;  %v14850_v60 = vadd.f32 %v6180_v3, %v6067_v44  ;;  %v6280_v44 = vadd.f32 %v6279_v11, %v14827_v25  ;;  %v6432_v3 = vadd.f32 %v6431_v4, %v6330_v55  ;;  %v6338_v57 = vmul.f32 %v14848_v41, %v14848_v41 }
 0x735   :  { %v6182_v27 = vpop.f32.mrf.mxu0  ;;  %v6261_v55 = vadd.f32 %v6260_v61, %v14841_v26  ;;  %v6413_v11 = vadd.f32 %v6412_v32, %v6337_v5 }
 0x736   :  { %v6071_v22 = vpop.f32.mrf.mxu1  ;;  %17202 = vst [vmem:[#allocation100_spill] sm:$0xff] %v14850_v60  ;;  %v14857_v43 = vadd.f32 %v6182_v27, %v6069_v18  ;;  %v6341_v16 = vmul.f32 %v14850_v60, %v14850_v60  ;;  %v6433_v46 = vadd.f32 %v6432_v3, %v6334_v2 }
 0x737   :  { %v6184_v48 = vpop.f32.mrf.mxu0 }
 0x738   :  { %v6073_v51 = vpop.f32.mrf.mxu1  ;;  %v14859_v29 = vadd.f32 %v6184_v48, %v6071_v22  ;;  %v6281_v48 = vadd.f32 %v6280_v44, %v14837_v33  ;;  %v6342_v50 = vmul.f32 %v14857_v43, %v14857_v43  ;;  %v6434_v2 = vadd.f32 %v6433_v46, %v6338_v57 }
 0x739   :  { %v6186_v13 = vpop.f32.mrf.mxu0  ;;  %v6414_v44 = vadd.f32 %v6413_v11, %v6341_v16 }
 0x73a   :  { %17203 = vst [vmem:[#allocation73_spill] sm:$0xff] %v14859_v29  ;;  %v6077_v35 = vpop.f32.mrf.mxu1  ;;  %v14867_v58 = vadd.f32 %v6186_v13, %v6073_v51  ;;  %v6345_v52 = vmul.f32 %v14859_v29, %v14859_v29  ;;  %v6282_v30 = vadd.f32 %v6281_v48, %v14848_v41  ;;  %v6435_v48 = vadd.f32 %v6434_v2, %v6342_v50 }
 0x73b   :  { %v6190_v62 = vpop.f32.mrf.mxu0 }
 0x73c   :  { %17204 = vst [vmem:[#allocation72_spill] sm:$0xff] %v14867_v58  ;;  %v14869_v18 = vadd.f32 %v6190_v62, %v6077_v35  ;;  %v6079_v27 = vpop.f32.mrf.mxu1  ;;  %v6262_v35 = vadd.f32 %v6261_v55, %v14850_v60  ;;  %v6346_v5 = vmul.f32 %v14867_v58, %v14867_v58  ;;  %v6415_v55 = vadd.f32 %v6414_v44, %v6345_v52 }
 0x73d   :  { %v6192_v22 = vpop.f32.mrf.mxu0 }
 0x73e   :  { %17205 = vst [vmem:[#allocation59_spill] sm:$0xff] %v14869_v18  ;;  %v14877_v4 = vadd.f32 %v6192_v22, %v6079_v27  ;;  %v6081_v51 = vpop.f32.mrf.mxu1  ;;  %v6349_v3 = vmul.f32 %v14869_v18, %v14869_v18  ;;  %v6283_v27 = vadd.f32 %v6282_v30, %v14857_v43  ;;  %v6263_v22 = vadd.f32 %v6262_v35, %v14859_v29 }
 0x73f   :  { %v6194_v13 = vpop.f32.mrf.mxu0  ;;  %v6436_v30 = vadd.f32 %v6435_v48, %v6346_v5 }
 0x740   :  { %17206 = vst [vmem:[#allocation64_spill] sm:$0xff] %v14877_v4  ;;  %v14881_v62 = vadd.f32 %v6194_v13, %v6081_v51  ;;  %v6083_v61 = vpop.f32.mrf.mxu1  ;;  %v6350_v57 = vmul.f32 %v14877_v4, %v14877_v4  ;;  %v6284_v51 = vadd.f32 %v6283_v27, %v14867_v58  ;;  %v6264_v13 = vadd.f32 %v6263_v22, %v14869_v18 }
 0x741   :  { %v6196_v32 = vpop.f32.mrf.mxu0  ;;  %v6416_v35 = vadd.f32 %v6415_v55, %v6349_v3 }
 0x742   :  { %17207 = vst [vmem:[#allocation101_spill] sm:$0xff] %v14881_v62  ;;  %v14889_v26 = vadd.f32 %v6196_v32, %v6083_v61  ;;  %v6353_v16 = vmul.f32 %v14881_v62, %v14881_v62  ;;  %v6087_v46 = vpop.f32.mrf.mxu1  ;;  %v6285_v44 = vadd.f32 %v6284_v51, %v14877_v4  ;;  %v6265_v61 = vadd.f32 %v6264_v13, %v14881_v62 }
 0x743   :  { %v6200_v11 = vpop.f32.mrf.mxu0  ;;  %v6437_v27 = vadd.f32 %v6436_v30, %v6350_v57 }
 0x744   :  { %17208 = vst [vmem:[#allocation61_spill] sm:$0xff] %v14889_v26  ;;  %v14897_v60 = vadd.f32 %v6200_v11, %v6087_v46  ;;  %v6354_v50 = vmul.f32 %v14889_v26, %v14889_v26  ;;  %v6089_v52 = vpop.f32.mrf.mxu1  ;;  %v6417_v22 = vadd.f32 %v6416_v35, %v6353_v16  ;;  %v6286_v5 = vadd.f32 %v6285_v44, %v14889_v26 }
 0x745   :  { %v6202_v2 = vpop.f32.mrf.mxu0 }
 0x746   :  { %17209 = vst [vmem:[#allocation75_spill] sm:$0xff] %v14897_v60  ;;  %v6357_v32 = vmul.f32 %v14897_v60, %v14897_v60  ;;  %v14905_v29 = vadd.f32 %v6202_v2, %v6089_v52  ;;  %v6091_v46 = vpop.f32.mrf.mxu1  ;;  %v6266_v3 = vadd.f32 %v6265_v61, %v14897_v60  ;;  %v6438_v51 = vadd.f32 %v6437_v27, %v6354_v50 }
 0x747   :  { %v6204_v11 = vpop.f32.mrf.mxu0 }
 0x748   :  { %17210 = vst [vmem:[#allocation74_spill] sm:$0xff] %v14905_v29  ;;  %v6358_v48 = vmul.f32 %v14905_v29, %v14905_v29  ;;  %v14911_v55 = vadd.f32 %v6204_v11, %v6091_v46  ;;  %v6418_v13 = vadd.f32 %v6417_v22, %v6357_v32  ;;  %v6093_v62 = vpop.f32.mrf.mxu1  ;;  %v6287_v52 = vadd.f32 %v6286_v5, %v14905_v29 }
 0x749   :  { %v6206_v4 = vpop.f32.mrf.mxu0 }
 0x74a   :  { %17211 = vst [vmem:[#allocation67_spill] sm:$0xff] %v14911_v55  ;;  %v6267_v57 = vadd.f32 %v6266_v3, %v14911_v55  ;;  %v6361_v16 = vmul.f32 %v14911_v55, %v14911_v55  ;;  %v14917_v30 = vadd.f32 %v6206_v4, %v6093_v62  ;;  %v6439_v35 = vadd.f32 %v6438_v51, %v6358_v48 }
 0x74c   :  { %17212 = vst [vmem:[#allocation77_spill] sm:$0xff] %v14917_v30  ;;  %v6268_v2 = vrot.slane %v6267_v57, 4  ;;  %v6419_v44 = vadd.f32 %v6418_v13, %v6361_v16  ;;  %v6288_v61 = vadd.f32 %v6287_v52, %v14917_v30  ;;  %v6362_v50 = vmul.f32 %v14917_v30, %v14917_v30 }
 0x74e   :  { %v6269_v32 = vadd.f32 %v6268_v2, %v6267_v57  ;;  %v6420_v27 = vrot.slane %v6419_v44, 4  ;;  %v6289_v22 = vrot.slane %v6288_v61, 4  ;;  %v6440_v46 = vadd.f32 %v6439_v35, %v6362_v50 }
 0x750   :  { %v6270_v11 = vrot.slane %v6269_v32, 2  ;;  %v6421_v5 = vadd.f32 %v6420_v27, %v6419_v44  ;;  %v6290_v3 = vadd.f32 %v6289_v22, %v6288_v61  ;;  %v6441_v26 = vrot.slane %v6440_v46, 4 }
 0x752   :  { %v6271_v29 = vadd.f32 %v6270_v11, %v6269_v32  ;;  %v6422_v55 = vrot.slane %v6421_v5, 2  ;;  %v6291_v4 = vrot.slane %v6290_v3, 2  ;;  %v6442_v62 = vadd.f32 %v6441_v26, %v6440_v46 }
 0x754   :  { %v6272_v48 = vrot.slane %v6271_v29, 1  ;;  %v6423_v51 = vadd.f32 %v6422_v55, %v6421_v5  ;;  %v6292_v13 = vadd.f32 %v6291_v4, %v6290_v3  ;;  %v6443_v16 = vrot.slane %v6442_v62, 2 }
 0x756   :  { %v6273_v52 = vadd.f32 %v6272_v48, %v6271_v29  ;;  %v6424_v60 = vrot.slane %v6423_v51, 1  ;;  %v6293_v18 = vrot.slane %v6292_v13, 1  ;;  %v6444_v30 = vadd.f32 %v6443_v16, %v6442_v62 }
 0x758   :  { %v6297_v57 = vmul.f32 0.0078125, %v6273_v52  ;;  %v6425_v2 = vadd.f32 %v6424_v60, %v6423_v51  ;;  %v6294_v58 = vadd.f32 %v6293_v18, %v6292_v13  ;;  %v6445_v35 = vrot.slane %v6444_v30, 1  ;;  %v17213_v60 = vld [vmem:[#allocation79_spill] sm:$0xff]  ;;  %v6209_v51 = vld [vmem:[%s16705_s10] sm:$0xf] }
 0x759   :  { %v17214_v18 = vcombine.low %v14801_v12, %v14808_v40  ;;  %v17215_v52 = vld [vmem:[#allocation80_spill] sm:$0xff]  ;;  %v17218_v12 = vld [vmem:[#allocation83_spill] sm:$0xff] }
 0x75a   :  { %v6449_v50 = vmul.f32 0.0078125, %v6425_v2  ;;  %v6453_v44 = vmul.f32 %v6297_v57, %v6297_v57  ;;  %v6298_v61 = vmul.f32 0.0078125, %v6294_v58  ;;  %v6446_v27 = vadd.f32 %v6445_v35, %v6444_v30  ;;  %v17216_v35 = vld [vmem:[#allocation81_spill] sm:$0xff] }
 0x75b   :  { %v6483_v48 = vrot.slane %v17214_v18, %v17213_v60 }
 0x75c   :  { %v6457_v32 = vsub.f32 %v6449_v50, %v6453_v44  ;;  %v6450_v22 = vmul.f32 0.0078125, %v6446_v27  ;;  %v6454_v11 = vmul.f32 %v6298_v61, %v6298_v61  ;;  %v17217_v44 = vld [vmem:[#allocation82_spill] sm:$0xff] }
 0x75e   :  { %v6461_v26 = vmax.f32 %v6457_v32, 0.0  ;;  %v6458_v46 = vsub.f32 %v6450_v22, %v6454_v11 }
 0x760   :  { %v6465_v55 = vadd.f32 1e-05, %v6461_v26  ;;  %v6462_v5 = vmax.f32 %v6458_v46, 0.0 }
 0x762   :  { %v6466_v3 = vadd.f32 1e-05, %v6462_v5  ;;  %11050 = vrsqrt.f32 %v6465_v55 }
 0x764   :  { %11052 = vrsqrt.f32 %v6466_v3 }
 0x76f   :  { %v11051_v29 = vpop.eup %11050 }
 0x771   :  { %v11053_v4 = vpop.eup %11052 }
 0x772   :  { %v6476_v62 = vcombine.low %v11051_v29, %v11053_v4 }
 0x774   :  { %v6490_v58 = vrot.slane %v6476_v62, %v17213_v60 }
 0x776   :  { %v6491_v30 = vcombine.low %v6483_v48, %v6490_v58  ;;  %v17220_v58 = vld [vmem:[#allocation63_spill] sm:$0xff] }
 0x778   :  { %v6498_v13 = vrot.slane %v6491_v30, %v17213_v60 }
 0x77a   :  { %v6500_v16 = vmul.f32 %v6498_v13, %v6209_v51  ;;  %v17221_v51 = vld [vmem:[#allocation65_spill] sm:$0xff] }
 0x77c   :  { %v14932_v2 = vrot.slane %v6500_v16, %v17215_v52  ;;  %v14935_v50 = vrot.slane %v6500_v16, %v17216_v35  ;;  %v14938_v27 = vrot.slane %v6500_v16, %v17217_v44  ;;  %v14941_v40 = vrot.slane %v6500_v16, %v17218_v12  ;;  %v17222_v16 = vld [vmem:[#allocation76_spill] sm:$0xff] }
 0x77e   :  { %v6522_v32 = vmul.f32 %v14932_v2, %v14744_v45  ;;  %v6523_v22 = vmul.f32 %v14935_v50, %v14748_v23  ;;  %v6524_v11 = vmul.f32 %v14938_v27, %v6297_v57  ;;  %v6525_v26 = vmul.f32 %v14941_v40, %v6298_v61 }
 0x77f   :  { %v14951_v46 = vmul.f32 %v14932_v2, %v14576_v39  ;;  %v14955_v55 = vmul.f32 %v14935_v50, %v14578_v59  ;;  %v14959_v5 = vmul.f32 %v14938_v27, %v14758_v10  ;;  %v14963_v23 = vmul.f32 %v14941_v40, %v14764_v24 }
 0x780   :  { %v6530_v45 = vcombine.low %v6522_v32, %v6523_v22  ;;  %v6531_v3 = vcombine.low %v6524_v11, %v6525_v26  ;;  %v14967_v57 = vmul.f32 %v14932_v2, %v14580_v47  ;;  %v14971_v39 = vmul.f32 %v14935_v50, %v14582_v31  ;;  %v17223_v32 = vld [vmem:[#allocation78_spill] sm:$0xff] }
 0x781   :  { %v14975_v59 = vmul.f32 %v14938_v27, %v14752_v56  ;;  %v14979_v10 = vmul.f32 %v14941_v40, %v14754_v49  ;;  %v14983_v24 = vmul.f32 %v14932_v2, %v14584_v38  ;;  %v14989_v31 = vmul.f32 %v14935_v50, %v14586_v36  ;;  %v17224_v26 = vld [vmem:[#allocation42_spill] sm:$0xff] }
 0x782   :  { %v6538_v61 = vrot.slane %v6530_v45, %v17213_v60  ;;  %v6545_v47 = vrot.slane %v6531_v3, %v17213_v60  ;;  %v14993_v56 = vmul.f32 %v14938_v27, %v14760_v9  ;;  %v14997_v49 = vmul.f32 %v14941_v40, %v14768_v17  ;;  %v17225_v45 = vld [vmem:[#allocation44_spill] sm:$0xff] }
 0x783   :  { %v15001_v38 = vmul.f32 %v14932_v2, %v14588_v53  ;;  %v15005_v29 = vmul.f32 %v14935_v50, %v14590_v20  ;;  %v15009_v36 = vmul.f32 %v14938_v27, %v14770_v37  ;;  %v15013_v9 = vmul.f32 %v14941_v40, %v14778_v34  ;;  %v6210_v20 = vld [vmem:[%s16706_s11] sm:$0xf] }
 0x784   :  { %v6546_v4 = vcombine.low %v6538_v61, %v6545_v47  ;;  %v15017_v17 = vmul.f32 %v14932_v2, %v14592_v7  ;;  %v15021_v53 = vmul.f32 %v14935_v50, %v14594_v6  ;;  %v15028_v37 = vmul.f32 %v14938_v27, %v14780_v1  ;;  %v17226_v61 = vld [vmem:[#allocation97_spill] sm:$0xff] }
 0x785   :  { %v15032_v34 = vmul.f32 %v14941_v40, %v14790_v63  ;;  %v15036_v7 = vmul.f32 %v14932_v2, %v14596_v15  ;;  %v15040_v6 = vmul.f32 %v14935_v50, %v14598_v54  ;;  %v15045_v18 = vmul.f32 %v14938_v27, %v14794_v42  ;;  %v17219_v54 = vld [vmem:[#allocation93_spill] sm:$0xff] }
 0x786   :  { %v6553_v62 = vrot.slane %v6546_v4, %v17213_v60  ;;  %v15049_v1 = vmul.f32 %v14941_v40, %v14804_v21  ;;  %v15053_v63 = vmul.f32 %v14932_v2, %v14600_v0  ;;  %v15057_v15 = vmul.f32 %v14935_v50, %v14602_v28  ;;  %v17227_v4 = vld [vmem:[#allocation86_spill] sm:$0xff]  ;;  %v17240_v60 = vld [vmem:[#allocation89_spill] sm:$0xff] }
 0x787   :  { %v15061_v48 = vmul.f32 %v14938_v27, %v17219_v54  ;;  %v15065_v42 = vmul.f32 %v14941_v40, %v14817_v19  ;;  %v15069_v21 = vmul.f32 %v14932_v2, %v17220_v58  ;;  %v15073_v0 = vmul.f32 %v14935_v50, %v17221_v51  ;;  %v17229_v54 = vld [vmem:[#allocation100_spill] sm:$0xff] }
 0x788   :  { %v6555_v30 = vsub.f32 %v6210_v20, %v6553_v62  ;;  %v15077_v28 = vmul.f32 %v14938_v27, %v14819_v8  ;;  %v15081_v13 = vmul.f32 %v14941_v40, %v14827_v25  ;;  %v15085_v19 = vmul.f32 %v14932_v2, %v17222_v16  ;;  %v17228_v20 = vld [vmem:[#allocation87_spill] sm:$0xff]  ;;  %v17230_v16 = vld [vmem:[#allocation94_spill] sm:$0xff] }
 0x789   :  { %v15089_v22 = vmul.f32 %v14935_v50, %v17223_v32  ;;  %v15093_v11 = vmul.f32 %v14938_v27, %v14829_v14  ;;  %v15097_v8 = vmul.f32 %v14941_v40, %v14837_v33  ;;  %v15101_v25 = vmul.f32 %v14932_v2, %v17224_v26  ;;  %v17232_v32 = vld [vmem:[#allocation95_spill] sm:$0xff] }
 0x78a   :  { %v15105_v3 = vmul.f32 %v14935_v50, %v17225_v45  ;;  %v15109_v47 = vmul.f32 %v14938_v27, %v17226_v61  ;;  %v15113_v14 = vmul.f32 %v14941_v40, %v14848_v41  ;;  %v15117_v33 = vmul.f32 %v14932_v2, %v17227_v4  ;;  %v17234_v45 = vld [vmem:[#allocation73_spill] sm:$0xff]  ;;  %v17236_v4 = vld [vmem:[#allocation72_spill] sm:$0xff] }
 0x78b   :  { %v15121_v62 = vmul.f32 %v14935_v50, %v17228_v20  ;;  %v15125_v58 = vmul.f32 %v14938_v27, %v17229_v54  ;;  %v15129_v51 = vmul.f32 %v14941_v40, %v14857_v43  ;;  %v15133_v41 = vmul.f32 %v14932_v2, %v17230_v16  ;;  %v17238_v54 = vld [vmem:[#allocation88_spill] sm:$0xff] }
 0x78c   :  { %v15137_v26 = vmul.f32 %v14935_v50, %v17232_v32  ;;  %v15141_v61 = vmul.f32 %v14938_v27, %v17234_v45  ;;  %v15145_v20 = vmul.f32 %v14941_v40, %v17236_v4  ;;  %v15149_v43 = vmul.f32 %v14932_v2, %v17238_v54 }
 0x78d   :  { %17231 = vst [vmem:[#allocation83_spill] sm:$0xff] %v15133_v41  ;;  %v15153_v16 = vmul.f32 %v14935_v50, %v17240_v60  ;;  %v17242_v41 = vld [vmem:[#allocation59_spill] sm:$0xff] }
 0x78e   :  { %17233 = vst [vmem:[#allocation93_spill] sm:$0xff] %v15137_v26  ;;  %17235 = vst [vmem:[#allocation63_spill] sm:$0xff] %v15141_v61  ;;  %v15157_v32 = vmul.f32 %v14938_v27, %v17242_v41  ;;  %v17244_v26 = vld [vmem:[#allocation64_spill] sm:$0xff] }
 0x78f   :  { %17237 = vst [vmem:[#allocation65_spill] sm:$0xff] %v15145_v20  ;;  %17239 = vst [vmem:[#allocation76_spill] sm:$0xff] %v15149_v43  ;;  %v15161_v45 = vmul.f32 %v14941_v40, %v17244_v26  ;;  %v17246_v61 = vld [vmem:[#allocation96_spill] sm:$0xff]  ;;  %v17248_v20 = vld [vmem:[#allocation90_spill] sm:$0xff] }
 0x790   :  { %17241 = vst [vmem:[#allocation78_spill] sm:$0xff] %v15153_v16  ;;  %17243 = vst [vmem:[#allocation42_spill] sm:$0xff] %v15157_v32  ;;  %v15165_v4 = vmul.f32 %v14932_v2, %v17246_v61  ;;  %v15169_v54 = vmul.f32 %v14935_v50, %v17248_v20  ;;  %v17250_v43 = vld [vmem:[#allocation101_spill] sm:$0xff]  ;;  %v17252_v16 = vld [vmem:[#allocation91_spill] sm:$0xff] }
 0x791   :  { %17245 = vst [vmem:[#allocation44_spill] sm:$0xff] %v15161_v45  ;;  %v15173_v60 = vmul.f32 %v14938_v27, %v17250_v43  ;;  %v15177_v41 = vmul.f32 %v14932_v2, %v17252_v16  ;;  %v17254_v32 = vld [vmem:[#allocation98_spill] sm:$0xff]  ;;  %v17256_v45 = vld [vmem:[#allocation75_spill] sm:$0xff] }
 0x792   :  { %17247 = vst [vmem:[#allocation97_spill] sm:$0xff] %v15165_v4  ;;  %17249 = vst [vmem:[#allocation86_spill] sm:$0xff] %v15169_v54  ;;  %v15181_v26 = vmul.f32 %v14935_v50, %v17254_v32  ;;  %v15185_v61 = vmul.f32 %v14938_v27, %v17256_v45  ;;  %v17258_v4 = vld [vmem:[#allocation74_spill] sm:$0xff]  ;;  %v17260_v54 = vld [vmem:[#allocation99_spill] sm:$0xff] }
 0x793   :  { %17251 = vst [vmem:[#allocation87_spill] sm:$0xff] %v15173_v60  ;;  %17253 = vst [vmem:[#allocation100_spill] sm:$0xff] %v15177_v41  ;;  %v15189_v20 = vmul.f32 %v14941_v40, %v17258_v4  ;;  %v15193_v43 = vmul.f32 %v14932_v2, %v17260_v54  ;;  %v17261_v60 = vld [vmem:[#allocation61_spill] sm:$0xff]  ;;  %v17262_v41 = vld [vmem:[#allocation92_spill] sm:$0xff]  ;;  %v15215_v2 = vrot.slane %v6555_v30, %v17216_v35 }
 0x794   :  { %17255 = vst [vmem:[#allocation94_spill] sm:$0xff] %v15181_v26  ;;  %17257 = vst [vmem:[#allocation95_spill] sm:$0xff] %v15185_v61  ;;  %v15197_v16 = vmul.f32 %v14941_v40, %v17261_v60  ;;  %v15201_v32 = vmul.f32 %v14935_v50, %v17262_v41  ;;  %v17263_v26 = vld [vmem:[#allocation67_spill] sm:$0xff]  ;;  %v15208_v61 = vrot.slane %v6555_v30, %v17215_v52  ;;  %v17264_v4 = vld [vmem:[#allocation77_spill] sm:$0xff] }
 0x795   :  { %17259 = vst [vmem:[#allocation73_spill] sm:$0xff] %v15189_v20  ;;  %v15205_v45 = vmul.f32 %v14938_v27, %v17263_v26  ;;  %v15212_v20 = vmul.f32 %v14941_v40, %v17264_v4  ;;  %v15218_v54 = vrot.slane %v6555_v30, %v17217_v44  ;;  %v15221_v50 = vrot.slane %v6555_v30, %v17218_v12  ;;  %v17269_v26 = vld [vmem:[#allocation93_spill] sm:$0xff]  ;;  %v17270_v4 = vld [vmem:[#allocation63_spill] sm:$0xff] }
 0x796   :  { %v15225_v27 = vadd.f32 %v15208_v61, %v14951_v46  ;;  %v15229_v60 = vadd.f32 %v15208_v61, %v14967_v57  ;;  %v15233_v40 = vadd.f32 %v15208_v61, %v14983_v24  ;;  %v15237_v41 = vadd.f32 %v15208_v61, %v15001_v38  ;;  %v17272_v44 = vld [vmem:[#allocation65_spill] sm:$0xff]  ;;  %v17273_v35 = vld [vmem:[#allocation76_spill] sm:$0xff] }
 0x797   :  { %v15241_v12 = vadd.f32 %v15215_v2, %v14955_v55  ;;  %v15245_v46 = vadd.f32 %v15218_v54, %v14959_v5  ;;  %v15249_v57 = vadd.f32 %v15221_v50, %v14963_v23  ;;  %v6646_v24 = vadd.f32 %v15215_v2, %v14971_v39  ;;  %v17275_v52 = vld [vmem:[#allocation78_spill] sm:$0xff] }
 0x798   :  { %v15255_v30 = vadd.f32 %v15218_v54, %v14975_v59  ;;  %v6648_v38 = vadd.f32 %v15221_v50, %v14979_v10  ;;  %v15261_v55 = vadd.f32 %v15215_v2, %v14989_v31  ;;  %v15265_v5 = vadd.f32 %v15218_v54, %v14993_v56 }
 0x799   :  { %v15269_v23 = vadd.f32 %v15221_v50, %v14997_v49  ;;  %v15273_v39 = vadd.f32 %v15215_v2, %v15005_v29  ;;  %v15277_v59 = vadd.f32 %v15218_v54, %v15009_v36  ;;  %v15281_v10 = vadd.f32 %v15221_v50, %v15013_v9 }
 0x79a   :  { %v15285_v31 = vadd.f32 %v15208_v61, %v15017_v17  ;;  %v15289_v56 = vadd.f32 %v15215_v2, %v15021_v53  ;;  %v15293_v49 = vadd.f32 %v15218_v54, %v15028_v37  ;;  %v15297_v29 = vadd.f32 %v15221_v50, %v15032_v34 }
 0x79b   :  { %v15301_v36 = vadd.f32 %v15208_v61, %v15036_v7  ;;  %v15305_v9 = vadd.f32 %v15215_v2, %v15040_v6  ;;  %v15309_v17 = vadd.f32 %v15218_v54, %v15045_v18  ;;  %v15313_v53 = vadd.f32 %v15221_v50, %v15049_v1 }
 0x79c   :  { %v15317_v37 = vadd.f32 %v15208_v61, %v15053_v63  ;;  %v15321_v34 = vadd.f32 %v15215_v2, %v15057_v15  ;;  %v15325_v7 = vadd.f32 %v15218_v54, %v15061_v48  ;;  %v15329_v6 = vadd.f32 %v15221_v50, %v15065_v42 }
 0x79d   :  { %v15333_v18 = vadd.f32 %v15208_v61, %v15069_v21  ;;  %v15337_v1 = vadd.f32 %v15215_v2, %v15073_v0  ;;  %v15341_v63 = vadd.f32 %v15218_v54, %v15077_v28  ;;  %v15345_v15 = vadd.f32 %v15221_v50, %v15081_v13 }
 0x79e   :  { %v15349_v48 = vadd.f32 %v15208_v61, %v15085_v19  ;;  %v15353_v42 = vadd.f32 %v15215_v2, %v15089_v22  ;;  %v15357_v21 = vadd.f32 %v15218_v54, %v15093_v11  ;;  %v15361_v0 = vadd.f32 %v15221_v50, %v15097_v8 }
 0x79f   :  { %v15365_v28 = vadd.f32 %v15208_v61, %v15101_v25  ;;  %v15369_v13 = vadd.f32 %v15215_v2, %v15105_v3  ;;  %v15373_v19 = vadd.f32 %v15218_v54, %v15109_v47  ;;  %v15377_v22 = vadd.f32 %v15221_v50, %v15113_v14  ;;  %v17267_v47 = vld [vmem:[#allocation83_spill] sm:$0xff] }
 0x7a0   :  { %v15381_v11 = vadd.f32 %v15208_v61, %v15117_v33  ;;  %v15385_v8 = vadd.f32 %v15215_v2, %v15121_v62  ;;  %v15389_v25 = vadd.f32 %v15218_v54, %v15125_v58  ;;  %v15393_v3 = vadd.f32 %v15221_v50, %v15129_v51 }
 0x7a1   :  { %v15397_v14 = vadd.f32 %v15208_v61, %v17267_v47  ;;  %v15401_v33 = vadd.f32 %v15215_v2, %v17269_v26  ;;  %v15405_v62 = vadd.f32 %v15218_v54, %v17270_v4  ;;  %v15409_v58 = vadd.f32 %v15221_v50, %v17272_v44 }
 0x7a2   :  { %17265 = vst [vmem:[#allocation72_spill] sm:$0xff] %v15381_v11  ;;  %17266 = vst [vmem:[#allocation88_spill] sm:$0xff] %v15389_v25  ;;  %v15413_v51 = vadd.f32 %v15208_v61, %v17273_v35  ;;  %v15417_v47 = vadd.f32 %v15215_v2, %v17275_v52  ;;  %v17276_v25 = vld [vmem:[#allocation42_spill] sm:$0xff] }
 0x7a3   :  { %17268 = vst [vmem:[#allocation89_spill] sm:$0xff] %v15397_v14  ;;  %17271 = vst [vmem:[#allocation59_spill] sm:$0xff] %v15405_v62  ;;  %v15421_v26 = vadd.f32 %v15218_v54, %v17276_v25  ;;  %v17278_v14 = vld [vmem:[#allocation44_spill] sm:$0xff]  ;;  %v17280_v62 = vld [vmem:[#allocation97_spill] sm:$0xff]  ;;  %v15441_v25 = vadd.f32 %v15221_v50, %v15197_v16  ;;  %v15461_v16 = vadd.f32 %v15208_v61, %v15193_v43 }
 0x7a4   :  { %17274 = vst [vmem:[#allocation64_spill] sm:$0xff] %v15413_v51  ;;  %v15425_v4 = vadd.f32 %v15221_v50, %v17278_v14  ;;  %v15429_v44 = vadd.f32 %v15208_v61, %v17280_v62  ;;  %v17282_v11 = vld [vmem:[#allocation86_spill] sm:$0xff]  ;;  %v17284_v51 = vld [vmem:[#allocation87_spill] sm:$0xff] }
 0x7a5   :  { %17277 = vst [vmem:[#allocation96_spill] sm:$0xff] %v15421_v26  ;;  %v15433_v35 = vadd.f32 %v15215_v2, %v17282_v11  ;;  %v15437_v52 = vadd.f32 %v15218_v54, %v17284_v51  ;;  %v17285_v26 = vld [vmem:[#allocation100_spill] sm:$0xff] }
 0x7a6   :  { %17279 = vst [vmem:[#allocation90_spill] sm:$0xff] %v15425_v4  ;;  %17281 = vst [vmem:[#allocation101_spill] sm:$0xff] %v15429_v44  ;;  %v15445_v14 = vadd.f32 %v15208_v61, %v17285_v26  ;;  %v17286_v4 = vld [vmem:[#allocation94_spill] sm:$0xff]  ;;  %v17287_v44 = vld [vmem:[#allocation95_spill] sm:$0xff]  ;;  %v15465_v26 = vadd.f32 %v15215_v2, %v15201_v32 }
 0x7a7   :  { %17283 = vst [vmem:[#allocation91_spill] sm:$0xff] %v15433_v35  ;;  %v15449_v62 = vadd.f32 %v15215_v2, %v17286_v4  ;;  %v15453_v11 = vadd.f32 %v15218_v54, %v17287_v44  ;;  %v17289_v35 = vld [vmem:[#allocation73_spill] sm:$0xff]  ;;  %v15469_v4 = vadd.f32 %v15218_v54, %v15205_v45  ;;  %v15473_v44 = vadd.f32 %v15221_v50, %v15212_v20 }
 0x7a8   :  { %v15457_v51 = vadd.f32 %v15221_v50, %v17289_v35 }
 0x7a9   :  { %17288 = vst [vmem:[#allocation98_spill] sm:$0xff] %v15453_v11 }
 0x7aa   :  { %11664 = dma.done.wait [#allocation6 + $0x2], 4096 }
 0x7ab   :  { %11665 = vsyncadd [#allocation6 + $0x2], 4294963200  ;;  %v6773_v35 = vpack.c.bf16 %v6646_v24, %v15241_v12  ;;  %v6775_v11 = vpack.c.bf16 %v6648_v38, %v15249_v57  ;;  %v11054_v61 = vld [vmem:[#allocation4 + $0x78] sm:$0xff]   ;;  %v11058_v45 = vld [vmem:[#allocation4 + $0x70] sm:$0xff]  }
 0x7ac   :  { %v11055_v43 = vld [vmem:[#allocation4 + $0xf8] sm:$0xff]   ;;  %9904 = vmatprep.subr.bf16.mxu1 %v11054_v61  ;;  %v11059_v54 = vld [vmem:[#allocation4 + $0xf0] sm:$0xff]   ;;  %v11062_v12 = vld [vmem:[#allocation4 + $0x68] sm:$0xff]  }
 0x7ad   :  { %7035 = vmatprep.mubr.bf16.mxu1 %v6773_v35  ;;  %7132 = vmatprep.mubr.bf16.mxu0 %v6775_v11  ;;  %v11056_v32 = vld [vmem:[#allocation4 + $0x38] sm:$0xff]   ;;  %v11060_v20 = vld [vmem:[#allocation4 + $0x30] sm:$0xff]   ;;  %v11063_v57 = vld [vmem:[#allocation4 + $0xe8] sm:$0xff]  }
 0x7ae   :  { %9968 = vmatprep.subr.bf16.mxu0 %v11055_v43  ;;  %v11057_v2 = vld [vmem:[#allocation4 + $0xb8] sm:$0xff]   ;;  %9905 = vmatpush3.bf16.msra.mxu1 %v11056_v32  ;;  %v11061_v50 = vld [vmem:[#allocation4 + $0xb0] sm:$0xff]   ;;  %v11064_v24 = vld [vmem:[#allocation4 + $0x28] sm:$0xff]  }
 0x7af   :  { %9969 = vmatpush3.bf16.msra.mxu0 %v11057_v2  ;;  %9906 = vmatprep.subr.bf16.mxu1 %v11058_v45  ;;  %v11065_v38 = vld [vmem:[#allocation4 + $0xa8] sm:$0xff]   ;;  %v11066_v11 = vld [vmem:[#allocation4 + $0x60] sm:$0xff]   ;;  %v11070_v32 = vld [vmem:[#allocation4 + $0x58] sm:$0xff]  }
 0x7b0   :  { %9970 = vmatprep.subr.bf16.mxu0 %v11059_v54  ;;  %v11067_v35 = vld [vmem:[#allocation4 + $0xe0] sm:$0xff]   ;;  %v11071_v2 = vld [vmem:[#allocation4 + $0xd8] sm:$0xff]  }
 0x7b1   :  { %v11068_v61 = vld [vmem:[#allocation4 + $0x20] sm:$0xff]   ;;  %v11072_v45 = vld [vmem:[#allocation4 + $0x18] sm:$0xff]  }
 0x7b2   :  { %9907 = vmatpush3.bf16.msra.mxu1 %v11060_v20  ;;  %v11069_v43 = vld [vmem:[#allocation4 + $0xa0] sm:$0xff]   ;;  %v11073_v54 = vld [vmem:[#allocation4 + $0x98] sm:$0xff]   ;;  %v11074_v20 = vld [vmem:[#allocation4 + $0x50] sm:$0xff]  }
 0x7b3   :  { %9971 = vmatpush3.bf16.msra.mxu0 %v11061_v50  ;;  %9908 = vmatprep.subr.bf16.mxu1 %v11062_v12  ;;  %v11075_v50 = vld [vmem:[#allocation4 + $0xd0] sm:$0xff]  }
 0x7b4   :  { %9972 = vmatprep.subr.bf16.mxu0 %v11063_v57  ;;  %v11076_v12 = vld [vmem:[#allocation4 + $0x10] sm:$0xff]  }
 0x7b5   :  { %v11077_v57 = vld [vmem:[#allocation4 + $0x90] sm:$0xff]  }
 0x7b6   :  { %9909 = vmatpush3.bf16.msra.mxu1 %v11064_v24  ;;  %v11078_v24 = vld [vmem:[#allocation4 + $0x48] sm:$0xff]  }
 0x7b7   :  { %9973 = vmatpush3.bf16.msra.mxu0 %v11065_v38  ;;  %9910 = vmatprep.subr.bf16.mxu1 %v11066_v11  ;;  %v11079_v38 = vld [vmem:[#allocation4 + $0xc8] sm:$0xff]  }
 0x7b8   :  { %9974 = vmatprep.subr.bf16.mxu0 %v11067_v35  ;;  %v11080_v11 = vld [vmem:[#allocation4 + $0x8] sm:$0xff]  }
 0x7b9   :  { %v11081_v35 = vld [vmem:[#allocation4 + $0x88] sm:$0xff]  }
 0x7ba   :  { %9911 = vmatpush3.bf16.msra.mxu1 %v11068_v61  ;;  %v11082_v61 = vld [vmem:[#allocation4 + $0x40] sm:$0xff]  }
 0x7bb   :  { %9975 = vmatpush3.bf16.msra.mxu0 %v11069_v43  ;;  %9912 = vmatprep.subr.bf16.mxu1 %v11070_v32  ;;  %v11083_v43 = vld [vmem:[#allocation4 + $0xc0] sm:$0xff]  }
 0x7bc   :  { %9976 = vmatprep.subr.bf16.mxu0 %v11071_v2  ;;  %v11084_v32 = vld [vmem:[#allocation4] sm:$0xff]  }
 0x7bd   :  { %v11085_v2 = vld [vmem:[#allocation4 + $0x80] sm:$0xff]  }
 0x7be   :  { %9913 = vmatpush3.bf16.msra.mxu1 %v11072_v45  ;;  %v6772_v45 = vpack.c.bf16 %v15229_v60, %v15225_v27  ;;  %v6778_v27 = vpack.c.bf16 %v15277_v59, %v15265_v5  ;;  %v6781_v60 = vpack.c.bf16 %v15305_v9, %v15289_v56  ;;  %v6784_v5 = vpack.c.bf16 %v15333_v18, %v15317_v37 }
 0x7bf   :  { %9977 = vmatpush3.bf16.msra.mxu0 %v11073_v54  ;;  %9914 = vmatprep.subr.bf16.mxu1 %v11074_v20  ;;  %v6774_v54 = vpack.c.bf16 %v15255_v30, %v15245_v46  ;;  %v6777_v20 = vpack.c.bf16 %v15273_v39, %v15261_v55  ;;  %v6783_v46 = vpack.c.bf16 %v15313_v53, %v15297_v29  ;;  %v17290_v29 = vld [vmem:[#allocation72_spill] sm:$0xff]  ;;  %v17293_v53 = vld [vmem:[#allocation59_spill] sm:$0xff] }
 0x7c0   :  { %9978 = vmatprep.subr.bf16.mxu0 %v11075_v50  ;;  %v6779_v50 = vpack.c.bf16 %v15281_v10, %v15269_v23  ;;  %v6780_v30 = vpack.c.bf16 %v15301_v36, %v15285_v31  ;;  %v6782_v55 = vpack.c.bf16 %v15309_v17, %v15293_v49  ;;  %v6786_v23 = vpack.c.bf16 %v15341_v63, %v15325_v7  ;;  %v17291_v36 = vld [vmem:[#allocation89_spill] sm:$0xff]  ;;  %v17292_v17 = vld [vmem:[#allocation88_spill] sm:$0xff] }
 0x7c1   :  { %v6789_v39 = vpack.c.bf16 %v15369_v13, %v15353_v42  ;;  %v6791_v59 = vpack.c.bf16 %v15377_v22, %v15361_v0  ;;  %v6788_v10 = vpack.c.bf16 %v15365_v28, %v15349_v48  ;;  %v6790_v31 = vpack.c.bf16 %v15373_v19, %v15357_v21  ;;  %v17297_v63 = vld [vmem:[#allocation101_spill] sm:$0xff]  ;;  %v17298_v48 = vld [vmem:[#allocation96_spill] sm:$0xff]  ;;  %v17299_v13 = vld [vmem:[#allocation98_spill] sm:$0xff] }
 0x7c2   :  { %9915 = vmatpush3.bf16.msra.mxu1 %v11076_v12  ;;  %v6776_v12 = vpack.c.bf16 %v15237_v41, %v15233_v40  ;;  %v6785_v40 = vpack.c.bf16 %v15337_v1, %v15321_v34  ;;  %v6787_v41 = vpack.c.bf16 %v15345_v15, %v15329_v6  ;;  %v6793_v56 = vpack.c.bf16 %v15401_v33, %v15385_v8  ;;  %v17294_v34 = vld [vmem:[#allocation91_spill] sm:$0xff]  ;;  %v17295_v6 = vld [vmem:[#allocation90_spill] sm:$0xff]  ;;  %v17296_v1 = vld [vmem:[#allocation64_spill] sm:$0xff] }
 0x7c3   :  { %9979 = vmatpush3.bf16.msra.mxu0 %v11077_v57  ;;  %9916 = vmatprep.subr.bf16.mxu1 %v11078_v24  ;;  %v6795_v49 = vpack.c.bf16 %v15409_v58, %v15393_v3  ;;  %v6792_v9 = vpack.c.bf16 %v17291_v36, %v17290_v29  ;;  %v6794_v37 = vpack.c.bf16 %v17293_v53, %v17292_v17  ;;  %v15537_v3 = vld [vmem:[#allocation17] ss:$0 sm:$0xff] }
 0x7c4   :  { %9980 = vmatprep.subr.bf16.mxu0 %v11079_v38  ;;  %v6797_v7 = vpack.c.bf16 %v17294_v34, %v15417_v47  ;;  %v6799_v18 = vpack.c.bf16 %v15441_v25, %v17295_v6  ;;  %v6796_v15 = vpack.c.bf16 %v17297_v63, %v17296_v1  ;;  %v6798_v42 = vpack.c.bf16 %v15437_v52, %v17298_v48 }
 0x7c5   :  { %v6801_v21 = vpack.c.bf16 %v15465_v26, %v15449_v62  ;;  %v6803_v0 = vpack.c.bf16 %v15473_v44, %v15457_v51  ;;  %v6800_v28 = vpack.c.bf16 %v15461_v16, %v15445_v14  ;;  %v6802_v19 = vpack.c.bf16 %v15469_v4, %v17299_v13 }
 0x7c6   :  { %9917 = vmatpush3.bf16.msra.mxu1 %v11080_v11 }
 0x7c7   :  { %9981 = vmatpush3.bf16.msra.mxu0 %v11081_v35  ;;  %9918 = vmatprep.subr.bf16.mxu1 %v11082_v61 }
 0x7c8   :  { %9982 = vmatprep.subr.bf16.mxu0 %v11083_v43 }
 0x7ca   :  { %9919 = vmatpush3.bf16.msra.mxu1 %v11084_v32 }
 0x7cb   :  { %9983 = vmatpush3.bf16.msra.mxu0 %v11085_v2 }
 0x7cd   :  { %7036 = vmatmul.mubr.bf16.vlgmr.msra.gmra.mxu1 %v6772_v45 }
 0x7ce   :  { %7133 = vmatmul.mubr.bf16.vlgmr.msra.gmra.mxu0 %v6774_v54  ;;  %7043 = vmatprep.mubr.bf16.mxu1 %v6777_v20 }
 0x7cf   :  { %7140 = vmatprep.mubr.bf16.mxu0 %v6779_v50 }
 0x7d5   :  { %7044 = vmatmul.mubr.bf16.gmra.mxu1 %v6776_v12 }
 0x7d6   :  { %7141 = vmatmul.mubr.bf16.gmra.mxu0 %v6778_v27  ;;  %7051 = vmatprep.mubr.bf16.mxu1 %v6781_v60 }
 0x7d7   :  { %7148 = vmatprep.mubr.bf16.mxu0 %v6783_v46 }
 0x7dd   :  { %7052 = vmatmul.mubr.bf16.gmra.mxu1 %v6780_v30 }
 0x7de   :  { %7149 = vmatmul.mubr.bf16.gmra.mxu0 %v6782_v55  ;;  %7059 = vmatprep.mubr.bf16.mxu1 %v6785_v40 }
 0x7df   :  { %7156 = vmatprep.mubr.bf16.mxu0 %v6787_v41 }
 0x7e5   :  { %7060 = vmatmul.mubr.bf16.gmra.mxu1 %v6784_v5 }
 0x7e6   :  { %7157 = vmatmul.mubr.bf16.gmra.mxu0 %v6786_v23  ;;  %7067 = vmatprep.mubr.bf16.mxu1 %v6789_v39 }
 0x7e7   :  { %7164 = vmatprep.mubr.bf16.mxu0 %v6791_v59 }
 0x7ed   :  { %7068 = vmatmul.mubr.bf16.gmra.mxu1 %v6788_v10 }
 0x7ee   :  { %7165 = vmatmul.mubr.bf16.gmra.mxu0 %v6790_v31  ;;  %7075 = vmatprep.mubr.bf16.mxu1 %v6793_v56 }
 0x7ef   :  { %7172 = vmatprep.mubr.bf16.mxu0 %v6795_v49 }
 0x7f5   :  { %7076 = vmatmul.mubr.bf16.gmra.mxu1 %v6792_v9 }
 0x7f6   :  { %7173 = vmatmul.mubr.bf16.gmra.mxu0 %v6794_v37  ;;  %7083 = vmatprep.mubr.bf16.mxu1 %v6797_v7 }
 0x7f7   :  { %7180 = vmatprep.mubr.bf16.mxu0 %v6799_v18 }
 0x7fd   :  { %7084 = vmatmul.mubr.bf16.gmra.mxu1 %v6796_v15 }
 0x7fe   :  { %7181 = vmatmul.mubr.bf16.gmra.mxu0 %v6798_v42  ;;  %7091 = vmatprep.mubr.bf16.mxu1 %v6801_v21 }
 0x7ff   :  { %7188 = vmatprep.mubr.bf16.mxu0 %v6803_v0 }
 0x805   :  { %7092 = vmatmul.mubr.bf16.gmra.mxu1 %v6800_v28 }
 0x806   :  { %7189 = vmatmul.mubr.bf16.gmra.mxu0 %v6802_v19 }
 0x88d   :  { %v9920_v22 = vpop.f32.mrf.mxu1 }
 0x88e   :  { %v9984_v8 = vpop.f32.mrf.mxu0 }
 0x88f   :  { %v9921_v33 = vpop.f32.mrf.mxu1 }
 0x890   :  { %v9922_v58 = vadd.f32 %v9921_v33, %v9920_v22  ;;  %v9985_v47 = vpop.f32.mrf.mxu0 }
 0x891   :  { %v9923_v52 = vpop.f32.mrf.mxu1  ;;  %v9986_v62 = vadd.f32 %v9985_v47, %v9984_v8 }
 0x892   :  { %v7038_v25 = vadd.f32 %v9922_v58, %v15537_v3  ;;  %v9987_v51 = vpop.f32.mrf.mxu0 }
 0x893   :  { %v9924_v26 = vpop.f32.mrf.mxu1 }
 0x894   :  { %v9925_v44 = vadd.f32 %v9924_v26, %v9923_v52  ;;  %v9988_v14 = vpop.f32.mrf.mxu0  ;;  %v15540_v16 = vadd.f32 %v9986_v62, %v7038_v25 }
 0x895   :  { %v9926_v4 = vpop.f32.mrf.mxu1  ;;  %v9989_v24 = vadd.f32 %v9988_v14, %v9987_v51 }
 0x896   :  { %v7041_v57 = vadd.f32 %v9925_v44, %v15537_v3  ;;  %v9990_v38 = vpop.f32.mrf.mxu0  ;;  %7197 = vmax.xlane.f32.xlu0 %v15540_v16 }
 0x897   :  { %v9927_v11 = vpop.f32.mrf.mxu1 }
 0x898   :  { %v9928_v35 = vadd.f32 %v9927_v11, %v9926_v4  ;;  %v9991_v61 = vpop.f32.mrf.mxu0  ;;  %v15544_v43 = vadd.f32 %v9989_v24, %v7041_v57 }
 0x899   :  { %v9929_v32 = vpop.f32.mrf.mxu1  ;;  %v9992_v45 = vadd.f32 %v9991_v61, %v9990_v38 }
 0x89a   :  { %v7046_v2 = vadd.f32 %v9928_v35, %v15537_v3  ;;  %v9993_v54 = vpop.f32.mrf.mxu0  ;;  %7199 = vmax.xlane.f32.xlu0 %v15544_v43 }
 0x89b   :  { %v9930_v20 = vpop.f32.mrf.mxu1 }
 0x89c   :  { %v9931_v50 = vadd.f32 %v9930_v20, %v9929_v32  ;;  %v9994_v12 = vpop.f32.mrf.mxu0  ;;  %v15548_v27 = vadd.f32 %v9992_v45, %v7046_v2 }
 0x89d   :  { %v9932_v60 = vpop.f32.mrf.mxu1  ;;  %v9995_v30 = vadd.f32 %v9994_v12, %v9993_v54 }
 0x89e   :  { %v7049_v46 = vadd.f32 %v9931_v50, %v15537_v3  ;;  %v9996_v55 = vpop.f32.mrf.mxu0  ;;  %7201 = vmax.xlane.f32.xlu1 %v15548_v27 }
 0x89f   :  { %v9933_v40 = vpop.f32.mrf.mxu1 }
 0x8a0   :  { %v9934_v41 = vadd.f32 %v9933_v40, %v9932_v60  ;;  %v9997_v5 = vpop.f32.mrf.mxu0  ;;  %v15552_v23 = vadd.f32 %v9995_v30, %v7049_v46 }
 0x8a1   :  { %v9935_v39 = vpop.f32.mrf.mxu1  ;;  %v9998_v10 = vadd.f32 %v9997_v5, %v9996_v55 }
 0x8a2   :  { %v7054_v59 = vadd.f32 %v9934_v41, %v15537_v3  ;;  %v9999_v31 = vpop.f32.mrf.mxu0  ;;  %7203 = vmax.xlane.f32.xlu1 %v15552_v23 }
 0x8a3   :  { %v9936_v56 = vpop.f32.mrf.mxu1 }
 0x8a4   :  { %v9937_v49 = vadd.f32 %v9936_v56, %v9935_v39  ;;  %v10000_v29 = vpop.f32.mrf.mxu0  ;;  %v15556_v36 = vadd.f32 %v9998_v10, %v7054_v59 }
 0x8a5   :  { %v9938_v9 = vpop.f32.mrf.mxu1  ;;  %v10001_v53 = vadd.f32 %v10000_v29, %v9999_v31 }
 0x8a6   :  { %v7057_v17 = vadd.f32 %v9937_v49, %v15537_v3  ;;  %v10002_v37 = vpop.f32.mrf.mxu0  ;;  %7205 = vmax.xlane.f32.xlu0 %v15556_v36 }
 0x8a7   :  { %v9939_v34 = vpop.f32.mrf.mxu1 }
 0x8a8   :  { %v9940_v7 = vadd.f32 %v9939_v34, %v9938_v9  ;;  %v10003_v6 = vpop.f32.mrf.mxu0  ;;  %v15560_v18 = vadd.f32 %v10001_v53, %v7057_v17 }
 0x8a9   :  { %v9941_v1 = vpop.f32.mrf.mxu1  ;;  %v10004_v15 = vadd.f32 %v10003_v6, %v10002_v37 }
 0x8aa   :  { %v7062_v63 = vadd.f32 %v9940_v7, %v15537_v3  ;;  %v10005_v48 = vpop.f32.mrf.mxu0  ;;  %7207 = vmax.xlane.f32.xlu1 %v15560_v18 }
 0x8ab   :  { %v9942_v42 = vpop.f32.mrf.mxu1 }
 0x8ac   :  { %v9943_v21 = vadd.f32 %v9942_v42, %v9941_v1  ;;  %v10006_v0 = vpop.f32.mrf.mxu0  ;;  %v15564_v28 = vadd.f32 %v10004_v15, %v7062_v63 }
 0x8ad   :  { %v9944_v13 = vpop.f32.mrf.mxu1  ;;  %v10007_v22 = vadd.f32 %v10006_v0, %v10005_v48 }
 0x8ae   :  { %v7065_v19 = vadd.f32 %v9943_v21, %v15537_v3  ;;  %v10008_v8 = vpop.f32.mrf.mxu0  ;;  %7209 = vmax.xlane.f32.xlu0 %v15564_v28 }
 0x8af   :  { %v9945_v33 = vpop.f32.mrf.mxu1 }
 0x8b0   :  { %v9946_v58 = vadd.f32 %v9945_v33, %v9944_v13  ;;  %v10009_v47 = vpop.f32.mrf.mxu0  ;;  %v15568_v52 = vadd.f32 %v10007_v22, %v7065_v19 }
 0x8b1   :  { %v9947_v25 = vpop.f32.mrf.mxu1  ;;  %v10010_v51 = vadd.f32 %v10009_v47, %v10008_v8 }
 0x8b2   :  { %v7070_v62 = vadd.f32 %v9946_v58, %v15537_v3  ;;  %v10011_v26 = vpop.f32.mrf.mxu0  ;;  %7211 = vmax.xlane.f32.xlu1 %v15568_v52 }
 0x8b3   :  { %v9948_v44 = vpop.f32.mrf.mxu1 }
 0x8b4   :  { %v9949_v14 = vadd.f32 %v9948_v44, %v9947_v25  ;;  %v10012_v4 = vpop.f32.mrf.mxu0  ;;  %v15572_v57 = vadd.f32 %v10010_v51, %v7070_v62 }
 0x8b5   :  { %v9950_v24 = vpop.f32.mrf.mxu1  ;;  %v10013_v11 = vadd.f32 %v10012_v4, %v10011_v26 }
 0x8b6   :  { %v7073_v38 = vadd.f32 %v9949_v14, %v15537_v3  ;;  %v10014_v35 = vpop.f32.mrf.mxu0  ;;  %7213 = vmax.xlane.f32.xlu0 %v15572_v57 }
 0x8b7   :  { %v9951_v61 = vpop.f32.mrf.mxu1 }
 0x8b8   :  { %v9952_v32 = vadd.f32 %v9951_v61, %v9950_v24  ;;  %v10015_v2 = vpop.f32.mrf.mxu0  ;;  %v15576_v45 = vadd.f32 %v10013_v11, %v7073_v38 }
 0x8b9   :  { %v9953_v54 = vpop.f32.mrf.mxu1  ;;  %v10016_v50 = vadd.f32 %v10015_v2, %v10014_v35 }
 0x8ba   :  { %v7078_v20 = vadd.f32 %v9952_v32, %v15537_v3  ;;  %v10017_v12 = vpop.f32.mrf.mxu0  ;;  %7215 = vmax.xlane.f32.xlu1 %v15576_v45 }
 0x8bb   :  { %v9954_v60 = vpop.f32.mrf.mxu1 }
 0x8bc   :  { %v9955_v46 = vadd.f32 %v9954_v60, %v9953_v54  ;;  %v10018_v30 = vpop.f32.mrf.mxu0  ;;  %v15580_v55 = vadd.f32 %v10016_v50, %v7078_v20 }
 0x8bd   :  { %v9956_v40 = vpop.f32.mrf.mxu1  ;;  %v10019_v5 = vadd.f32 %v10018_v30, %v10017_v12 }
 0x8be   :  { %v7081_v41 = vadd.f32 %v9955_v46, %v15537_v3  ;;  %v10020_v39 = vpop.f32.mrf.mxu0  ;;  %7217 = vmax.xlane.f32.xlu0 %v15580_v55 }
 0x8bf   :  { %v9957_v59 = vpop.f32.mrf.mxu1 }
 0x8c0   :  { %v9958_v10 = vadd.f32 %v9957_v59, %v9956_v40  ;;  %v10021_v31 = vpop.f32.mrf.mxu0  ;;  %v15584_v56 = vadd.f32 %v10019_v5, %v7081_v41 }
 0x8c1   :  { %v9959_v49 = vpop.f32.mrf.mxu1  ;;  %v10022_v9 = vadd.f32 %v10021_v31, %v10020_v39 }
 0x8c2   :  { %v7086_v29 = vadd.f32 %v9958_v10, %v15537_v3  ;;  %v10023_v17 = vpop.f32.mrf.mxu0  ;;  %7219 = vmax.xlane.f32.xlu1 %v15584_v56 }
 0x8c3   :  { %v9960_v53 = vpop.f32.mrf.mxu1 }
 0x8c4   :  { %v9961_v37 = vadd.f32 %v9960_v53, %v9959_v49  ;;  %v10024_v34 = vpop.f32.mrf.mxu0  ;;  %v15588_v7 = vadd.f32 %v10022_v9, %v7086_v29 }
 0x8c5   :  { %v9962_v6 = vpop.f32.mrf.mxu1  ;;  %v10025_v63 = vadd.f32 %v10024_v34, %v10023_v17 }
 0x8c6   :  { %v7089_v1 = vadd.f32 %v9961_v37, %v15537_v3  ;;  %v10026_v15 = vpop.f32.mrf.mxu0  ;;  %7221 = vmax.xlane.f32.xlu0 %v15588_v7 }
 0x8c7   :  { %v9963_v48 = vpop.f32.mrf.mxu1 }
 0x8c8   :  { %v9964_v42 = vadd.f32 %v9963_v48, %v9962_v6  ;;  %v10027_v21 = vpop.f32.mrf.mxu0  ;;  %v15592_v0 = vadd.f32 %v10025_v63, %v7089_v1 }
 0x8c9   :  { %v9965_v13 = vpop.f32.mrf.mxu1  ;;  %v10028_v22 = vadd.f32 %v10027_v21, %v10026_v15 }
 0x8ca   :  { %v7094_v19 = vadd.f32 %v9964_v42, %v15537_v3  ;;  %v10029_v8 = vpop.f32.mrf.mxu0  ;;  %7223 = vmax.xlane.f32.xlu1 %v15592_v0 }
 0x8cb   :  { %v9966_v33 = vpop.f32.mrf.mxu1 }
 0x8cc   :  { %v9967_v58 = vadd.f32 %v9966_v33, %v9965_v13  ;;  %v10030_v47 = vpop.f32.mrf.mxu0  ;;  %v15596_v25 = vadd.f32 %v10028_v22, %v7094_v19 }
 0x8cd   :  { %v10031_v51 = vadd.f32 %v10030_v47, %v10029_v8 }
 0x8ce   :  { %v7097_v62 = vadd.f32 %v9967_v58, %v15537_v3  ;;  %7225 = vmax.xlane.f32.xlu0 %v15596_v25 }
 0x8d0   :  { %v15600_v26 = vadd.f32 %v10031_v51, %v7097_v62 }
 0x8d2   :  { %7227 = vmax.xlane.f32.xlu1 %v15600_v26 }
 0x91f   :  { %v7198_v44 = vpop.xlane.xlu0 %7197 }
 0x920   :  { %v7229_v14 = vsub.f32 %v15540_v16, %v7198_v44 }
 0x922   :  { %v7245_v4 = vmul.f32 1.442695, %v7229_v14 }
 0x923   :  { %v7200_v24 = vpop.xlane.xlu0 %7199 }
 0x924   :  { %11086 = vpow2.f32 %v7245_v4  ;;  %v7230_v38 = vsub.f32 %v15544_v43, %v7200_v24 }
 0x926   :  { %v7247_v11 = vmul.f32 1.442695, %v7230_v38 }
 0x927   :  { %v7202_v35 = vpop.xlane.xlu1 %7201 }
 0x928   :  { %11088 = vpow2.f32 %v7247_v11  ;;  %v7231_v3 = vsub.f32 %v15548_v27, %v7202_v35 }
 0x92a   :  { %v7249_v61 = vmul.f32 1.442695, %v7231_v3 }
 0x92b   :  { %v7204_v32 = vpop.xlane.xlu1 %7203 }
 0x92c   :  { %11090 = vpow2.f32 %v7249_v61  ;;  %v7232_v2 = vsub.f32 %v15552_v23, %v7204_v32 }
 0x92e   :  { %v7251_v54 = vmul.f32 1.442695, %v7232_v2 }
 0x92f   :  { %v7206_v20 = vpop.xlane.xlu0 %7205 }
 0x930   :  { %11092 = vpow2.f32 %v7251_v54  ;;  %v7233_v16 = vsub.f32 %v15556_v36, %v7206_v20 }
 0x931   :  { %v15608_v50 = vpop.eup %11086 }
 0x932   :  { %v7253_v12 = vmul.f32 1.442695, %v7233_v16  ;;  %7277 = vadd.xlane.f32.xlu0 %v15608_v50 }
 0x933   :  { %v7208_v43 = vpop.xlane.xlu1 %7207 }
 0x934   :  { %11094 = vpow2.f32 %v7253_v12  ;;  %v7234_v60 = vsub.f32 %v15560_v18, %v7208_v43 }
 0x935   :  { %v15612_v27 = vpop.eup %11088 }
 0x936   :  { %v7255_v46 = vmul.f32 1.442695, %v7234_v60  ;;  %7279 = vadd.xlane.f32.xlu1 %v15612_v27 }
 0x937   :  { %v7210_v23 = vpop.xlane.xlu0 %7209 }
 0x938   :  { %11096 = vpow2.f32 %v7255_v46  ;;  %v7235_v30 = vsub.f32 %v15564_v28, %v7210_v23 }
 0x939   :  { %v15616_v40 = vpop.eup %11090 }
 0x93a   :  { %v7257_v36 = vmul.f32 1.442695, %v7235_v30  ;;  %7281 = vadd.xlane.f32.xlu0 %v15616_v40 }
 0x93b   :  { %v7212_v41 = vpop.xlane.xlu1 %7211 }
 0x93c   :  { %11098 = vpow2.f32 %v7257_v36  ;;  %v7236_v5 = vsub.f32 %v15568_v52, %v7212_v41 }
 0x93d   :  { %v15620_v39 = vpop.eup %11092 }
 0x93e   :  { %v7259_v18 = vmul.f32 1.442695, %v7236_v5  ;;  %7283 = vadd.xlane.f32.xlu1 %v15620_v39 }
 0x93f   :  { %v7214_v59 = vpop.xlane.xlu0 %7213 }
 0x940   :  { %11100 = vpow2.f32 %v7259_v18  ;;  %v7237_v10 = vsub.f32 %v15572_v57, %v7214_v59 }
 0x941   :  { %v15624_v31 = vpop.eup %11094 }
 0x942   :  { %v7261_v28 = vmul.f32 1.442695, %v7237_v10  ;;  %7285 = vadd.xlane.f32.xlu0 %v15624_v31 }
 0x943   :  { %v7216_v49 = vpop.xlane.xlu1 %7215 }
 0x944   :  { %11102 = vpow2.f32 %v7261_v28  ;;  %v7238_v29 = vsub.f32 %v15576_v45, %v7216_v49 }
 0x945   :  { %v15628_v9 = vpop.eup %11096 }
 0x946   :  { %v7263_v52 = vmul.f32 1.442695, %v7238_v29  ;;  %7287 = vadd.xlane.f32.xlu1 %v15628_v9 }
 0x947   :  { %v7218_v17 = vpop.xlane.xlu0 %7217 }
 0x948   :  { %11104 = vpow2.f32 %v7263_v52  ;;  %v7239_v53 = vsub.f32 %v15580_v55, %v7218_v17 }
 0x949   :  { %v15632_v37 = vpop.eup %11098 }
 0x94a   :  { %v7265_v57 = vmul.f32 1.442695, %v7239_v53  ;;  %7289 = vadd.xlane.f32.xlu0 %v15632_v37 }
 0x94b   :  { %v7220_v34 = vpop.xlane.xlu1 %7219 }
 0x94c   :  { %11106 = vpow2.f32 %v7265_v57  ;;  %v7240_v6 = vsub.f32 %v15584_v56, %v7220_v34 }
 0x94d   :  { %v15636_v1 = vpop.eup %11100 }
 0x94e   :  { %v7267_v45 = vmul.f32 1.442695, %v7240_v6  ;;  %7291 = vadd.xlane.f32.xlu1 %v15636_v1 }
 0x94f   :  { %v7222_v63 = vpop.xlane.xlu0 %7221 }
 0x950   :  { %11108 = vpow2.f32 %v7267_v45  ;;  %v7241_v15 = vsub.f32 %v15588_v7, %v7222_v63 }
 0x951   :  { %v15640_v48 = vpop.eup %11102 }
 0x952   :  { %v7269_v55 = vmul.f32 1.442695, %v7241_v15  ;;  %7293 = vadd.xlane.f32.xlu0 %v15640_v48 }
 0x953   :  { %v7224_v42 = vpop.xlane.xlu1 %7223 }
 0x954   :  { %11110 = vpow2.f32 %v7269_v55  ;;  %v7242_v21 = vsub.f32 %v15592_v0, %v7224_v42 }
 0x955   :  { %v15644_v13 = vpop.eup %11104 }
 0x956   :  { %v7271_v56 = vmul.f32 1.442695, %v7242_v21  ;;  %7295 = vadd.xlane.f32.xlu1 %v15644_v13 }
 0x957   :  { %v7226_v19 = vpop.xlane.xlu0 %7225 }
 0x958   :  { %11112 = vpow2.f32 %v7271_v56  ;;  %v7243_v22 = vsub.f32 %v15596_v25, %v7226_v19 }
 0x959   :  { %v15648_v8 = vpop.eup %11106 }
 0x95a   :  { %v7273_v7 = vmul.f32 1.442695, %v7243_v22  ;;  %7297 = vadd.xlane.f32.xlu0 %v15648_v8 }
 0x95b   :  { %v7228_v33 = vpop.xlane.xlu1 %7227 }
 0x95c   :  { %11114 = vpow2.f32 %v7273_v7  ;;  %v7244_v58 = vsub.f32 %v15600_v26, %v7228_v33 }
 0x95d   :  { %v15652_v47 = vpop.eup %11108 }
 0x95e   :  { %v7275_v0 = vmul.f32 1.442695, %v7244_v58  ;;  %7299 = vadd.xlane.f32.xlu1 %v15652_v47 }
 0x960   :  { %11116 = vpow2.f32 %v7275_v0 }
 0x961   :  { %v15655_v62 = vpop.eup %11110 }
 0x962   :  { %7301 = vadd.xlane.f32.xlu0 %v15655_v62 }
 0x965   :  { %v15658_v25 = vpop.eup %11112 }
 0x966   :  { %7303 = vadd.xlane.f32.xlu1 %v15658_v25 }
 0x969   :  { %v15661_v51 = vpop.eup %11114 }
 0x96a   :  { %7305 = vadd.xlane.f32.xlu0 %v15661_v51 }
 0x96d   :  { %v15664_v44 = vpop.eup %11116 }
 0x96e   :  { %7307 = vadd.xlane.f32.xlu1 %v15664_v44 }
 0x9bb   :  { %v7278_v26 = vpop.xlane.xlu0 %7277 }
 0x9bc   :  { %11118 = vrcp.f32 %v7278_v26 }
 0x9bf   :  { %v7280_v14 = vpop.xlane.xlu1 %7279 }
 0x9c0   :  { %11120 = vrcp.f32 %v7280_v14 }
 0x9c3   :  { %v7282_v4 = vpop.xlane.xlu0 %7281 }
 0x9c4   :  { %11122 = vrcp.f32 %v7282_v4 }
 0x9c7   :  { %v7284_v24 = vpop.xlane.xlu1 %7283 }
 0x9c8   :  { %11124 = vrcp.f32 %v7284_v24 }
 0x9c9   :  { %v11119_v38 = vpop.eup %11118 }
 0x9ca   :  { %v7310_v11 = vmul.f32 %v11119_v38, %v15608_v50 }
 0x9cb   :  { %v7286_v35 = vpop.xlane.xlu0 %7285 }
 0x9cc   :  { %7341 = vst [vmem:[#allocation19] sm:$0xff] %v7310_v11  ;;  %11126 = vrcp.f32 %v7286_v35 }
 0x9cd   :  { %v11121_v3 = vpop.eup %11120 }
 0x9ce   :  { %v7312_v61 = vmul.f32 %v11121_v3, %v15612_v27 }
 0x9cf   :  { %v7288_v32 = vpop.xlane.xlu1 %7287 }
 0x9d0   :  { %7342 = vst [vmem:[#allocation19 + $0x8] sm:$0xff] %v7312_v61  ;;  %11128 = vrcp.f32 %v7288_v32 }
 0x9d1   :  { %v11123_v2 = vpop.eup %11122 }
 0x9d2   :  { %v7314_v54 = vmul.f32 %v11123_v2, %v15616_v40 }
 0x9d3   :  { %v7290_v20 = vpop.xlane.xlu0 %7289 }
 0x9d4   :  { %7343 = vst [vmem:[#allocation19 + $0x10] sm:$0xff] %v7314_v54  ;;  %11130 = vrcp.f32 %v7290_v20 }
 0x9d5   :  { %v11125_v16 = vpop.eup %11124 }
 0x9d6   :  { %v7316_v12 = vmul.f32 %v11125_v16, %v15620_v39 }
 0x9d7   :  { %v7292_v43 = vpop.xlane.xlu1 %7291 }
 0x9d8   :  { %7344 = vst [vmem:[#allocation19 + $0x18] sm:$0xff] %v7316_v12  ;;  %11132 = vrcp.f32 %v7292_v43 }
 0x9d9   :  { %v11127_v50 = vpop.eup %11126 }
 0x9da   :  { %v7318_v60 = vmul.f32 %v11127_v50, %v15624_v31 }
 0x9db   :  { %v7294_v46 = vpop.xlane.xlu0 %7293 }
 0x9dc   :  { %7345 = vst [vmem:[#allocation19 + $0x20] sm:$0xff] %v7318_v60  ;;  %11134 = vrcp.f32 %v7294_v46 }
 0x9dd   :  { %v11129_v27 = vpop.eup %11128 }
 0x9de   :  { %v7320_v23 = vmul.f32 %v11129_v27, %v15628_v9 }
 0x9df   :  { %v7296_v30 = vpop.xlane.xlu1 %7295 }
 0x9e0   :  { %7346 = vst [vmem:[#allocation19 + $0x28] sm:$0xff] %v7320_v23  ;;  %11136 = vrcp.f32 %v7296_v30 }
 0x9e1   :  { %v11131_v40 = vpop.eup %11130 }
 0x9e2   :  { %v7322_v36 = vmul.f32 %v11131_v40, %v15632_v37 }
 0x9e3   :  { %v7298_v41 = vpop.xlane.xlu0 %7297 }
 0x9e4   :  { %7347 = vst [vmem:[#allocation19 + $0x30] sm:$0xff] %v7322_v36  ;;  %11138 = vrcp.f32 %v7298_v41 }
 0x9e5   :  { %v11133_v5 = vpop.eup %11132 }
 0x9e6   :  { %v7324_v39 = vmul.f32 %v11133_v5, %v15636_v1 }
 0x9e7   :  { %v7300_v18 = vpop.xlane.xlu1 %7299 }
 0x9e8   :  { %7348 = vst [vmem:[#allocation19 + $0x38] sm:$0xff] %v7324_v39  ;;  %11140 = vrcp.f32 %v7300_v18 }
 0x9e9   :  { %v11135_v59 = vpop.eup %11134 }
 0x9ea   :  { %v7326_v10 = vmul.f32 %v11135_v59, %v15640_v48 }
 0x9eb   :  { %v7302_v31 = vpop.xlane.xlu0 %7301 }
 0x9ec   :  { %7349 = vst [vmem:[#allocation19 + $0x40] sm:$0xff] %v7326_v10  ;;  %11142 = vrcp.f32 %v7302_v31 }
 0x9ed   :  { %v11137_v28 = vpop.eup %11136 }
 0x9ee   :  { %v7328_v49 = vmul.f32 %v11137_v28, %v15644_v13 }
 0x9ef   :  { %v7304_v29 = vpop.xlane.xlu1 %7303 }
 0x9f0   :  { %7350 = vst [vmem:[#allocation19 + $0x48] sm:$0xff] %v7328_v49  ;;  %11144 = vrcp.f32 %v7304_v29 }
 0x9f1   :  { %v11139_v9 = vpop.eup %11138 }
 0x9f2   :  { %v7330_v52 = vmul.f32 %v11139_v9, %v15648_v8 }
 0x9f3   :  { %v7306_v17 = vpop.xlane.xlu0 %7305 }
 0x9f4   :  { %7351 = vst [vmem:[#allocation19 + $0x50] sm:$0xff] %v7330_v52  ;;  %11146 = vrcp.f32 %v7306_v17 }
 0x9f5   :  { %v11141_v53 = vpop.eup %11140 }
 0x9f6   :  { %v7332_v37 = vmul.f32 %v11141_v53, %v15652_v47 }
 0x9f7   :  { %v7308_v57 = vpop.xlane.xlu1 %7307 }
 0x9f8   :  { %7352 = vst [vmem:[#allocation19 + $0x58] sm:$0xff] %v7332_v37  ;;  %11148 = vrcp.f32 %v7308_v57 }
 0x9f9   :  { %v11143_v34 = vpop.eup %11142 }
 0x9fa   :  { %v7334_v6 = vmul.f32 %v11143_v34, %v15655_v62 }
 0x9fc   :  { %7353 = vst [vmem:[#allocation19 + $0x60] sm:$0xff] %v7334_v6 }
 0x9fd   :  { %v11145_v1 = vpop.eup %11144 }
 0x9fe   :  { %v7336_v45 = vmul.f32 %v11145_v1, %v15658_v25 }
 0xa00   :  { %7354 = vst [vmem:[#allocation19 + $0x68] sm:$0xff] %v7336_v45 }
 0xa01   :  { %v11147_v63 = vpop.eup %11146 }
 0xa02   :  { %v7338_v15 = vmul.f32 %v11147_v63, %v15661_v51 }
 0xa04   :  { %7355 = vst [vmem:[#allocation19 + $0x70] sm:$0xff] %v7338_v15 }
 0xa05   :  { %v11149_v48 = vpop.eup %11148 }
 0xa06   :  { %v7340_v55 = vmul.f32 %v11149_v48, %v15664_v44 }
 0xa08   :  { %7356 = vst [vmem:[#allocation19 + $0x78] sm:$0xff] %v7340_v55 }
 0xa09   :  { %11666 = dma.done.wait [#allocation6 + $0x3], 9216 }
 0xa0a   :  { %11667 = vsyncadd [#allocation6 + $0x3], 4294958080  ;;  %v17300_v42 = vld [vmem:[#allocation66_spill] sm:$0xff]  ;;  %v17301_v21 = vmov 0   ;;  %v11156_v8 = vld [vmem:[#allocation5 + $0x7c] ss:$12 sps:$4 sm:$0xff]  }
 0xa0b   :  { %7872 = vmatprep.mubr.bf16.mxu1 %v17300_v42  ;;  %7985 = vmatprep.mubr.bf16.mxu0 %v17301_v21  ;;  %v11150_v13 = vld [vmem:[#allocation5 + $0xac] ss:$12 sps:$4 sm:$0xff]   ;;  %v11152_v56 = vld [vmem:[#allocation5 + $0xa8] ss:$12 sps:$4 sm:$0xff]   ;;  %v11155_v22 = vld [vmem:[#allocation5 + $0x90] ss:$12 sps:$4 sm:$0xff]  }
 0xa0c   :  { %7840 = vmatprep.subr.bf16.mxu1 %v11150_v13  ;;  %v11153_v19 = vld [vmem:[#allocation5 + $0x94] ss:$12 sps:$4 sm:$0xff]   ;;  %v11158_v7 = vld [vmem:[#allocation5 + $0x78] ss:$12 sps:$4 sm:$0xff]   ;;  %v11185_v44 = vld [vmem:[#allocation5 + $0x210] ss:$12 sps:$4 sm:$0xff]  }
 0xa0d   :  { %7841 = vmatpush1.bf16.msra.mxu1 %v11152_v56  ;;  %v11159_v33 = vld [vmem:[#allocation5 + $0x64] ss:$12 sps:$4 sm:$0xff]   ;;  %v11161_v58 = vld [vmem:[#allocation5 + $0x60] ss:$12 sps:$4 sm:$0xff]   ;;  %v11179_v62 = vld [vmem:[#allocation5 + $0x228] ss:$12 sps:$4 sm:$0xff]  }
 0xa0e   :  { %7842 = vmatprep.subr.bf16.mxu1 %v11153_v19  ;;  %v11162_v47 = vld [vmem:[#allocation5 + $0x4c] ss:$12 sps:$4 sm:$0xff]   ;;  %v11164_v25 = vld [vmem:[#allocation5 + $0x48] ss:$12 sps:$4 sm:$0xff]   ;;  %v11167_v4 = vld [vmem:[#allocation5 + $0x30] ss:$12 sps:$4 sm:$0xff]  }
 0xa0f   :  { %v11176_v0 = vld [vmem:[#allocation5 + $0x22c] ss:$12 sps:$4 sm:$0xff]   ;;  %v11182_v51 = vld [vmem:[#allocation5 + $0x214] ss:$12 sps:$4 sm:$0xff]   ;;  %v11188_v14 = vld [vmem:[#allocation5 + $0x1fc] ss:$12 sps:$4 sm:$0xff]  }
 0xa10   :  { %7953 = vmatprep.subr.bf16.mxu0 %v11176_v0  ;;  %v11165_v26 = vld [vmem:[#allocation5 + $0x34] ss:$12 sps:$4 sm:$0xff]   ;;  %v11191_v24 = vld [vmem:[#allocation5 + $0x1f8] ss:$12 sps:$4 sm:$0xff]   ;;  %v11168_v38 = vld [vmem:[#allocation5 + $0x1c] ss:$12 sps:$4 sm:$0xff]  }
 0xa11   :  { %7843 = vmatpush1.bf16.msra.mxu1 %v11155_v22  ;;  %7954 = vmatpush1.bf16.msra.mxu0 %v11179_v62  ;;  %v11194_v11 = vld [vmem:[#allocation5 + $0x1e4] ss:$12 sps:$4 sm:$0xff]   ;;  %v11197_v61 = vld [vmem:[#allocation5 + $0x1e0] ss:$12 sps:$4 sm:$0xff]   ;;  %v11203_v54 = vld [vmem:[#allocation5 + $0x1c8] ss:$12 sps:$4 sm:$0xff]  }
 0xa12   :  { %7844 = vmatprep.subr.bf16.mxu1 %v11156_v8  ;;  %7955 = vmatprep.subr.bf16.mxu0 %v11182_v51  ;;  %v11170_v35 = vld [vmem:[#allocation5 + $0x18] ss:$12 sps:$4 sm:$0xff]   ;;  %v11173_v2 = vld [vmem:[#allocation5] ss:$12 sps:$4 sm:$0xff]   ;;  %v11178_v12 = vld [vmem:[#allocation5 + $0x168] ss:$12 sps:$4 sm:$0xff]  }
 0xa13   :  { %v11171_v3 = vld [vmem:[#allocation5 + $0x4] ss:$12 sps:$4 sm:$0xff]   ;;  %v11200_v32 = vld [vmem:[#allocation5 + $0x1cc] ss:$12 sps:$4 sm:$0xff]   ;;  %v11206_v16 = vld [vmem:[#allocation5 + $0x1b4] ss:$12 sps:$4 sm:$0xff]  }
 0xa14   :  { %v11174_v20 = vld [vmem:[#allocation5 + $0x16c] ss:$12 sps:$4 sm:$0xff]   ;;  %v11180_v43 = vld [vmem:[#allocation5 + $0x154] ss:$12 sps:$4 sm:$0xff]   ;;  %v11209_v50 = vld [vmem:[#allocation5 + $0x1b0] ss:$12 sps:$4 sm:$0xff]  }
 0xa15   :  { %7845 = vmatpush1.bf16.msra.mxu1 %v11158_v7  ;;  %7956 = vmatpush1.bf16.msra.mxu0 %v11185_v44  ;;  %v11212_v60 = vld [vmem:[#allocation5 + $0x19c] ss:$12 sps:$4 sm:$0xff]   ;;  %v11215_v23 = vld [vmem:[#allocation5 + $0x198] ss:$12 sps:$4 sm:$0xff]   ;;  %v11221_v41 = vld [vmem:[#allocation5 + $0x180] ss:$12 sps:$4 sm:$0xff]  }
 0xa16   :  { %7846 = vmatprep.subr.bf16.mxu1 %v11159_v33  ;;  %7957 = vmatprep.subr.bf16.mxu0 %v11188_v14  ;;  %v11184_v46 = vld [vmem:[#allocation5 + $0x150] ss:$12 sps:$4 sm:$0xff]   ;;  %v11190_v40 = vld [vmem:[#allocation5 + $0x138] ss:$12 sps:$4 sm:$0xff]   ;;  %v11196_v39 = vld [vmem:[#allocation5 + $0x120] ss:$12 sps:$4 sm:$0xff]  }
 0xa17   :  { %v11186_v27 = vld [vmem:[#allocation5 + $0x13c] ss:$12 sps:$4 sm:$0xff]   ;;  %v11218_v30 = vld [vmem:[#allocation5 + $0x184] ss:$12 sps:$4 sm:$0xff]   ;;  %v11198_v18 = vld [vmem:[#allocation5 + $0x10c] ss:$12 sps:$4 sm:$0xff]  }
 0xa18   :  { %v11192_v36 = vld [vmem:[#allocation5 + $0x124] ss:$12 sps:$4 sm:$0xff]   ;;  %v17302_v10 = vld [vmem:[#allocation43_spill] sm:$0xff]  ;;  %v11236_v49 = vld [vmem:[#allocation5 + $0x200] ss:$12 sps:$4 sm:$0xff]  }
 0xa19   :  { %7847 = vmatpush1.bf16.msra.mxu1 %v11161_v58  ;;  %7958 = vmatpush1.bf16.msra.mxu0 %v11191_v24  ;;  %v11230_v5 = vld [vmem:[#allocation5 + $0x230] ss:$12 sps:$4 sm:$0xff]   ;;  %v11233_v59 = vld [vmem:[#allocation5 + $0x218] ss:$12 sps:$4 sm:$0xff]   ;;  %v11202_v31 = vld [vmem:[#allocation5 + $0x108] ss:$12 sps:$4 sm:$0xff]  }
 0xa1a   :  { %7848 = vmatprep.subr.bf16.mxu1 %v11162_v47  ;;  %7959 = vmatprep.subr.bf16.mxu0 %v11194_v11  ;;  %v11204_v28 = vld [vmem:[#allocation5 + $0xf4] ss:$12 sps:$4 sm:$0xff]   ;;  %v11208_v29 = vld [vmem:[#allocation5 + $0xf0] ss:$12 sps:$4 sm:$0xff]   ;;  %v17303_v17 = vld [vmem:[#allocation45_spill] sm:$0xff] }
 0xa1b   :  { %v11210_v9 = vld [vmem:[#allocation5 + $0xdc] ss:$12 sps:$4 sm:$0xff]   ;;  %v11214_v53 = vld [vmem:[#allocation5 + $0xd8] ss:$12 sps:$4 sm:$0xff]   ;;  %v11220_v34 = vld [vmem:[#allocation5 + $0xc0] ss:$12 sps:$4 sm:$0xff]  }
 0xa1c   :  { %v11237_v52 = vld [vmem:[#allocation5 + $0x1e8] ss:$12 sps:$4 sm:$0xff]   ;;  %v11216_v37 = vld [vmem:[#allocation5 + $0xc4] ss:$12 sps:$4 sm:$0xff]   ;;  %v11244_v48 = vld [vmem:[#allocation5 + $0x1a0] ss:$12 sps:$4 sm:$0xff]  }
 0xa1d   :  { %7849 = vmatpush1.bf16.msra.mxu1 %v11164_v25  ;;  %7960 = vmatpush1.bf16.msra.mxu0 %v11197_v61  ;;  %v11240_v57 = vld [vmem:[#allocation5 + $0x1d0] ss:$12 sps:$4 sm:$0xff]   ;;  %v11241_v1 = vld [vmem:[#allocation5 + $0x1b8] ss:$12 sps:$4 sm:$0xff]   ;;  %v11226_v19 = vld [vmem:[#allocation5 + $0x140] ss:$12 sps:$4 sm:$0xff]  }
 0xa1e   :  { %7850 = vmatprep.subr.bf16.mxu1 %v11165_v26  ;;  %7961 = vmatprep.subr.bf16.mxu0 %v11200_v32  ;;  %v11222_v6 = vld [vmem:[#allocation5 + $0x170] ss:$12 sps:$4 sm:$0xff]   ;;  %v11224_v15 = vld [vmem:[#allocation5 + $0x158] ss:$12 sps:$4 sm:$0xff]   ;;  %v11245_v22 = vld [vmem:[#allocation5 + $0x188] ss:$12 sps:$4 sm:$0xff]  }
 0xa1f   :  { %v17304_v45 = vld [vmem:[#allocation47_spill] sm:$0xff]  ;;  %v17305_v55 = vld [vmem:[#allocation68_spill] sm:$0xff]  ;;  %v17306_v13 = vld [vmem:[#allocation46_spill] sm:$0xff] }
 0xa20   :  { %v11223_v63 = vld [vmem:[#allocation5 + $0xb0] ss:$12 sps:$4 sm:$0xff]   ;;  %v11225_v56 = vld [vmem:[#allocation5 + $0x98] ss:$12 sps:$4 sm:$0xff]   ;;  %v11227_v7 = vld [vmem:[#allocation5 + $0x80] ss:$12 sps:$4 sm:$0xff]  }
 0xa21   :  { %7851 = vmatpush1.bf16.msra.mxu1 %v11167_v4  ;;  %7962 = vmatpush1.bf16.msra.mxu0 %v11203_v54  ;;  %v17307_v8 = vld [vmem:[#allocation48_spill] sm:$0xff]  ;;  %v11228_v33 = vld [vmem:[#allocation5 + $0x128] ss:$12 sps:$4 sm:$0xff]  }
 0xa22   :  { %7852 = vmatprep.subr.bf16.mxu1 %v11168_v38  ;;  %7963 = vmatprep.subr.bf16.mxu0 %v11206_v16  ;;  %v17308_v58 = vld [vmem:[#allocation50_spill] sm:$0xff]  ;;  %v17309_v47 = vld [vmem:[#allocation69_spill] sm:$0xff]  ;;  %v17311_v26 = vld [vmem:[#allocation51_spill] sm:$0xff] }
 0xa23   :  { %v11229_v0 = vld [vmem:[#allocation5 + $0x68] ss:$12 sps:$4 sm:$0xff]   ;;  %v11231_v62 = vld [vmem:[#allocation5 + $0x110] ss:$12 sps:$4 sm:$0xff]   ;;  %v11234_v44 = vld [vmem:[#allocation5 + $0xf8] ss:$12 sps:$4 sm:$0xff]  }
 0xa24   :  { %v17310_v25 = vld [vmem:[#allocation49_spill] sm:$0xff]  ;;  %v11232_v51 = vld [vmem:[#allocation5 + $0x50] ss:$12 sps:$4 sm:$0xff]  }
 0xa25   :  { %7853 = vmatpush1.bf16.msra.mxu1 %v11170_v35  ;;  %7964 = vmatpush1.bf16.msra.mxu0 %v11209_v50  ;;  %v17312_v14 = vld [vmem:[#allocation53_spill] sm:$0xff]  ;;  %v17313_v38 = vld [vmem:[#allocation55_spill] sm:$0xff]  ;;  %v17315_v61 = vld [vmem:[#allocation54_spill] sm:$0xff] }
 0xa26   :  { %7854 = vmatprep.subr.bf16.mxu1 %v11171_v3  ;;  %7965 = vmatprep.subr.bf16.mxu0 %v11212_v60  ;;  %v11235_v4 = vld [vmem:[#allocation5 + $0x38] ss:$12 sps:$4 sm:$0xff]   ;;  %v11238_v24 = vld [vmem:[#allocation5 + $0xe0] ss:$12 sps:$4 sm:$0xff]   ;;  %v11242_v35 = vld [vmem:[#allocation5 + $0xc8] ss:$12 sps:$4 sm:$0xff]  }
 0xa27   :  { %v11239_v11 = vld [vmem:[#allocation5 + $0x20] ss:$12 sps:$4 sm:$0xff]   ;;  %v11243_v32 = vld [vmem:[#allocation5 + $0x8] ss:$12 sps:$4 sm:$0xff]  }
 0xa28   :  { %v17314_v3 = vld [vmem:[#allocation52_spill] sm:$0xff]  ;;  %v17319_v16 = vld [vmem:[#allocation58_spill] sm:$0xff]  ;;  %v17322_v50 = vld [vmem:[#allocation71_spill] sm:$0xff] }
 0xa29   :  { %7855 = vmatpush1.bf16.msra.mxu1 %v11173_v2  ;;  %7966 = vmatpush1.bf16.msra.mxu0 %v11215_v23  ;;  %v17316_v2 = vld [vmem:[#allocation57_spill] sm:$0xff]  ;;  %v17317_v54 = vld [vmem:[#allocation56_spill] sm:$0xff]  ;;  %v17324_v60 = vld [vmem:[#allocation62_spill] sm:$0xff] }
 0xa2a   :  { %7856 = vmatprep.subr.bf16.mxu1 %v11174_v20  ;;  %7967 = vmatprep.subr.bf16.mxu0 %v11218_v30  ;;  %v17318_v20 = vld [vmem:[#allocation84_spill] sm:$0xff] }
 0xa2d   :  { %7857 = vmatpush2.bf16.msra.mxu1 %v11178_v12  ;;  %7968 = vmatpush1.bf16.msra.mxu0 %v11221_v41  ;;  %v17320_v12 = vld [vmem:[#allocation70_spill] sm:$0xff] }
 0xa2e   :  { %7858 = vmatprep.subr.bf16.mxu1 %v11180_v43  ;;  %10112 = vmatprep.subr.bf16.mxu0 %v11230_v5  ;;  %v17321_v43 = vld [vmem:[#allocation85_spill] sm:$0xff] }
 0xa30   :  { %7986 = vmatmul.mubr.bf16.vlgmr.msra.gmra.mxu0 %v17302_v10 }
 0xa31   :  { %7859 = vmatpush2.bf16.msra.mxu1 %v11184_v46  ;;  %7995 = vmatprep.mubr.bf16.mxu0 %v17301_v21 }
 0xa32   :  { %7860 = vmatprep.subr.bf16.mxu1 %v11186_v27  ;;  %10113 = vmatpush3.bf16.msra.mxu0 %v11230_v5 }
 0xa33   :  { %10114 = vmatprep.subr.bf16.mxu0 %v11233_v59 }
 0xa35   :  { %7861 = vmatpush2.bf16.msra.mxu1 %v11190_v40 }
 0xa36   :  { %7862 = vmatprep.subr.bf16.mxu1 %v11192_v36  ;;  %10115 = vmatpush3.bf16.msra.mxu0 %v11233_v59 }
 0xa37   :  { %10116 = vmatprep.subr.bf16.mxu0 %v11236_v49 }
 0xa38   :  { %7996 = vmatmul.mubr.bf16.gmra.mxu0 %v17303_v17 }
 0xa39   :  { %7863 = vmatpush2.bf16.msra.mxu1 %v11196_v39  ;;  %8005 = vmatprep.mubr.bf16.mxu0 %v17301_v21 }
 0xa3a   :  { %7864 = vmatprep.subr.bf16.mxu1 %v11198_v18  ;;  %10117 = vmatpush3.bf16.msra.mxu0 %v11236_v49 }
 0xa3b   :  { %10118 = vmatprep.subr.bf16.mxu0 %v11237_v52 }
 0xa3d   :  { %7865 = vmatpush2.bf16.msra.mxu1 %v11202_v31 }
 0xa3e   :  { %7866 = vmatprep.subr.bf16.mxu1 %v11204_v28  ;;  %10119 = vmatpush3.bf16.msra.mxu0 %v11237_v52 }
 0xa3f   :  { %10120 = vmatprep.subr.bf16.mxu0 %v11240_v57 }
 0xa40   :  { %8006 = vmatmul.mubr.bf16.gmra.mxu0 %v17304_v45 }
 0xa41   :  { %7867 = vmatpush2.bf16.msra.mxu1 %v11208_v29  ;;  %8015 = vmatprep.mubr.bf16.mxu0 %v17301_v21 }
 0xa42   :  { %7868 = vmatprep.subr.bf16.mxu1 %v11210_v9  ;;  %10121 = vmatpush3.bf16.msra.mxu0 %v11240_v57 }
 0xa43   :  { %10122 = vmatprep.subr.bf16.mxu0 %v11241_v1 }
 0xa45   :  { %7869 = vmatpush2.bf16.msra.mxu1 %v11214_v53 }
 0xa46   :  { %7870 = vmatprep.subr.bf16.mxu1 %v11216_v37  ;;  %10123 = vmatpush3.bf16.msra.mxu0 %v11241_v1 }
 0xa47   :  { %10124 = vmatprep.subr.bf16.mxu0 %v11244_v48 }
 0xa48   :  { %8016 = vmatmul.mubr.bf16.gmra.mxu0 %v17307_v8 }
 0xa49   :  { %7871 = vmatpush2.bf16.msra.mxu1 %v11220_v34  ;;  %8025 = vmatprep.mubr.bf16.mxu0 %v17301_v21 }
 0xa4a   :  { %10032 = vmatprep.subr.bf16.mxu1 %v11222_v6  ;;  %10125 = vmatpush3.bf16.msra.mxu0 %v11244_v48 }
 0xa4b   :  { %10126 = vmatprep.subr.bf16.mxu0 %v11245_v22 }
 0xa4c   :  { %7873 = vmatmul.mubr.bf16.vlgmr.msra.gmra.mxu1 %v17305_v55 }
 0xa4d   :  { %10033 = vmatpush3.bf16.msra.mxu1 %v11223_v63  ;;  %7882 = vmatprep.mubr.bf16.mxu1 %v17306_v13 }
 0xa4e   :  { %10034 = vmatprep.subr.bf16.mxu1 %v11224_v15  ;;  %10127 = vmatpush3.bf16.msra.mxu0 %v11245_v22 }
 0xa50   :  { %8026 = vmatmul.mubr.bf16.gmra.mxu0 %v17310_v25 }
 0xa51   :  { %10035 = vmatpush3.bf16.msra.mxu1 %v11225_v56  ;;  %8035 = vmatprep.mubr.bf16.mxu0 %v17301_v21 }
 0xa52   :  { %10036 = vmatprep.subr.bf16.mxu1 %v11226_v19 }
 0xa54   :  { %7883 = vmatmul.mubr.bf16.gmra.mxu1 %v17308_v58 }
 0xa55   :  { %7892 = vmatprep.mubr.bf16.mxu1 %v17309_v47  ;;  %10037 = vmatpush3.bf16.msra.mxu1 %v11227_v7 }
 0xa56   :  { %10038 = vmatprep.subr.bf16.mxu1 %v11228_v33 }
 0xa58   :  { %8036 = vmatmul.mubr.bf16.gmra.mxu0 %v17313_v38 }
 0xa59   :  { %10039 = vmatpush3.bf16.msra.mxu1 %v11229_v0  ;;  %8045 = vmatprep.mubr.bf16.mxu0 %v17301_v21 }
 0xa5a   :  { %10040 = vmatprep.subr.bf16.mxu1 %v11231_v62 }
 0xa5c   :  { %7893 = vmatmul.mubr.bf16.gmra.mxu1 %v17311_v26 }
 0xa5d   :  { %7902 = vmatprep.mubr.bf16.mxu1 %v17312_v14  ;;  %10041 = vmatpush3.bf16.msra.mxu1 %v11232_v51 }
 0xa5e   :  { %10042 = vmatprep.subr.bf16.mxu1 %v11234_v44 }
 0xa60   :  { %8046 = vmatmul.mubr.bf16.gmra.mxu0 %v17316_v2 }
 0xa61   :  { %10043 = vmatpush3.bf16.msra.mxu1 %v11235_v4  ;;  %8055 = vmatprep.mubr.bf16.mxu0 %v17301_v21  ;;  %v17323_v21 = vld [vmem:[#allocation60_spill] sm:$0xff] }
 0xa62   :  { %10044 = vmatprep.subr.bf16.mxu1 %v11238_v24 }
 0xa64   :  { %7903 = vmatmul.mubr.bf16.gmra.mxu1 %v17314_v3 }
 0xa65   :  { %7912 = vmatprep.mubr.bf16.mxu1 %v17315_v61  ;;  %10045 = vmatpush3.bf16.msra.mxu1 %v11239_v11 }
 0xa66   :  { %10046 = vmatprep.subr.bf16.mxu1 %v11242_v35 }
 0xa68   :  { %8056 = vmatmul.mubr.bf16.gmra.mxu0 %v17319_v16 }
 0xa69   :  { %10047 = vmatpush3.bf16.msra.mxu1 %v11243_v32  ;;  %10128 = vmatprep.mubr.bf16.mxu0 %v17302_v10 }
 0xa6c   :  { %7913 = vmatmul.mubr.bf16.gmra.mxu1 %v17317_v54 }
 0xa6d   :  { %7922 = vmatprep.mubr.bf16.mxu1 %v17318_v20 }
 0xa70   :  { %10129 = vmatmul.mubr.bf16.vlgmr.msra.gmra.mxu0 %v17303_v17 }
 0xa71   :  { %10132 = vmatprep.mubr.bf16.mxu0 %v17304_v45 }
 0xa74   :  { %7923 = vmatmul.mubr.bf16.gmra.mxu1 %v17320_v12 }
 0xa75   :  { %7932 = vmatprep.mubr.bf16.mxu1 %v17321_v43 }
 0xa78   :  { %10133 = vmatmul.mubr.bf16.gmra.mxu0 %v17307_v8 }
 0xa79   :  { %10136 = vmatprep.mubr.bf16.mxu0 %v17310_v25 }
 0xa7c   :  { %7933 = vmatmul.mubr.bf16.gmra.mxu1 %v17322_v50 }
 0xa7d   :  { %7942 = vmatprep.mubr.bf16.mxu1 %v17323_v21 }
 0xa80   :  { %10137 = vmatmul.mubr.bf16.gmra.mxu0 %v17313_v38 }
 0xa81   :  { %10140 = vmatprep.mubr.bf16.mxu0 %v17316_v2 }
 0xa84   :  { %7943 = vmatmul.mubr.bf16.gmra.mxu1 %v17324_v60 }
 0xa85   :  { %8098 = vmatprep.mubr.bf16.mxu1 %v17300_v42 }
 0xa88   :  { %10141 = vmatmul.mubr.bf16.gmra.mxu0 %v17319_v16 }
 0xa8c   :  { %8099 = vmatmul.mubr.bf16.vlgmr.msra.gmra.mxu1 %v17305_v55 }
 0xa8d   :  { %8106 = vmatprep.mubr.bf16.mxu1 %v17306_v13 }
 0xa94   :  { %8107 = vmatmul.mubr.bf16.gmra.mxu1 %v17308_v58 }
 0xa95   :  { %8114 = vmatprep.mubr.bf16.mxu1 %v17309_v47 }
 0xa9c   :  { %8115 = vmatmul.mubr.bf16.gmra.mxu1 %v17311_v26 }
 0xa9d   :  { %8122 = vmatprep.mubr.bf16.mxu1 %v17312_v14 }
 0xaa4   :  { %8123 = vmatmul.mubr.bf16.gmra.mxu1 %v17314_v3 }
 0xaa5   :  { %8130 = vmatprep.mubr.bf16.mxu1 %v17315_v61 }
 0xaac   :  { %8131 = vmatmul.mubr.bf16.gmra.mxu1 %v17317_v54 }
 0xaad   :  { %8138 = vmatprep.mubr.bf16.mxu1 %v17318_v20 }
 0xab4   :  { %8139 = vmatmul.mubr.bf16.gmra.mxu1 %v17320_v12 }
 0xab5   :  { %8146 = vmatprep.mubr.bf16.mxu1 %v17321_v43 }
 0xabc   :  { %8147 = vmatmul.mubr.bf16.gmra.mxu1 %v17322_v50 }
 0xabd   :  { %8154 = vmatprep.mubr.bf16.mxu1 %v17323_v21 }
 0xac4   :  { %8155 = vmatmul.mubr.bf16.gmra.mxu1 %v17324_v60 }
 0xaf0   :  { %v7987_v42 = vpop.f32.mrf.mxu0 }
 0xaf2   :  { %v7989_v46 = vpop.f32.mrf.mxu0 }
 0xaf4   :  { %v7991_v27 = vpop.f32.mrf.mxu0 }
 0xaf6   :  { %v15739_v23 = vpop.f32.mrf.mxu0 }
 0xaf8   :  { %v15741_v30 = vpop.f32.mrf.mxu0 }
 0xafa   :  { %v15743_v40 = vpop.f32.mrf.mxu0 }
 0xafc   :  { %v15745_v36 = vpop.f32.mrf.mxu0 }
 0xafe   :  { %v15747_v41 = vpop.f32.mrf.mxu0 }
 0xb00   :  { %v15749_v5 = vpop.f32.mrf.mxu0 }
 0xb02   :  { %v15751_v39 = vpop.f32.mrf.mxu0 }
 0xb04   :  { %v15753_v59 = vpop.f32.mrf.mxu0 }
 0xb06   :  { %v15757_v28 = vpop.f32.mrf.mxu0 }
 0xb08   :  { %v15761_v9 = vpop.f32.mrf.mxu0 }
 0xb0a   :  { %v15765_v53 = vpop.f32.mrf.mxu0 }
 0xb0c   :  { %v7874_v18 = vpop.f32.mrf.mxu1  ;;  %v15767_v57 = vpop.f32.mrf.mxu0 }
 0xb0d   :  { %v15755_v10 = vadd.f32 %v7987_v42, %v7874_v18 }
 0xb0e   :  { %v7876_v31 = vpop.f32.mrf.mxu1  ;;  %v15769_v6 = vpop.f32.mrf.mxu0 }
 0xb0f   :  { %v15759_v49 = vadd.f32 %v7989_v46, %v7876_v31 }
 0xb10   :  { %v7878_v29 = vpop.f32.mrf.mxu1  ;;  %v15771_v45 = vpop.f32.mrf.mxu0 }
 0xb11   :  { %v15763_v52 = vadd.f32 %v7991_v27, %v7878_v29 }
 0xb12   :  { %v7880_v17 = vpop.f32.mrf.mxu1  ;;  %v15773_v15 = vpop.f32.mrf.mxu0 }
 0xb13   :  { %17325 = vst [vmem:[#allocation75_spill] sm:$0xff] %v15763_v52  ;;  %v15842_v27 = vadd.f32 %v15739_v23, %v7880_v17 }
 0xb14   :  { %v7884_v37 = vpop.f32.mrf.mxu1  ;;  %v15775_v55 = vpop.f32.mrf.mxu0 }
 0xb15   :  { %17333 = vst [vmem:[#allocation93_spill] sm:$0xff] %v15842_v27  ;;  %v15845_v18 = vadd.f32 %v15741_v30, %v7884_v37  ;;  %v8332_v23 = vmul.f32 %v15842_v27, %v15842_v27 }
 0xb16   :  { %v7886_v34 = vpop.f32.mrf.mxu1  ;;  %v15777_v56 = vpop.f32.mrf.mxu0 }
 0xb17   :  { %v8334_v37 = vmul.f32 %v15845_v18, %v15845_v18 }
 0xb18   :  { %v7888_v1 = vpop.f32.mrf.mxu1  ;;  %v15779_v22 = vpop.f32.mrf.mxu0 }
 0xb19   :  { %v15863_v30 = vadd.f32 %v15745_v36, %v7888_v1  ;;  %v8262_v1 = vadd.f32 %v15763_v52, %v15755_v10 }
 0xb1a   :  { %v7890_v63 = vpop.f32.mrf.mxu1  ;;  %v15783_v33 = vpop.f32.mrf.mxu0 }
 0xb1b   :  { %v15866_v17 = vadd.f32 %v15747_v41, %v7890_v63 }
 0xb1c   :  { %v7894_v48 = vpop.f32.mrf.mxu1  ;;  %v15789_v0 = vpop.f32.mrf.mxu0 }
 0xb1d   :  { %v15879_v36 = vadd.f32 %v15749_v5, %v7894_v48  ;;  %v8338_v5 = vmul.f32 %v15866_v17, %v15866_v17  ;;  %v8263_v48 = vadd.f32 %v8262_v1, %v15845_v18 }
 0xb1e   :  { %v7896_v13 = vpop.f32.mrf.mxu1  ;;  %v15795_v51 = vpop.f32.mrf.mxu0 }
 0xb1f   :  { %v15882_v41 = vadd.f32 %v15751_v39, %v7896_v13 }
 0xb20   :  { %v7898_v19 = vpop.f32.mrf.mxu1  ;;  %v15801_v14 = vpop.f32.mrf.mxu0 }
 0xb21   :  { %v15897_v39 = vadd.f32 %v15753_v59, %v7898_v19  ;;  %v8264_v59 = vadd.f32 %v8263_v48, %v15863_v30 }
 0xb22   :  { %v7900_v8 = vpop.f32.mrf.mxu1  ;;  %v15807_v38 = vpop.f32.mrf.mxu0 }
 0xb23   :  { %v8343_v1 = vmul.f32 %v15897_v39, %v15897_v39 }
 0xb24   :  { %v15781_v7 = vpop.f32.mrf.mxu1  ;;  %v15813_v3 = vpop.f32.mrf.mxu0 }
 0xb25   :  { %v15913_v19 = vadd.f32 %v15761_v9, %v15781_v7 }
 0xb26   :  { %v15785_v58 = vpop.f32.mrf.mxu1  ;;  %v15819_v2 = vpop.f32.mrf.mxu0 }
 0xb27   :  { %v8346_v48 = vmul.f32 %v15913_v19, %v15913_v19 }
 0xb28   :  { %v15787_v47 = vpop.f32.mrf.mxu1  ;;  %v15825_v16 = vpop.f32.mrf.mxu0 }
 0xb29   :  { %17326 = vst [vmem:[#allocation74_spill] sm:$0xff] %v15825_v16  ;;  %v15852_v16 = vadd.f32 %v15743_v40, %v7886_v34  ;;  %v8328_v40 = vmul.f32 %v15755_v10, %v15755_v10  ;;  %v15930_v9 = vadd.f32 %v15767_v57, %v15787_v47 }
 0xb2a   :  { %v15791_v62 = vpop.f32.mrf.mxu1  ;;  %v15831_v50 = vpop.f32.mrf.mxu0 }
 0xb2b   :  { %17328 = vst [vmem:[#allocation61_spill] sm:$0xff] %v15831_v50 }
 0xb2c   :  { %v15793_v25 = vpop.f32.mrf.mxu1  ;;  %v15837_v42 = vpop.f32.mrf.mxu0 }
 0xb2d   :  { %17331 = vst [vmem:[#allocation77_spill] sm:$0xff] %v15837_v42  ;;  %v15946_v57 = vadd.f32 %v15771_v45, %v15793_v25 }
 0xb2e   :  { %v15797_v44 = vpop.f32.mrf.mxu1  ;;  %v15847_v31 = vpop.f32.mrf.mxu0 }
 0xb2f   :  { %17334 = vst [vmem:[#allocation63_spill] sm:$0xff] %v15847_v31  ;;  %v8335_v31 = vmul.f32 %v15852_v16, %v15852_v16 }
 0xb30   :  { %v15799_v26 = vpop.f32.mrf.mxu1  ;;  %v15858_v42 = vpop.f32.mrf.mxu0 }
 0xb31   :  { %17337 = vst [vmem:[#allocation78_spill] sm:$0xff] %v15858_v42  ;;  %v8329_v42 = vmul.f32 %v15759_v49, %v15759_v49 }
 0xb32   :  { %v15803_v4 = vpop.f32.mrf.mxu1 }
 0xb33   :  { %v8397_v50 = vadd.f32 %v8332_v23, %v8329_v42  ;;  %v8340_v23 = vmul.f32 %v15879_v36, %v15879_v36 }
 0xb34   :  { %v15805_v24 = vpop.f32.mrf.mxu1 }
 0xb35   :  { %v8398_v42 = vadd.f32 %v8397_v50, %v8335_v31 }
 0xb36   :  { %v15809_v11 = vpop.f32.mrf.mxu1 }
 0xb38   :  { %v15811_v35 = vpop.f32.mrf.mxu1 }
 0xb3a   :  { %v15815_v61 = vpop.f32.mrf.mxu1 }
 0xb3c   :  { %v15817_v32 = vpop.f32.mrf.mxu1 }
 0xb3e   :  { %v15821_v54 = vpop.f32.mrf.mxu1 }
 0xb40   :  { %v15823_v20 = vpop.f32.mrf.mxu1 }
 0xb42   :  { %v15827_v12 = vpop.f32.mrf.mxu1 }
 0xb44   :  { %v15829_v43 = vpop.f32.mrf.mxu1 }
 0xb45   :  { %17327 = vst [vmem:[#allocation99_spill] sm:$0xff] %v15829_v43 }
 0xb46   :  { %v15833_v21 = vpop.f32.mrf.mxu1 }
 0xb47   :  { %17329 = vst [vmem:[#allocation92_spill] sm:$0xff] %v15833_v21  ;;  %v8337_v21 = vmul.f32 %v15863_v30, %v15863_v30 }
 0xb48   :  { %v15835_v60 = vpop.f32.mrf.mxu1 }
 0xb49   :  { %17330 = vst [vmem:[#allocation67_spill] sm:$0xff] %v15835_v60  ;;  %v8331_v60 = vmul.f32 %v15763_v52, %v15763_v52  ;;  %v8341_v52 = vmul.f32 %v15882_v41, %v15882_v41 }
 0xb4a   :  { %v15839_v46 = vpop.f32.mrf.mxu1 }
 0xb4b   :  { %17332 = vst [vmem:[#allocation83_spill] sm:$0xff] %v15839_v46  ;;  %v8376_v63 = vadd.f32 %v8331_v60, %v8328_v40  ;;  %v8283_v46 = vadd.f32 %v15842_v27, %v15759_v49  ;;  %v15901_v60 = vadd.f32 %v15757_v28, %v7900_v8  ;;  %v15917_v28 = vadd.f32 %v15765_v53, %v15785_v58 }
 0xb4c   :  { %v15849_v29 = vpop.f32.mrf.mxu1  ;;  %v15934_v53 = vadd.f32 %v15769_v6, %v15791_v62  ;;  %v8265_v58 = vadd.f32 %v8264_v59, %v15879_v36  ;;  %v15950_v6 = vadd.f32 %v15773_v15, %v15797_v44  ;;  %v15964_v15 = vadd.f32 %v15775_v55, %v15799_v26 }
 0xb4d   :  { %17335 = vst [vmem:[#allocation65_spill] sm:$0xff] %v15849_v29  ;;  %v8377_v13 = vadd.f32 %v8376_v63, %v8334_v37  ;;  %v8284_v27 = vadd.f32 %v8283_v46, %v15852_v16  ;;  %v8399_v37 = vadd.f32 %v8398_v42, %v8338_v5  ;;  %v8344_v63 = vmul.f32 %v15901_v60, %v15901_v60 }
 0xb4e   :  { %v15856_v43 = vpop.f32.mrf.mxu1  ;;  %v8350_v45 = vmul.f32 %v15934_v53, %v15934_v53  ;;  %v8353_v55 = vmul.f32 %v15950_v6, %v15950_v6 }
 0xb4f   :  { %17336 = vst [vmem:[#allocation76_spill] sm:$0xff] %v15856_v43  ;;  %v15888_v43 = vpop.f32.mrf.mxu0  ;;  %v8378_v50 = vadd.f32 %v8377_v13, %v8337_v21  ;;  %v8285_v31 = vadd.f32 %v8284_v27, %v15866_v17  ;;  %v8400_v5 = vadd.f32 %v8399_v37, %v8341_v52  ;;  %v8347_v13 = vmul.f32 %v15917_v28, %v15917_v28 }
 0xb50   :  { %v15872_v34 = vpop.f32.mrf.mxu1  ;;  %v8266_v52 = vadd.f32 %v8265_v58, %v15897_v39 }
 0xb51   :  { %v15919_v8 = vpop.f32.mrf.mxu0  ;;  %v8379_v21 = vadd.f32 %v8378_v50, %v8340_v23  ;;  %v8286_v27 = vadd.f32 %v8285_v31, %v15882_v41  ;;  %v8401_v59 = vadd.f32 %v8400_v5, %v8344_v63  ;;  %v8349_v50 = vmul.f32 %v15930_v9, %v15930_v9 }
 0xb52   :  { %v15890_v29 = vpop.f32.mrf.mxu1  ;;  %v8267_v31 = vadd.f32 %v8266_v52, %v15913_v19  ;;  %v15985_v5 = vadd.f32 %v15779_v22, %v15805_v24  ;;  %v8355_v52 = vmul.f32 %v15964_v15, %v15964_v15  ;;  %v16007_v24 = vadd.f32 %v15795_v51, %v15815_v61 }
 0xb53   :  { %v15952_v47 = vpop.f32.mrf.mxu0  ;;  %v8380_v42 = vadd.f32 %v8379_v21, %v8343_v1  ;;  %v8287_v23 = vadd.f32 %v8286_v27, %v15901_v60  ;;  %v15974_v1 = vadd.f32 %v15777_v56, %v15803_v4  ;;  %v8402_v58 = vadd.f32 %v8401_v59, %v8347_v13 }
 0xb54   :  { %v15903_v40 = vpop.f32.mrf.mxu1  ;;  %v8352_v21 = vmul.f32 %v15946_v57, %v15946_v57  ;;  %17338 = vst [vmem:[#allocation42_spill] sm:$0xff] %v15985_v5  ;;  %v15989_v56 = vadd.f32 %v15783_v33, %v15809_v11  ;;  %v8268_v4 = vadd.f32 %v8267_v31, %v15930_v9  ;;  %v16003_v33 = vadd.f32 %v15789_v0, %v15811_v35 }
 0xb55   :  { %v15968_v44 = vpop.f32.mrf.mxu0  ;;  %v8288_v37 = vadd.f32 %v8287_v23, %v15917_v28  ;;  %v8381_v63 = vadd.f32 %v8380_v42, %v8346_v48  ;;  %v8403_v13 = vadd.f32 %v8402_v58, %v8350_v45  ;;  %v8356_v22 = vmul.f32 %v15974_v1, %v15974_v1 }
 0xb56   :  { %v15921_v46 = vpop.f32.mrf.mxu1  ;;  %17339 = vst [vmem:[#allocation44_spill] sm:$0xff] %v15989_v56  ;;  %v8269_v11 = vadd.f32 %v8268_v4, %v15946_v57  ;;  %v8359_v58 = vmul.f32 %v15989_v56, %v15989_v56  ;;  %v16017_v0 = vadd.f32 %v15801_v14, %v15817_v32  ;;  %v16022_v61 = vadd.f32 %v15807_v38, %v15821_v54 }
 0xb57   :  { %v8289_v27 = vadd.f32 %v8288_v37, %v15934_v53  ;;  %v8382_v48 = vadd.f32 %v8381_v63, %v8349_v50  ;;  %v15996_v23 = vpop.f32.mrf.mxu0  ;;  %v8404_v45 = vadd.f32 %v8403_v13, %v8353_v55  ;;  %v8358_v63 = vmul.f32 %v15985_v5, %v15985_v5 }
 0xb58   :  { %v15936_v7 = vpop.f32.mrf.mxu1  ;;  %17340 = vst [vmem:[#allocation97_spill] sm:$0xff] %v16017_v0  ;;  %v8270_v51 = vadd.f32 %v8269_v11, %v15964_v15  ;;  %17341 = vst [vmem:[#allocation86_spill] sm:$0xff] %v16022_v61  ;;  %v8362_v14 = vmul.f32 %v16007_v24, %v16007_v24  ;;  %v16034_v13 = vadd.f32 %v15819_v2, %v15827_v12 }
 0xb59   :  { %v8290_v59 = vadd.f32 %v8289_v27, %v15950_v6  ;;  %v8383_v50 = vadd.f32 %v8382_v48, %v8352_v21  ;;  %v16024_v21 = vpop.f32.mrf.mxu0  ;;  %v8405_v27 = vadd.f32 %v8404_v45, %v8356_v22  ;;  %v8361_v48 = vmul.f32 %v16003_v33, %v16003_v33 }
 0xb5a   :  { %v15954_v62 = vpop.f32.mrf.mxu1  ;;  %v8271_v32 = vadd.f32 %v8270_v51, %v15985_v5  ;;  %17342 = vst [vmem:[#allocation87_spill] sm:$0xff] %v16034_v13  ;;  %v8364_v22 = vmul.f32 %v16017_v0, %v16017_v0  ;;  %v16044_v45 = vadd.f32 %v15813_v3, %v15823_v20  ;;  %v10053_v2 = vadd.f32 %v15890_v29, %v15872_v34  ;;  %v17347_v3 = vld [vmem:[#allocation65_spill] sm:$0xff]  ;;  %v17348_v20 = vld [vmem:[#allocation76_spill] sm:$0xff] }
 0xb5b   :  { %v8291_v37 = vadd.f32 %v8290_v59, %v15974_v1  ;;  %v8384_v35 = vadd.f32 %v8383_v50, %v8355_v52  ;;  %v8406_v52 = vadd.f32 %v8405_v27, %v8359_v58  ;;  %v8365_v50 = vmul.f32 %v16022_v61, %v16022_v61  ;;  %v8216_v12 = vpop.f32.mrf.mxu0  ;;  %v17345_v27 = vld [vmem:[#allocation61_spill] sm:$0xff] }
 0xb5c   :  { %v15966_v25 = vpop.f32.mrf.mxu1  ;;  %v8272_v11 = vadd.f32 %v8271_v32, %v16003_v33  ;;  %17343 = vst [vmem:[#allocation100_spill] sm:$0xff] %v16044_v45  ;;  %v10050_v5 = vadd.f32 %v17348_v20, %v17347_v3  ;;  %v10056_v29 = vadd.f32 %v15921_v46, %v15903_v40  ;;  %v16073_v20 = vadd.f32 %v10053_v2, %v15952_v47  ;;  %v17358_v2 = vld [vmem:[#allocation78_spill] sm:$0xff] }
 0xb5d   :  { %v8292_v4 = vadd.f32 %v8291_v37, %v15989_v56  ;;  %v8385_v54 = vadd.f32 %v8384_v35, %v8358_v63  ;;  %v8407_v58 = vadd.f32 %v8406_v52, %v8362_v14  ;;  %v17344_v35 = vld [vmem:[#allocation92_spill] sm:$0xff]  ;;  %v8368_v56 = vmul.f32 %v16034_v13, %v16034_v13  ;;  %v17349_v52 = vld [vmem:[#allocation99_spill] sm:$0xff] }
 0xb5e   :  { %v15980_v26 = vpop.f32.mrf.mxu1  ;;  %v8273_v32 = vadd.f32 %v8272_v11, %v16017_v0  ;;  %v17352_v11 = vld [vmem:[#allocation83_spill] sm:$0xff]  ;;  %v10059_v40 = vadd.f32 %v15954_v62, %v15936_v7  ;;  %v16087_v47 = vadd.f32 %v10050_v5, %v15888_v43  ;;  %v8333_v43 = vmul.f32 %v16073_v20, %v16073_v20 }
 0xb5f   :  { %v8293_v59 = vadd.f32 %v8292_v4, %v16007_v24  ;;  %v8386_v63 = vadd.f32 %v8385_v54, %v8361_v48  ;;  %v16051_v4 = vadd.f32 %v17345_v27, %v17344_v35  ;;  %v16060_v48 = vpop.f32.mrf.mxu0  ;;  %v17353_v27 = vld [vmem:[#allocation63_spill] sm:$0xff]  ;;  %v8408_v0 = vadd.f32 %v8407_v58, %v8365_v50 }
 0xb60   :  { %v15994_v42 = vpop.f32.mrf.mxu1  ;;  %v8274_v3 = vadd.f32 %v8273_v32, %v16044_v45  ;;  %v16090_v32 = vadd.f32 %v17358_v2, %v10056_v29  ;;  %v10062_v7 = vadd.f32 %v15980_v26, %v15966_v25  ;;  %v16103_v5 = vadd.f32 %v15919_v8, %v10059_v40 }
 0xb61   :  { %v8294_v51 = vadd.f32 %v8293_v59, %v16022_v61  ;;  %17346 = vst [vmem:[#allocation94_spill] sm:$0xff] %v16051_v4  ;;  %v8387_v14 = vadd.f32 %v8386_v63, %v8364_v22  ;;  %v17350_v59 = vld [vmem:[#allocation74_spill] sm:$0xff]  ;;  %v16069_v61 = vadd.f32 %v17353_v27, %v17352_v11  ;;  %v8367_v22 = vmul.f32 %v16044_v45, %v16044_v45  ;;  %v8229_v11 = vpop.f32.mrf.mxu0 }
 0xb62   :  { %v10064_v31 = vpop.f32.mrf.mxu1  ;;  %v16065_v35 = vadd.f32 %v17350_v59, %v17349_v52  ;;  %v17355_v52 = vld [vmem:[#allocation67_spill] sm:$0xff]  ;;  %v17356_v59 = vld [vmem:[#allocation77_spill] sm:$0xff]  ;;  %v8409_v58 = vadd.f32 %v8408_v0, %v8368_v56  ;;  %v8336_v2 = vmul.f32 %v16090_v32, %v16090_v32 }
 0xb63   :  { %v8295_v54 = vadd.f32 %v8294_v51, %v16034_v13  ;;  %17354 = vst [vmem:[#allocation73_spill] sm:$0xff] %v16069_v61  ;;  %v8371_v51 = vmul.f32 %v16051_v4, %v16051_v4  ;;  %v16084_v50 = vadd.f32 %v17356_v59, %v17355_v52  ;;  %v8374_v56 = vmul.f32 %v16069_v61, %v16069_v61 }
 0xb64   :  { %v10066_v55 = vpop.f32.mrf.mxu1  ;;  %17351 = vst [vmem:[#allocation95_spill] sm:$0xff] %v16065_v35  ;;  %v8370_v27 = vmul.f32 %v16065_v35, %v16065_v35  ;;  %v10065_v25 = vadd.f32 %v10064_v31, %v15994_v42  ;;  %v8388_v0 = vadd.f32 %v8387_v14, %v8367_v22  ;;  %v10139_v42 = vpop.f32.mrf.mxu0 }
 0xb65   :  { %v8296_v63 = vadd.f32 %v8295_v54, %v16051_v4  ;;  %17357 = vst [vmem:[#allocation72_spill] sm:$0xff] %v16084_v50  ;;  %v8275_v54 = vadd.f32 %v8274_v3, %v16065_v35  ;;  %v8410_v29 = vadd.f32 %v8409_v58, %v8371_v51  ;;  %v8373_v59 = vmul.f32 %v16084_v50, %v16084_v50 }
 0xb66   :  { %v10067_v38 = vpop.f32.mrf.mxu1  ;;  %v16114_v4 = vadd.f32 %v10062_v7, %v15996_v23  ;;  %v8389_v31 = vadd.f32 %v8388_v0, %v8370_v27  ;;  %v8304_v51 = vadd.f32 %v16073_v20, %v16087_v47  ;;  %v16120_v35 = vadd.f32 %v10065_v25, %v8216_v12 }
 0xb67   :  { %v8297_v52 = vadd.f32 %v8296_v63, %v16069_v61  ;;  %v8276_v3 = vadd.f32 %v8275_v54, %v16084_v50  ;;  %v8330_v63 = vmul.f32 %v16087_v47, %v16087_v47  ;;  %v10068_v8 = vadd.f32 %v10067_v38, %v10066_v55 }
 0xb68   :  { %v10069_v37 = vpop.f32.mrf.mxu1  ;;  %v8411_v22 = vadd.f32 %v8410_v29, %v8374_v56  ;;  %v8339_v54 = vmul.f32 %v16103_v5, %v16103_v5  ;;  %v8390_v23 = vadd.f32 %v8389_v31, %v8373_v59  ;;  %v8305_v55 = vadd.f32 %v8304_v51, %v16090_v32 }
 0xb69   :  { %v8298_v14 = vrot.slane %v8297_v52, 4  ;;  %v8418_v58 = vadd.f32 %v8333_v43, %v8330_v63  ;;  %v8277_v13 = vrot.slane %v8276_v3, 4  ;;  %v8342_v7 = vmul.f32 %v16114_v4, %v16114_v4  ;;  %v8232_v43 = vpop.f32.mrf.mxu0 }
 0xb6a   :  { %v10070_v34 = vpop.f32.mrf.mxu1  ;;  %v16126_v27 = vadd.f32 %v15968_v44, %v10068_v8  ;;  %v8306_v12 = vadd.f32 %v8305_v55, %v16103_v5  ;;  %v8412_v25 = vrot.slane %v8411_v22, 4 }
 0xb6b   :  { %v10071_v61 = vadd.f32 %v10070_v34, %v10069_v37  ;;  %v8419_v38 = vadd.f32 %v8418_v58, %v8336_v2  ;;  %v8299_v29 = vadd.f32 %v8298_v14, %v8297_v52  ;;  %v8345_v34 = vmul.f32 %v16120_v35, %v16120_v35  ;;  %v16134_v2 = vpop.f32.mrf.mxu0 }
 0xb6c   :  { %v10072_v46 = vpop.f32.mrf.mxu1  ;;  %v8278_v31 = vadd.f32 %v8277_v13, %v8276_v3  ;;  %v8307_v44 = vadd.f32 %v8306_v12, %v16114_v4  ;;  %v8348_v52 = vmul.f32 %v16126_v27, %v16126_v27 }
 0xb6d   :  { %v8420_v37 = vadd.f32 %v8419_v38, %v8339_v54  ;;  %v16132_v59 = vadd.f32 %v16024_v21, %v10071_v61  ;;  %v8300_v61 = vrot.slane %v8299_v29, 2  ;;  %v8413_v21 = vadd.f32 %v8412_v25, %v8411_v22  ;;  %v8245_v38 = vpop.f32.mrf.mxu0 }
 0xb6e   :  { %v10073_v62 = vpop.f32.mrf.mxu1  ;;  %v8308_v58 = vadd.f32 %v8307_v44, %v16120_v35  ;;  %v8279_v12 = vrot.slane %v8278_v31, 2 }
 0xb6f   :  { %v10074_v56 = vadd.f32 %v10073_v62, %v10072_v46  ;;  %v8391_v62 = vrot.slane %v8390_v23, 4  ;;  %v8421_v8 = vadd.f32 %v8420_v37, %v8342_v7  ;;  %v8351_v13 = vmul.f32 %v16132_v59, %v16132_v59 }
 0xb70   :  { %v10075_v26 = vpop.f32.mrf.mxu1  ;;  %v8414_v44 = vrot.slane %v8413_v21, 2 }
 0xb71   :  { %v16139_v14 = vadd.f32 %v10074_v56, %v8229_v11  ;;  %v8422_v55 = vadd.f32 %v8421_v8, %v8345_v34  ;;  %v8392_v11 = vadd.f32 %v8391_v62, %v8390_v23  ;;  %v8301_v34 = vadd.f32 %v8300_v61, %v8299_v29 }
 0xb72   :  { %v10076_v40 = vpop.f32.mrf.mxu1  ;;  %v8280_v62 = vadd.f32 %v8279_v12, %v8278_v31 }
 0xb73   :  { %v10077_v46 = vadd.f32 %v10076_v40, %v10075_v26  ;;  %v8309_v26 = vadd.f32 %v8308_v58, %v16126_v27  ;;  %v8423_v56 = vadd.f32 %v8422_v55, %v8348_v52  ;;  %v8354_v37 = vmul.f32 %v16139_v14, %v16139_v14 }
 0xb74   :  { %v10078_v50 = vpop.f32.mrf.mxu1  ;;  %v8393_v52 = vrot.slane %v8392_v11, 2  ;;  %v8281_v12 = vrot.slane %v8280_v62, 1 }
 0xb75   :  { %v16145_v40 = vadd.f32 %v10077_v46, %v8232_v43  ;;  %v8310_v22 = vadd.f32 %v8309_v26, %v16132_v59  ;;  %v8424_v8 = vadd.f32 %v8423_v56, %v8351_v13  ;;  %v10143_v43 = vpop.f32.mrf.mxu0  ;;  %v8302_v13 = vrot.slane %v8301_v34, 1 }
 0xb76   :  { %v10079_v0 = vpop.f32.mrf.mxu1 }
 0xb77   :  { %v10080_v54 = vadd.f32 %v10079_v0, %v10078_v50  ;;  %v8357_v23 = vmul.f32 %v16145_v40, %v16145_v40  ;;  %v8248_v26 = vpop.f32.mrf.mxu0 }
 0xb78   :  { %v10081_v63 = vpop.f32.mrf.mxu1 }
 0xb79   :  { %v16151_v0 = vadd.f32 %v16060_v48, %v10080_v54 }
 0xb7a   :  { %v10082_v51 = vpop.f32.mrf.mxu1 }
 0xb7b   :  { %v10083_v7 = vadd.f32 %v10082_v51, %v10081_v63  ;;  %17359 = vst [vmem:[#allocation89_spill] sm:$0xff] %v16151_v0  ;;  %v8311_v63 = vadd.f32 %v8310_v22, %v16139_v14  ;;  %v8425_v51 = vadd.f32 %v8424_v8, %v8354_v37  ;;  %v8360_v29 = vmul.f32 %v16151_v0, %v16151_v0 }
 0xb7c   :  { %v10084_v3 = vpop.f32.mrf.mxu1  ;;  %v8394_v37 = vadd.f32 %v8393_v52, %v8392_v11  ;;  %v8282_v11 = vadd.f32 %v8281_v12, %v8280_v62 }
 0xb7d   :  { %v16156_v46 = vadd.f32 %v10139_v42, %v10083_v7  ;;  %v8312_v48 = vadd.f32 %v8311_v63, %v16145_v40 }
 0xb7e   :  { %v10085_v50 = vpop.f32.mrf.mxu1  ;;  %v8395_v52 = vrot.slane %v8394_v37, 1 }
 0xb7f   :  { %v10086_v25 = vadd.f32 %v10085_v50, %v10084_v3  ;;  %v8415_v3 = vadd.f32 %v8414_v44, %v8413_v21  ;;  %v8426_v50 = vadd.f32 %v8425_v51, %v8357_v23  ;;  %v8313_v42 = vadd.f32 %v8312_v48, %v16151_v0 }
 0xb80   :  { %v10087_v58 = vpop.f32.mrf.mxu1  ;;  %v8363_v31 = vmul.f32 %v16156_v46, %v16156_v46  ;;  %v8303_v44 = vadd.f32 %v8302_v13, %v8301_v34 }
 0xb81   :  { %v16161_v54 = vadd.f32 %v10086_v25, %v8245_v38  ;;  %v8427_v8 = vadd.f32 %v8426_v50, %v8360_v29  ;;  %v8314_v38 = vadd.f32 %v8313_v42, %v16156_v46 }
 0xb82   :  { %v10088_v55 = vpop.f32.mrf.mxu1 }
 0xb83   :  { %17360 = vst [vmem:[#allocation88_spill] sm:$0xff] %v16161_v54  ;;  %v10089_v61 = vadd.f32 %v10088_v55, %v10087_v58  ;;  %v8366_v25 = vmul.f32 %v16161_v54, %v16161_v54  ;;  %v8416_v58 = vrot.slane %v8415_v3, 1  ;;  %v8315_v23 = vadd.f32 %v8314_v38, %v16161_v54 }
 0xb84   :  { %v10090_v56 = vpop.f32.mrf.mxu1  ;;  %v8428_v51 = vadd.f32 %v8427_v8, %v8363_v31  ;;  %v8325_v8 = vmul.f32 0.0078125, %v8282_v11  ;;  %v8396_v38 = vadd.f32 %v8395_v52, %v8394_v37 }
 0xb85   :  { %v16166_v7 = vadd.f32 %v10089_v61, %v8248_v26  ;;  %v8417_v50 = vadd.f32 %v8416_v58, %v8415_v3 }
 0xb86   :  { %v10091_v22 = vpop.f32.mrf.mxu1  ;;  %v8429_v61 = vadd.f32 %v8428_v51, %v8366_v25 }
 0xb87   :  { %17361 = vst [vmem:[#allocation59_spill] sm:$0xff] %v16166_v7  ;;  %v10092_v21 = vadd.f32 %v10091_v22, %v10090_v56  ;;  %v8369_v55 = vmul.f32 %v16166_v7, %v16166_v7  ;;  %v8316_v26 = vadd.f32 %v8315_v23, %v16166_v7  ;;  %v8326_v56 = vmul.f32 0.0078125, %v8303_v44 }
 0xb88   :  { %v10093_v63 = vpop.f32.mrf.mxu1  ;;  %v8440_v12 = vmul.f32 0.0078125, %v8417_v50  ;;  %v8439_v23 = vmul.f32 0.0078125, %v8396_v38  ;;  %v8442_v7 = vmul.f32 %v8325_v8, %v8325_v8 }
 0xb89   :  { %v16175_v48 = vadd.f32 %v16134_v2, %v10092_v21  ;;  %v8430_v42 = vadd.f32 %v8429_v61, %v8369_v55  ;;  %v8443_v54 = vmul.f32 %v8326_v56, %v8326_v56 }
 0xb8a   :  { %v10094_v29 = vpop.f32.mrf.mxu1  ;;  %v8445_v58 = vsub.f32 %v8439_v23, %v8442_v7 }
 0xb8b   :  { %17362 = vst [vmem:[#allocation91_spill] sm:$0xff] %v16175_v48  ;;  %v8372_v34 = vmul.f32 %v16175_v48, %v16175_v48  ;;  %v10095_v13 = vadd.f32 %v10094_v29, %v10093_v63  ;;  %v8317_v31 = vadd.f32 %v8316_v26, %v16175_v48  ;;  %v8446_v63 = vsub.f32 %v8440_v12, %v8443_v54  ;;  %v17363_v12 = vld [vmem:[#allocation79_spill] sm:$0xff] }
 0xb8c   :  { %v8448_v52 = vmax.f32 %v8445_v58, 0.0  ;;  %v8836_v58 = vld [vmem:[%s16712_s17] sm:$0x7] }
 0xb8d   :  { %v8257_v22 = vadd.f32 %v10143_v43, %v10095_v13  ;;  %v8431_v2 = vadd.f32 %v8430_v42, %v8372_v34  ;;  %v8449_v43 = vmax.f32 %v8446_v63, 0.0  ;;  %v8260_v63 = vld [vmem:[%s16710_s15] sm:$0x7] }
 0xb8e   :  { %v8451_v42 = vadd.f32 1e-05, %v8448_v52 }
 0xb8f   :  { %v8318_v21 = vadd.f32 %v8317_v31, %v8257_v22  ;;  %v8375_v62 = vmul.f32 %v8257_v22, %v8257_v22  ;;  %v8452_v34 = vadd.f32 1e-05, %v8449_v43  ;;  %v17366_v43 = vld [vmem:[#allocation81_spill] sm:$0xff] }
 0xb91   :  { %v8319_v25 = vrot.slane %v8318_v21, 4  ;;  %v8432_v51 = vadd.f32 %v8431_v2, %v8375_v62  ;;  %11246 = vrsqrt.f32 %v8452_v34 }
 0xb92   :  { %11248 = vrsqrt.f32 %v8451_v42 }
 0xb93   :  { %v8320_v45 = vadd.f32 %v8319_v25, %v8318_v21  ;;  %v8433_v0 = vrot.slane %v8432_v51, 4 }
 0xb95   :  { %v8321_v44 = vrot.slane %v8320_v45, 2  ;;  %v8434_v3 = vadd.f32 %v8433_v0, %v8432_v51 }
 0xb97   :  { %v8322_v55 = vadd.f32 %v8321_v44, %v8320_v45  ;;  %v8435_v29 = vrot.slane %v8434_v3, 2 }
 0xb99   :  { %v8323_v11 = vrot.slane %v8322_v55, 1  ;;  %v8436_v37 = vadd.f32 %v8435_v29, %v8434_v3 }
 0xb9b   :  { %v8324_v61 = vadd.f32 %v8323_v11, %v8322_v55  ;;  %v8437_v26 = vrot.slane %v8436_v37, 1  ;;  %v17364_v55 = vld [vmem:[#allocation80_spill] sm:$0xff] }
 0xb9d   :  { %v8327_v13 = vmul.f32 0.0078125, %v8324_v61  ;;  %v8438_v50 = vadd.f32 %v8437_v26, %v8436_v37  ;;  %v17367_v37 = vld [vmem:[#allocation82_spill] sm:$0xff]  ;;  %v16200_v61 = vrot.slane %v8836_v58, %v17364_v55  ;;  %v16203_v26 = vrot.slane %v8836_v58, %v17366_v43 }
 0xb9e   :  { %v11247_v45 = vpop.eup %11246  ;;  %v16206_v34 = vrot.slane %v8836_v58, %v17367_v37  ;;  %v17373_v58 = vld [vmem:[#allocation89_spill] sm:$0xff] }
 0xb9f   :  { %v8441_v31 = vmul.f32 0.0078125, %v8438_v50  ;;  %v8444_v38 = vmul.f32 %v8327_v13, %v8327_v13  ;;  %v11249_v7 = vpop.eup %11248 }
 0xba0   :  { %v8460_v21 = vcombine.low %v11249_v7, %v11247_v45 }
 0xba1   :  { %v8447_v2 = vsub.f32 %v8441_v31, %v8444_v38 }
 0xba2   :  { %v8467_v25 = vrot.slane %v8460_v21, %v17363_v12 }
 0xba3   :  { %v8450_v54 = vmax.f32 %v8447_v2, 0.0 }
 0xba5   :  { %v8453_v0 = vadd.f32 1e-05, %v8450_v54 }
 0xba7   :  { %11250 = vrsqrt.f32 %v8453_v0 }
 0xbb4   :  { %v11251_v62 = vpop.eup %11250 }
 0xbb5   :  { %v8474_v51 = vrot.slane %v11251_v62, %v17363_v12  ;;  %v17370_v62 = vld [vmem:[#allocation93_spill] sm:$0xff] }
 0xbb7   :  { %v8475_v23 = vcombine.low %v8467_v25, %v8474_v51 }
 0xbb9   :  { %v8482_v44 = vrot.slane %v8475_v23, %v17363_v12 }
 0xbbb   :  { %v8484_v3 = vmul.f32 %v8482_v44, %v8260_v63  ;;  %v17371_v44 = vld [vmem:[#allocation42_spill] sm:$0xff] }
 0xbbd   :  { %v16191_v29 = vrot.slane %v8484_v3, %v17364_v55  ;;  %v16194_v11 = vrot.slane %v8484_v3, %v17366_v43  ;;  %v16197_v52 = vrot.slane %v8484_v3, %v17367_v37  ;;  %v17372_v3 = vld [vmem:[#allocation44_spill] sm:$0xff] }
 0xbbf   :  { %17365 = vst [vmem:[#allocation90_spill] sm:$0xff] %v16191_v29  ;;  %17368 = vst [vmem:[#allocation64_spill] sm:$0xff] %v16197_v52  ;;  %v8501_v50 = vmul.f32 %v16191_v29, %v8325_v8  ;;  %v8502_v42 = vmul.f32 %v16194_v11, %v8326_v56  ;;  %v8503_v31 = vmul.f32 %v16197_v52, %v8327_v13  ;;  %v17369_v13 = vld [vmem:[#allocation75_spill] sm:$0xff] }
 0xbc0   :  { %v8579_v38 = vmul.f32 %v16197_v52, %v8257_v22  ;;  %v8538_v2 = vmul.f32 %v16191_v29, %v15845_v18  ;;  %v8539_v54 = vmul.f32 %v16194_v11, %v15852_v16  ;;  %v8540_v0 = vmul.f32 %v16197_v52, %v16090_v32 }
 0xbc1   :  { %v8532_v45 = vmul.f32 %v16191_v29, %v15755_v10  ;;  %v8507_v7 = vcombine.low %v8501_v50, %v8502_v42  ;;  %v8521_v8 = vrot.slane %v8503_v31, %v17363_v12  ;;  %v8533_v56 = vmul.f32 %v16194_v11, %v15759_v49  ;;  %v17374_v50 = vld [vmem:[#allocation100_spill] sm:$0xff]  ;;  %v17375_v42 = vld [vmem:[#allocation87_spill] sm:$0xff] }
 0xbc2   :  { %v8534_v22 = vmul.f32 %v16197_v52, %v16087_v47  ;;  %v8541_v18 = vmul.f32 %v16191_v29, %v15863_v30  ;;  %v8542_v16 = vmul.f32 %v16194_v11, %v15866_v17  ;;  %v8543_v32 = vmul.f32 %v16197_v52, %v16103_v5 }
 0xbc3   :  { %v8535_v10 = vmul.f32 %v16191_v29, %v17369_v13  ;;  %v8514_v21 = vrot.slane %v8507_v7, %v17363_v12  ;;  %v8536_v49 = vmul.f32 %v16194_v11, %v17370_v62  ;;  %v8537_v47 = vmul.f32 %v16197_v52, %v16073_v20  ;;  %v17376_v13 = vld [vmem:[#allocation59_spill] sm:$0xff]  ;;  %v17377_v62 = vld [vmem:[#allocation97_spill] sm:$0xff] }
 0xbc4   :  { %v16240_v30 = vmul.f32 %v16191_v29, %v15897_v39  ;;  %v16244_v17 = vmul.f32 %v16194_v11, %v15901_v60  ;;  %v16248_v5 = vmul.f32 %v16197_v52, %v16120_v35  ;;  %v16252_v25 = vmul.f32 %v16191_v29, %v15879_v36  ;;  %v8261_v36 = vld [vmem:[%s16711_s16] sm:$0x7]  ;;  %s11690_s16 = smov [#allocation19]  }
 0xbc5   :  { %v16256_v51 = vmul.f32 %v16194_v11, %v15882_v41  ;;  %v8522_v20 = vcombine.low %v8514_v21, %v8521_v8  ;;  %v16260_v39 = vmul.f32 %v16197_v52, %v16114_v4  ;;  %v16264_v60 = vmul.f32 %v16191_v29, %v15930_v9  ;;  %s9194_s2 = sshll.u32 %s11690_s16, 4  ;;  %s9195_s2 = int_to_ptr.vmem [resolvable:$true] %s9194_s2 }
 0xbc6   :  { %v16268_v35 = vmul.f32 %v16194_v11, %v15934_v53  ;;  %v16275_v41 = vmul.f32 %v16197_v52, %v16132_v59  ;;  %v16279_v4 = vmul.f32 %v16191_v29, %v15913_v19  ;;  %v16283_v9 = vmul.f32 %v16194_v11, %v15917_v28  ;;  %s11612_s24 = scalar_lea.vmem %s9195_s2, 2048  ;;  %p11617_p9 = scmp.lt.s32.totalorder %s9195_s2, %s9195_s2 }
 0xbc7   :  { %v16287_v53 = vmul.f32 %v16197_v52, %v16126_v27  ;;  %v8529_v23 = vrot.slane %v8522_v20, %v17363_v12  ;;  %v16292_v63 = vmul.f32 %v16191_v29, %v15964_v15  ;;  %v16296_v59 = vmul.f32 %v16194_v11, %v15974_v1  ;;  %p11613_p8 = scmp.ne.s32.totalorder %s9195_s2, %s11612_s24  ;;  %p11618_p10 = scmp.lt.s32.totalorder %s11612_s24, %s11612_s24 }
 0xbc8   :  { %v16300_v19 = vmul.f32 %v16197_v52, %v16145_v40  ;;  %v16304_v28 = vmul.f32 %v16191_v29, %v15946_v57  ;;  %v16308_v27 = vmul.f32 %v16194_v11, %v15950_v6  ;;  %v16312_v15 = vmul.f32 %v16197_v52, %v16139_v14 }
 0xbc9   :  { %v16316_v1 = vmul.f32 %v16191_v29, %v16003_v33  ;;  %v8531_v12 = vsub.f32 %v8261_v36, %v8529_v23  ;;  %v16320_v40 = vmul.f32 %v16194_v11, %v16007_v24  ;;  %v16324_v57 = vmul.f32 %v16197_v52, %v16156_v46  ;;  %v17378_v36 = vld [vmem:[#allocation86_spill] sm:$0xff]  ;;  %p11619_p11 = por %p11618_p10, %p11617_p9 }
 0xbca   :  { %v16328_v6 = vmul.f32 %v16191_v29, %v17371_v44  ;;  %v16332_v14 = vmul.f32 %v16194_v11, %v17372_v3  ;;  %v16336_v33 = vmul.f32 %v16197_v52, %v17373_v58  ;;  %v16340_v24 = vmul.f32 %v16191_v29, %v17374_v50 }
 0xbcb   :  { %v16344_v46 = vmul.f32 %v16194_v11, %v17375_v42  ;;  %v16347_v31 = vrot.slane %v8531_v12, %v17364_v55  ;;  %v16350_v7 = vrot.slane %v8531_v12, %v17366_v43  ;;  %v16353_v8 = vrot.slane %v8531_v12, %v17367_v37  ;;  %v17379_v55 = vld [vmem:[#allocation88_spill] sm:$0xff]  ;;  %p11620_p12 = pnand %p11619_p11, %p11613_p8 }
 0xbcc   :  { %v16357_v21 = vmul.f32 %v16197_v52, %v17376_v13  ;;  %v16361_v20 = vmul.f32 %v16191_v29, %v17377_v62  ;;  %v16365_v23 = vmul.f32 %v16194_v11, %v17378_v36  ;;  %v16369_v44 = vmul.f32 %v16197_v52, %v17379_v55  ;;  %v17380_v43 = vld [vmem:[#allocation72_spill] sm:$0xff] }
 0xbcd   :  { %v16373_v37 = vmul.f32 %v16191_v29, %v17380_v43  ;;  %v8643_v12 = vadd.f32 %v16353_v8, %v8579_v38  ;;  %v8602_v3 = vadd.f32 %v16347_v31, %v8538_v2  ;;  %v8603_v58 = vadd.f32 %v16350_v7, %v8539_v54 }
 0xbce   :  { %v8604_v50 = vadd.f32 %v16353_v8, %v8540_v0  ;;  %v8596_v42 = vadd.f32 %v16347_v31, %v8532_v45  ;;  %v8597_v13 = vadd.f32 %v16350_v7, %v8533_v56  ;;  %v8598_v62 = vadd.f32 %v16353_v8, %v8534_v22 }
 0xbcf   :  { %v8605_v36 = vadd.f32 %v16347_v31, %v8541_v18  ;;  %v16383_v55 = vmul.f32 0.5, %v8643_v12  ;;  %v8650_v43 = vmul.f32 0.5, %v8602_v3  ;;  %v8651_v52 = vmul.f32 0.5, %v8603_v58 }
 0xbd0   :  { %v8652_v48 = vmul.f32 0.5, %v8604_v50  ;;  %v8644_v38 = vmul.f32 0.5, %v8596_v42  ;;  %v8645_v29 = vmul.f32 0.5, %v8597_v13  ;;  %v8646_v2 = vmul.f32 0.5, %v8598_v62 }
 0xbd1   :  { %v8606_v54 = vadd.f32 %v16350_v7, %v8542_v16  ;;  %11252 = vtanh.f32 %v8650_v43  ;;  %v8607_v0 = vadd.f32 %v16353_v8, %v8543_v32  ;;  %v8653_v45 = vmul.f32 0.5, %v8605_v36 }
 0xbd2   :  { %v8599_v56 = vadd.f32 %v16347_v31, %v8535_v10  ;;  %11254 = vtanh.f32 %v8651_v52  ;;  %v8600_v18 = vadd.f32 %v16350_v7, %v8536_v49  ;;  %v8601_v12 = vadd.f32 %v16353_v8, %v8537_v47 }
 0xbd3   :  { %v8654_v22 = vmul.f32 0.5, %v8606_v54  ;;  %11256 = vtanh.f32 %v8652_v48  ;;  %v8655_v3 = vmul.f32 0.5, %v8607_v0  ;;  %v8611_v50 = vadd.f32 %v16347_v31, %v16240_v30 }
 0xbd4   :  { %v8647_v58 = vmul.f32 0.5, %v8599_v56  ;;  %11258 = vtanh.f32 %v8644_v38  ;;  %v8648_v16 = vmul.f32 0.5, %v8600_v18  ;;  %v8649_v42 = vmul.f32 0.5, %v8601_v12 }
 0xbd5   :  { %v8612_v32 = vadd.f32 %v16350_v7, %v16244_v17  ;;  %11260 = vtanh.f32 %v8645_v29  ;;  %v8613_v52 = vadd.f32 %v16353_v8, %v16248_v5  ;;  %v8659_v10 = vmul.f32 0.5, %v8611_v50 }
 0xbd6   :  { %v8608_v49 = vadd.f32 %v16347_v31, %v16252_v25  ;;  %11262 = vtanh.f32 %v8646_v2  ;;  %v8609_v47 = vadd.f32 %v16350_v7, %v16256_v51  ;;  %v8610_v30 = vadd.f32 %v16353_v8, %v16260_v39 }
 0xbd7   :  { %v8660_v48 = vmul.f32 0.5, %v8612_v32  ;;  %11264 = vtanh.f32 %v8653_v45  ;;  %v8661_v13 = vmul.f32 0.5, %v8613_v52  ;;  %v8617_v29 = vadd.f32 %v16347_v31, %v16264_v60 }
 0xbd8   :  { %v8656_v62 = vmul.f32 0.5, %v8608_v49  ;;  %11266 = vtanh.f32 %v8654_v22  ;;  %v8657_v17 = vmul.f32 0.5, %v8609_v47  ;;  %v8658_v5 = vmul.f32 0.5, %v8610_v30 }
 0xbd9   :  { %v8618_v25 = vadd.f32 %v16350_v7, %v16268_v35  ;;  %11268 = vtanh.f32 %v8655_v3  ;;  %v8619_v36 = vadd.f32 %v16353_v8, %v16275_v41  ;;  %v8665_v51 = vmul.f32 0.5, %v8617_v29 }
 0xbda   :  { %v8614_v39 = vadd.f32 %v16347_v31, %v16279_v4  ;;  %11270 = vtanh.f32 %v8647_v58  ;;  %v8615_v38 = vadd.f32 %v16350_v7, %v16283_v9  ;;  %v8616_v60 = vadd.f32 %v16353_v8, %v16287_v53 }
 0xbdb   :  { %v8666_v43 = vmul.f32 0.5, %v8618_v25  ;;  %11272 = vtanh.f32 %v8648_v16  ;;  %v8667_v2 = vmul.f32 0.5, %v8619_v36  ;;  %v8623_v35 = vadd.f32 %v16347_v31, %v16292_v63 }
 0xbdc   :  { %v8662_v54 = vmul.f32 0.5, %v8614_v39  ;;  %11274 = vtanh.f32 %v8649_v42  ;;  %v16416_v41 = vmul.f32 0.5, %v8615_v38  ;;  %v16418_v0 = vmul.f32 0.5, %v8616_v60 }
 0xbdd   :  { %v8624_v4 = vadd.f32 %v16350_v7, %v16296_v59  ;;  %11276 = vtanh.f32 %v8659_v10  ;;  %v8625_v9 = vadd.f32 %v16353_v8, %v16300_v19  ;;  %v16424_v45 = vmul.f32 0.5, %v8623_v35 }
 0xbde   :  { %v8620_v53 = vadd.f32 %v16347_v31, %v16304_v28  ;;  %v11253_v56 = vpop.eup %11252  ;;  %11278 = vtanh.f32 %v8660_v48  ;;  %v8621_v22 = vadd.f32 %v16350_v7, %v16308_v27  ;;  %v8622_v18 = vadd.f32 %v16353_v8, %v16312_v15 }
 0xbdf   :  { %v16428_v63 = vmul.f32 0.5, %v8624_v4  ;;  %v11255_v59 = vpop.eup %11254  ;;  %v8746_v12 = vmul.f32 0.5, %v11253_v56  ;;  %11280 = vtanh.f32 %v8661_v13  ;;  %v16434_v3 = vmul.f32 0.5, %v8625_v9 }
 0xbe0   :  { %v16436_v19 = vmul.f32 0.5, %v8620_v53  ;;  %v11257_v58 = vpop.eup %11256  ;;  %v8747_v50 = vmul.f32 0.5, %v11255_v59  ;;  %11282 = vtanh.f32 %v8656_v62  ;;  %v16438_v28 = vmul.f32 0.5, %v8621_v22 }
 0xbe1   :  { %v16440_v16 = vmul.f32 0.5, %v8622_v18  ;;  %v11259_v42 = vpop.eup %11258  ;;  %v8748_v32 = vmul.f32 0.5, %v11257_v58  ;;  %v8794_v27 = vadd.f32 0.5, %v8746_v12  ;;  %11284 = vtanh.f32 %v8657_v17 }
 0xbe2   :  { %v16444_v15 = vadd.f32 %v16347_v31, %v16316_v1  ;;  %v11261_v52 = vpop.eup %11260  ;;  %v8795_v10 = vadd.f32 0.5, %v8747_v50  ;;  %v8740_v49 = vmul.f32 0.5, %v11259_v42  ;;  %11286 = vtanh.f32 %v8658_v5 }
 0xbe3   :  { %v16448_v48 = vadd.f32 %v16350_v7, %v16320_v40  ;;  %v11263_v47 = vpop.eup %11262  ;;  %v8796_v30 = vadd.f32 0.5, %v8748_v32  ;;  %v8859_v13 = vmul.f32 %v16200_v61, %v8794_v27  ;;  %v8741_v62 = vmul.f32 0.5, %v11261_v52 }
 0xbe4   :  { %11288 = vtanh.f32 %v8665_v51  ;;  %v11265_v29 = vpop.eup %11264  ;;  %v8860_v17 = vmul.f32 %v16203_v26, %v8795_v10  ;;  %v8742_v25 = vmul.f32 0.5, %v11263_v47  ;;  %v8788_v1 = vadd.f32 0.5, %v8740_v49 }
 0xbe5   :  { %11290 = vtanh.f32 %v8666_v43  ;;  %v11267_v36 = vpop.eup %11266  ;;  %v8861_v39 = vmul.f32 %v16206_v34, %v8796_v30  ;;  %v8789_v5 = vadd.f32 0.5, %v8741_v62  ;;  %v8749_v38 = vmul.f32 0.5, %v11265_v29 }
 0xbe6   :  { %11292 = vtanh.f32 %v8667_v2  ;;  %v11269_v40 = vpop.eup %11268  ;;  %v8909_v60 = vadd.f32 %v8860_v17, %v8859_v13  ;;  %v8790_v35 = vadd.f32 0.5, %v8742_v25  ;;  %v8853_v4 = vmul.f32 %v16200_v61, %v8788_v1 }
 0xbe7   :  { %v8750_v9 = vmul.f32 0.5, %v11267_v36  ;;  %v11271_v53 = vpop.eup %11270  ;;  %v8854_v51 = vmul.f32 %v16203_v26, %v8789_v5  ;;  %v8751_v56 = vmul.f32 0.5, %v11269_v40  ;;  %v8797_v22 = vadd.f32 0.5, %v8749_v38 }
 0xbe8   :  { %11294 = vtanh.f32 %v8662_v54  ;;  %v11273_v18 = vpop.eup %11272  ;;  %v8910_v43 = vadd.f32 %v8909_v60, %v8861_v39  ;;  %v8855_v59 = vmul.f32 %v16206_v34, %v8790_v35  ;;  %v8743_v58 = vmul.f32 0.5, %v11271_v53 }
 0xbe9   :  { %v8798_v12 = vadd.f32 0.5, %v8750_v9  ;;  %v11275_v50 = vpop.eup %11274  ;;  %v8901_v2 = vadd.f32 %v8854_v51, %v8853_v4  ;;  %v8799_v42 = vadd.f32 0.5, %v8751_v56  ;;  %v8862_v32 = vmul.f32 %v16200_v61, %v8797_v22 }
 0xbea   :  { %v8744_v27 = vmul.f32 0.5, %v11273_v18  ;;  %v11277_v52 = vpop.eup %11276  ;;  %8911 = vadd.xlane.f32.xlu1 %v8910_v43  ;;  %v8745_v49 = vmul.f32 0.5, %v11275_v50  ;;  %v8791_v47 = vadd.f32 0.5, %v8743_v58  ;;  %11296 = vtanh.f32 %v16416_v41 }
 0xbeb   :  { %v8863_v10 = vmul.f32 %v16203_v26, %v8798_v12  ;;  %v11279_v54 = vpop.eup %11278  ;;  %v8902_v30 = vadd.f32 %v8901_v2, %v8855_v59  ;;  %v8864_v13 = vmul.f32 %v16206_v34, %v8799_v42  ;;  %v8755_v29 = vmul.f32 0.5, %v11277_v52 }
 0xbec   :  { %v8792_v62 = vadd.f32 0.5, %v8744_v27  ;;  %v11281_v17 = vpop.eup %11280  ;;  %v8793_v1 = vadd.f32 0.5, %v8745_v49  ;;  %v8856_v36 = vmul.f32 %v16200_v61, %v8791_v47  ;;  %v8756_v39 = vmul.f32 0.5, %v11279_v54 }
 0xbed   :  { %v8913_v25 = vadd.f32 %v8863_v10, %v8862_v32  ;;  %v11283_v5 = vpop.eup %11282  ;;  %8903 = vadd.xlane.f32.xlu0 %v8902_v30  ;;  %v8757_v40 = vmul.f32 0.5, %v11281_v17  ;;  %v8803_v60 = vadd.f32 0.5, %v8755_v29  ;;  %11298 = vtanh.f32 %v16418_v0 }
 0xbee   :  { %v8857_v38 = vmul.f32 %v16203_v26, %v8792_v62  ;;  %v11285_v41 = vpop.eup %11284  ;;  %v8858_v4 = vmul.f32 %v16206_v34, %v8793_v1  ;;  %v8804_v9 = vadd.f32 0.5, %v8756_v39  ;;  %v8752_v53 = vmul.f32 0.5, %v11283_v5 }
 0xbef   :  { %v8914_v35 = vadd.f32 %v8913_v25, %v8864_v13  ;;  %v11287_v51 = vpop.eup %11286  ;;  %v8805_v22 = vadd.f32 0.5, %v8757_v40  ;;  %v8868_v18 = vmul.f32 %v16200_v61, %v8803_v60  ;;  %v8753_v43 = vmul.f32 0.5, %v11285_v41 }
 0xbf0   :  { %v8905_v56 = vadd.f32 %v8857_v38, %v8856_v36  ;;  %v8869_v12 = vmul.f32 %v16203_v26, %v8804_v9  ;;  %v8754_v58 = vmul.f32 0.5, %v11287_v51  ;;  %v8800_v50 = vadd.f32 0.5, %v8752_v53 }
 0xbf1   :  { %v11289_v59 = vpop.eup %11288  ;;  %8915 = vadd.xlane.f32.xlu1 %v8914_v35  ;;  %11300 = vtanh.f32 %v16424_v45  ;;  %v8870_v42 = vmul.f32 %v16206_v34, %v8805_v22  ;;  %v8801_v32 = vadd.f32 0.5, %v8753_v43  ;;  %v8677_v40 = vmul.f32 0.5, %v16444_v15 }
 0xbf2   :  { %v11291_v0 = vpop.eup %11290  ;;  %v8906_v2 = vadd.f32 %v8905_v56, %v8858_v4  ;;  %v8761_v27 = vmul.f32 0.5, %v11289_v59  ;;  %v8921_v10 = vadd.f32 %v8869_v12, %v8868_v18  ;;  %v8802_v49 = vadd.f32 0.5, %v8754_v58 }
 0xbf3   :  { %v11293_v52 = vpop.eup %11292  ;;  %v8865_v47 = vmul.f32 %v16200_v61, %v8800_v50  ;;  %v8762_v54 = vmul.f32 0.5, %v11291_v0  ;;  %v8866_v30 = vmul.f32 %v16203_v26, %v8801_v32  ;;  %11302 = vtanh.f32 %v16428_v63 }
 0xbf4   :  { %8907 = vadd.xlane.f32.xlu0 %v8906_v2  ;;  %v8763_v13 = vmul.f32 0.5, %v11293_v52  ;;  %v8809_v62 = vadd.f32 0.5, %v8761_v27  ;;  %v8922_v29 = vadd.f32 %v8921_v10, %v8870_v42  ;;  %v8867_v17 = vmul.f32 %v16206_v34, %v8802_v49 }
 0xbf5   :  { %v11295_v45 = vpop.eup %11294  ;;  %v8810_v25 = vadd.f32 0.5, %v8762_v54  ;;  %11304 = vtanh.f32 %v16434_v3  ;;  %v8917_v1 = vadd.f32 %v8866_v30, %v8865_v47  ;;  %v8631_v63 = vadd.f32 %v16353_v8, %v16324_v57 }
 0xbf6   :  { %v8811_v36 = vadd.f32 0.5, %v8763_v13  ;;  %v8874_v39 = vmul.f32 %v16200_v61, %v8809_v62  ;;  %v8758_v5 = vmul.f32 0.5, %v11295_v45  ;;  %8923 = vadd.xlane.f32.xlu1 %v8922_v29  ;;  %11306 = vtanh.f32 %v16436_v19 }
 0xbf7   :  { %v8875_v38 = vmul.f32 %v16203_v26, %v8810_v25  ;;  %v11297_v60 = vpop.eup %11296  ;;  %v8918_v41 = vadd.f32 %v8917_v1, %v8867_v17  ;;  %11308 = vtanh.f32 %v16438_v28  ;;  %v8678_v53 = vmul.f32 0.5, %v16448_v48  ;;  %v17381_v1 = vld [vmem:[#allocation73_spill] sm:$0xff] }
 0xbf8   :  { %v8876_v35 = vmul.f32 %v16206_v34, %v8811_v36  ;;  %v8806_v3 = vadd.f32 0.5, %v8758_v5  ;;  %v8759_v9 = vmul.f32 0.5, %v11297_v60  ;;  %11310 = vtanh.f32 %v16440_v16 }
 0xbf9   :  { %v8929_v4 = vadd.f32 %v8875_v38, %v8874_v39  ;;  %8919 = vadd.xlane.f32.xlu0 %v8918_v41  ;;  %v8679_v51 = vmul.f32 0.5, %v8631_v63  ;;  %11312 = vtanh.f32 %v8677_v40  ;;  %v8626_v57 = vadd.f32 %v16347_v31, %v16328_v6 }
 0xbfa   :  { %v8871_v19 = vmul.f32 %v16200_v61, %v8806_v3  ;;  %v11299_v15 = vpop.eup %11298  ;;  %v8807_v22 = vadd.f32 0.5, %v8759_v9  ;;  %11314 = vtanh.f32 %v8678_v53  ;;  %v8627_v28 = vadd.f32 %v16350_v7, %v16332_v14 }
 0xbfb   :  { %v8930_v56 = vadd.f32 %v8929_v4, %v8876_v35  ;;  %v8760_v18 = vmul.f32 0.5, %v11299_v15  ;;  %11316 = vtanh.f32 %v8679_v51  ;;  %v8628_v16 = vadd.f32 %v16353_v8, %v16336_v33 }
 0xbfc   :  { %v8674_v48 = vmul.f32 0.5, %v8626_v57  ;;  %v8872_v43 = vmul.f32 %v16203_v26, %v8807_v22  ;;  %v8675_v59 = vmul.f32 0.5, %v8627_v28  ;;  %v8635_v6 = vadd.f32 %v16347_v31, %v16340_v24 }
 0xbfd   :  { %8931 = vadd.xlane.f32.xlu1 %v8930_v56  ;;  %v8636_v12 = vadd.f32 %v16350_v7, %v16344_v46  ;;  %v8808_v50 = vadd.f32 0.5, %v8760_v18  ;;  %v8676_v0 = vmul.f32 0.5, %v8628_v16  ;;  %v8637_v14 = vadd.f32 %v16353_v8, %v16357_v21 }
 0xbfe   :  { %v11301_v58 = vpop.eup %11300  ;;  %11318 = vtanh.f32 %v8674_v48  ;;  %v8925_v2 = vadd.f32 %v8872_v43, %v8871_v19  ;;  %v8683_v42 = vmul.f32 0.5, %v8635_v6  ;;  %v8632_v46 = vadd.f32 %v16347_v31, %v16361_v20 }
 0xbff   :  { %v8767_v33 = vmul.f32 0.5, %v11301_v58  ;;  %11320 = vtanh.f32 %v8675_v59  ;;  %v8873_v32 = vmul.f32 %v16206_v34, %v8808_v50  ;;  %v8684_v27 = vmul.f32 0.5, %v8636_v12  ;;  %v17382_v58 = vld [vmem:[#allocation95_spill] sm:$0xff]  ;;  %v17383_v50 = vld [vmem:[#allocation90_spill] sm:$0xff] }
 0xc00   :  { %11322 = vtanh.f32 %v8676_v0  ;;  %v8685_v52 = vmul.f32 0.5, %v8637_v14  ;;  %v11303_v24 = vpop.eup %11302  ;;  %v8633_v49 = vadd.f32 %v16350_v7, %v16365_v23  ;;  %v8634_v30 = vadd.f32 %v16353_v8, %v16369_v44 }
 0xc01   :  { %v8815_v10 = vadd.f32 0.5, %v8767_v33  ;;  %11324 = vtanh.f32 %v8683_v42  ;;  %v8926_v21 = vadd.f32 %v8925_v2, %v8873_v32  ;;  %v8768_v54 = vmul.f32 0.5, %v11303_v24 }
 0xc02   :  { %v11305_v47 = vpop.eup %11304  ;;  %11326 = vtanh.f32 %v8684_v27  ;;  %v8680_v45 = vmul.f32 0.5, %v8632_v46  ;;  %v8681_v25 = vmul.f32 0.5, %v8633_v49  ;;  %v8682_v20 = vmul.f32 0.5, %v8634_v30 }
 0xc03   :  { %v8769_v13 = vmul.f32 0.5, %v11305_v47  ;;  %v8880_v62 = vmul.f32 %v16200_v61, %v8815_v10  ;;  %11328 = vtanh.f32 %v8685_v52  ;;  %v11307_v29 = vpop.eup %11306  ;;  %8927 = vadd.xlane.f32.xlu0 %v8926_v21  ;;  %v8816_v17 = vadd.f32 0.5, %v8768_v54  ;;  %v17384_v10 = vld [vmem:[#allocation94_spill] sm:$0xff] }
 0xc04   :  { %v8578_v23 = vmul.f32 %v16194_v11, %v17381_v1  ;;  %v11309_v36 = vpop.eup %11308  ;;  %v8764_v5 = vmul.f32 0.5, %v11307_v29  ;;  %11330 = vtanh.f32 %v8680_v45  ;;  %v8641_v44 = vadd.f32 %v16347_v31, %v16373_v37 }
 0xc05   :  { %v8817_v39 = vadd.f32 0.5, %v8769_v13  ;;  %v11311_v38 = vpop.eup %11310  ;;  %v8881_v63 = vmul.f32 %v16203_v26, %v8816_v17  ;;  %v8765_v40 = vmul.f32 0.5, %v11309_v36  ;;  %11332 = vtanh.f32 %v8681_v25 }
 0xc06   :  { %v8642_v60 = vadd.f32 %v16350_v7, %v8578_v23  ;;  %v11313_v41 = vpop.eup %11312  ;;  %v8766_v3 = vmul.f32 0.5, %v11311_v38  ;;  %v8812_v4 = vadd.f32 0.5, %v8764_v5  ;;  %11334 = vtanh.f32 %v8682_v20  ;;  %v17385_v23 = vld [vmem:[#allocation91_spill] sm:$0xff] }
 0xc07   :  { %v8882_v35 = vmul.f32 %v16206_v34, %v8817_v39  ;;  %v11315_v9 = vpop.eup %11314  ;;  %v8937_v53 = vadd.f32 %v8881_v63, %v8880_v62  ;;  %v8813_v19 = vadd.f32 0.5, %v8765_v40  ;;  %v8773_v51 = vmul.f32 0.5, %v11313_v41 }
 0xc08   :  { %v8689_v57 = vmul.f32 0.5, %v8641_v44  ;;  %v11317_v15 = vpop.eup %11316  ;;  %v8814_v37 = vadd.f32 0.5, %v8766_v3  ;;  %v8877_v56 = vmul.f32 %v16200_v61, %v8812_v4  ;;  %v8774_v22 = vmul.f32 0.5, %v11315_v9 }
 0xc09   :  { %v8690_v28 = vmul.f32 0.5, %v8642_v60  ;;  %v8938_v18 = vadd.f32 %v8937_v53, %v8882_v35  ;;  %v8878_v16 = vmul.f32 %v16203_v26, %v8813_v19  ;;  %v8775_v48 = vmul.f32 0.5, %v11317_v15 }
 0xc0a   :  { %v8821_v43 = vadd.f32 0.5, %v8773_v51  ;;  %v8879_v6 = vmul.f32 %v16206_v34, %v8814_v37  ;;  %v8822_v12 = vadd.f32 0.5, %v8774_v22  ;;  %11336 = vtanh.f32 %v8689_v57 }
 0xc0b   :  { %v11319_v59 = vpop.eup %11318  ;;  %v8574_v0 = vmul.f32 %v17383_v50, %v17382_v58  ;;  %8939 = vadd.xlane.f32.xlu1 %v8938_v18  ;;  %v8933_v2 = vadd.f32 %v8878_v16, %v8877_v56  ;;  %v8823_v33 = vadd.f32 0.5, %v8775_v48  ;;  %11338 = vtanh.f32 %v8690_v28 }
 0xc0c   :  { %v11321_v14 = vpop.eup %11320  ;;  %v8886_v42 = vmul.f32 %v16200_v61, %v8821_v43  ;;  %v8770_v32 = vmul.f32 0.5, %v11319_v59  ;;  %v8887_v52 = vmul.f32 %v16203_v26, %v8822_v12  ;;  %v8575_v46 = vmul.f32 %v16194_v11, %v17384_v10  ;;  %v17386_v11 = vld [vmem:[#allocation64_spill] sm:$0xff] }
 0xc0d   :  { %v11323_v27 = vpop.eup %11322  ;;  %v8771_v24 = vmul.f32 0.5, %v11321_v14  ;;  %v8934_v47 = vadd.f32 %v8933_v2, %v8879_v6  ;;  %v8888_v21 = vmul.f32 %v16206_v34, %v8823_v33  ;;  %11340 = vtanh.f32 %v16383_v55 }
 0xc0e   :  { %v11325_v49 = vpop.eup %11324  ;;  %v8772_v54 = vmul.f32 0.5, %v11323_v27  ;;  %v8818_v30 = vadd.f32 0.5, %v8770_v32  ;;  %v8945_v62 = vadd.f32 %v8887_v52, %v8886_v42  ;;  %v8576_v36 = vmul.f32 %v17386_v11, %v17385_v23 }
 0xc0f   :  { %v11327_v13 = vpop.eup %11326  ;;  %v8819_v45 = vadd.f32 0.5, %v8771_v24  ;;  %v8779_v29 = vmul.f32 0.5, %v11325_v49  ;;  %8935 = vadd.xlane.f32.xlu0 %v8934_v47  ;;  %v8638_v55 = vadd.f32 %v16347_v31, %v8574_v0  ;;  %v8639_v41 = vadd.f32 %v16350_v7, %v8575_v46 }
 0xc10   :  { %v11329_v17 = vpop.eup %11328  ;;  %v8820_v25 = vadd.f32 0.5, %v8772_v54  ;;  %v8883_v20 = vmul.f32 %v16200_v61, %v8818_v30  ;;  %v8780_v1 = vmul.f32 0.5, %v11327_v13  ;;  %v8946_v39 = vadd.f32 %v8945_v62, %v8888_v21 }
 0xc11   :  { %v8884_v5 = vmul.f32 %v16203_v26, %v8819_v45  ;;  %v8781_v44 = vmul.f32 0.5, %v11329_v17  ;;  %v8827_v38 = vadd.f32 0.5, %v8779_v29  ;;  %v11331_v63 = vpop.eup %11330  ;;  %v8640_v15 = vadd.f32 %v16353_v8, %v8576_v36 }
 0xc12   :  { %v8885_v40 = vmul.f32 %v16206_v34, %v8820_v25  ;;  %v8828_v60 = vadd.f32 0.5, %v8780_v1  ;;  %v11333_v35 = vpop.eup %11332  ;;  %8947 = vadd.xlane.f32.xlu1 %v8946_v39  ;;  %v8776_v53 = vmul.f32 0.5, %v11331_v63  ;;  %v8686_v37 = vmul.f32 0.5, %v8638_v55 }
 0xc13   :  { %v8941_v3 = vadd.f32 %v8884_v5, %v8883_v20  ;;  %v8829_v4 = vadd.f32 0.5, %v8781_v44  ;;  %v8892_v9 = vmul.f32 %v16200_v61, %v8827_v38  ;;  %v11335_v19 = vpop.eup %11334  ;;  %v8777_v57 = vmul.f32 0.5, %v11333_v35 }
 0xc14   :  { %v8893_v51 = vmul.f32 %v16203_v26, %v8828_v60  ;;  %v8778_v31 = vmul.f32 0.5, %v11335_v19  ;;  %v8824_v28 = vadd.f32 0.5, %v8776_v53  ;;  %v8687_v16 = vmul.f32 0.5, %v8639_v41 }
 0xc15   :  { %v8942_v56 = vadd.f32 %v8941_v3, %v8885_v40  ;;  %v8894_v22 = vmul.f32 %v16206_v34, %v8829_v4  ;;  %v8825_v18 = vadd.f32 0.5, %v8777_v57  ;;  %v8688_v48 = vmul.f32 0.5, %v8640_v15 }
 0xc16   :  { %v8953_v7 = vadd.f32 %v8893_v51, %v8892_v9  ;;  %v8826_v43 = vadd.f32 0.5, %v8778_v31  ;;  %v8889_v59 = vmul.f32 %v16200_v61, %v8824_v28  ;;  %11342 = vtanh.f32 %v8686_v37 }
 0xc17   :  { %8943 = vadd.xlane.f32.xlu0 %v8942_v56  ;;  %v11337_v6 = vpop.eup %11336  ;;  %v8890_v58 = vmul.f32 %v16203_v26, %v8825_v18  ;;  %11344 = vtanh.f32 %v8687_v16 }
 0xc18   :  { %v8954_v12 = vadd.f32 %v8953_v7, %v8894_v22  ;;  %v8785_v8 = vmul.f32 0.5, %v11337_v6  ;;  %11346 = vtanh.f32 %v8688_v48  ;;  %v11339_v50 = vpop.eup %11338  ;;  %v8891_v0 = vmul.f32 %v16206_v34, %v8826_v43 }
 0xc19   :  { %v8949_v14 = vadd.f32 %v8890_v58, %v8889_v59  ;;  %v8786_v2 = vmul.f32 0.5, %v11339_v50 }
 0xc1a   :  { %8955 = vadd.xlane.f32.xlu1 %v8954_v12  ;;  %v8833_v33 = vadd.f32 0.5, %v8785_v8  ;;  %v11341_v42 = vpop.eup %11340 }
 0xc1b   :  { %v8950_v32 = vadd.f32 %v8949_v14, %v8891_v0  ;;  %v8787_v27 = vmul.f32 0.5, %v11341_v42  ;;  %v8834_v52 = vadd.f32 0.5, %v8786_v2 }
 0xc1c   :  { %v8898_v24 = vmul.f32 %v16200_v61, %v8833_v33 }
 0xc1d   :  { %8951 = vadd.xlane.f32.xlu0 %v8950_v32  ;;  %v8835_v10 = vadd.f32 0.5, %v8787_v27  ;;  %v8899_v46 = vmul.f32 %v16203_v26, %v8834_v52 }
 0xc1f   :  { %v8900_v49 = vmul.f32 %v16206_v34, %v8835_v10  ;;  %v8961_v47 = vadd.f32 %v8899_v46, %v8898_v24 }
 0xc21   :  { %v8962_v21 = vadd.f32 %v8961_v47, %v8900_v49 }
 0xc23   :  { %v11343_v54 = vpop.eup %11342  ;;  %8963 = vadd.xlane.f32.xlu1 %v8962_v21 }
 0xc24   :  { %v11345_v30 = vpop.eup %11344  ;;  %v8782_v13 = vmul.f32 0.5, %v11343_v54 }
 0xc25   :  { %v11347_v62 = vpop.eup %11346  ;;  %v8783_v45 = vmul.f32 0.5, %v11345_v30 }
 0xc26   :  { %v8784_v29 = vmul.f32 0.5, %v11347_v62  ;;  %v8830_v17 = vadd.f32 0.5, %v8782_v13 }
 0xc27   :  { %v8831_v25 = vadd.f32 0.5, %v8783_v45 }
 0xc28   :  { %v8832_v20 = vadd.f32 0.5, %v8784_v29  ;;  %v8895_v1 = vmul.f32 %v16200_v61, %v8830_v17 }
 0xc29   :  { %v8896_v23 = vmul.f32 %v16203_v26, %v8831_v25 }
 0xc2a   :  { %v8897_v11 = vmul.f32 %v16206_v34, %v8832_v20 }
 0xc2b   :  { %v8957_v36 = vadd.f32 %v8896_v23, %v8895_v1 }
 0xc2d   :  { %v8958_v39 = vadd.f32 %v8957_v36, %v8897_v11 }
 0xc2f   :  { %8959 = vadd.xlane.f32.xlu0 %v8958_v39 }
 0xc30   :  { %11623 = shalt.err (!%p11620_p12)
}
 0xc31   :  { %s11691_s25 = smov 128   ;;  %s11692_s3 = smov 8   ;;  %v16546_v61 = vld [vmem:[#allocation7] ss:$0 sm:$0xff]  ;;  %vm9148_vm0 = vcmask 7168   ;;  %vm9187_vm1 = vcmask 0  }
 0xc32   :  { %9200 = dma.vmem_to_hbm [thread:$0]  %s9195_s2, 2048, %s16714_s19, [#allocation10], %s11691_s25, %s11691_s25, %s11692_s3  }
 0xc33   :  { %s11693_s19 = smov [#allocation20]  }
 0xc34   :  { %s9207_s26 = sshll.u32 %s11693_s19, 4  ;;  %s9208_s26 = int_to_ptr.vmem [resolvable:$true] %s9207_s26 }
 0xc35   :  { %s11632_s27 = scalar_lea.vmem %s9208_s26, 16  ;;  %s11636_s28 = scalar_lea.vmem %s9208_s26, 32 }
 0xc36   :  { %p11633_p13 = scmp.ne.s32.totalorder %s9208_s26, %s11632_s27  ;;  %p11637_p0 = scmp.lt.s32.totalorder %s9208_s26, %s9208_s26 }
 0xc37   :  { %p11638_p1 = scmp.lt.s32.totalorder %s11636_s28, %s11632_s27 }
 0xc39   :  { %p11639_p2 = por %p11638_p1, %p11637_p0 }
 0xc3b   :  { %p11640_p3 = pnand %p11639_p2, %p11633_p13 }
 0xc73   :  { %v8912_v26 = vpop.xlane.xlu1 %8911 }
 0xc74   :  { %v16549_v34 = vadd.f32 %v16546_v61, %v8912_v26 }
 0xc76   :  { %v8904_v5 = vpop.xlane.xlu0 %8903  ;;  %v8990_v38 = vsub.f32 0.0, %v16549_v34 }
 0xc77   :  { %v16552_v44 = vadd.f32 %v16546_v61, %v8904_v5 }
 0xc78   :  { %v9022_v41 = vand.u32 2147483647, %v8990_v38 }
 0xc79   :  { %v8988_v63 = vsub.f32 0.0, %v16552_v44  ;;  %v9006_v44 = vmax.f32 %v8990_v38, 0.0 }
 0xc7a   :  { %v8916_v40 = vpop.xlane.xlu1 %8915  ;;  %v9038_v51 = vsub.f32 0.0, %v9022_v41 }
 0xc7b   :  { %v16557_v60 = vadd.f32 %v16546_v61, %v8916_v40  ;;  %v9020_v55 = vand.u32 2147483647, %v8988_v63 }
 0xc7c   :  { %v9056_v7 = vmul.f32 1.442695, %v9038_v51 }
 0xc7d   :  { %v8908_v35 = vpop.xlane.xlu0 %8907  ;;  %v9036_v3 = vsub.f32 0.0, %v9020_v55  ;;  %v8991_v9 = vsub.f32 0.0, %v16557_v60 }
 0xc7e   :  { %v16564_v4 = vadd.f32 %v16546_v61, %v8908_v35 }
 0xc7f   :  { %v8924_v19 = vpop.xlane.xlu1 %8923  ;;  %v9052_v15 = vmul.f32 1.442695, %v9036_v3  ;;  %v9023_v56 = vand.u32 2147483647, %v8991_v9  ;;  %v9007_v38 = vmax.f32 %v8991_v9, 0.0 }
 0xc80   :  { %v8989_v53 = vsub.f32 0.0, %v16564_v4  ;;  %v16569_v57 = vadd.f32 %v16546_v61, %v8924_v19 }
 0xc81   :  { %11348 = vpow2.f32 %v9052_v15  ;;  %v9039_v43 = vsub.f32 0.0, %v9023_v56 }
 0xc82   :  { %v9021_v37 = vand.u32 2147483647, %v8989_v53  ;;  %v8920_v22 = vpop.xlane.xlu0 %8919  ;;  %v8993_v18 = vsub.f32 0.0, %v16569_v57 }
 0xc83   :  { %v16576_v28 = vadd.f32 %v16546_v61, %v8920_v22  ;;  %v9058_v50 = vmul.f32 1.442695, %v9039_v43 }
 0xc84   :  { %v9037_v31 = vsub.f32 0.0, %v9021_v37  ;;  %v9025_v12 = vand.u32 2147483647, %v8993_v18 }
 0xc85   :  { %v8992_v48 = vsub.f32 0.0, %v16576_v28 }
 0xc86   :  { %v9054_v16 = vmul.f32 1.442695, %v9037_v31  ;;  %v8932_v59 = vpop.xlane.xlu1 %8931  ;;  %v9041_v0 = vsub.f32 0.0, %v9025_v12 }
 0xc87   :  { %v9024_v6 = vand.u32 2147483647, %v8992_v48  ;;  %v16585_v8 = vadd.f32 %v16546_v61, %v8932_v59 }
 0xc88   :  { %11350 = vpow2.f32 %v9054_v16  ;;  %v9062_v27 = vmul.f32 1.442695, %v9041_v0 }
 0xc89   :  { %11352 = vpow2.f32 %v9056_v7  ;;  %v9040_v58 = vsub.f32 0.0, %v9024_v6  ;;  %v8995_v33 = vsub.f32 0.0, %v16585_v8 }
 0xc8a   :  { %11354 = vpow2.f32 %v9058_v50 }
 0xc8b   :  { %v9060_v2 = vmul.f32 1.442695, %v9040_v58  ;;  %v9027_v52 = vand.u32 2147483647, %v8995_v33 }
 0xc8c   :  { %v8928_v14 = vpop.xlane.xlu0 %8927 }
 0xc8d   :  { %v16589_v42 = vadd.f32 %v16546_v61, %v8928_v14  ;;  %11356 = vpow2.f32 %v9060_v2  ;;  %v9043_v13 = vsub.f32 0.0, %v9027_v52 }
 0xc8e   :  { %v11349_v10 = vpop.eup %11348  ;;  %11358 = vpow2.f32 %v9062_v27 }
 0xc8f   :  { %v8994_v32 = vsub.f32 0.0, %v16589_v42  ;;  %v9084_v54 = vadd.f32 1.0, %v11349_v10  ;;  %v9066_v20 = vmul.f32 1.442695, %v9043_v13 }
 0xc91   :  { %v9026_v24 = vand.u32 2147483647, %v8994_v32  ;;  %v9010_v57 = vmax.f32 %v8994_v32, 0.0 }
 0xc93   :  { %v9042_v46 = vsub.f32 0.0, %v9026_v24 }
 0xc94   :  { %v8940_v47 = vpop.xlane.xlu1 %8939 }
 0xc95   :  { %v11351_v49 = vpop.eup %11350  ;;  %v16597_v62 = vadd.f32 %v16546_v61, %v8940_v47  ;;  %v9064_v45 = vmul.f32 1.442695, %v9042_v46 }
 0xc96   :  { %v11353_v21 = vpop.eup %11352  ;;  %v9085_v30 = vadd.f32 1.0, %v11351_v49 }
 0xc97   :  { %v8997_v29 = vsub.f32 0.0, %v16597_v62  ;;  %v9086_v17 = vadd.f32 1.0, %v11353_v21  ;;  %v11355_v11 = vpop.eup %11354 }
 0xc98   :  { %11360 = vlog2.f32 %v9085_v30  ;;  %v8936_v25 = vpop.xlane.xlu0 %8935  ;;  %v9087_v55 = vadd.f32 1.0, %v11355_v11  ;;  %v9005_v30 = vmax.f32 %v8989_v53, 0.0 }
 0xc99   :  { %11362 = vlog2.f32 %v9084_v54  ;;  %v16601_v1 = vadd.f32 %v16546_v61, %v8936_v25  ;;  %v9029_v23 = vand.u32 2147483647, %v8997_v29 }
 0xc9a   :  { %11364 = vpow2.f32 %v9064_v45  ;;  %v11357_v40 = vpop.eup %11356 }
 0xc9b   :  { %v8996_v36 = vsub.f32 0.0, %v16601_v1  ;;  %v8948_v39 = vpop.xlane.xlu1 %8947  ;;  %11366 = vlog2.f32 %v9086_v17  ;;  %v9045_v41 = vsub.f32 0.0, %v9029_v23  ;;  %v11359_v51 = vpop.eup %11358  ;;  %v9088_v15 = vadd.f32 1.0, %v11357_v40 }
 0xc9c   :  { %v16607_v26 = vadd.f32 %v16546_v61, %v8948_v39  ;;  %11368 = vpow2.f32 %v9066_v20  ;;  %v9089_v59 = vadd.f32 1.0, %v11359_v51  ;;  %v9004_v17 = vmax.f32 %v8988_v63, 0.0 }
 0xc9d   :  { %v9028_v5 = vand.u32 2147483647, %v8996_v36  ;;  %11370 = vlog2.f32 %v9087_v55  ;;  %v9070_v31 = vmul.f32 1.442695, %v9045_v41 }
 0xc9e   :  { %v8999_v35 = vsub.f32 0.0, %v16607_v26 }
 0xc9f   :  { %v9044_v3 = vsub.f32 0.0, %v9028_v5 }
 0xca0   :  { %v8944_v19 = vpop.xlane.xlu0 %8943  ;;  %v9031_v56 = vand.u32 2147483647, %v8999_v35 }
 0xca1   :  { %v9068_v37 = vmul.f32 1.442695, %v9044_v3  ;;  %v16615_v22 = vadd.f32 %v16546_v61, %v8944_v19 }
 0xca2   :  { %v9047_v12 = vsub.f32 0.0, %v9031_v56 }
 0xca3   :  { %v8956_v7 = vpop.xlane.xlu1 %8955  ;;  %11372 = vpow2.f32 %v9068_v37  ;;  %v8998_v16 = vsub.f32 0.0, %v16615_v22 }
 0xca4   :  { %v16619_v43 = vadd.f32 %v16546_v61, %v8956_v7  ;;  %11374 = vlog2.f32 %v9088_v15  ;;  %v9074_v46 = vmul.f32 1.442695, %v9047_v12 }
 0xca5   :  { %v11361_v6 = vpop.eup %11360  ;;  %v9030_v58 = vand.u32 2147483647, %v8998_v16  ;;  %11376 = vpow2.f32 %v9070_v31  ;;  %v9014_v1 = vmax.f32 %v8998_v16, 0.0 }
 0xca6   :  { %v9001_v50 = vsub.f32 0.0, %v16619_v43  ;;  %v11363_v0 = vpop.eup %11362  ;;  %v8952_v14 = vpop.xlane.xlu0 %8951  ;;  %v9103_v52 = vmul.f32 0.6931472, %v11361_v6  ;;  %11378 = vlog2.f32 %v9089_v59 }
 0xca7   :  { %v11365_v2 = vpop.eup %11364  ;;  %v9046_v27 = vsub.f32 0.0, %v9030_v58  ;;  %v16625_v24 = vadd.f32 %v16546_v61, %v8952_v14  ;;  %v9101_v54 = vmul.f32 0.6931472, %v11363_v0 }
 0xca8   :  { %v11367_v10 = vpop.eup %11366  ;;  %v9033_v47 = vand.u32 2147483647, %v9001_v50  ;;  %v9090_v13 = vadd.f32 1.0, %v11365_v2  ;;  %v9133_v25 = vadd.f32 %v9103_v52, %v9005_v30 }
 0xca9   :  { %v9072_v49 = vmul.f32 1.442695, %v9046_v27  ;;  %v11369_v21 = vpop.eup %11368  ;;  %v9000_v45 = vsub.f32 0.0, %v16625_v24  ;;  %v9105_v23 = vmul.f32 0.6931472, %v11367_v10  ;;  %v9132_v40 = vadd.f32 %v9101_v54, %v9004_v17 }
 0xcaa   :  { %v9091_v11 = vadd.f32 1.0, %v11369_v21  ;;  %v9049_v39 = vsub.f32 0.0, %v9033_v47  ;;  %v11371_v55 = vpop.eup %11370  ;;  %v9150_v41 = vsel %vm9148_vm0, %v9133_v25, 0.0  ;;  %v9008_v10 = vmax.f32 %v8992_v48, 0.0 }
 0xcab   :  { %11380 = vpow2.f32 %v9072_v49  ;;  %v9032_v20 = vand.u32 2147483647, %v9000_v45  ;;  %v9134_v51 = vadd.f32 %v9105_v23, %v9006_v44  ;;  %v9149_v56 = vsel %vm9148_vm0, %v9132_v40, 0.0 }
 0xcac   :  { %11382 = vpow2.f32 %v9074_v46  ;;  %v8964_v5 = vpop.xlane.xlu1 %8963  ;;  %v9078_v15 = vmul.f32 1.442695, %v9049_v39  ;;  %v9107_v31 = vmul.f32 0.6931472, %v11371_v55  ;;  %v9151_v6 = vadd.f32 %v9150_v41, %v9149_v56 }
 0xcad   :  { %11384 = vlog2.f32 %v9090_v13  ;;  %v9048_v4 = vsub.f32 0.0, %v9032_v20  ;;  %v16637_v53 = vadd.f32 %v16546_v61, %v8964_v5  ;;  %v9152_v14 = vsel %vm9148_vm0, %v9134_v51, 0.0 }
 0xcae   :  { %11386 = vlog2.f32 %v9091_v11  ;;  %v9135_v2 = vadd.f32 %v9107_v31, %v9007_v38  ;;  %v9153_v52 = vadd.f32 %v9152_v14, %v9151_v6  ;;  %v9009_v25 = vmax.f32 %v8993_v18, 0.0 }
 0xcaf   :  { %v9076_v3 = vmul.f32 1.442695, %v9048_v4  ;;  %v9003_v19 = vsub.f32 0.0, %v16637_v53  ;;  %v9013_v14 = vmax.f32 %v8997_v29, 0.0  ;;  %v9015_v29 = vmax.f32 %v8999_v35, 0.0 }
 0xcb0   :  { %v11373_v63 = vpop.eup %11372  ;;  %v9154_v30 = vsel %vm9148_vm0, %v9135_v2, 0.0  ;;  %v9016_v16 = vmax.f32 %v9000_v45, 0.0 }
 0xcb1   :  { %v11375_v37 = vpop.eup %11374  ;;  %v9092_v7 = vadd.f32 1.0, %v11373_v63  ;;  %11388 = vpow2.f32 %v9076_v3  ;;  %v9035_v34 = vand.u32 2147483647, %v9003_v19  ;;  %v9155_v20 = vadd.f32 %v9154_v30, %v9153_v52 }
 0xcb2   :  { %v11377_v59 = vpop.eup %11376  ;;  %v9109_v12 = vmul.f32 0.6931472, %v11375_v37  ;;  %11390 = vpow2.f32 %v9078_v15  ;;  %v9011_v37 = vmax.f32 %v8995_v33, 0.0  ;;  %v9019_v24 = vmax.f32 %v9003_v19, 0.0 }
 0xcb3   :  { %v9051_v58 = vsub.f32 0.0, %v9035_v34  ;;  %v11379_v0 = vpop.eup %11378  ;;  %v9093_v27 = vadd.f32 1.0, %v11377_v59  ;;  %11392 = vlog2.f32 %v9092_v7  ;;  %v9012_v34 = vmax.f32 %v8996_v36, 0.0 }
 0xcb4   :  { %v9111_v21 = vmul.f32 0.6931472, %v11379_v0  ;;  %v9136_v54 = vadd.f32 %v9109_v12, %v9008_v10 }
 0xcb5   :  { %v9082_v49 = vmul.f32 1.442695, %v9051_v58  ;;  %11394 = vlog2.f32 %v9093_v27 }
 0xcb6   :  { %v9137_v48 = vadd.f32 %v9111_v21, %v9009_v25  ;;  %v9156_v23 = vsel %vm9148_vm0, %v9136_v54, 0.0 }
 0xcb7   :  { %11396 = vpow2.f32 %v9082_v49  ;;  %v9157_v4 = vadd.f32 %v9156_v23, %v9155_v20 }
 0xcb8   :  { %v11381_v46 = vpop.eup %11380  ;;  %v8960_v47 = vpop.xlane.xlu0 %8959  ;;  %v9158_v55 = vsel %vm9148_vm0, %v9137_v48, 0.0 }
 0xcb9   :  { %v16652_v60 = vadd.f32 %v16546_v61, %v8960_v47  ;;  %v11383_v9 = vpop.eup %11382  ;;  %v9094_v13 = vadd.f32 1.0, %v11381_v46  ;;  %v9159_v56 = vadd.f32 %v9158_v55, %v9157_v4 }
 0xcba   :  { %v11385_v17 = vpop.eup %11384  ;;  %v9095_v61 = vadd.f32 1.0, %v11383_v9 }
 0xcbb   :  { %v9002_v28 = vsub.f32 0.0, %v16652_v60  ;;  %v11387_v11 = vpop.eup %11386  ;;  %v9113_v39 = vmul.f32 0.6931472, %v11385_v17  ;;  %11398 = vlog2.f32 %v9094_v13 }
 0xcbc   :  { %v9115_v44 = vmul.f32 0.6931472, %v11387_v11  ;;  %11400 = vlog2.f32 %v9095_v61  ;;  %v9017_v61 = vmax.f32 %v9001_v50, 0.0 }
 0xcbd   :  { %v9034_v5 = vand.u32 2147483647, %v9002_v28  ;;  %v9138_v41 = vadd.f32 %v9113_v39, %v9010_v57  ;;  %v9018_v45 = vmax.f32 %v9002_v28, 0.0 }
 0xcbe   :  { %v11389_v40 = vpop.eup %11388  ;;  %v9139_v31 = vadd.f32 %v9115_v44, %v9011_v37 }
 0xcbf   :  { %v9050_v18 = vsub.f32 0.0, %v9034_v5  ;;  %v11391_v63 = vpop.eup %11390  ;;  %v9096_v3 = vadd.f32 1.0, %v11389_v40  ;;  %v9160_v7 = vsel %vm9148_vm0, %v9138_v41, 0.0 }
 0xcc0   :  { %v11393_v15 = vpop.eup %11392  ;;  %v9097_v32 = vadd.f32 1.0, %v11391_v63  ;;  %v9161_v6 = vadd.f32 %v9160_v7, %v9159_v56  ;;  %v9162_v12 = vsel %vm9148_vm0, %v9139_v31, 0.0 }
 0xcc1   :  { %v9080_v51 = vmul.f32 1.442695, %v9050_v18  ;;  %v9117_v42 = vmul.f32 0.6931472, %v11393_v15 }
 0xcc2   :  { %v11395_v59 = vpop.eup %11394  ;;  %v9163_v33 = vadd.f32 %v9162_v12, %v9161_v6 }
 0xcc3   :  { %11402 = vpow2.f32 %v9080_v51  ;;  %v9119_v58 = vmul.f32 0.6931472, %v11395_v59  ;;  %v9140_v0 = vadd.f32 %v9117_v42, %v9012_v34 }
 0xcc4   :  { %11404 = vlog2.f32 %v9096_v3  ;;  %v11397_v38 = vpop.eup %11396 }
 0xcc5   :  { %11406 = vlog2.f32 %v9097_v32  ;;  %v9099_v2 = vadd.f32 1.0, %v11397_v38  ;;  %v9141_v27 = vadd.f32 %v9119_v58, %v9013_v14  ;;  %v9164_v52 = vsel %vm9148_vm0, %v9140_v0, 0.0 }
 0xcc6   :  { %v9165_v49 = vadd.f32 %v9164_v52, %v9163_v33 }
 0xcc7   :  { %11408 = vlog2.f32 %v9099_v2  ;;  %v9166_v47 = vsel %vm9148_vm0, %v9141_v27, 0.0 }
 0xcc8   :  { %v11399_v8 = vpop.eup %11398  ;;  %v9167_v62 = vadd.f32 %v9166_v47, %v9165_v49 }
 0xcc9   :  { %v9121_v10 = vmul.f32 0.6931472, %v11399_v8  ;;  %v11401_v46 = vpop.eup %11400 }
 0xcca   :  { %v9123_v21 = vmul.f32 0.6931472, %v11401_v46 }
 0xccb   :  { %v9142_v54 = vadd.f32 %v9121_v10, %v9014_v1 }
 0xccc   :  { %v9143_v13 = vadd.f32 %v9123_v21, %v9015_v29 }
 0xccd   :  { %v9168_v17 = vsel %vm9148_vm0, %v9142_v54, 0.0 }
 0xcce   :  { %v9169_v22 = vadd.f32 %v9168_v17, %v9167_v62  ;;  %v9170_v48 = vsel %vm9148_vm0, %v9143_v13, 0.0 }
 0xcd0   :  { %v11403_v36 = vpop.eup %11402  ;;  %v9171_v39 = vadd.f32 %v9170_v48, %v9169_v22 }
 0xcd1   :  { %v9098_v9 = vadd.f32 1.0, %v11403_v36  ;;  %v11405_v30 = vpop.eup %11404 }
 0xcd2   :  { %v9125_v25 = vmul.f32 0.6931472, %v11405_v30  ;;  %v11407_v20 = vpop.eup %11406 }
 0xcd3   :  { %11410 = vlog2.f32 %v9098_v9  ;;  %v9127_v23 = vmul.f32 0.6931472, %v11407_v20 }
 0xcd4   :  { %v9144_v11 = vadd.f32 %v9125_v25, %v9016_v16  ;;  %v11409_v26 = vpop.eup %11408 }
 0xcd5   :  { %v9145_v35 = vadd.f32 %v9127_v23, %v9017_v61  ;;  %v9131_v4 = vmul.f32 0.6931472, %v11409_v26 }
 0xcd6   :  { %v9172_v5 = vsel %vm9148_vm0, %v9144_v11, 0.0 }
 0xcd7   :  { %v9173_v40 = vadd.f32 %v9172_v5, %v9171_v39  ;;  %v9174_v18 = vsel %vm9148_vm0, %v9145_v35, 0.0  ;;  %v9147_v63 = vadd.f32 %v9131_v4, %v9019_v24 }
 0xcd9   :  { %v9175_v44 = vadd.f32 %v9174_v18, %v9173_v40  ;;  %v9178_v3 = vsel %vm9148_vm0, %v9147_v63, 0.0 }
 0xce0   :  { %v11411_v57 = vpop.eup %11410 }
 0xce1   :  { %v9129_v55 = vmul.f32 0.6931472, %v11411_v57 }
 0xce3   :  { %v9146_v43 = vadd.f32 %v9129_v55, %v9018_v45 }
 0xce5   :  { %v9176_v50 = vsel %vm9148_vm0, %v9146_v43, 0.0 }
 0xce6   :  { %v9177_v41 = vadd.f32 %v9176_v50, %v9175_v44 }
 0xce8   :  { %v9179_v51 = vadd.f32 %v9178_v3, %v9177_v41 }
 0xcea   :  { %v9180_v15 = vrot.slane %v9179_v51, 4 }
 0xcec   :  { %v9181_v37 = vadd.f32 %v9180_v15, %v9179_v51 }
 0xcee   :  { %v9182_v56 = vrot.slane %v9181_v37, 2 }
 0xcf0   :  { %v9183_v31 = vadd.f32 %v9182_v56, %v9181_v37 }
 0xcf2   :  { %v9184_v7 = vrot.slane %v9183_v31, 1 }
 0xcf4   :  { %v9185_v53 = vadd.f32 %v9184_v7, %v9183_v31 }
 0xcf6   :  { %v9186_v19 = vmul.f32 0.0078125, %v9185_v53 }
 0xcf8   :  { %9188 = vst.msk [vmem:[#allocation20] sm:$0x1] %vm9187_vm1, %v9186_v19 }
 0xcf9   :  { %11643 = shalt.err (!%p11640_p3)
}
 0xcfa   :  { %9210 = dma.vmem_to_hbm [thread:$0]  %s9208_s26, 16, %s16715_s20, [#allocation21]  }
 0xcfb   :  { %11668 = dma.done.wait [#allocation10], 2048  }
 0xcfc   :  { %11669 = vsyncadd [#allocation10], 4294965248 }
 0xcfd   :  { %11670 = dma.done.wait [#allocation21], 16  }
 0xcfe   :  { %11671 = vsyncadd [#allocation21], 4294967280 }
 0xcff   :  { %9217 = vsyncpa [#allocation9], 1 }
 0xd00   :  { %9218 = vsyncpa [#allocation12], 1 }
 0xd01   :  { %9219 = vsyncpa [#allocation15], 1 }
 0xd02   :  { %9220 = vsyncpa [#allocation18], 1 }
 0xd03   :  { %9221 = vsyncpa [#allocation10], 1 }
 0xd04   :  { %9222 = vsyncpa [#allocation21], 1 }
 0xd05   :  { %9223 = vsyncmov [#allocation6] }
 0xd08   :  { %s9224_s5 = vpop.sfrf %9223 }
 0xd09   :  { %p9772_p4 = scmp.ne.s32.totalorder %s9224_s5, 0 }
 0xd0b   :  { %9228 = shalt.err (%p9772_p4)  }
 0xd0c   :  { %9230 = vsyncmov [#allocation6 + $0x1] }
 0xd0f   :  { %s9231_s13 = vpop.sfrf %9230 }
 0xd10   :  { %p9773_p5 = scmp.ne.s32.totalorder %s9231_s13, 0 }
 0xd12   :  { %9235 = shalt.err (%p9773_p5)  }
 0xd13   :  { %9237 = vsyncmov [#allocation6 + $0x2] }
 0xd16   :  { %s9238_s20 = vpop.sfrf %9237 }
 0xd17   :  { %p9774_p6 = scmp.ne.s32.totalorder %s9238_s20, 0 }
 0xd19   :  { %9242 = shalt.err (%p9774_p6)  }
 0xd1a   :  { %9244 = vsyncmov [#allocation6 + $0x3] }
 0xd1d   :  { %s9245_s4 = vpop.sfrf %9244 }
 0xd1e   :  { %p9775_p7 = scmp.ne.s32.totalorder %s9245_s4, 0 }
 0xd20   :  { %9249 = shalt.err (%p9775_p7)  }

</bundles_post_ra>
